<compile_context>
chip_gen: v5e
topology: v5e:2x2
jax: 0.10.0
libtpu: 0.0.40
codegen_flags: <defaults>
</compile_context>

<pallas_src>
import jax
import jax.numpy as jnp
from jax.experimental import pallas as pl
from jax.experimental.pallas import tpu as pltpu

INPUT_DIM = 5
HIDDEN_DIM = 50
OUTPUT_DIM = 1
NUM_LAYERS = 2   # kernel hardcodes the 2-layer structure of the module
H_PAD = 128      # per-gate lane-padded slab width


# ----------------------------- weight packing (wrapper side) -----------------------------

def _pack_gate_weights(w, hidden_dim, hp, k_pad):
    """PyTorch (4H, K) gate-stacked weight -> fused (k_pad, 4*hp), gate order i,f,o,g.

    Output lanes per gate are padded H->hp; the contraction dim is padded K->k_pad with zeros.
    """
    k = w.shape[1]
    wg = w.reshape(4, hidden_dim, k)               # PyTorch gate order: i, f, g, o
    wg = wg[jnp.array([0, 1, 3, 2])]               # -> i, f, o, g (one sigmoid slab + one tanh)
    wg = jnp.transpose(wg, (0, 2, 1))              # (4, K, H)
    wg = jnp.pad(wg, ((0, 0), (0, k_pad - k), (0, hp - hidden_dim)))
    wg = jnp.transpose(wg, (1, 0, 2)).reshape(k_pad, 4 * hp)
    return wg


def _pack_gate_bias(b_ih, b_hh, hidden_dim, hp):
    """Combined PyTorch biases -> fused (1, 4*hp) row, gate order i,f,o,g, lane-padded."""
    b = (b_ih + b_hh).reshape(4, hidden_dim)
    b = b[jnp.array([0, 1, 3, 2])]
    b = jnp.pad(b, ((0, 0), (0, hp - hidden_dim)))
    return b.reshape(1, 4 * hp)


# ----------------------------------- Pallas forward -----------------------------------

def einfaches_lstm_forward(x, pt_params):
    """x: (B, T, D) float32.  pt_params: dict of PyTorch-shaped parameters."""
    B, T, D = x.shape
    H = HIDDEN_DIM
    O = OUTPUT_DIM
    HP = H_PAD
    G3 = 3 * HP
    BP = ((B + 7) // 8) * 8          # batch padded to full sublane groups
    DP = ((D + 7) // 8) * 8          # input-feature dim padded to a sublane group

    # ---- pack weights (off-chain, wrapper side) ----
    wih0 = _pack_gate_weights(pt_params["weight_ih_l0"], H, HP, DP)       # (DP, 4*HP)
    whh0 = _pack_gate_weights(pt_params["weight_hh_l0"], H, HP, HP)       # (HP, 4*HP)
    b0   = _pack_gate_bias(pt_params["bias_ih_l0"], pt_params["bias_hh_l0"], H, HP)
    wih1 = _pack_gate_weights(pt_params["weight_ih_l1"], H, HP, HP)       # (HP, 4*HP)
    whh1 = _pack_gate_weights(pt_params["weight_hh_l1"], H, HP, HP)       # (HP, 4*HP)
    rhs1 = jnp.concatenate([wih1, whh1], axis=0)                          # (2*HP, 4*HP) stacked
    b1   = _pack_gate_bias(pt_params["bias_ih_l1"], pt_params["bias_hh_l1"], H, HP)
    wfc  = jnp.pad(pt_params["fc_weight"].T, ((0, HP - H), (0, 0)))       # (HP, O)
    bfc  = pt_params["fc_bias"].reshape(1, O)                             # (1, O)

    # Time-major, sublane/lane-padded input: row t*BP + b == x[b, t, :] (zero padded).
    x_tm = jnp.transpose(x, (1, 0, 2))                                    # (T, B, D)
    x_tm = jnp.pad(x_tm, ((0, 0), (0, BP - B), (0, DP - D)))              # (T, BP, DP)
    x_flat = x_tm.reshape(T * BP, DP)

    def kernel(xf_ref,                         # (T*BP, DP)
               wih0_ref, whh0_ref, b0_ref,     # (DP,4HP), (HP,4HP), (1,4HP)
               rhs1_ref, b1_ref,               # (2HP,4HP), (1,4HP)
               wfc_ref, bfc_ref,               # (HP,O), (1,O)
               out_ref,                        # (B, O)
               zx0_ref):                       # scratch: (T*BP, 4HP) layer-0 input projections

        def cell(z, c):
            # z: (BP, 4*HP) fused pre-activation; gate slabs [i | f | o | g], each HP lanes wide.
            s = jax.nn.sigmoid(z[:, :G3])          # one EUP slab for i, f, o
            i_g = s[:, 0:HP]
            f_g = s[:, HP:2 * HP]
            o_g = s[:, 2 * HP:G3]
            g_g = jnp.tanh(z[:, G3:])
            c_new = f_g * c + i_g * g_g
            h_new = o_g * jnp.tanh(c_new)
            return h_new, c_new

        # ---- Layer 0: batched input projections for all timesteps (bias folded, off-chain) ----
        zx0_ref[...] = (jnp.dot(xf_ref[...], wih0_ref[...],
                                preferred_element_type=jnp.float32) + b0_ref[...])

        # ---- Wavefront recurrence over both layers (fully unrolled; state stays in vregs) ----
        # Peeled layer-0 step 0: zero initial state => z == zx0[0], no recurrent dot.
        h0, c0 = cell(zx0_ref[pl.ds(0, BP), :], jnp.zeros((BP, HP), jnp.float32))
        h1 = jnp.zeros((BP, HP), jnp.float32)
        c1 = jnp.zeros((BP, HP), jnp.float32)

        for t in range(1, T):
            # Layer-0 step t (depends on h0_{t-1}); aligned full-tile read of zx0[t].
            z0 = zx0_ref[pl.ds(t * BP, BP), :] + jnp.dot(
                h0, whh0_ref[...], preferred_element_type=jnp.float32)
            # Layer-1 step t-1 (depends on h0_{t-1}, h1_{t-2}) -- independent of z0, overlaps.
            if t == 1:
                # Peeled: h1_{-1} == 0, only the wih1 half of the stacked RHS is needed.
                z1 = jnp.dot(h0, rhs1_ref[pl.ds(0, HP), :],
                             preferred_element_type=jnp.float32) + b1_ref[...]
            else:
                lhs1 = jnp.concatenate([h0, h1], axis=1)          # (BP, 2*HP), 128-aligned concat
                z1 = jnp.dot(lhs1, rhs1_ref[...],
                             preferred_element_type=jnp.float32) + b1_ref[...]
            h0_next, c0 = cell(z0, c0)
            h1, c1 = cell(z1, c1)
            h0 = h0_next

        # Final wavefront step: layer-1 step T-1.
        lhs1 = jnp.concatenate([h0, h1], axis=1)
        z1 = jnp.dot(lhs1, rhs1_ref[...], preferred_element_type=jnp.float32) + b1_ref[...]
        h1, c1 = cell(z1, c1)

        # ---- fc on the last timestep's top-layer hidden state (padded rows/lanes are zero) ----
        y = jnp.dot(h1, wfc_ref[...], preferred_element_type=jnp.float32) + bfc_ref[...]
        out_ref[...] = y[:B, :].astype(out_ref.dtype)

    vmem = pl.BlockSpec(memory_space=pltpu.MemorySpace.VMEM)
    out = pl.pallas_call(
        kernel,
        out_shape=jax.ShapeDtypeStruct((B, O), x.dtype),
        in_specs=[vmem] * 8,
        out_specs=vmem,
        scratch_shapes=[
            pltpu.VMEM((T * BP, 4 * HP), jnp.float32),   # layer-0 fused input projections
        ],
    )(x_flat, wih0, whh0, b0, rhs1, b1, wfc, bfc)
    return out


# ------------------------- pure-JAX reference (for validation) -------------------------

def _lstm_layer_ref(x, w_ih, w_hh, b_ih, b_hh):
    """x: (B, T, Din) -> (B, T, H), PyTorch LSTM cell semantics."""
    H = w_hh.shape[1]
    B = x.shape[0]

    def cell(carry, x_t):
        h, c = carry
        gates = x_t @ w_ih.T + h @ w_hh.T + b_ih + b_hh
        i, f, g, o = jnp.split(gates, 4, axis=-1)
        i = jax.nn.sigmoid(i)
        f = jax.nn.sigmoid(f)
        g = jnp.tanh(g)
        o = jax.nn.sigmoid(o)
        c = f * c + i * g
        h = o * jnp.tanh(c)
        return (h, c), h

    h0 = jnp.zeros((B, H), jnp.float32)
    c0 = jnp.zeros((B, H), jnp.float32)
    _, hs = jax.lax.scan(cell, (h0, c0), jnp.transpose(x, (1, 0, 2)))
    return jnp.transpose(hs, (1, 0, 2))


def einfaches_lstm_ref(x, p):
    h = _lstm_layer_ref(x, p["weight_ih_l0"], p["weight_hh_l0"], p["bias_ih_l0"], p["bias_hh_l0"])
    h = _lstm_layer_ref(h, p["weight_ih_l1"], p["weight_hh_l1"], p["bias_ih_l1"], p["bias_hh_l1"])
    last = h[:, -1, :]
    return last @ p["fc_weight"].T + p["fc_bias"]


# ----------------------------------------- main -----------------------------------------

if __name__ == "__main__":
    key = jax.random.PRNGKey(0)
    B, T, D, H, O = 2, 8, INPUT_DIM, HIDDEN_DIM, OUTPUT_DIM

    keys = jax.random.split(key, 12)
    u = lambda k, shape: jax.random.uniform(k, shape, jnp.float32, -0.1, 0.1)

    pt_params = {
        "weight_ih_l0": u(keys[0], (4 * H, D)),
        "weight_hh_l0": u(keys[1], (4 * H, H)),
        "bias_ih_l0":   u(keys[2], (4 * H,)),
        "bias_hh_l0":   u(keys[3], (4 * H,)),
        "weight_ih_l1": u(keys[4], (4 * H, H)),
        "weight_hh_l1": u(keys[5], (4 * H, H)),
        "bias_ih_l1":   u(keys[6], (4 * H,)),
        "bias_hh_l1":   u(keys[7], (4 * H,)),
        "fc_weight":    u(keys[8], (O, H)),
        "fc_bias":      u(keys[9], (O,)),
    }
    x = jax.random.normal(keys[10], (B, T, D), jnp.float32)

    out = jax.block_until_ready(einfaches_lstm_forward(x, pt_params))
    ref = jax.block_until_ready(einfaches_lstm_ref(x, pt_params))

    assert out.shape == (B, O), out.shape
    assert jnp.allclose(out, ref, atol=1e-4, rtol=1e-4), (out, ref)
    print("KERNEL_OK")
</pallas_src>

<mosaic_0001>
module attributes {stable_mosaic.version = 11 : i64} {
  func.func @kernel(%arg0: memref<64x8xf32, #tpu.memory_space<vmem>>, %arg1: memref<8x512xf32, #tpu.memory_space<vmem>>, %arg2: memref<128x512xf32, #tpu.memory_space<vmem>>, %arg3: memref<1x512xf32, #tpu.memory_space<vmem>>, %arg4: memref<256x512xf32, #tpu.memory_space<vmem>>, %arg5: memref<1x512xf32, #tpu.memory_space<vmem>>, %arg6: memref<128x1xf32, #tpu.memory_space<vmem>>, %arg7: memref<1x1xf32, #tpu.memory_space<vmem>>, %arg8: memref<2x1xf32, #tpu.memory_space<vmem>>, %arg9: memref<64x512xf32, #tpu.memory_space<vmem>>) attributes {dimension_semantics = [], scalar_prefetch = 0 : i64, scratch_operands = 1 : i64, tpu.core_type = #tpu.core_type<tc>} {
    %c0 = arith.constant 0 : index
    %c0_0 = arith.constant 0 : index
    %0 = vector.load %arg0[%c0, %c0_0] : memref<64x8xf32, #tpu.memory_space<vmem>>, vector<64x8xf32>
    %c0_1 = arith.constant 0 : index
    %c0_2 = arith.constant 0 : index
    %1 = vector.load %arg1[%c0_1, %c0_2] : memref<8x512xf32, #tpu.memory_space<vmem>>, vector<8x512xf32>
    %cst = arith.constant dense<0.000000e+00> : vector<64x512xf32>
    %2 = tpu.matmul %0, %1, %cst {dimension_numbers = #tpu.dot_dimension_numbers<[1], [0], [0], [1], [0, 0, 1, 1], [], []>} : vector<64x8xf32>, vector<8x512xf32>, vector<64x512xf32> -> vector<64x512xf32>
    %c0_3 = arith.constant 0 : index
    %c0_4 = arith.constant 0 : index
    %3 = vector.load %arg3[%c0_3, %c0_4] : memref<1x512xf32, #tpu.memory_space<vmem>>, vector<1x512xf32>
    %4 = vector.broadcast %3 : vector<1x512xf32> to vector<64x512xf32>
    %5 = arith.addf %2, %4 : vector<64x512xf32>
    %c0_5 = arith.constant 0 : index
    %c0_6 = arith.constant 0 : index
    %6 = vector.load %arg9[%c0_5, %c0_6] : memref<64x512xf32, #tpu.memory_space<vmem>>, vector<64x512xf32>
    tpu.vector_store %arg9[%c0_5, %c0_6], %5 {strides = array<i32>} : memref<64x512xf32, #tpu.memory_space<vmem>>, vector<64x512xf32>,
    %c0_7 = arith.constant 0 : index
    %c0_8 = arith.constant 0 : index
    %7 = vector.load %arg9[%c0_7, %c0_8] : memref<64x512xf32, #tpu.memory_space<vmem>>, vector<8x512xf32>
    %cst_9 = arith.constant 0.000000e+00 : f32
    %8 = vector.broadcast %cst_9 : f32 to vector<8x128xf32>
    %9 = vector.extract_strided_slice %7 {offsets = [0, 0], sizes = [8, 384], strides = [1, 1]} : vector<8x512xf32> to vector<8x384xf32>
    %10 = arith.negf %9 : vector<8x384xf32>
    %11 = math.exp %10 : vector<8x384xf32>
    %cst_10 = arith.constant 1.000000e+00 : f32
    %12 = vector.broadcast %cst_10 : f32 to vector<8x384xf32>
    %13 = arith.addf %12, %11 : vector<8x384xf32>
    %14 = arith.divf %12, %13 : vector<8x384xf32>
    %15 = vector.extract_strided_slice %14 {offsets = [0, 0], sizes = [8, 128], strides = [1, 1]} : vector<8x384xf32> to vector<8x128xf32>
    %16 = vector.extract_strided_slice %14 {offsets = [0, 128], sizes = [8, 128], strides = [1, 1]} : vector<8x384xf32> to vector<8x128xf32>
    %17 = vector.extract_strided_slice %14 {offsets = [0, 256], sizes = [8, 128], strides = [1, 1]} : vector<8x384xf32> to vector<8x128xf32>
    %18 = vector.extract_strided_slice %7 {offsets = [0, 384], sizes = [8, 128], strides = [1, 1]} : vector<8x512xf32> to vector<8x128xf32>
    %19 = math.tanh %18 : vector<8x128xf32>
    %20 = arith.mulf %16, %8 : vector<8x128xf32>
    %21 = arith.mulf %15, %19 : vector<8x128xf32>
    %22 = arith.addf %20, %21 : vector<8x128xf32>
    %23 = math.tanh %22 : vector<8x128xf32>
    %24 = arith.mulf %17, %23 : vector<8x128xf32>
    %cst_11 = arith.constant 0.000000e+00 : f32
    %25 = vector.broadcast %cst_11 : f32 to vector<8x128xf32>
    %c8 = arith.constant 8 : index
    %c0_12 = arith.constant 0 : index
    %26 = vector.load %arg9[%c8, %c0_12] : memref<64x512xf32, #tpu.memory_space<vmem>>, vector<8x512xf32>
    %c0_13 = arith.constant 0 : index
    %c0_14 = arith.constant 0 : index
    %27 = vector.load %arg2[%c0_13, %c0_14] : memref<128x512xf32, #tpu.memory_space<vmem>>, vector<128x512xf32>
    %cst_15 = arith.constant dense<0.000000e+00> : vector<8x512xf32>
    %28 = tpu.matmul %24, %27, %cst_15 {dimension_numbers = #tpu.dot_dimension_numbers<[1], [0], [0], [1], [0, 0, 1, 1], [], []>} : vector<8x128xf32>, vector<128x512xf32>, vector<8x512xf32> -> vector<8x512xf32>
    %29 = arith.addf %26, %28 : vector<8x512xf32>
    %c0_16 = arith.constant 0 : index
    %c0_17 = arith.constant 0 : index
    %30 = vector.load %arg4[%c0_16, %c0_17] : memref<256x512xf32, #tpu.memory_space<vmem>>, vector<128x512xf32>
    %cst_18 = arith.constant dense<0.000000e+00> : vector<8x512xf32>
    %31 = tpu.matmul %24, %30, %cst_18 {dimension_numbers = #tpu.dot_dimension_numbers<[1], [0], [0], [1], [0, 0, 1, 1], [], []>} : vector<8x128xf32>, vector<128x512xf32>, vector<8x512xf32> -> vector<8x512xf32>
    %c0_19 = arith.constant 0 : index
    %c0_20 = arith.constant 0 : index
    %32 = vector.load %arg5[%c0_19, %c0_20] : memref<1x512xf32, #tpu.memory_space<vmem>>, vector<1x512xf32>
    %33 = vector.broadcast %32 : vector<1x512xf32> to vector<8x512xf32>
    %34 = arith.addf %31, %33 : vector<8x512xf32>
    %35 = vector.extract_strided_slice %29 {offsets = [0, 0], sizes = [8, 384], strides = [1, 1]} : vector<8x512xf32> to vector<8x384xf32>
    %36 = arith.negf %35 : vector<8x384xf32>
    %37 = math.exp %36 : vector<8x384xf32>
    %cst_21 = arith.constant 1.000000e+00 : f32
    %38 = vector.broadcast %cst_21 : f32 to vector<8x384xf32>
    %39 = arith.addf %38, %37 : vector<8x384xf32>
    %40 = arith.divf %38, %39 : vector<8x384xf32>
    %41 = vector.extract_strided_slice %40 {offsets = [0, 0], sizes = [8, 128], strides = [1, 1]} : vector<8x384xf32> to vector<8x128xf32>
    %42 = vector.extract_strided_slice %40 {offsets = [0, 128], sizes = [8, 128], strides = [1, 1]} : vector<8x384xf32> to vector<8x128xf32>
    %43 = vector.extract_strided_slice %40 {offsets = [0, 256], sizes = [8, 128], strides = [1, 1]} : vector<8x384xf32> to vector<8x128xf32>
    %44 = vector.extract_strided_slice %29 {offsets = [0, 384], sizes = [8, 128], strides = [1, 1]} : vector<8x512xf32> to vector<8x128xf32>
    %45 = math.tanh %44 : vector<8x128xf32>
    %46 = arith.mulf %42, %22 : vector<8x128xf32>
    %47 = arith.mulf %41, %45 : vector<8x128xf32>
    %48 = arith.addf %46, %47 : vector<8x128xf32>
    %49 = math.tanh %48 : vector<8x128xf32>
    %50 = arith.mulf %43, %49 : vector<8x128xf32>
    %51 = vector.extract_strided_slice %34 {offsets = [0, 0], sizes = [8, 384], strides = [1, 1]} : vector<8x512xf32> to vector<8x384xf32>
    %52 = arith.negf %51 : vector<8x384xf32>
    %53 = math.exp %52 : vector<8x384xf32>
    %cst_22 = arith.constant 1.000000e+00 : f32
    %54 = vector.broadcast %cst_22 : f32 to vector<8x384xf32>
    %55 = arith.addf %54, %53 : vector<8x384xf32>
    %56 = arith.divf %54, %55 : vector<8x384xf32>
    %57 = vector.extract_strided_slice %56 {offsets = [0, 0], sizes = [8, 128], strides = [1, 1]} : vector<8x384xf32> to vector<8x128xf32>
    %58 = vector.extract_strided_slice %56 {offsets = [0, 128], sizes = [8, 128], strides = [1, 1]} : vector<8x384xf32> to vector<8x128xf32>
    %59 = vector.extract_strided_slice %56 {offsets = [0, 256], sizes = [8, 128], strides = [1, 1]} : vector<8x384xf32> to vector<8x128xf32>
    %60 = vector.extract_strided_slice %34 {offsets = [0, 384], sizes = [8, 128], strides = [1, 1]} : vector<8x512xf32> to vector<8x128xf32>
    %61 = math.tanh %60 : vector<8x128xf32>
    %62 = arith.mulf %58, %25 : vector<8x128xf32>
    %63 = arith.mulf %57, %61 : vector<8x128xf32>
    %64 = arith.addf %62, %63 : vector<8x128xf32>
    %65 = math.tanh %64 : vector<8x128xf32>
    %66 = arith.mulf %59, %65 : vector<8x128xf32>
    %c16 = arith.constant 16 : index
    %c0_23 = arith.constant 0 : index
    %67 = vector.load %arg9[%c16, %c0_23] : memref<64x512xf32, #tpu.memory_space<vmem>>, vector<8x512xf32>
    %c0_24 = arith.constant 0 : index
    %c0_25 = arith.constant 0 : index
    %68 = vector.load %arg2[%c0_24, %c0_25] : memref<128x512xf32, #tpu.memory_space<vmem>>, vector<128x512xf32>
    %cst_26 = arith.constant dense<0.000000e+00> : vector<8x512xf32>
    %69 = tpu.matmul %50, %68, %cst_26 {dimension_numbers = #tpu.dot_dimension_numbers<[1], [0], [0], [1], [0, 0, 1, 1], [], []>} : vector<8x128xf32>, vector<128x512xf32>, vector<8x512xf32> -> vector<8x512xf32>
    %70 = arith.addf %67, %69 : vector<8x512xf32>
    %71 = tpu.concatenate %50, %66 in 1 : vector<8x128xf32>, vector<8x128xf32> -> vector<8x256xf32>
    %c0_27 = arith.constant 0 : index
    %c0_28 = arith.constant 0 : index
    %72 = vector.load %arg4[%c0_27, %c0_28] : memref<256x512xf32, #tpu.memory_space<vmem>>, vector<256x512xf32>
    %cst_29 = arith.constant dense<0.000000e+00> : vector<8x512xf32>
    %73 = tpu.matmul %71, %72, %cst_29 {dimension_numbers = #tpu.dot_dimension_numbers<[1], [0], [0], [1], [0, 0, 1, 1], [], []>} : vector<8x256xf32>, vector<256x512xf32>, vector<8x512xf32> -> vector<8x512xf32>
    %c0_30 = arith.constant 0 : index
    %c0_31 = arith.constant 0 : index
    %74 = vector.load %arg5[%c0_30, %c0_31] : memref<1x512xf32, #tpu.memory_space<vmem>>, vector<1x512xf32>
    %75 = vector.broadcast %74 : vector<1x512xf32> to vector<8x512xf32>
    %76 = arith.addf %73, %75 : vector<8x512xf32>
    %77 = vector.extract_strided_slice %70 {offsets = [0, 0], sizes = [8, 384], strides = [1, 1]} : vector<8x512xf32> to vector<8x384xf32>
    %78 = arith.negf %77 : vector<8x384xf32>
    %79 = math.exp %78 : vector<8x384xf32>
    %cst_32 = arith.constant 1.000000e+00 : f32
    %80 = vector.broadcast %cst_32 : f32 to vector<8x384xf32>
    %81 = arith.addf %80, %79 : vector<8x384xf32>
    %82 = arith.divf %80, %81 : vector<8x384xf32>
    %83 = vector.extract_strided_slice %82 {offsets = [0, 0], sizes = [8, 128], strides = [1, 1]} : vector<8x384xf32> to vector<8x128xf32>
    %84 = vector.extract_strided_slice %82 {offsets = [0, 128], sizes = [8, 128], strides = [1, 1]} : vector<8x384xf32> to vector<8x128xf32>
    %85 = vector.extract_strided_slice %82 {offsets = [0, 256], sizes = [8, 128], strides = [1, 1]} : vector<8x384xf32> to vector<8x128xf32>
    %86 = vector.extract_strided_slice %70 {offsets = [0, 384], sizes = [8, 128], strides = [1, 1]} : vector<8x512xf32> to vector<8x128xf32>
    %87 = math.tanh %86 : vector<8x128xf32>
    %88 = arith.mulf %84, %48 : vector<8x128xf32>
    %89 = arith.mulf %83, %87 : vector<8x128xf32>
    %90 = arith.addf %88, %89 : vector<8x128xf32>
    %91 = math.tanh %90 : vector<8x128xf32>
    %92 = arith.mulf %85, %91 : vector<8x128xf32>
    %93 = vector.extract_strided_slice %76 {offsets = [0, 0], sizes = [8, 384], strides = [1, 1]} : vector<8x512xf32> to vector<8x384xf32>
    %94 = arith.negf %93 : vector<8x384xf32>
    %95 = math.exp %94 : vector<8x384xf32>
    %cst_33 = arith.constant 1.000000e+00 : f32
    %96 = vector.broadcast %cst_33 : f32 to vector<8x384xf32>
    %97 = arith.addf %96, %95 : vector<8x384xf32>
    %98 = arith.divf %96, %97 : vector<8x384xf32>
    %99 = vector.extract_strided_slice %98 {offsets = [0, 0], sizes = [8, 128], strides = [1, 1]} : vector<8x384xf32> to vector<8x128xf32>
    %100 = vector.extract_strided_slice %98 {offsets = [0, 128], sizes = [8, 128], strides = [1, 1]} : vector<8x384xf32> to vector<8x128xf32>
    %101 = vector.extract_strided_slice %98 {offsets = [0, 256], sizes = [8, 128], strides = [1, 1]} : vector<8x384xf32> to vector<8x128xf32>
    %102 = vector.extract_strided_slice %76 {offsets = [0, 384], sizes = [8, 128], strides = [1, 1]} : vector<8x512xf32> to vector<8x128xf32>
    %103 = math.tanh %102 : vector<8x128xf32>
    %104 = arith.mulf %100, %64 : vector<8x128xf32>
    %105 = arith.mulf %99, %103 : vector<8x128xf32>
    %106 = arith.addf %104, %105 : vector<8x128xf32>
    %107 = math.tanh %106 : vector<8x128xf32>
    %108 = arith.mulf %101, %107 : vector<8x128xf32>
    %c24 = arith.constant 24 : index
    %c0_34 = arith.constant 0 : index
    %109 = vector.load %arg9[%c24, %c0_34] : memref<64x512xf32, #tpu.memory_space<vmem>>, vector<8x512xf32>
    %c0_35 = arith.constant 0 : index
    %c0_36 = arith.constant 0 : index
    %110 = vector.load %arg2[%c0_35, %c0_36] : memref<128x512xf32, #tpu.memory_space<vmem>>, vector<128x512xf32>
    %cst_37 = arith.constant dense<0.000000e+00> : vector<8x512xf32>
    %111 = tpu.matmul %92, %110, %cst_37 {dimension_numbers = #tpu.dot_dimension_numbers<[1], [0], [0], [1], [0, 0, 1, 1], [], []>} : vector<8x128xf32>, vector<128x512xf32>, vector<8x512xf32> -> vector<8x512xf32>
    %112 = arith.addf %109, %111 : vector<8x512xf32>
    %113 = tpu.concatenate %92, %108 in 1 : vector<8x128xf32>, vector<8x128xf32> -> vector<8x256xf32>
    %c0_38 = arith.constant 0 : index
    %c0_39 = arith.constant 0 : index
    %114 = vector.load %arg4[%c0_38, %c0_39] : memref<256x512xf32, #tpu.memory_space<vmem>>, vector<256x512xf32>
    %cst_40 = arith.constant dense<0.000000e+00> : vector<8x512xf32>
    %115 = tpu.matmul %113, %114, %cst_40 {dimension_numbers = #tpu.dot_dimension_numbers<[1], [0], [0], [1], [0, 0, 1, 1], [], []>} : vector<8x256xf32>, vector<256x512xf32>, vector<8x512xf32> -> vector<8x512xf32>
    %c0_41 = arith.constant 0 : index
    %c0_42 = arith.constant 0 : index
    %116 = vector.load %arg5[%c0_41, %c0_42] : memref<1x512xf32, #tpu.memory_space<vmem>>, vector<1x512xf32>
    %117 = vector.broadcast %116 : vector<1x512xf32> to vector<8x512xf32>
    %118 = arith.addf %115, %117 : vector<8x512xf32>
    %119 = vector.extract_strided_slice %112 {offsets = [0, 0], sizes = [8, 384], strides = [1, 1]} : vector<8x512xf32> to vector<8x384xf32>
    %120 = arith.negf %119 : vector<8x384xf32>
    %121 = math.exp %120 : vector<8x384xf32>
    %cst_43 = arith.constant 1.000000e+00 : f32
    %122 = vector.broadcast %cst_43 : f32 to vector<8x384xf32>
    %123 = arith.addf %122, %121 : vector<8x384xf32>
    %124 = arith.divf %122, %123 : vector<8x384xf32>
    %125 = vector.extract_strided_slice %124 {offsets = [0, 0], sizes = [8, 128], strides = [1, 1]} : vector<8x384xf32> to vector<8x128xf32>
    %126 = vector.extract_strided_slice %124 {offsets = [0, 128], sizes = [8, 128], strides = [1, 1]} : vector<8x384xf32> to vector<8x128xf32>
    %127 = vector.extract_strided_slice %124 {offsets = [0, 256], sizes = [8, 128], strides = [1, 1]} : vector<8x384xf32> to vector<8x128xf32>
    %128 = vector.extract_strided_slice %112 {offsets = [0, 384], sizes = [8, 128], strides = [1, 1]} : vector<8x512xf32> to vector<8x128xf32>
    %129 = math.tanh %128 : vector<8x128xf32>
    %130 = arith.mulf %126, %90 : vector<8x128xf32>
    %131 = arith.mulf %125, %129 : vector<8x128xf32>
    %132 = arith.addf %130, %131 : vector<8x128xf32>
    %133 = math.tanh %132 : vector<8x128xf32>
    %134 = arith.mulf %127, %133 : vector<8x128xf32>
    %135 = vector.extract_strided_slice %118 {offsets = [0, 0], sizes = [8, 384], strides = [1, 1]} : vector<8x512xf32> to vector<8x384xf32>
    %136 = arith.negf %135 : vector<8x384xf32>
    %137 = math.exp %136 : vector<8x384xf32>
    %cst_44 = arith.constant 1.000000e+00 : f32
    %138 = vector.broadcast %cst_44 : f32 to vector<8x384xf32>
    %139 = arith.addf %138, %137 : vector<8x384xf32>
    %140 = arith.divf %138, %139 : vector<8x384xf32>
    %141 = vector.extract_strided_slice %140 {offsets = [0, 0], sizes = [8, 128], strides = [1, 1]} : vector<8x384xf32> to vector<8x128xf32>
    %142 = vector.extract_strided_slice %140 {offsets = [0, 128], sizes = [8, 128], strides = [1, 1]} : vector<8x384xf32> to vector<8x128xf32>
    %143 = vector.extract_strided_slice %140 {offsets = [0, 256], sizes = [8, 128], strides = [1, 1]} : vector<8x384xf32> to vector<8x128xf32>
    %144 = vector.extract_strided_slice %118 {offsets = [0, 384], sizes = [8, 128], strides = [1, 1]} : vector<8x512xf32> to vector<8x128xf32>
    %145 = math.tanh %144 : vector<8x128xf32>
    %146 = arith.mulf %142, %106 : vector<8x128xf32>
    %147 = arith.mulf %141, %145 : vector<8x128xf32>
    %148 = arith.addf %146, %147 : vector<8x128xf32>
    %149 = math.tanh %148 : vector<8x128xf32>
    %150 = arith.mulf %143, %149 : vector<8x128xf32>
    %c32 = arith.constant 32 : index
    %c0_45 = arith.constant 0 : index
    %151 = vector.load %arg9[%c32, %c0_45] : memref<64x512xf32, #tpu.memory_space<vmem>>, vector<8x512xf32>
    %c0_46 = arith.constant 0 : index
    %c0_47 = arith.constant 0 : index
    %152 = vector.load %arg2[%c0_46, %c0_47] : memref<128x512xf32, #tpu.memory_space<vmem>>, vector<128x512xf32>
    %cst_48 = arith.constant dense<0.000000e+00> : vector<8x512xf32>
    %153 = tpu.matmul %134, %152, %cst_48 {dimension_numbers = #tpu.dot_dimension_numbers<[1], [0], [0], [1], [0, 0, 1, 1], [], []>} : vector<8x128xf32>, vector<128x512xf32>, vector<8x512xf32> -> vector<8x512xf32>
    %154 = arith.addf %151, %153 : vector<8x512xf32>
    %155 = tpu.concatenate %134, %150 in 1 : vector<8x128xf32>, vector<8x128xf32> -> vector<8x256xf32>
    %c0_49 = arith.constant 0 : index
    %c0_50 = arith.constant 0 : index
    %156 = vector.load %arg4[%c0_49, %c0_50] : memref<256x512xf32, #tpu.memory_space<vmem>>, vector<256x512xf32>
    %cst_51 = arith.constant dense<0.000000e+00> : vector<8x512xf32>
    %157 = tpu.matmul %155, %156, %cst_51 {dimension_numbers = #tpu.dot_dimension_numbers<[1], [0], [0], [1], [0, 0, 1, 1], [], []>} : vector<8x256xf32>, vector<256x512xf32>, vector<8x512xf32> -> vector<8x512xf32>
    %c0_52 = arith.constant 0 : index
    %c0_53 = arith.constant 0 : index
    %158 = vector.load %arg5[%c0_52, %c0_53] : memref<1x512xf32, #tpu.memory_space<vmem>>, vector<1x512xf32>
    %159 = vector.broadcast %158 : vector<1x512xf32> to vector<8x512xf32>
    %160 = arith.addf %157, %159 : vector<8x512xf32>
    %161 = vector.extract_strided_slice %154 {offsets = [0, 0], sizes = [8, 384], strides = [1, 1]} : vector<8x512xf32> to vector<8x384xf32>
    %162 = arith.negf %161 : vector<8x384xf32>
    %163 = math.exp %162 : vector<8x384xf32>
    %cst_54 = arith.constant 1.000000e+00 : f32
    %164 = vector.broadcast %cst_54 : f32 to vector<8x384xf32>
    %165 = arith.addf %164, %163 : vector<8x384xf32>
    %166 = arith.divf %164, %165 : vector<8x384xf32>
    %167 = vector.extract_strided_slice %166 {offsets = [0, 0], sizes = [8, 128], strides = [1, 1]} : vector<8x384xf32> to vector<8x128xf32>
    %168 = vector.extract_strided_slice %166 {offsets = [0, 128], sizes = [8, 128], strides = [1, 1]} : vector<8x384xf32> to vector<8x128xf32>
    %169 = vector.extract_strided_slice %166 {offsets = [0, 256], sizes = [8, 128], strides = [1, 1]} : vector<8x384xf32> to vector<8x128xf32>
    %170 = vector.extract_strided_slice %154 {offsets = [0, 384], sizes = [8, 128], strides = [1, 1]} : vector<8x512xf32> to vector<8x128xf32>
    %171 = math.tanh %170 : vector<8x128xf32>
    %172 = arith.mulf %168, %132 : vector<8x128xf32>
    %173 = arith.mulf %167, %171 : vector<8x128xf32>
    %174 = arith.addf %172, %173 : vector<8x128xf32>
    %175 = math.tanh %174 : vector<8x128xf32>
    %176 = arith.mulf %169, %175 : vector<8x128xf32>
    %177 = vector.extract_strided_slice %160 {offsets = [0, 0], sizes = [8, 384], strides = [1, 1]} : vector<8x512xf32> to vector<8x384xf32>
    %178 = arith.negf %177 : vector<8x384xf32>
    %179 = math.exp %178 : vector<8x384xf32>
    %cst_55 = arith.constant 1.000000e+00 : f32
    %180 = vector.broadcast %cst_55 : f32 to vector<8x384xf32>
    %181 = arith.addf %180, %179 : vector<8x384xf32>
    %182 = arith.divf %180, %181 : vector<8x384xf32>
    %183 = vector.extract_strided_slice %182 {offsets = [0, 0], sizes = [8, 128], strides = [1, 1]} : vector<8x384xf32> to vector<8x128xf32>
    %184 = vector.extract_strided_slice %182 {offsets = [0, 128], sizes = [8, 128], strides = [1, 1]} : vector<8x384xf32> to vector<8x128xf32>
    %185 = vector.extract_strided_slice %182 {offsets = [0, 256], sizes = [8, 128], strides = [1, 1]} : vector<8x384xf32> to vector<8x128xf32>
    %186 = vector.extract_strided_slice %160 {offsets = [0, 384], sizes = [8, 128], strides = [1, 1]} : vector<8x512xf32> to vector<8x128xf32>
    %187 = math.tanh %186 : vector<8x128xf32>
    %188 = arith.mulf %184, %148 : vector<8x128xf32>
    %189 = arith.mulf %183, %187 : vector<8x128xf32>
    %190 = arith.addf %188, %189 : vector<8x128xf32>
    %191 = math.tanh %190 : vector<8x128xf32>
    %192 = arith.mulf %185, %191 : vector<8x128xf32>
    %c40 = arith.constant 40 : index
    %c0_56 = arith.constant 0 : index
    %193 = vector.load %arg9[%c40, %c0_56] : memref<64x512xf32, #tpu.memory_space<vmem>>, vector<8x512xf32>
    %c0_57 = arith.constant 0 : index
    %c0_58 = arith.constant 0 : index
    %194 = vector.load %arg2[%c0_57, %c0_58] : memref<128x512xf32, #tpu.memory_space<vmem>>, vector<128x512xf32>
    %cst_59 = arith.constant dense<0.000000e+00> : vector<8x512xf32>
    %195 = tpu.matmul %176, %194, %cst_59 {dimension_numbers = #tpu.dot_dimension_numbers<[1], [0], [0], [1], [0, 0, 1, 1], [], []>} : vector<8x128xf32>, vector<128x512xf32>, vector<8x512xf32> -> vector<8x512xf32>
    %196 = arith.addf %193, %195 : vector<8x512xf32>
    %197 = tpu.concatenate %176, %192 in 1 : vector<8x128xf32>, vector<8x128xf32> -> vector<8x256xf32>
    %c0_60 = arith.constant 0 : index
    %c0_61 = arith.constant 0 : index
    %198 = vector.load %arg4[%c0_60, %c0_61] : memref<256x512xf32, #tpu.memory_space<vmem>>, vector<256x512xf32>
    %cst_62 = arith.constant dense<0.000000e+00> : vector<8x512xf32>
    %199 = tpu.matmul %197, %198, %cst_62 {dimension_numbers = #tpu.dot_dimension_numbers<[1], [0], [0], [1], [0, 0, 1, 1], [], []>} : vector<8x256xf32>, vector<256x512xf32>, vector<8x512xf32> -> vector<8x512xf32>
    %c0_63 = arith.constant 0 : index
    %c0_64 = arith.constant 0 : index
    %200 = vector.load %arg5[%c0_63, %c0_64] : memref<1x512xf32, #tpu.memory_space<vmem>>, vector<1x512xf32>
    %201 = vector.broadcast %200 : vector<1x512xf32> to vector<8x512xf32>
    %202 = arith.addf %199, %201 : vector<8x512xf32>
    %203 = vector.extract_strided_slice %196 {offsets = [0, 0], sizes = [8, 384], strides = [1, 1]} : vector<8x512xf32> to vector<8x384xf32>
    %204 = arith.negf %203 : vector<8x384xf32>
    %205 = math.exp %204 : vector<8x384xf32>
    %cst_65 = arith.constant 1.000000e+00 : f32
    %206 = vector.broadcast %cst_65 : f32 to vector<8x384xf32>
    %207 = arith.addf %206, %205 : vector<8x384xf32>
    %208 = arith.divf %206, %207 : vector<8x384xf32>
    %209 = vector.extract_strided_slice %208 {offsets = [0, 0], sizes = [8, 128], strides = [1, 1]} : vector<8x384xf32> to vector<8x128xf32>
    %210 = vector.extract_strided_slice %208 {offsets = [0, 128], sizes = [8, 128], strides = [1, 1]} : vector<8x384xf32> to vector<8x128xf32>
    %211 = vector.extract_strided_slice %208 {offsets = [0, 256], sizes = [8, 128], strides = [1, 1]} : vector<8x384xf32> to vector<8x128xf32>
    %212 = vector.extract_strided_slice %196 {offsets = [0, 384], sizes = [8, 128], strides = [1, 1]} : vector<8x512xf32> to vector<8x128xf32>
    %213 = math.tanh %212 : vector<8x128xf32>
    %214 = arith.mulf %210, %174 : vector<8x128xf32>
    %215 = arith.mulf %209, %213 : vector<8x128xf32>
    %216 = arith.addf %214, %215 : vector<8x128xf32>
    %217 = math.tanh %216 : vector<8x128xf32>
    %218 = arith.mulf %211, %217 : vector<8x128xf32>
    %219 = vector.extract_strided_slice %202 {offsets = [0, 0], sizes = [8, 384], strides = [1, 1]} : vector<8x512xf32> to vector<8x384xf32>
    %220 = arith.negf %219 : vector<8x384xf32>
    %221 = math.exp %220 : vector<8x384xf32>
    %cst_66 = arith.constant 1.000000e+00 : f32
    %222 = vector.broadcast %cst_66 : f32 to vector<8x384xf32>
    %223 = arith.addf %222, %221 : vector<8x384xf32>
    %224 = arith.divf %222, %223 : vector<8x384xf32>
    %225 = vector.extract_strided_slice %224 {offsets = [0, 0], sizes = [8, 128], strides = [1, 1]} : vector<8x384xf32> to vector<8x128xf32>
    %226 = vector.extract_strided_slice %224 {offsets = [0, 128], sizes = [8, 128], strides = [1, 1]} : vector<8x384xf32> to vector<8x128xf32>
    %227 = vector.extract_strided_slice %224 {offsets = [0, 256], sizes = [8, 128], strides = [1, 1]} : vector<8x384xf32> to vector<8x128xf32>
    %228 = vector.extract_strided_slice %202 {offsets = [0, 384], sizes = [8, 128], strides = [1, 1]} : vector<8x512xf32> to vector<8x128xf32>
    %229 = math.tanh %228 : vector<8x128xf32>
    %230 = arith.mulf %226, %190 : vector<8x128xf32>
    %231 = arith.mulf %225, %229 : vector<8x128xf32>
    %232 = arith.addf %230, %231 : vector<8x128xf32>
    %233 = math.tanh %232 : vector<8x128xf32>
    %234 = arith.mulf %227, %233 : vector<8x128xf32>
    %c48 = arith.constant 48 : index
    %c0_67 = arith.constant 0 : index
    %235 = vector.load %arg9[%c48, %c0_67] : memref<64x512xf32, #tpu.memory_space<vmem>>, vector<8x512xf32>
    %c0_68 = arith.constant 0 : index
    %c0_69 = arith.constant 0 : index
    %236 = vector.load %arg2[%c0_68, %c0_69] : memref<128x512xf32, #tpu.memory_space<vmem>>, vector<128x512xf32>
    %cst_70 = arith.constant dense<0.000000e+00> : vector<8x512xf32>
    %237 = tpu.matmul %218, %236, %cst_70 {dimension_numbers = #tpu.dot_dimension_numbers<[1], [0], [0], [1], [0, 0, 1, 1], [], []>} : vector<8x128xf32>, vector<128x512xf32>, vector<8x512xf32> -> vector<8x512xf32>
    %238 = arith.addf %235, %237 : vector<8x512xf32>
    %239 = tpu.concatenate %218, %234 in 1 : vector<8x128xf32>, vector<8x128xf32> -> vector<8x256xf32>
    %c0_71 = arith.constant 0 : index
    %c0_72 = arith.constant 0 : index
    %240 = vector.load %arg4[%c0_71, %c0_72] : memref<256x512xf32, #tpu.memory_space<vmem>>, vector<256x512xf32>
    %cst_73 = arith.constant dense<0.000000e+00> : vector<8x512xf32>
    %241 = tpu.matmul %239, %240, %cst_73 {dimension_numbers = #tpu.dot_dimension_numbers<[1], [0], [0], [1], [0, 0, 1, 1], [], []>} : vector<8x256xf32>, vector<256x512xf32>, vector<8x512xf32> -> vector<8x512xf32>
    %c0_74 = arith.constant 0 : index
    %c0_75 = arith.constant 0 : index
    %242 = vector.load %arg5[%c0_74, %c0_75] : memref<1x512xf32, #tpu.memory_space<vmem>>, vector<1x512xf32>
    %243 = vector.broadcast %242 : vector<1x512xf32> to vector<8x512xf32>
    %244 = arith.addf %241, %243 : vector<8x512xf32>
    %245 = vector.extract_strided_slice %238 {offsets = [0, 0], sizes = [8, 384], strides = [1, 1]} : vector<8x512xf32> to vector<8x384xf32>
    %246 = arith.negf %245 : vector<8x384xf32>
    %247 = math.exp %246 : vector<8x384xf32>
    %cst_76 = arith.constant 1.000000e+00 : f32
    %248 = vector.broadcast %cst_76 : f32 to vector<8x384xf32>
    %249 = arith.addf %248, %247 : vector<8x384xf32>
    %250 = arith.divf %248, %249 : vector<8x384xf32>
    %251 = vector.extract_strided_slice %250 {offsets = [0, 0], sizes = [8, 128], strides = [1, 1]} : vector<8x384xf32> to vector<8x128xf32>
    %252 = vector.extract_strided_slice %250 {offsets = [0, 128], sizes = [8, 128], strides = [1, 1]} : vector<8x384xf32> to vector<8x128xf32>
    %253 = vector.extract_strided_slice %250 {offsets = [0, 256], sizes = [8, 128], strides = [1, 1]} : vector<8x384xf32> to vector<8x128xf32>
    %254 = vector.extract_strided_slice %238 {offsets = [0, 384], sizes = [8, 128], strides = [1, 1]} : vector<8x512xf32> to vector<8x128xf32>
    %255 = math.tanh %254 : vector<8x128xf32>
    %256 = arith.mulf %252, %216 : vector<8x128xf32>
    %257 = arith.mulf %251, %255 : vector<8x128xf32>
    %258 = arith.addf %256, %257 : vector<8x128xf32>
    %259 = math.tanh %258 : vector<8x128xf32>
    %260 = arith.mulf %253, %259 : vector<8x128xf32>
    %261 = vector.extract_strided_slice %244 {offsets = [0, 0], sizes = [8, 384], strides = [1, 1]} : vector<8x512xf32> to vector<8x384xf32>
    %262 = arith.negf %261 : vector<8x384xf32>
    %263 = math.exp %262 : vector<8x384xf32>
    %cst_77 = arith.constant 1.000000e+00 : f32
    %264 = vector.broadcast %cst_77 : f32 to vector<8x384xf32>
    %265 = arith.addf %264, %263 : vector<8x384xf32>
    %266 = arith.divf %264, %265 : vector<8x384xf32>
    %267 = vector.extract_strided_slice %266 {offsets = [0, 0], sizes = [8, 128], strides = [1, 1]} : vector<8x384xf32> to vector<8x128xf32>
    %268 = vector.extract_strided_slice %266 {offsets = [0, 128], sizes = [8, 128], strides = [1, 1]} : vector<8x384xf32> to vector<8x128xf32>
    %269 = vector.extract_strided_slice %266 {offsets = [0, 256], sizes = [8, 128], strides = [1, 1]} : vector<8x384xf32> to vector<8x128xf32>
    %270 = vector.extract_strided_slice %244 {offsets = [0, 384], sizes = [8, 128], strides = [1, 1]} : vector<8x512xf32> to vector<8x128xf32>
    %271 = math.tanh %270 : vector<8x128xf32>
    %272 = arith.mulf %268, %232 : vector<8x128xf32>
    %273 = arith.mulf %267, %271 : vector<8x128xf32>
    %274 = arith.addf %272, %273 : vector<8x128xf32>
    %275 = math.tanh %274 : vector<8x128xf32>
    %276 = arith.mulf %269, %275 : vector<8x128xf32>
    %c56 = arith.constant 56 : index
    %c0_78 = arith.constant 0 : index
    %277 = vector.load %arg9[%c56, %c0_78] : memref<64x512xf32, #tpu.memory_space<vmem>>, vector<8x512xf32>
    %c0_79 = arith.constant 0 : index
    %c0_80 = arith.constant 0 : index
    %278 = vector.load %arg2[%c0_79, %c0_80] : memref<128x512xf32, #tpu.memory_space<vmem>>, vector<128x512xf32>
    %cst_81 = arith.constant dense<0.000000e+00> : vector<8x512xf32>
    %279 = tpu.matmul %260, %278, %cst_81 {dimension_numbers = #tpu.dot_dimension_numbers<[1], [0], [0], [1], [0, 0, 1, 1], [], []>} : vector<8x128xf32>, vector<128x512xf32>, vector<8x512xf32> -> vector<8x512xf32>
    %280 = arith.addf %277, %279 : vector<8x512xf32>
    %281 = tpu.concatenate %260, %276 in 1 : vector<8x128xf32>, vector<8x128xf32> -> vector<8x256xf32>
    %c0_82 = arith.constant 0 : index
    %c0_83 = arith.constant 0 : index
    %282 = vector.load %arg4[%c0_82, %c0_83] : memref<256x512xf32, #tpu.memory_space<vmem>>, vector<256x512xf32>
    %cst_84 = arith.constant dense<0.000000e+00> : vector<8x512xf32>
    %283 = tpu.matmul %281, %282, %cst_84 {dimension_numbers = #tpu.dot_dimension_numbers<[1], [0], [0], [1], [0, 0, 1, 1], [], []>} : vector<8x256xf32>, vector<256x512xf32>, vector<8x512xf32> -> vector<8x512xf32>
    %c0_85 = arith.constant 0 : index
    %c0_86 = arith.constant 0 : index
    %284 = vector.load %arg5[%c0_85, %c0_86] : memref<1x512xf32, #tpu.memory_space<vmem>>, vector<1x512xf32>
    %285 = vector.broadcast %284 : vector<1x512xf32> to vector<8x512xf32>
    %286 = arith.addf %283, %285 : vector<8x512xf32>
    %287 = vector.extract_strided_slice %280 {offsets = [0, 0], sizes = [8, 384], strides = [1, 1]} : vector<8x512xf32> to vector<8x384xf32>
    %288 = arith.negf %287 : vector<8x384xf32>
    %289 = math.exp %288 : vector<8x384xf32>
    %cst_87 = arith.constant 1.000000e+00 : f32
    %290 = vector.broadcast %cst_87 : f32 to vector<8x384xf32>
    %291 = arith.addf %290, %289 : vector<8x384xf32>
    %292 = arith.divf %290, %291 : vector<8x384xf32>
    %293 = vector.extract_strided_slice %292 {offsets = [0, 0], sizes = [8, 128], strides = [1, 1]} : vector<8x384xf32> to vector<8x128xf32>
    %294 = vector.extract_strided_slice %292 {offsets = [0, 128], sizes = [8, 128], strides = [1, 1]} : vector<8x384xf32> to vector<8x128xf32>
    %295 = vector.extract_strided_slice %292 {offsets = [0, 256], sizes = [8, 128], strides = [1, 1]} : vector<8x384xf32> to vector<8x128xf32>
    %296 = vector.extract_strided_slice %280 {offsets = [0, 384], sizes = [8, 128], strides = [1, 1]} : vector<8x512xf32> to vector<8x128xf32>
    %297 = math.tanh %296 : vector<8x128xf32>
    %298 = arith.mulf %294, %258 : vector<8x128xf32>
    %299 = arith.mulf %293, %297 : vector<8x128xf32>
    %300 = arith.addf %298, %299 : vector<8x128xf32>
    %301 = math.tanh %300 : vector<8x128xf32>
    %302 = arith.mulf %295, %301 : vector<8x128xf32>
    %303 = vector.extract_strided_slice %286 {offsets = [0, 0], sizes = [8, 384], strides = [1, 1]} : vector<8x512xf32> to vector<8x384xf32>
    %304 = arith.negf %303 : vector<8x384xf32>
    %305 = math.exp %304 : vector<8x384xf32>
    %cst_88 = arith.constant 1.000000e+00 : f32
    %306 = vector.broadcast %cst_88 : f32 to vector<8x384xf32>
    %307 = arith.addf %306, %305 : vector<8x384xf32>
    %308 = arith.divf %306, %307 : vector<8x384xf32>
    %309 = vector.extract_strided_slice %308 {offsets = [0, 0], sizes = [8, 128], strides = [1, 1]} : vector<8x384xf32> to vector<8x128xf32>
    %310 = vector.extract_strided_slice %308 {offsets = [0, 128], sizes = [8, 128], strides = [1, 1]} : vector<8x384xf32> to vector<8x128xf32>
    %311 = vector.extract_strided_slice %308 {offsets = [0, 256], sizes = [8, 128], strides = [1, 1]} : vector<8x384xf32> to vector<8x128xf32>
    %312 = vector.extract_strided_slice %286 {offsets = [0, 384], sizes = [8, 128], strides = [1, 1]} : vector<8x512xf32> to vector<8x128xf32>
    %313 = math.tanh %312 : vector<8x128xf32>
    %314 = arith.mulf %310, %274 : vector<8x128xf32>
    %315 = arith.mulf %309, %313 : vector<8x128xf32>
    %316 = arith.addf %314, %315 : vector<8x128xf32>
    %317 = math.tanh %316 : vector<8x128xf32>
    %318 = arith.mulf %311, %317 : vector<8x128xf32>
    %319 = tpu.concatenate %302, %318 in 1 : vector<8x128xf32>, vector<8x128xf32> -> vector<8x256xf32>
    %c0_89 = arith.constant 0 : index
    %c0_90 = arith.constant 0 : index
    %320 = vector.load %arg4[%c0_89, %c0_90] : memref<256x512xf32, #tpu.memory_space<vmem>>, vector<256x512xf32>
    %cst_91 = arith.constant dense<0.000000e+00> : vector<8x512xf32>
    %321 = tpu.matmul %319, %320, %cst_91 {dimension_numbers = #tpu.dot_dimension_numbers<[1], [0], [0], [1], [0, 0, 1, 1], [], []>} : vector<8x256xf32>, vector<256x512xf32>, vector<8x512xf32> -> vector<8x512xf32>
    %c0_92 = arith.constant 0 : index
    %c0_93 = arith.constant 0 : index
    %322 = vector.load %arg5[%c0_92, %c0_93] : memref<1x512xf32, #tpu.memory_space<vmem>>, vector<1x512xf32>
    %323 = vector.broadcast %322 : vector<1x512xf32> to vector<8x512xf32>
    %324 = arith.addf %321, %323 : vector<8x512xf32>
    %325 = vector.extract_strided_slice %324 {offsets = [0, 0], sizes = [8, 384], strides = [1, 1]} : vector<8x512xf32> to vector<8x384xf32>
    %326 = arith.negf %325 : vector<8x384xf32>
    %327 = math.exp %326 : vector<8x384xf32>
    %cst_94 = arith.constant 1.000000e+00 : f32
    %328 = vector.broadcast %cst_94 : f32 to vector<8x384xf32>
    %329 = arith.addf %328, %327 : vector<8x384xf32>
    %330 = arith.divf %328, %329 : vector<8x384xf32>
    %331 = vector.extract_strided_slice %330 {offsets = [0, 0], sizes = [8, 128], strides = [1, 1]} : vector<8x384xf32> to vector<8x128xf32>
    %332 = vector.extract_strided_slice %330 {offsets = [0, 128], sizes = [8, 128], strides = [1, 1]} : vector<8x384xf32> to vector<8x128xf32>
    %333 = vector.extract_strided_slice %330 {offsets = [0, 256], sizes = [8, 128], strides = [1, 1]} : vector<8x384xf32> to vector<8x128xf32>
    %334 = vector.extract_strided_slice %324 {offsets = [0, 384], sizes = [8, 128], strides = [1, 1]} : vector<8x512xf32> to vector<8x128xf32>
    %335 = math.tanh %334 : vector<8x128xf32>
    %336 = arith.mulf %332, %316 : vector<8x128xf32>
    %337 = arith.mulf %331, %335 : vector<8x128xf32>
    %338 = arith.addf %336, %337 : vector<8x128xf32>
    %339 = math.tanh %338 : vector<8x128xf32>
    %340 = arith.mulf %333, %339 : vector<8x128xf32>
    %c0_95 = arith.constant 0 : index
    %c0_96 = arith.constant 0 : index
    %341 = vector.load %arg6[%c0_95, %c0_96] : memref<128x1xf32, #tpu.memory_space<vmem>>, vector<128x1xf32>
    %cst_97 = arith.constant dense<0.000000e+00> : vector<8x1xf32>
    %342 = tpu.matmul %340, %341, %cst_97 {dimension_numbers = #tpu.dot_dimension_numbers<[1], [0], [0], [1], [0, 0, 1, 1], [], []>} : vector<8x128xf32>, vector<128x1xf32>, vector<8x1xf32> -> vector<8x1xf32>
    %c0_98 = arith.constant 0 : index
    %c0_99 = arith.constant 0 : index
    %343 = vector.load %arg7[%c0_98, %c0_99] : memref<1x1xf32, #tpu.memory_space<vmem>>, vector<1x1xf32>
    %344 = vector.broadcast %343 : vector<1x1xf32> to vector<8x1xf32>
    %345 = arith.addf %342, %344 : vector<8x1xf32>
    %346 = vector.extract_strided_slice %345 {offsets = [0, 0], sizes = [2, 1], strides = [1, 1]} : vector<8x1xf32> to vector<2x1xf32>
    %c0_100 = arith.constant 0 : index
    %c0_101 = arith.constant 0 : index
    %347 = vector.load %arg8[%c0_100, %c0_101] : memref<2x1xf32, #tpu.memory_space<vmem>>, vector<2x1xf32>
    tpu.vector_store %arg8[%c0_100, %c0_101], %346 {strides = array<i32>} : memref<2x1xf32, #tpu.memory_space<vmem>>, vector<2x1xf32>,
    return
  }
}

</mosaic_0001>

<bundles_post_ra>
// kernel: tpu_custom_call.1
= control target key start
LH: loop header
LB: loop body
LE: loop exit
PB: predicated region body
PF: predicated region fallthrough
CT: control target
= control target key end

     0   :  { %s7772_s0 = inlined_call_operand.vmem [shape: f32[64,8], index: 0, kind: input, shape index: {}]   ;;  %s7773_s1 = inlined_call_operand.vmem [shape: f32[8,512], index: 1, kind: input, shape index: {}]   ;;  %s7774_s2 = inlined_call_operand.hbm [shape: f32[128,512], index: 2, kind: input, shape index: {}]   ;;  %s7775_s3 = inlined_call_operand.vmem [shape: f32[1,512], index: 3, kind: input, shape index: {}]   ;;  %s7776_s4 = inlined_call_operand.hbm [shape: f32[256,512], index: 4, kind: input, shape index: {}]   ;;  %s7777_s5 = inlined_call_operand.vmem [shape: f32[1,512], index: 5, kind: input, shape index: {}]   ;;  %s7778_s6 = inlined_call_operand.vmem [shape: f32[128,1], index: 6, kind: input, shape index: {}]   ;;  %s7779_s7 = inlined_call_operand.<no memory space> [shape: f32[1,1], index: 7, kind: input, shape index: {}]   ;;  %s7780_s8 = inlined_call_operand.vmem [shape: f32[2,1], index: 8, kind: output, shape index: {}]  }
   0x1   :  { %v13_v0 = vstv %s7779_s7 }
   0x2   :  { %14 = vst [vmem:[#allocation3] sm:$0x1] %v13_v0 }
   0x3   :  { %15 = vsyncpa [#allocation5], 0  ;;  %s25_s9 = sshll.u32 %s7774_s2, 4  ;;  %s26_s9 = int_to_ptr.hbm [resolvable:$true] %s25_s9 }
   0x4   :  { %16 = vsyncpa [#allocation7], 0  ;;  %s4410_s10 = smov [#allocation4]   ;;  %s40_s14 = sshll.u32 %s7776_s4, 4  ;;  %s41_s14 = int_to_ptr.hbm [resolvable:$true] %s40_s14 }
   0x5   :  { %s27_s11 = sshll.u32 %s4410_s10, 4  ;;  %s4411_s15 = smov 512   ;;  %s28_s11 = int_to_ptr.vmem [resolvable:$true] %s27_s11 }
   0x6   :  { %s4412_s16 = smov 32   ;;  %s4413_s7 = smov [#allocation6]  }
   0x7   :  { %33 = dma.hbm_to_vmem [thread:$0]  %s26_s9, 8192, %s28_s11, [#allocation5], %s4411_s15, %s4411_s15, %s4412_s16  }
   0x8   :  { %s42_s17 = sshll.u32 %s4413_s7, 4  ;;  %s43_s17 = int_to_ptr.vmem [resolvable:$true] %s42_s17 }
   0x9   :  { %48 = dma.hbm_to_vmem [thread:$0]  %s41_s14, 16384, %s43_s17, [#allocation7], %s4411_s15, %s4411_s15, %s4412_s16  }
   0xa   :  { %4406 = dma.done.wait [#allocation5], 8192  }
   0xb   :  { %4407 = vsyncadd [#allocation5], 4294959104 }
   0xc   :  { %4408 = dma.done.wait [#allocation7], 16384  }
   0xd   :  { %4409 = vsyncadd [#allocation7], 4294950912  ;;  %vm85_vm0 = vcmask 64512   ;;  %v71_v1 = vld [vmem:[%s7773_s1] sm:$0xff]  ;;  %v4477_v3 = vld [vmem:[%s7772_s0 + $0x28] sm:$0xff] }
   0xe   :  { %v63_v2 = vld [vmem:[%s7772_s0] sm:$0xff]  ;;  %125 = vmatpush.msra.mxu0 %v71_v1  ;;  %3528 = vmatpush.msra.mxu1 %v71_v1  ;;  %v4482_v4 = vld [vmem:[%s7772_s0 + $0x30] sm:$0xff]  ;;  %v72_v5 = vld [vmem:[%s7773_s1 + $0x8] sm:$0xff] }
   0xf   :  { %v73_v6 = vld [vmem:[%s7773_s1 + $0x10] sm:$0xff]  ;;  %3529 = vmatpush.msra.mxu2 %v71_v1  ;;  %3448 = vmatmul.msk.f32.vlgmr.msra.gmra.mxu0 %vm85_vm0, %v63_v2  ;;  %v4500_v8 = vld [vmem:[%s7772_s0 + $0x38] sm:$0xff]  ;;  %v4512_v13 = vld [vmem:[#allocation4 + $0x1e0] sm:$0xff] }
  0x10   :  { %v4491_v7 = vld [vmem:[#allocation4 + $0x1e8] sm:$0xff]  ;;  %3453 = vmatmul.msk.f32.vlgmr.msra.gmra.mxu1 %vm85_vm0, %v4477_v3  ;;  %3454 = vmatmul.msk.f32.vlgmr.msra.gmra.mxu2 %vm85_vm0, %v4482_v4  ;;  %v4502_v9 = vld [vmem:[#allocation4 + $0x1f0] sm:$0xff]  ;;  %v4519_v15 = vld [vmem:[#allocation4 + $0x1f8] sm:$0xff] }
  0x11   :  { %166 = vmatpush.msrb.mxu1 %v72_v5  ;;  %207 = vmatpush.msrb.mxu2 %v73_v6  ;;  %v74_v10 = vld [vmem:[%s7773_s1 + $0x18] sm:$0xff]  ;;  %v4507_v11 = vld [vmem:[#allocation4 + $0x1c8] sm:$0xff]  ;;  %v4536_v17 = vld [vmem:[#allocation4 + $0x1c0] sm:$0xff] }
  0x12   :  { %3530 = vmatpush.msra.mxu3 %v71_v1  ;;  %v4510_v12 = vld [vmem:[#allocation4 + $0x1d0] sm:$0xff]  ;;  %v4517_v14 = vld [vmem:[#allocation4 + $0x1a8] sm:$0xff]  ;;  %441 = vmatpush.msrb.mxu0 %v4512_v13  ;;  %v4538_v18 = vld [vmem:[#allocation4 + $0x1d8] sm:$0xff] }
  0x13   :  { %461 = vmatpush.msra.mxu1 %v4491_v7  ;;  %3455 = vmatmul.msk.f32.vlgmr.msra.gmra.mxu3 %vm85_vm0, %v4500_v8  ;;  %v64_v16 = vld [vmem:[%s7772_s0 + $0x8] sm:$0xff]  ;;  %v4542_v19 = vld [vmem:[#allocation4 + $0x1b0] sm:$0xff]  ;;  %v4546_v21 = vld [vmem:[#allocation4 + $0x1b8] sm:$0xff] }
  0x14   :  { %481 = vmatpush.msra.mxu2 %v4502_v9  ;;  %248 = vmatpush.msrb.mxu3 %v74_v10  ;;  %v4544_v20 = vld [vmem:[#allocation4 + $0x1a0] sm:$0xff]  ;;  %v4550_v22 = vld [vmem:[#allocation4 + $0x188] sm:$0xff]  ;;  %v4563_v25 = vld [vmem:[#allocation4 + $0x190] sm:$0xff] }
  0x15   :  { %462 = vmatpush.msra.mxu1 %v4507_v11  ;;  %442 = vmatpush.msrb.mxu0 %v4536_v17  ;;  %v4556_v23 = vld [vmem:[%s7772_s0 + $0x10] sm:$0xff]  ;;  %v4558_v24 = vld [vmem:[#allocation4 + $0x180] sm:$0xff]  ;;  %v4565_v26 = vld [vmem:[#allocation4 + $0x198] sm:$0xff] }
  0x16   :  { %482 = vmatpush.msra.mxu2 %v4510_v12  ;;  %501 = vmatpush.msra.mxu3 %v4519_v15  ;;  %v4571_v27 = vld [vmem:[#allocation4 + $0x168] sm:$0xff]  ;;  %v4573_v28 = vld [vmem:[#allocation4 + $0x160] sm:$0xff]  ;;  %v4577_v29 = vld [vmem:[#allocation4 + $0x170] sm:$0xff] }
  0x17   :  { %463 = vmatpush.msra.mxu1 %v4517_v14  ;;  %3449 = vmatmul.msk.f32.gmra.mxu0 %vm85_vm0, %v64_v16  ;;  %v4579_v30 = vld [vmem:[#allocation4 + $0x178] sm:$0xff]  ;;  %v4584_v31 = vld [vmem:[#allocation4 + $0x140] sm:$0xff]  ;;  %v4586_v32 = vld [vmem:[#allocation4 + $0x148] sm:$0xff] }
  0x18   :  { %3456 = vmatmul.msk.f32.vlgmr.msrb.gmra.mxu1 %vm85_vm0, %v63_v2  ;;  %3464 = vmatmul.msk.f32.vlgmr.msrb.gmra.mxu2 %vm85_vm0, %v63_v2  ;;  %v4588_v33 = vld [vmem:[#allocation4 + $0x150] sm:$0xff]  ;;  %v4592_v34 = vld [vmem:[#allocation4 + $0x158] sm:$0xff]  ;;  %v4596_v35 = vld [vmem:[#allocation4 + $0x120] sm:$0xff] }
  0x19   :  { %502 = vmatpush.msra.mxu3 %v4538_v18  ;;  %483 = vmatpush.msra.mxu2 %v4542_v19  ;;  %v4598_v36 = vld [vmem:[#allocation4 + $0x128] sm:$0xff]  ;;  %v4600_v37 = vld [vmem:[#allocation4 + $0x130] sm:$0xff]  ;;  %v4604_v38 = vld [vmem:[#allocation4 + $0x138] sm:$0xff] }
  0x1a   :  { %443 = vmatpush.msrb.mxu0 %v4544_v20  ;;  %464 = vmatpush.msra.mxu1 %v4550_v22  ;;  %v4611_v39 = vld [vmem:[%s7772_s0 + $0x18] sm:$0xff]  ;;  %v4613_v40 = vld [vmem:[#allocation4 + $0x100] sm:$0xff]  ;;  %v4617_v41 = vld [vmem:[#allocation4 + $0x108] sm:$0xff] }
  0x1b   :  { %3472 = vmatmul.msk.f32.vlgmr.msrb.gmra.mxu3 %vm85_vm0, %v63_v2  ;;  %484 = vmatpush.msra.mxu2 %v4563_v25  ;;  %v4619_v42 = vld [vmem:[#allocation4 + $0x110] sm:$0xff]  ;;  %v4625_v43 = vld [vmem:[#allocation4 + $0x118] sm:$0xff]  ;;  %v4627_v44 = vld [vmem:[#allocation4 + $0xe0] sm:$0xff] }
  0x1c   :  { %503 = vmatpush.msra.mxu3 %v4546_v21  ;;  %444 = vmatpush.msrb.mxu0 %v4558_v24  ;;  %v4632_v45 = vld [vmem:[#allocation4 + $0xe8] sm:$0xff]  ;;  %v4634_v46 = vld [vmem:[#allocation4 + $0xf0] sm:$0xff]  ;;  %v4638_v47 = vld [vmem:[#allocation4 + $0xf8] sm:$0xff] }
  0x1d   :  { %465 = vmatpush.msra.mxu1 %v4571_v27  ;;  %485 = vmatpush.msra.mxu2 %v4577_v29  ;;  %v4640_v48 = vld [vmem:[#allocation4 + $0xc0] sm:$0xff]  ;;  %v4644_v49 = vld [vmem:[#allocation4 + $0xc8] sm:$0xff]  ;;  %v4646_v50 = vld [vmem:[#allocation4 + $0xd0] sm:$0xff] }
  0x1e   :  { %504 = vmatpush.msra.mxu3 %v4565_v26  ;;  %445 = vmatpush.msrb.mxu0 %v4573_v28  ;;  %8182 = vst [vmem:[#allocation10_spill] sm:$0xff] %v4646_v50  ;;  %v4650_v51 = vld [vmem:[#allocation4 + $0xd8] sm:$0xff]  ;;  %v4652_v52 = vld [vmem:[#allocation4 + $0xa0] sm:$0xff]  ;;  %v4656_v53 = vld [vmem:[#allocation4 + $0xa8] sm:$0xff] }
  0x1f   :  { %466 = vmatpush.msra.mxu1 %v4586_v32  ;;  %486 = vmatpush.msra.mxu2 %v4588_v33  ;;  %8183 = vst [vmem:[#allocation11_spill] sm:$0xff] %v4650_v51  ;;  %v4658_v54 = vld [vmem:[#allocation4 + $0xb0] sm:$0xff]  ;;  %v4662_v55 = vld [vmem:[#allocation4 + $0xb8] sm:$0xff]  ;;  %v4673_v57 = vld [vmem:[#allocation4 + $0x80] sm:$0xff] }
  0x20   :  { %3457 = vmatmul.msk.f32.gmra.mxu1 %vm85_vm0, %v64_v16  ;;  %3465 = vmatmul.msk.f32.gmra.mxu2 %vm85_vm0, %v64_v16  ;;  %8184 = vst [vmem:[#allocation12_spill] sm:$0xff] %v4652_v52  ;;  %v4667_v56 = vld [vmem:[%s7772_s0 + $0x20] sm:$0xff]  ;;  %v4675_v58 = vld [vmem:[#allocation4 + $0x88] sm:$0xff]  ;;  %v4680_v59 = vld [vmem:[#allocation4 + $0x90] sm:$0xff] }
  0x21   :  { %505 = vmatpush.msra.mxu3 %v4579_v30  ;;  %446 = vmatpush.msrb.mxu0 %v4584_v31  ;;  %8185 = vst [vmem:[#allocation13_spill] sm:$0xff] %v4656_v53  ;;  %v4682_v60 = vld [vmem:[#allocation4 + $0x98] sm:$0xff]  ;;  %v4688_v61 = vld [vmem:[#allocation4 + $0x60] sm:$0xff]  ;;  %v4690_v62 = vld [vmem:[#allocation4 + $0x68] sm:$0xff] }
  0x22   :  { %467 = vmatpush.msra.mxu1 %v4598_v36  ;;  %487 = vmatpush.msra.mxu2 %v4600_v37  ;;  %8186 = vst [vmem:[#allocation14_spill] sm:$0xff] %v4658_v54  ;;  %v4695_v63 = vld [vmem:[%s7775_s3] sm:$0xf]  ;;  %v4699_v0 = vld [vmem:[#allocation4 + $0x70] sm:$0xff]  ;;  %v4707_v5 = vld [vmem:[#allocation4 + $0x48] sm:$0xff] }
  0x23   :  { %3473 = vmatmul.msk.f32.gmra.mxu3 %vm85_vm0, %v64_v16  ;;  %447 = vmatpush.msrb.mxu0 %v4596_v35  ;;  %8187 = vst [vmem:[#allocation15_spill] sm:$0xff] %v4662_v55  ;;  %v4701_v1 = vld [vmem:[#allocation4 + $0x78] sm:$0xff]  ;;  %v4705_v2 = vld [vmem:[#allocation4 + $0x40] sm:$0xff]  ;;  %v4711_v6 = vld [vmem:[#allocation4 + $0x50] sm:$0xff]  ;;  %v4716_v16 = vperm.slane %v4695_v63, 0 }
  0x24   :  { %506 = vmatpush.msra.mxu3 %v4592_v34  ;;  %468 = vmatpush.msra.mxu1 %v4617_v41  ;;  %8188 = vst [vmem:[#allocation16_spill] sm:$0xff] %v4673_v57  ;;  %v4713_v10 = vld [vmem:[#allocation4 + $0x58] sm:$0xff] }
  0x25   :  { %448 = vmatpush.msrb.mxu0 %v4613_v40  ;;  %488 = vmatpush.msra.mxu2 %v4619_v42  ;;  %8189 = vst [vmem:[#allocation17_spill] sm:$0xff] %v4675_v58 }
  0x26   :  { %507 = vmatpush.msra.mxu3 %v4604_v38  ;;  %469 = vmatpush.msra.mxu1 %v4632_v45  ;;  %8190 = vst [vmem:[#allocation18_spill] sm:$0xff] %v4680_v59 }
  0x27   :  { %449 = vmatpush.msrb.mxu0 %v4627_v44  ;;  %489 = vmatpush.msra.mxu2 %v4634_v46  ;;  %8191 = vst [vmem:[#allocation19_spill] sm:$0xff] %v4682_v60 }
  0x28   :  { %3466 = vmatmul.msk.f32.gmra.mxu2 %vm85_vm0, %v4556_v23  ;;  %3458 = vmatmul.msk.f32.gmra.mxu1 %vm85_vm0, %v4556_v23  ;;  %8192 = vst [vmem:[#allocation20_spill] sm:$0xff] %v4688_v61 }
  0x29   :  { %508 = vmatpush.msra.mxu3 %v4625_v43  ;;  %450 = vmatpush.msrb.mxu0 %v4640_v48  ;;  %8193 = vst [vmem:[#allocation21_spill] sm:$0xff] %v4690_v62 }
  0x2a   :  { %470 = vmatpush.msra.mxu1 %v4644_v49  ;;  %490 = vmatpush.msra.mxu2 %v4646_v50  ;;  %8194 = vst [vmem:[#allocation22_spill] sm:$0xff] %v4699_v0 }
  0x2b   :  { %3474 = vmatmul.msk.f32.gmra.mxu3 %vm85_vm0, %v4556_v23  ;;  %451 = vmatpush.msrb.mxu0 %v4652_v52  ;;  %8195 = vst [vmem:[#allocation23_spill] sm:$0xff] %v4701_v1 }
  0x2c   :  { %509 = vmatpush.msra.mxu3 %v4638_v47  ;;  %471 = vmatpush.msra.mxu1 %v4656_v53  ;;  %8196 = vst [vmem:[#allocation24_spill] sm:$0xff] %v4705_v2  ;;  %v4911_v53 = vld [vmem:[#allocation6 + $0x20] sm:$0xff] }
  0x2d   :  { %491 = vmatpush.msra.mxu2 %v4658_v54  ;;  %452 = vmatpush.msrb.mxu0 %v4673_v57  ;;  %8197 = vst [vmem:[#allocation25_spill] sm:$0xff] %v4707_v5 }
  0x2e   :  { %510 = vmatpush.msra.mxu3 %v4650_v51  ;;  %472 = vmatpush.msra.mxu1 %v4675_v58  ;;  %8198 = vst [vmem:[#allocation26_spill] sm:$0xff] %v4711_v6 }
  0x2f   :  { %492 = vmatpush.msra.mxu2 %v4680_v59  ;;  %453 = vmatpush.msrb.mxu0 %v4688_v61  ;;  %8199 = vst [vmem:[#allocation27_spill] sm:$0xff] %v4713_v10  ;;  %v4722_v59 = vld [vmem:[#allocation4 + $0x28] sm:$0xff]  ;;  %v4728_v61 = vld [vmem:[#allocation4 + $0x38] sm:$0xff] }
  0x30   :  { %3459 = vmatmul.msk.f32.gmra.mxu1 %vm85_vm0, %v4611_v39  ;;  %3467 = vmatmul.msk.f32.gmra.mxu2 %vm85_vm0, %v4611_v39  ;;  %8200 = vst [vmem:[#allocation28_spill] sm:$0xff] %v4716_v16 }
  0x31   :  { %511 = vmatpush.msra.mxu3 %v4662_v55  ;;  %473 = vmatpush.msra.mxu1 %v4690_v62  ;;  %8202 = vst [vmem:[#allocation30_spill] sm:$0xff] %v4722_v59  ;;  %v4726_v62 = vld [vmem:[#allocation4 + $0x30] sm:$0xff] }
  0x32   :  { %493 = vmatpush.msra.mxu2 %v4699_v0  ;;  %454 = vmatpush.msrb.mxu0 %v4705_v2  ;;  %8203 = vst [vmem:[#allocation31_spill] sm:$0xff] %v4726_v62  ;;  %v4741_v2 = vld [vmem:[#allocation4 + $0x8] sm:$0xff] }
  0x33   :  { %3475 = vmatmul.msk.f32.gmra.mxu3 %vm85_vm0, %v4611_v39  ;;  %474 = vmatpush.msra.mxu1 %v4707_v5  ;;  %8204 = vst [vmem:[#allocation32_spill] sm:$0xff] %v4728_v61  ;;  %v4739_v5 = vld [vmem:[#allocation4] sm:$0xff] }
  0x34   :  { %512 = vmatpush.msra.mxu3 %v4682_v60  ;;  %v4720_v60 = vld [vmem:[#allocation4 + $0x20] sm:$0xff]  ;;  %494 = vmatpush.msra.mxu2 %v4711_v6  ;;  %8206 = vst [vmem:[#allocation34_spill] sm:$0xff] %v4739_v5  ;;  %v580_v6 = vld [vmem:[#allocation6 + $0x1b8] sm:$0xff] }
  0x35   :  { %8201 = vst [vmem:[#allocation29_spill] sm:$0xff] %v4720_v60  ;;  %455 = vmatpush.msrb.mxu0 %v4720_v60  ;;  %475 = vmatpush.msra.mxu1 %v4722_v59  ;;  %v4747_v60 = vld [vmem:[#allocation4 + $0x10] sm:$0xff]  ;;  %v4749_v59 = vld [vmem:[#allocation4 + $0x18] sm:$0xff] }
  0x36   :  { %513 = vmatpush.msra.mxu3 %v4701_v1  ;;  %495 = vmatpush.msra.mxu2 %v4726_v62  ;;  %8207 = vst [vmem:[#allocation35_spill] sm:$0xff] %v4741_v2  ;;  %v4765_v62 = vld [vmem:[#allocation6 + $0x1c8] sm:$0xff] }
  0x37   :  { %3450 = vmatmul.msk.f32.gmra.mxu0 %vm85_vm0, %v4556_v23  ;;  %8208 = vst [vmem:[#allocation36_spill] sm:$0xff] %v4747_v60  ;;  %476 = vmatpush.msra.mxu1 %v4741_v2  ;;  %v587_v23 = vld [vmem:[#allocation6 + $0x1f0] sm:$0xff]  ;;  %v584_v2 = vld [vmem:[#allocation6 + $0x1d8] sm:$0xff] }
  0x38   :  { %3460 = vmatmul.msk.f32.gmra.mxu1 %vm85_vm0, %v4667_v56  ;;  %3468 = vmatmul.msk.f32.gmra.mxu2 %vm85_vm0, %v4667_v56  ;;  %8209 = vst [vmem:[#allocation37_spill] sm:$0xff] %v4749_v59 }
  0x39   :  { %514 = vmatpush.msra.mxu3 %v4713_v10  ;;  %456 = vmatpush.msrb.mxu0 %v4739_v5  ;;  %8213 = vst [vmem:[#allocation41_spill] sm:$0xff] %v4765_v62  ;;  %v583_v5 = vld [vmem:[#allocation6 + $0x1d0] sm:$0xff] }
  0x3a   :  { %496 = vmatpush.msra.mxu2 %v4747_v60  ;;  %v579_v60 = vld [vmem:[#allocation6 + $0x1b0] sm:$0xff] }
  0x3b   :  { %3476 = vmatmul.msk.f32.gmra.mxu3 %vm85_vm0, %v4667_v56 }
  0x3c   :  { %515 = vmatpush.msra.mxu3 %v4728_v61  ;;  %v588_v61 = vld [vmem:[#allocation6 + $0x1f8] sm:$0xff]  ;;  %639 = vmatpush.msrb.mxu2 %v587_v23 }
  0x3e   :  { %516 = vmatpush.msra.mxu3 %v4749_v59  ;;  %v4776_v59 = vld [vmem:[#allocation6 + $0x1a8] sm:$0xff]  ;;  %640 = vmatpush.msrb.mxu2 %v583_v5 }
  0x3f   :  { %8217 = vst [vmem:[#allocation45_spill] sm:$0xff] %v4776_v59  ;;  %v4796_v5 = vld [vmem:[#allocation6 + $0x168] sm:$0xff]  ;;  %3451 = vmatmul.msk.f32.gmra.mxu0 %vm85_vm0, %v4611_v39 }
  0x40   :  { %3461 = vmatmul.msk.f32.gmra.mxu1 %vm85_vm0, %v4477_v3  ;;  %3469 = vmatmul.msk.f32.gmra.mxu2 %vm85_vm0, %v4477_v3  ;;  %8222 = vst [vmem:[#allocation50_spill] sm:$0xff] %v4796_v5 }
  0x41   :  { %659 = vmatpush.msrb.mxu3 %v588_v61  ;;  %v575_v61 = vld [vmem:[#allocation6 + $0x190] sm:$0xff]  ;;  %641 = vmatpush.msrb.mxu2 %v579_v60 }
  0x42   :  { %v571_v60 = vld [vmem:[#allocation6 + $0x170] sm:$0xff] }
  0x43   :  { %3477 = vmatmul.msk.f32.gmra.mxu3 %vm85_vm0, %v4477_v3  ;;  %v4768_v3 = vperm.slane %v4695_v63, 1  ;;  %642 = vmatpush.msrb.mxu2 %v575_v61  ;;  %v4811_v61 = vld [vmem:[#allocation6 + $0x148] sm:$0xff] }
  0x44   :  { %660 = vmatpush.msrb.mxu3 %v584_v2  ;;  %v4790_v2 = vperm.slane %v4695_v63, 2  ;;  %8225 = vst [vmem:[#allocation53_spill] sm:$0xff] %v4811_v61 }
  0x45   :  { %8214 = vst [vmem:[#allocation42_spill] sm:$0xff] %v4768_v3  ;;  %643 = vmatpush.msrb.mxu2 %v571_v60  ;;  %v559_v60 = vld [vmem:[#allocation6 + $0x110] sm:$0xff] }
  0x46   :  { %661 = vmatpush.msrb.mxu3 %v580_v6  ;;  %8220 = vst [vmem:[#allocation48_spill] sm:$0xff] %v4790_v2  ;;  %v572_v6 = vld [vmem:[#allocation6 + $0x178] sm:$0xff] }
  0x47   :  { %3452 = vmatmul.msk.f32.gmra.mxu0 %vm85_vm0, %v4667_v56  ;;  %v551_v56 = vld [vmem:[#allocation6 + $0xd0] sm:$0xff] }
  0x48   :  { %3462 = vmatmul.msk.f32.gmra.mxu1 %vm85_vm0, %v4482_v4  ;;  %3470 = vmatmul.msk.f32.gmra.mxu2 %vm85_vm0, %v4482_v4 }
  0x4b   :  { %3478 = vmatmul.msk.f32.gmra.mxu3 %vm85_vm0, %v4482_v4  ;;  %v563_v4 = vld [vmem:[#allocation6 + $0x130] sm:$0xff] }
  0x50   :  { %3463 = vmatmul.msk.f32.gmra.mxu1 %vm85_vm0, %v4500_v8  ;;  %3471 = vmatmul.msk.f32.gmra.mxu2 %vm85_vm0, %v4500_v8 }
  0x53   :  { %3479 = vmatmul.msk.f32.gmra.mxu3 %vm85_vm0, %v4500_v8  ;;  %v4863_v8 = vld [vmem:[#allocation6 + $0xa8] sm:$0xff] }
  0x54   :  { %8236 = vst [vmem:[#allocation64_spill] sm:$0xff] %v4863_v8 }
  0x8c   :  { %v127_v58 = vpop.f32.mrf.mxu0 }
  0x8d   :  { %v128_v1 = vadd.f32 %v127_v58, %v4716_v16  ;;  %v4735_v0 = vpop.f32.mrf.mxu1  ;;  %v4757_v16 = vld [vmem:[#allocation6 + $0x1e8] sm:$0xff] }
  0x8e   :  { %8205 = vst [vmem:[#allocation33_spill] sm:$0xff] %v4735_v0  ;;  %v4755_v0 = vld [vmem:[#allocation6 + $0x1e0] sm:$0xff]  ;;  %619 = vmatpush.msrb.mxu1 %v4757_v16 }
  0x8f   :  { %v3480_v58 = vmul.f32 -1.442695, %v128_v1  ;;  %8210 = vst [vmem:[#allocation38_spill] sm:$0xff] %v4755_v0  ;;  %v4763_v1 = vld [vmem:[#allocation6 + $0x1c0] sm:$0xff]  ;;  %599 = vmatpush.msra.mxu0 %v4755_v0  ;;  %v4782_v0 = vld [vmem:[#allocation6 + $0x188] sm:$0xff] }
  0x90   :  { %8211 = vst [vmem:[#allocation39_spill] sm:$0xff] %v4757_v16  ;;  %620 = vmatpush.msrb.mxu1 %v4765_v62  ;;  %v4780_v16 = vld [vmem:[#allocation6 + $0x180] sm:$0xff] }
  0x91   :  { %3536 = vpow2.f32 %v3480_v58  ;;  %8212 = vst [vmem:[#allocation40_spill] sm:$0xff] %v4763_v1  ;;  %v4774_v58 = vld [vmem:[#allocation6 + $0x1a0] sm:$0xff]  ;;  %600 = vmatpush.msra.mxu0 %v4763_v1 }
  0x92   :  { %8216 = vst [vmem:[#allocation44_spill] sm:$0xff] %v4774_v58  ;;  %621 = vmatpush.msrb.mxu1 %v4776_v59  ;;  %v564_v59 = vld [vmem:[#allocation6 + $0x138] sm:$0xff] }
  0x93   :  { %v4772_v10 = vpop.f32.mrf.mxu2  ;;  %8218 = vst [vmem:[#allocation46_spill] sm:$0xff] %v4780_v16  ;;  %601 = vmatpush.msra.mxu0 %v4774_v58 }
  0x94   :  { %8215 = vst [vmem:[#allocation43_spill] sm:$0xff] %v4772_v10  ;;  %v576_v10 = vld [vmem:[#allocation6 + $0x198] sm:$0xff]  ;;  %622 = vmatpush.msrb.mxu1 %v4782_v0 }
  0x95   :  { %v168_v57 = vpop.f32.mrf.mxu1  ;;  %8219 = vst [vmem:[#allocation47_spill] sm:$0xff] %v4782_v0  ;;  %602 = vmatpush.msra.mxu0 %v4780_v16  ;;  %662 = vmatpush.msrb.mxu3 %v576_v10  ;;  %v4809_v10 = vld [vmem:[#allocation6 + $0x140] sm:$0xff]  ;;  %v4818_v0 = vld [vmem:[#allocation6 + $0x128] sm:$0xff] }
  0x96   :  { %v169_v23 = vadd.f32 %v168_v57, %v4768_v3  ;;  %v4794_v57 = vld [vmem:[#allocation6 + $0x160] sm:$0xff]  ;;  %8224 = vst [vmem:[#allocation52_spill] sm:$0xff] %v4809_v10  ;;  %623 = vmatpush.msrb.mxu1 %v4796_v5  ;;  %v568_v3 = vld [vmem:[#allocation6 + $0x158] sm:$0xff] }
  0x97   :  { %v3537_v1 = vpop.eup %3536  ;;  %8221 = vst [vmem:[#allocation49_spill] sm:$0xff] %v4794_v57  ;;  %603 = vmatpush.msra.mxu0 %v4794_v57  ;;  %663 = vmatpush.msrb.mxu3 %v572_v6  ;;  %v560_v6 = vld [vmem:[#allocation6 + $0x118] sm:$0xff] }
  0x98   :  { %v4787_v62 = vadd.f32 1.0, %v3537_v1  ;;  %v3481_v55 = vmul.f32 -1.442695, %v169_v23  ;;  %v4803_v1 = vpop.f32.mrf.mxu3  ;;  %8227 = vst [vmem:[#allocation55_spill] sm:$0xff] %v4818_v0  ;;  %624 = vmatpush.msrb.mxu1 %v4811_v61 }
  0x99   :  { %8223 = vst [vmem:[#allocation51_spill] sm:$0xff] %v4803_v1  ;;  %v4816_v1 = vld [vmem:[#allocation6 + $0x120] sm:$0xff]  ;;  %604 = vmatpush.msra.mxu0 %v4809_v10  ;;  %664 = vmatpush.msrb.mxu3 %v568_v3 }
  0x9a   :  { %3538 = vrcp.f32 %v4787_v62  ;;  %8226 = vst [vmem:[#allocation54_spill] sm:$0xff] %v4816_v1  ;;  %625 = vmatpush.msrb.mxu1 %v4818_v0  ;;  %v4838_v0 = vld [vmem:[#allocation6 + $0xe8] sm:$0xff]  ;;  %v4861_v10 = vld [vmem:[#allocation6 + $0xa0] sm:$0xff]  ;;  %vm327_vm1 = vweird.f32 %v4787_v62  ;;  %v331_v58 = vand.u32 2147483647, %v4787_v62 }
  0x9b   :  { %3540 = vpow2.f32 %v3481_v55  ;;  %v209_v23 = vpop.f32.mrf.mxu2  ;;  %v567_v55 = vld [vmem:[#allocation6 + $0x150] sm:$0xff]  ;;  %605 = vmatpush.msra.mxu0 %v4816_v1  ;;  %665 = vmatpush.msrb.mxu3 %v564_v59  ;;  %8231 = vst [vmem:[#allocation59_spill] sm:$0xff] %v4838_v0  ;;  %v4842_v1 = vperm.slane %v4695_v63, 3 }
  0x9c   :  { %v210_v39 = vadd.f32 %v209_v23, %v4790_v2  ;;  %644 = vmatpush.msrb.mxu2 %v567_v55  ;;  %v4822_v23 = vld [vmem:[#allocation6 + $0x100] sm:$0xff]  ;;  %v4824_v2 = vld [vmem:[#allocation6 + $0x108] sm:$0xff]  ;;  %v555_v59 = vld [vmem:[#allocation6 + $0xf0] sm:$0xff]  ;;  %8235 = vst [vmem:[#allocation63_spill] sm:$0xff] %v4861_v10  ;;  %vm332_vm6 = vcmp.eq.f32.partialorder %v331_v58, 8.507059e+37 }
  0x9d   :  { %8228 = vst [vmem:[#allocation56_spill] sm:$0xff] %v4822_v23  ;;  %606 = vmatpush.msra.mxu0 %v4822_v23  ;;  %626 = vmatpush.msrb.mxu1 %v4824_v2  ;;  %v527_v58 = vld [vmem:[#allocation6 + $0x10] sm:$0xff] }
  0x9e   :  { %v3482_v16 = vmul.f32 -1.442695, %v210_v39  ;;  %8229 = vst [vmem:[#allocation57_spill] sm:$0xff] %v4824_v2  ;;  %645 = vmatpush.msrb.mxu2 %v563_v4  ;;  %666 = vmatpush.msrb.mxu3 %v560_v6  ;;  %v556_v4 = vld [vmem:[#allocation6 + $0xf8] sm:$0xff]  ;;  %v4854_v6 = vld [vmem:[#allocation6 + $0xc8] sm:$0xff] }
  0x9f   :  { %8232 = vst [vmem:[#allocation60_spill] sm:$0xff] %v4842_v1  ;;  %627 = vmatpush.msrb.mxu1 %v4838_v0  ;;  %v548_v0 = vld [vmem:[#allocation6 + $0xb8] sm:$0xff] }
  0xa0   :  { %v4826_v5 = vpop.eup %3538  ;;  %3542 = vpow2.f32 %v3482_v16  ;;  %646 = vmatpush.msrb.mxu2 %v559_v60  ;;  %v4836_v16 = vld [vmem:[#allocation6 + $0xe0] sm:$0xff]  ;;  %8234 = vst [vmem:[#allocation62_spill] sm:$0xff] %v4854_v6  ;;  %667 = vmatpush.msrb.mxu3 %v556_v4  ;;  %v543_v4 = vld [vmem:[#allocation6 + $0x90] sm:$0xff] }
  0xa1   :  { %v3541_v39 = vpop.eup %3540  ;;  %v323_v61 = vmul.f32 %v4826_v5, %v4787_v62  ;;  %8230 = vst [vmem:[#allocation58_spill] sm:$0xff] %v4836_v16  ;;  %v4852_v60 = vld [vmem:[#allocation6 + $0xc0] sm:$0xff]  ;;  %607 = vmatpush.msra.mxu0 %v4836_v16  ;;  %628 = vmatpush.msrb.mxu1 %v4854_v6  ;;  %v547_v16 = vld [vmem:[#allocation6 + $0xb0] sm:$0xff]  ;;  %vm328_vm2 = vweird.f32 %v4826_v5 }
  0xa2   :  { %v4832_v3 = vadd.f32 1.0, %v3541_v39  ;;  %8233 = vst [vmem:[#allocation61_spill] sm:$0xff] %v4852_v60  ;;  %v552_v39 = vld [vmem:[#allocation6 + $0xd8] sm:$0xff]  ;;  %647 = vmatpush.msrb.mxu2 %v555_v59  ;;  %vm4899_vm3 = vmor %vm327_vm1, %vm328_vm2 }
  0xa3   :  { %v324_v55 = vsub.f32 1.0, %v323_v61  ;;  %v250_v61 = vpop.f32.mrf.mxu3  ;;  %608 = vmatpush.msra.mxu0 %v4852_v60  ;;  %668 = vmatpush.msrb.mxu3 %v552_v39  ;;  %v4884_v39 = vld [vmem:[#allocation6 + $0x68] sm:$0xff]  ;;  %v540_v60 = vld [vmem:[#allocation6 + $0x78] sm:$0xff] }
  0xa4   :  { %3544 = vrcp.f32 %v4832_v3  ;;  %v251_v57 = vadd.f32 %v250_v61, %v4842_v1  ;;  %648 = vmatpush.msrb.mxu2 %v551_v56  ;;  %629 = vmatpush.msrb.mxu1 %v4863_v8  ;;  %v544_v61 = vld [vmem:[#allocation6 + $0x98] sm:$0xff]  ;;  %v4882_v56 = vld [vmem:[#allocation6 + $0x60] sm:$0xff]  ;;  %8240 = vst [vmem:[#allocation68_spill] sm:$0xff] %v4884_v39  ;;  %v539_v8 = vld [vmem:[#allocation6 + $0x70] sm:$0xff]  ;;  %v348_v54 = vand.u32 2147483648, %v4832_v3  ;;  %vm342_vm5 = vweird.f32 %v4832_v3 }
  0xa5   :  { %v325_v23 = vmul.f32 %v4826_v5, %v324_v55  ;;  %v4871_v55 = vld [vmem:[#allocation6 + $0x88] sm:$0xff]  ;;  %609 = vmatpush.msra.mxu0 %v4861_v10  ;;  %669 = vmatpush.msrb.mxu3 %v548_v0  ;;  %8239 = vst [vmem:[#allocation67_spill] sm:$0xff] %v4882_v56  ;;  %v333_v10 = vand.u32 2147483648, %v4787_v62  ;;  %v346_v62 = vand.u32 2147483647, %v4832_v3 }
  0xa6   :  { %v3543_v63 = vpop.eup %3542  ;;  %8238 = vst [vmem:[#allocation66_spill] sm:$0xff] %v4871_v55  ;;  %649 = vmatpush.msrb.mxu2 %v547_v16  ;;  %630 = vmatpush.msrb.mxu1 %v4871_v55  ;;  %v4890_v16 = vld [vmem:[#allocation6 + $0x40] sm:$0xff]  ;;  %v4892_v0 = vld [vmem:[#allocation6 + $0x48] sm:$0xff]  ;;  %v349_v51 = vor.u32 1.1754944e-38, %v348_v54 }
  0xa7   :  { %v4858_v2 = vadd.f32 1.0, %v3543_v63  ;;  %v4869_v63 = vld [vmem:[#allocation6 + $0x80] sm:$0xff]  ;;  %v326_v6 = vadd.f32 %v4826_v5, %v325_v23  ;;  %670 = vmatpush.msrb.mxu3 %v544_v61  ;;  %v334_v52 = vor.u32 1.1754944e-38, %v333_v10  ;;  %vm347_vm8 = vcmp.eq.f32.partialorder %v346_v62, 8.507059e+37 }
  0xa8   :  { %8237 = vst [vmem:[#allocation65_spill] sm:$0xff] %v4869_v63  ;;  %610 = vmatpush.msra.mxu0 %v4869_v63  ;;  %650 = vmatpush.msrb.mxu2 %v543_v4  ;;  %v536_v4 = vld [vmem:[#allocation6 + $0x58] sm:$0xff] }
  0xa9   :  { %3546 = vrcp.f32 %v4858_v2  ;;  %631 = vmatpush.msrb.mxu1 %v4884_v39  ;;  %v330_v63 = vsel %vm4899_vm3, %v4826_v5, %v326_v6  ;;  %671 = vmatpush.msrb.mxu3 %v540_v60  ;;  %v4920_v60 = vld [vmem:[#allocation6] sm:$0xff]  ;;  %v4922_v6 = vld [vmem:[#allocation6 + $0x8] sm:$0xff]  ;;  %vm357_vm10 = vweird.f32 %v4858_v2 }
  0xaa   :  { %v4873_v59 = vpop.eup %3544  ;;  %3548 = vtanh.f32 %v251_v57  ;;  %611 = vmatpush.msra.mxu0 %v4882_v56  ;;  %651 = vmatpush.msrb.mxu2 %v539_v8  ;;  %v4913_v56 = vld [vmem:[#allocation6 + $0x28] sm:$0xff]  ;;  %v532_v57 = vld [vmem:[#allocation6 + $0x38] sm:$0xff]  ;;  %v335_v50 = vsel %vm332_vm6, %v334_v52, %v330_v63 }
  0xab   :  { %v338_v1 = vmul.f32 %v4873_v59, %v4832_v3  ;;  %vm343_vm4 = vweird.f32 %v4873_v59  ;;  %8243 = vst [vmem:[#allocation69_spill] sm:$0xff] %v4913_v56  ;;  %632 = vmatpush.msrb.mxu1 %v4892_v0  ;;  %672 = vmatpush.msrb.mxu3 %v536_v4  ;;  %v528_v3 = vld [vmem:[#allocation6 + $0x18] sm:$0xff] }
  0xac   :  { %612 = vmatpush.msra.mxu0 %v4890_v16  ;;  %vm344_vm7 = vmor %vm342_vm5, %vm343_vm4 }
  0xad   :  { %v339_v23 = vsub.f32 1.0, %v338_v1  ;;  %v535_v1 = vld [vmem:[#allocation6 + $0x50] sm:$0xff]  ;;  %633 = vmatpush.msrb.mxu1 %v4913_v56  ;;  %673 = vmatpush.msrb.mxu3 %v532_v57  ;;  %v363_v56 = vand.u32 2147483648, %v4858_v2 }
  0xae   :  { %652 = vmatpush.msrb.mxu2 %v535_v1  ;;  %613 = vmatpush.msra.mxu0 %v4911_v53 }
  0xaf   :  { %v3547_v61 = vpop.eup %3546  ;;  %v340_v55 = vmul.f32 %v4873_v59, %v339_v23  ;;  %v531_v23 = vld [vmem:[#allocation6 + $0x30] sm:$0xff]  ;;  %634 = vmatpush.msrb.mxu1 %v4922_v6  ;;  %674 = vmatpush.msrb.mxu3 %v528_v3  ;;  %v364_v62 = vor.u32 1.1754944e-38, %v363_v56  ;;  %v8283_v56 = vld [vmem:[#allocation55_spill] sm:$0xff]  ;;  %v8289_v3 = vld [vmem:[#allocation62_spill] sm:$0xff] }
  0xb0   :  { %v353_v39 = vmul.f32 %v3547_v61, %v4858_v2  ;;  %v3549_v8 = vpop.eup %3548  ;;  %653 = vmatpush.msrb.mxu2 %v531_v23  ;;  %614 = vmatpush.msra.mxu0 %v4920_v60  ;;  %vm358_vm9 = vweird.f32 %v3547_v61 }
  0xb1   :  { %v341_v5 = vadd.f32 %v4873_v59, %v340_v55  ;;  %v369_v54 = vmul.f32 %v3549_v8, %v335_v50  ;;  %vm359_vm11 = vmor %vm357_vm10, %vm358_vm9  ;;  %v8286_v8 = vld [vmem:[#allocation58_spill] sm:$0xff] }
  0xb2   :  { %v354_v10 = vsub.f32 1.0, %v353_v39  ;;  %654 = vmatpush.msrb.mxu2 %v527_v58  ;;  %v8288_v58 = vld [vmem:[#allocation61_spill] sm:$0xff] }
  0xb3   :  { %v345_v55 = vsel %vm344_vm7, %v4873_v59, %v341_v5  ;;  %v8285_v5 = vld [vmem:[#allocation57_spill] sm:$0xff] }
  0xb4   :  { %v355_v1 = vmul.f32 %v3547_v61, %v354_v10  ;;  %v350_v4 = vsel %vm347_vm8, %v349_v51, %v345_v55  ;;  %v361_v51 = vand.u32 2147483647, %v4858_v2  ;;  %v8282_v2 = vld [vmem:[#allocation54_spill] sm:$0xff]  ;;  %v8287_v10 = vld [vmem:[#allocation59_spill] sm:$0xff]  ;;  %v5021_v55 = vpop.f32.mrf.mxu1 }
  0xb5   :  { %v368_v52 = vmul.f32 0.0, %v350_v4  ;;  %v8291_v4 = vld [vmem:[#allocation64_spill] sm:$0xff] }
  0xb6   :  { %v356_v39 = vadd.f32 %v3547_v61, %v355_v1  ;;  %vm362_vm12 = vcmp.eq.f32.partialorder %v361_v51, 8.507059e+37  ;;  %v8290_v1 = vld [vmem:[#allocation63_spill] sm:$0xff]  ;;  %v8295_v51 = vld [vmem:[#allocation68_spill] sm:$0xff] }
  0xb7   :  { %v4931_v63 = vadd.f32 %v369_v54, %v368_v52  ;;  %v8292_v52 = vld [vmem:[#allocation65_spill] sm:$0xff]  ;;  %v8293_v54 = vld [vmem:[#allocation66_spill] sm:$0xff] }
  0xb8   :  { %v360_v59 = vsel %vm359_vm11, %v3547_v61, %v356_v39  ;;  %v8284_v61 = vld [vmem:[#allocation56_spill] sm:$0xff]  ;;  %v8294_v39 = vld [vmem:[#allocation67_spill] sm:$0xff] }
  0xb9   :  { %3550 = vtanh.f32 %v4931_v63  ;;  %v365_v50 = vsel %vm362_vm12, %v364_v62, %v360_v59  ;;  %v5029_v59 = vpop.f32.mrf.mxu2  ;;  %v8296_v62 = vld [vmem:[#allocation69_spill] sm:$0xff] }
  0xbf   :  { %v3551_v23 = vpop.eup %3550 }
  0xc0   :  { %v372_v57 = vmul.f32 %v3551_v23, %v365_v50  ;;  %v5035_v23 = vpop.f32.mrf.mxu1  ;;  %v5039_v50 = vpop.f32.mrf.mxu3 }
  0xc2   :  { %457 = vmatmul.f32.vlgmr.msrb.gmra.mxu0 %v372_v57  ;;  %477 = vmatmul.f32.vlgmr.msra.gmra.mxu1 %v372_v57 }
  0xc3   :  { %497 = vmatmul.f32.vlgmr.msra.gmra.mxu2 %v372_v57  ;;  %517 = vmatmul.f32.vlgmr.msra.gmra.mxu3 %v372_v57 }
  0xc4   :  { %809 = vmatpush.msrb.mxu0 %v4512_v13  ;;  %829 = vmatpush.msra.mxu1 %v4491_v7  ;;  %v8244_v7 = vld [vmem:[#allocation10_spill] sm:$0xff] }
  0xc5   :  { %849 = vmatpush.msra.mxu2 %v4502_v9  ;;  %869 = vmatpush.msra.mxu3 %v4519_v15  ;;  %v8245_v9 = vld [vmem:[#allocation11_spill] sm:$0xff]  ;;  %v8248_v13 = vld [vmem:[#allocation14_spill] sm:$0xff]  ;;  %v8250_v15 = vld [vmem:[#allocation16_spill] sm:$0xff] }
  0xc6   :  { %810 = vmatpush.msrb.mxu0 %v4536_v17  ;;  %830 = vmatpush.msra.mxu1 %v4507_v11  ;;  %v8246_v11 = vld [vmem:[#allocation12_spill] sm:$0xff]  ;;  %v8251_v17 = vld [vmem:[#allocation17_spill] sm:$0xff] }
  0xc7   :  { %850 = vmatpush.msra.mxu2 %v4510_v12  ;;  %870 = vmatpush.msra.mxu3 %v4538_v18  ;;  %v8247_v12 = vld [vmem:[#allocation13_spill] sm:$0xff]  ;;  %v8252_v18 = vld [vmem:[#allocation18_spill] sm:$0xff] }
  0xc8   :  { %811 = vmatpush.msrb.mxu0 %v4544_v20  ;;  %831 = vmatpush.msra.mxu1 %v4517_v14  ;;  %v8249_v14 = vld [vmem:[#allocation15_spill] sm:$0xff]  ;;  %v8254_v20 = vld [vmem:[#allocation20_spill] sm:$0xff] }
  0xc9   :  { %851 = vmatpush.msra.mxu2 %v4542_v19  ;;  %871 = vmatpush.msra.mxu3 %v4546_v21  ;;  %v8253_v19 = vld [vmem:[#allocation19_spill] sm:$0xff]  ;;  %v8255_v21 = vld [vmem:[#allocation21_spill] sm:$0xff] }
  0xca   :  { %615 = vmatmul.f32.vlgmr.msra.gmra.mxu0 %v372_v57  ;;  %635 = vmatmul.f32.vlgmr.msrb.gmra.mxu1 %v372_v57 }
  0xcb   :  { %655 = vmatmul.f32.vlgmr.msrb.gmra.mxu2 %v372_v57  ;;  %675 = vmatmul.f32.vlgmr.msrb.gmra.mxu3 %v372_v57  ;;  %v5041_v57 = vpop.f32.mrf.mxu2 }
  0xcc   :  { %812 = vmatpush.msrb.mxu0 %v4558_v24  ;;  %832 = vmatpush.msra.mxu1 %v4550_v22  ;;  %v8256_v22 = vld [vmem:[#allocation22_spill] sm:$0xff]  ;;  %v8257_v24 = vld [vmem:[#allocation23_spill] sm:$0xff]  ;;  %8297 = vst [vmem:[#allocation10_spill] sm:$0xff] %v5041_v57 }
  0xcd   :  { %852 = vmatpush.msra.mxu2 %v4563_v25  ;;  %872 = vmatpush.msra.mxu3 %v4565_v26  ;;  %v8258_v25 = vld [vmem:[#allocation24_spill] sm:$0xff]  ;;  %v8259_v26 = vld [vmem:[#allocation25_spill] sm:$0xff] }
  0xce   :  { %813 = vmatpush.msrb.mxu0 %v4573_v28  ;;  %833 = vmatpush.msra.mxu1 %v4571_v27  ;;  %v8260_v27 = vld [vmem:[#allocation26_spill] sm:$0xff]  ;;  %v8261_v28 = vld [vmem:[#allocation27_spill] sm:$0xff] }
  0xcf   :  { %853 = vmatpush.msra.mxu2 %v4577_v29  ;;  %873 = vmatpush.msra.mxu3 %v4579_v30  ;;  %v8262_v29 = vld [vmem:[#allocation29_spill] sm:$0xff]  ;;  %v8263_v30 = vld [vmem:[#allocation30_spill] sm:$0xff] }
  0xd0   :  { %814 = vmatpush.msrb.mxu0 %v4584_v31  ;;  %834 = vmatpush.msra.mxu1 %v4586_v32  ;;  %v8264_v31 = vld [vmem:[#allocation31_spill] sm:$0xff]  ;;  %v8265_v32 = vld [vmem:[#allocation32_spill] sm:$0xff] }
  0xd1   :  { %854 = vmatpush.msra.mxu2 %v4588_v33  ;;  %874 = vmatpush.msra.mxu3 %v4592_v34  ;;  %v8266_v33 = vld [vmem:[#allocation34_spill] sm:$0xff]  ;;  %v8267_v34 = vld [vmem:[#allocation35_spill] sm:$0xff] }
  0xd2   :  { %815 = vmatpush.msrb.mxu0 %v4596_v35  ;;  %835 = vmatpush.msra.mxu1 %v4598_v36  ;;  %v8268_v35 = vld [vmem:[#allocation36_spill] sm:$0xff]  ;;  %v8269_v36 = vld [vmem:[#allocation37_spill] sm:$0xff] }
  0xd3   :  { %855 = vmatpush.msra.mxu2 %v4600_v37  ;;  %875 = vmatpush.msra.mxu3 %v4604_v38  ;;  %v8270_v37 = vld [vmem:[#allocation38_spill] sm:$0xff]  ;;  %v8271_v38 = vld [vmem:[#allocation39_spill] sm:$0xff] }
  0xd4   :  { %816 = vmatpush.msrb.mxu0 %v4613_v40  ;;  %836 = vmatpush.msra.mxu1 %v4617_v41  ;;  %v8272_v40 = vld [vmem:[#allocation40_spill] sm:$0xff]  ;;  %v8273_v41 = vld [vmem:[#allocation41_spill] sm:$0xff] }
  0xd5   :  { %856 = vmatpush.msra.mxu2 %v4619_v42  ;;  %876 = vmatpush.msra.mxu3 %v4625_v43  ;;  %v8274_v42 = vld [vmem:[#allocation44_spill] sm:$0xff]  ;;  %v8275_v43 = vld [vmem:[#allocation45_spill] sm:$0xff] }
  0xd6   :  { %817 = vmatpush.msrb.mxu0 %v4627_v44  ;;  %837 = vmatpush.msra.mxu1 %v4632_v45  ;;  %v8276_v44 = vld [vmem:[#allocation46_spill] sm:$0xff]  ;;  %v8277_v45 = vld [vmem:[#allocation47_spill] sm:$0xff] }
  0xd7   :  { %857 = vmatpush.msra.mxu2 %v4634_v46  ;;  %877 = vmatpush.msra.mxu3 %v4638_v47  ;;  %v8278_v46 = vld [vmem:[#allocation49_spill] sm:$0xff]  ;;  %v8279_v47 = vld [vmem:[#allocation50_spill] sm:$0xff] }
  0xd8   :  { %818 = vmatpush.msrb.mxu0 %v4640_v48  ;;  %838 = vmatpush.msra.mxu1 %v4644_v49  ;;  %v8280_v48 = vld [vmem:[#allocation52_spill] sm:$0xff]  ;;  %v8281_v49 = vld [vmem:[#allocation53_spill] sm:$0xff] }
  0xd9   :  { %858 = vmatpush.msra.mxu2 %v8244_v7  ;;  %878 = vmatpush.msra.mxu3 %v8245_v9  ;;  %v5043_v7 = vpop.f32.mrf.mxu1  ;;  %v5045_v9 = vpop.f32.mrf.mxu3 }
  0xda   :  { %819 = vmatpush.msrb.mxu0 %v8246_v11  ;;  %839 = vmatpush.msra.mxu1 %v8247_v12  ;;  %8298 = vst [vmem:[#allocation11_spill] sm:$0xff] %v5043_v7 }
  0xdb   :  { %859 = vmatpush.msra.mxu2 %v8248_v13  ;;  %879 = vmatpush.msra.mxu3 %v8249_v14  ;;  %8299 = vst [vmem:[#allocation12_spill] sm:$0xff] %v5045_v9 }
  0xdc   :  { %820 = vmatpush.msrb.mxu0 %v8250_v15  ;;  %840 = vmatpush.msra.mxu1 %v8251_v17 }
  0xdd   :  { %860 = vmatpush.msra.mxu2 %v8252_v18  ;;  %880 = vmatpush.msra.mxu3 %v8253_v19  ;;  %v5067_v18 = vld [vmem:[#allocation6 + $0x3e0] sm:$0xff]  ;;  %v5069_v19 = vld [vmem:[#allocation6 + $0x3e8] sm:$0xff] }
  0xde   :  { %821 = vmatpush.msrb.mxu0 %v8254_v20  ;;  %841 = vmatpush.msra.mxu1 %v8255_v21 }
  0xdf   :  { %861 = vmatpush.msra.mxu2 %v8256_v22  ;;  %881 = vmatpush.msra.mxu3 %v8257_v24  ;;  %v5077_v22 = vld [vmem:[#allocation6 + $0x3c0] sm:$0xff]  ;;  %v5079_v24 = vld [vmem:[#allocation6 + $0x3c8] sm:$0xff] }
  0xe0   :  { %822 = vmatpush.msrb.mxu0 %v8258_v25  ;;  %842 = vmatpush.msra.mxu1 %v8259_v26  ;;  %v5083_v25 = vld [vmem:[#allocation6 + $0x3a0] sm:$0xff]  ;;  %v5085_v26 = vld [vmem:[#allocation6 + $0x3a8] sm:$0xff] }
  0xe1   :  { %862 = vmatpush.msra.mxu2 %v8260_v27  ;;  %882 = vmatpush.msra.mxu3 %v8261_v28  ;;  %v5051_v11 = vpop.f32.mrf.mxu3 }
  0xe2   :  { %823 = vmatpush.msrb.mxu0 %v8262_v29  ;;  %843 = vmatpush.msra.mxu1 %v8263_v30  ;;  %8302 = vst [vmem:[#allocation15_spill] sm:$0xff] %v5051_v11  ;;  %v5093_v29 = vld [vmem:[#allocation6 + $0x380] sm:$0xff]  ;;  %v5095_v30 = vld [vmem:[#allocation6 + $0x388] sm:$0xff] }
  0xe3   :  { %863 = vmatpush.msra.mxu2 %v8264_v31  ;;  %883 = vmatpush.msra.mxu3 %v8265_v32  ;;  %v5099_v31 = vld [vmem:[#allocation6 + $0x360] sm:$0xff]  ;;  %v5101_v32 = vld [vmem:[#allocation6 + $0x368] sm:$0xff] }
  0xe4   :  { %824 = vmatpush.msrb.mxu0 %v8266_v33  ;;  %844 = vmatpush.msra.mxu1 %v8267_v34  ;;  %v5107_v34 = vld [vmem:[#allocation6 + $0x340] sm:$0xff] }
  0xe5   :  { %864 = vmatpush.msra.mxu2 %v8268_v35  ;;  %884 = vmatpush.msra.mxu3 %v8269_v36  ;;  %v5109_v35 = vld [vmem:[#allocation6 + $0x348] sm:$0xff] }
  0xe6   :  { %1021 = vmatpush.msra.mxu0 %v8270_v37  ;;  %1041 = vmatpush.msrb.mxu1 %v5067_v18  ;;  %v5115_v37 = vld [vmem:[#allocation6 + $0x320] sm:$0xff] }
  0xe7   :  { %1061 = vmatpush.msrb.mxu2 %v8271_v38  ;;  %1081 = vmatpush.msrb.mxu3 %v5069_v19  ;;  %v5117_v38 = vld [vmem:[#allocation6 + $0x328] sm:$0xff] }
  0xe8   :  { %1022 = vmatpush.msra.mxu0 %v8272_v40  ;;  %1042 = vmatpush.msrb.mxu1 %v5077_v22  ;;  %v8316_v40 = vld [vmem:[#allocation42_spill] sm:$0xff] }
  0xe9   :  { %1062 = vmatpush.msrb.mxu2 %v8273_v41  ;;  %v5059_v13 = vpop.f32.mrf.mxu3  ;;  %1082 = vmatpush.msrb.mxu3 %v5079_v24  ;;  %v172_v41 = vadd.f32 %v5021_v55, %v8316_v40 }
  0xea   :  { %1023 = vmatpush.msra.mxu0 %v8274_v42  ;;  %8306 = vst [vmem:[#allocation19_spill] sm:$0xff] %v5059_v13  ;;  %1043 = vmatpush.msrb.mxu1 %v5083_v25  ;;  %v8317_v42 = vld [vmem:[#allocation28_spill] sm:$0xff] }
  0xeb   :  { %1063 = vmatpush.msrb.mxu2 %v8275_v43  ;;  %1083 = vmatpush.msrb.mxu3 %v5085_v26 }
  0xec   :  { %1024 = vmatpush.msra.mxu0 %v8276_v44  ;;  %1044 = vmatpush.msrb.mxu1 %v5093_v29  ;;  %v5124_v44 = vld [vmem:[#allocation6 + $0x300] sm:$0xff] }
  0xed   :  { %1064 = vmatpush.msrb.mxu2 %v8277_v45  ;;  %1084 = vmatpush.msrb.mxu3 %v5095_v30  ;;  %v5126_v45 = vld [vmem:[#allocation6 + $0x308] sm:$0xff] }
  0xee   :  { %1025 = vmatpush.msra.mxu0 %v8278_v46  ;;  %1045 = vmatpush.msrb.mxu1 %v5099_v31 }
  0xef   :  { %1065 = vmatpush.msrb.mxu2 %v8279_v47  ;;  %1085 = vmatpush.msrb.mxu3 %v5101_v32 }
  0xf0   :  { %1026 = vmatpush.msra.mxu0 %v8280_v48  ;;  %1046 = vmatpush.msrb.mxu1 %v5107_v34 }
  0xf1   :  { %1066 = vmatpush.msrb.mxu2 %v8281_v49  ;;  %v5071_v20 = vpop.f32.mrf.mxu3  ;;  %1086 = vmatpush.msrb.mxu3 %v5109_v35 }
  0xf2   :  { %1027 = vmatpush.msra.mxu0 %v8282_v2  ;;  %8310 = vst [vmem:[#allocation23_spill] sm:$0xff] %v5071_v20  ;;  %1047 = vmatpush.msrb.mxu1 %v5115_v37  ;;  %v5130_v2 = vld [vmem:[#allocation6 + $0x2e0] sm:$0xff] }
  0xf3   :  { %1067 = vmatpush.msrb.mxu2 %v8283_v56  ;;  %1087 = vmatpush.msrb.mxu3 %v5117_v38  ;;  %v5132_v56 = vld [vmem:[#allocation6 + $0x2e8] sm:$0xff] }
  0xf4   :  { %1028 = vmatpush.msra.mxu0 %v8284_v61  ;;  %1048 = vmatpush.msrb.mxu1 %v5124_v44  ;;  %v5137_v61 = vld [vmem:[%s7777_s5] sm:$0xf] }
  0xf5   :  { %1068 = vmatpush.msrb.mxu2 %v8285_v5  ;;  %1088 = vmatpush.msrb.mxu3 %v5126_v45  ;;  %v5150_v55 = vperm.slane %v5137_v61, 0 }
  0xf6   :  { %1029 = vmatpush.msra.mxu0 %v8286_v8  ;;  %1049 = vmatpush.msrb.mxu1 %v5130_v2 }
  0xf7   :  { %1069 = vmatpush.msrb.mxu2 %v8287_v10  ;;  %1089 = vmatpush.msrb.mxu3 %v5132_v56  ;;  %v5141_v10 = vld [vmem:[#allocation6 + $0x2c0] sm:$0xff]  ;;  %8319 = vst [vmem:[#allocation31_spill] sm:$0xff] %v5150_v55 }
  0xf8   :  { %1030 = vmatpush.msra.mxu0 %v8288_v58  ;;  %v5143_v58 = vld [vmem:[#allocation6 + $0x2c8] sm:$0xff]  ;;  %1050 = vmatpush.msrb.mxu1 %v5141_v10 }
  0xf9   :  { %1070 = vmatpush.msrb.mxu2 %v8289_v3  ;;  %v5103_v33 = vpop.f32.mrf.mxu3  ;;  %1090 = vmatpush.msrb.mxu3 %v5143_v58 }
  0xfa   :  { %1031 = vmatpush.msra.mxu0 %v8290_v1  ;;  %8314 = vst [vmem:[#allocation27_spill] sm:$0xff] %v5103_v33  ;;  %v5153_v1 = vperm.slane %v5137_v61, 1  ;;  %v5192_v33 = vld [vmem:[#allocation6 + $0x228] sm:$0xff] }
  0xfb   :  { %1071 = vmatpush.msrb.mxu2 %v8291_v4  ;;  %v5155_v4 = vld [vmem:[#allocation6 + $0x2a0] sm:$0xff] }
  0xfc   :  { %1032 = vmatpush.msra.mxu0 %v8292_v52  ;;  %8320 = vst [vmem:[#allocation32_spill] sm:$0xff] %v5153_v1  ;;  %v5157_v52 = vld [vmem:[#allocation6 + $0x2a8] sm:$0xff]  ;;  %1051 = vmatpush.msrb.mxu1 %v5155_v4 }
  0xfd   :  { %1072 = vmatpush.msrb.mxu2 %v8293_v54  ;;  %v8321_v54 = vld [vmem:[#allocation48_spill] sm:$0xff]  ;;  %1091 = vmatpush.msrb.mxu3 %v5157_v52 }
  0xfe   :  { %1033 = vmatpush.msra.mxu0 %v8294_v39  ;;  %v213_v39 = vadd.f32 %v5029_v59, %v8321_v54 }
  0xff   :  { %1073 = vmatpush.msrb.mxu2 %v8295_v51 }
 0x100   :  { %1034 = vmatpush.msra.mxu0 %v4890_v16  ;;  %v5047_v16 = vpop.f32.mrf.mxu2 }
 0x101   :  { %1074 = vmatpush.msrb.mxu2 %v4892_v0  ;;  %8300 = vst [vmem:[#allocation13_spill] sm:$0xff] %v5047_v16  ;;  %v130_v0 = vpop.f32.mrf.mxu0  ;;  %v5145_v3 = vpop.f32.mrf.mxu3 }
 0x102   :  { %1035 = vmatpush.msra.mxu0 %v4911_v53  ;;  %v5049_v53 = vpop.f32.mrf.mxu1  ;;  %v131_v43 = vadd.f32 %v130_v0, %v8317_v42  ;;  %8318 = vst [vmem:[#allocation30_spill] sm:$0xff] %v5145_v3  ;;  %v5165_v0 = vld [vmem:[#allocation6 + $0x288] sm:$0xff] }
 0x103   :  { %1075 = vmatpush.msrb.mxu2 %v8296_v62  ;;  %8301 = vst [vmem:[#allocation14_spill] sm:$0xff] %v5049_v53  ;;  %v5163_v62 = vld [vmem:[#allocation6 + $0x280] sm:$0xff]  ;;  %1092 = vmatpush.msrb.mxu3 %v5165_v0  ;;  %v5179_v3 = vld [vmem:[#allocation6 + $0x248] sm:$0xff] }
 0x104   :  { %1036 = vmatpush.msra.mxu0 %v4920_v60  ;;  %1052 = vmatpush.msrb.mxu1 %v5163_v62 }
 0x105   :  { %1076 = vmatpush.msrb.mxu2 %v4922_v6 }
 0x108   :  { %v5053_v12 = vpop.f32.mrf.mxu2 }
 0x109   :  { %8303 = vst [vmem:[#allocation16_spill] sm:$0xff] %v5053_v12  ;;  %v5055_v60 = vpop.f32.mrf.mxu0 }
 0x10a   :  { %8304 = vst [vmem:[#allocation17_spill] sm:$0xff] %v5055_v60  ;;  %v5057_v6 = vpop.f32.mrf.mxu1 }
 0x10b   :  { %8305 = vst [vmem:[#allocation18_spill] sm:$0xff] %v5057_v6 }
 0x110   :  { %v5061_v14 = vpop.f32.mrf.mxu2 }
 0x111   :  { %8307 = vst [vmem:[#allocation20_spill] sm:$0xff] %v5061_v14  ;;  %v5063_v15 = vpop.f32.mrf.mxu0 }
 0x112   :  { %8308 = vst [vmem:[#allocation21_spill] sm:$0xff] %v5063_v15  ;;  %v5065_v17 = vpop.f32.mrf.mxu1 }
 0x113   :  { %8309 = vst [vmem:[#allocation22_spill] sm:$0xff] %v5065_v17 }
 0x118   :  { %v5075_v21 = vpop.f32.mrf.mxu2 }
 0x119   :  { %8311 = vst [vmem:[#allocation24_spill] sm:$0xff] %v5075_v21  ;;  %v5087_v27 = vpop.f32.mrf.mxu0  ;;  %v8323_v21 = vld [vmem:[#allocation60_spill] sm:$0xff] }
 0x11a   :  { %8312 = vst [vmem:[#allocation25_spill] sm:$0xff] %v5087_v27  ;;  %v5089_v28 = vpop.f32.mrf.mxu1 }
 0x11b   :  { %8313 = vst [vmem:[#allocation26_spill] sm:$0xff] %v5089_v28 }
 0x120   :  { %v5113_v36 = vpop.f32.mrf.mxu2 }
 0x121   :  { %8315 = vst [vmem:[#allocation29_spill] sm:$0xff] %v5113_v36 }
 0x13f   :  { %v458_v46 = vpop.f32.mrf.mxu0  ;;  %v478_v47 = vpop.f32.mrf.mxu1 }
 0x140   :  { %v521_v48 = vadd.f32 %v458_v46, %v131_v43  ;;  %v522_v49 = vadd.f32 %v478_v47, %v172_v41 }
 0x142   :  { %v3483_v5 = vmul.f32 -1.442695, %v521_v48  ;;  %v3484_v8 = vmul.f32 -1.442695, %v522_v49  ;;  %v5171_v48 = vld [vmem:[#allocation6 + $0x260] sm:$0xff]  ;;  %v5173_v49 = vld [vmem:[#allocation6 + $0x268] sm:$0xff] }
 0x143   :  { %1053 = vmatpush.msrb.mxu1 %v5171_v48  ;;  %1093 = vmatpush.msrb.mxu3 %v5173_v49 }
 0x144   :  { %3552 = vpow2.f32 %v3483_v5 }
 0x145   :  { %3554 = vpow2.f32 %v3484_v8  ;;  %1094 = vmatpush.msrb.mxu3 %v5179_v3 }
 0x146   :  { %v498_v51 = vpop.f32.mrf.mxu2 }
 0x147   :  { %v523_v41 = vadd.f32 %v498_v51, %v213_v39  ;;  %v616_v43 = vpop.f32.mrf.mxu0  ;;  %v636_v46 = vpop.f32.mrf.mxu1  ;;  %v5177_v51 = vld [vmem:[#allocation6 + $0x240] sm:$0xff]  ;;  %1095 = vmatpush.msrb.mxu3 %v5192_v33 }
 0x148   :  { %v617_v47 = vadd.f32 %v616_v43, %v5150_v55  ;;  %v637_v59 = vadd.f32 %v636_v46, %v5153_v1  ;;  %v5184_v46 = vperm.slane %v5137_v61, 2  ;;  %1054 = vmatpush.msrb.mxu1 %v5177_v51 }
 0x149   :  { %v3485_v5 = vmul.f32 -1.442695, %v523_v41 }
 0x14a   :  { %v3553_v8 = vpop.eup %3552  ;;  %v3486_v39 = vmul.f32 -1.442695, %v617_v47  ;;  %v3487_v43 = vmul.f32 -1.442695, %v637_v59  ;;  %8322 = vst [vmem:[#allocation34_spill] sm:$0xff] %v5184_v46  ;;  %v5190_v47 = vld [vmem:[#allocation6 + $0x220] sm:$0xff] }
 0x14b   :  { %v3555_v36 = vpop.eup %3554  ;;  %v5181_v28 = vadd.f32 1.0, %v3553_v8  ;;  %3556 = vpow2.f32 %v3485_v5  ;;  %v518_v8 = vpop.f32.mrf.mxu3  ;;  %1055 = vmatpush.msrb.mxu1 %v5190_v47  ;;  %v5197_v59 = vld [vmem:[#allocation6 + $0x200] sm:$0xff]  ;;  %v5199_v5 = vld [vmem:[#allocation6 + $0x208] sm:$0xff] }
 0x14c   :  { %v5188_v41 = vadd.f32 1.0, %v3555_v36  ;;  %3558 = vpow2.f32 %v3486_v39  ;;  %v254_v39 = vadd.f32 %v5039_v50, %v8323_v21  ;;  %1096 = vmatpush.msrb.mxu3 %v5199_v5 }
 0x14d   :  { %3560 = vrcp.f32 %v5181_v28  ;;  %1056 = vmatpush.msrb.mxu1 %v5197_v59  ;;  %vm696_vm15 = vweird.f32 %v5181_v28 }
 0x14e   :  { %3562 = vrcp.f32 %v5188_v41  ;;  %v656_v36 = vpop.f32.mrf.mxu2  ;;  %v524_v14 = vadd.f32 %v518_v8, %v254_v39  ;;  %v700_v8 = vand.u32 2147483647, %v5181_v28  ;;  %v702_v39 = vand.u32 2147483648, %v5181_v28 }
 0x14f   :  { %3564 = vpow2.f32 %v3487_v43  ;;  %v657_v17 = vadd.f32 %v656_v36, %v5184_v46  ;;  %vm711_vm0 = vweird.f32 %v5188_v41 }
 0x150   :  { %vm701_vm2 = vcmp.eq.f32.partialorder %v700_v8, 8.507059e+37  ;;  %v703_v21 = vor.u32 1.1754944e-38, %v702_v39 }
 0x151   :  { %v3557_v20 = vpop.eup %3556  ;;  %v3488_v6 = vmul.f32 -1.442695, %v657_v17 }
 0x152   :  { %v3559_v13 = vpop.eup %3558  ;;  %v5207_v12 = vadd.f32 1.0, %v3557_v20  ;;  %v5218_v20 = vperm.slane %v5137_v61, 3 }
 0x153   :  { %v3561_v27 = vpop.eup %3560  ;;  %v5209_v53 = vadd.f32 1.0, %v3559_v13  ;;  %3566 = vpow2.f32 %v3488_v6  ;;  %v717_v6 = vand.u32 2147483648, %v5188_v41  ;;  %v676_v15 = vpop.f32.mrf.mxu3 }
 0x154   :  { %v3563_v11 = vpop.eup %3562  ;;  %v692_v50 = vmul.f32 %v3561_v27, %v5181_v28  ;;  %3568 = vrcp.f32 %v5207_v12  ;;  %8324 = vst [vmem:[#allocation35_spill] sm:$0xff] %v5218_v20  ;;  %vm697_vm13 = vweird.f32 %v3561_v27  ;;  %v677_v1 = vadd.f32 %v676_v15, %v5218_v20 }
 0x155   :  { %v3565_v43 = vpop.eup %3564  ;;  %v707_v36 = vmul.f32 %v3563_v11, %v5188_v41  ;;  %3570 = vtanh.f32 %v524_v14  ;;  %v715_v14 = vand.u32 2147483647, %v5188_v41  ;;  %vm712_vm14 = vweird.f32 %v3563_v11  ;;  %vm698_vm1 = vmor %vm696_vm15, %vm697_vm13 }
 0x156   :  { %v693_v16 = vsub.f32 1.0, %v692_v50  ;;  %3572 = vrcp.f32 %v5209_v53  ;;  %v5215_v17 = vadd.f32 1.0, %v3565_v43  ;;  %vm713_vm3 = vmor %vm711_vm0, %vm712_vm14  ;;  %v718_v28 = vor.u32 1.1754944e-38, %v717_v6 }
 0x157   :  { %v708_v13 = vsub.f32 1.0, %v707_v36  ;;  %vm716_vm4 = vcmp.eq.f32.partialorder %v715_v14, 8.507059e+37  ;;  %vm726_vm5 = vweird.f32 %v5207_v12  ;;  %vm759_vm10 = vweird.f32 %v5209_v53 }
 0x158   :  { %v694_v7 = vmul.f32 %v3561_v27, %v693_v16  ;;  %3574 = vrcp.f32 %v5215_v17  ;;  %vm774_vm11 = vweird.f32 %v5215_v17 }
 0x159   :  { %v3567_v50 = vpop.eup %3566  ;;  %v709_v43 = vmul.f32 %v3563_v11, %v708_v13 }
 0x15a   :  { %v5226_v61 = vpop.eup %3568  ;;  %v695_v36 = vadd.f32 %v3561_v27, %v694_v7  ;;  %v5229_v46 = vadd.f32 1.0, %v3567_v50 }
 0x15b   :  { %v3571_v16 = vpop.eup %3570  ;;  %v722_v9 = vmul.f32 %v5226_v61, %v5207_v12  ;;  %v710_v13 = vadd.f32 %v3563_v11, %v709_v43  ;;  %vm727_vm6 = vweird.f32 %v5226_v61 }
 0x15c   :  { %v3573_v55 = vpop.eup %3572  ;;  %v699_v57 = vsel %vm698_vm1, %v3561_v27, %v695_v36  ;;  %3576 = vrcp.f32 %v5229_v46  ;;  %v732_v27 = vand.u32 2147483648, %v5207_v12  ;;  %v778_v36 = vand.u32 2147483647, %v5215_v17  ;;  %vm5256_vm9 = vmor %vm726_vm5, %vm727_vm6 }
 0x15d   :  { %v723_v7 = vsub.f32 1.0, %v722_v9  ;;  %v704_v41 = vsel %vm701_vm2, %v703_v21, %v699_v57  ;;  %v714_v50 = vsel %vm713_vm3, %v3563_v11, %v710_v13  ;;  %v755_v15 = vmul.f32 %v3573_v55, %v5209_v53 }
 0x15e   :  { %v3575_v20 = vpop.eup %3574  ;;  %v719_v54 = vsel %vm716_vm4, %v718_v28, %v714_v50  ;;  %v738_v60 = vmul.f32 %v3571_v16, %v704_v41  ;;  %3578 = vtanh.f32 %v677_v1  ;;  %v763_v57 = vand.u32 2147483647, %v5209_v53  ;;  %v5298_v28 = vld [vmem:[#allocation6 + $0x3b0] sm:$0xff] }
 0x15f   :  { %v724_v8 = vmul.f32 %v5226_v61, %v723_v7  ;;  %v737_v39 = vmul.f32 %v719_v54, %v4931_v63  ;;  %v756_v43 = vsub.f32 1.0, %v755_v15  ;;  %v770_v6 = vmul.f32 %v3575_v20, %v5215_v17 }
 0x160   :  { %v765_v9 = vand.u32 2147483648, %v5209_v53  ;;  %v780_v54 = vand.u32 2147483648, %v5215_v17  ;;  %vm760_vm7 = vweird.f32 %v3573_v55  ;;  %vm775_vm8 = vweird.f32 %v3575_v20 }
 0x161   :  { %v5244_v11 = vadd.f32 %v738_v60, %v737_v39  ;;  %v771_v21 = vsub.f32 1.0, %v770_v6  ;;  %v757_v1 = vmul.f32 %v3573_v55, %v756_v43  ;;  %v725_v63 = vadd.f32 %v5226_v61, %v724_v8  ;;  %vm761_vm12 = vmor %vm759_vm10, %vm760_vm7 }
 0x162   :  { %v5246_v14 = vpop.eup %3576  ;;  %v730_v7 = vand.u32 2147483647, %v5207_v12  ;;  %v766_v15 = vor.u32 1.1754944e-38, %v765_v9  ;;  %v781_v43 = vor.u32 1.1754944e-38, %v780_v54  ;;  %vm764_vm13 = vcmp.eq.f32.partialorder %v763_v57, 8.507059e+37  ;;  %vm776_vm14 = vmor %vm774_vm11, %vm775_vm8  ;;  %v5283_v57 = vld [vmem:[#allocation6 + $0x3d0] sm:$0xff] }
 0x163   :  { %8325 = vst [vmem:[#allocation36_spill] sm:$0xff] %v5244_v11  ;;  %3580 = vtanh.f32 %v5244_v11  ;;  %v772_v16 = vmul.f32 %v3575_v20, %v771_v21  ;;  %v785_v13 = vmul.f32 %v5246_v14, %v5229_v46  ;;  %v758_v41 = vadd.f32 %v3573_v55, %v757_v1  ;;  %v5290_v54 = vld [vmem:[#allocation6 + $0x3d8] sm:$0xff] }
 0x164   :  { %v3579_v60 = vpop.eup %3578  ;;  %v729_v39 = vsel %vm5256_vm9, %v5226_v61, %v725_v63  ;;  %v733_v21 = vor.u32 1.1754944e-38, %v732_v27  ;;  %vm779_vm15 = vcmp.eq.f32.partialorder %v778_v36, 8.507059e+37  ;;  %vm731_vm0 = vcmp.eq.f32.partialorder %v730_v7, 8.507059e+37  ;;  %v5286_v63 = vld [vmem:[#allocation6 + $0x1f0] sm:$0xff]  ;;  %v5359_v7 = vld [vmem:[#allocation6 + $0x158] sm:$0xff] }
 0x165   :  { %v786_v50 = vsub.f32 1.0, %v785_v13  ;;  %v773_v8 = vadd.f32 %v3575_v20, %v772_v16  ;;  %v762_v6 = vsel %vm761_vm12, %v3573_v55, %v758_v41  ;;  %v5272_v55 = vld [vmem:[#allocation6 + $0x3f0] sm:$0xff]  ;;  %vm790_vm1 = vweird.f32 %v5246_v14  ;;  %8336 = vst [vmem:[#allocation45_spill] sm:$0xff] %v5359_v7 }
 0x166   :  { %v767_v12 = vsel %vm764_vm13, %v766_v15, %v762_v6  ;;  %v734_v16 = vsel %vm731_vm0, %v733_v21, %v729_v39  ;;  %vm789_vm2 = vweird.f32 %v5229_v46  ;;  %v793_v36 = vand.u32 2147483647, %v5229_v46  ;;  %v5306_v41 = vld [vmem:[#allocation6 + $0x1d0] sm:$0xff]  ;;  %v5315_v15 = vld [vmem:[#allocation6 + $0x1d8] sm:$0xff] }
 0x167   :  { %v777_v1 = vsel %vm776_vm14, %v3575_v20, %v773_v8  ;;  %v801_v17 = vmul.f32 %v3579_v60, %v767_v12  ;;  %v787_v13 = vmul.f32 %v5246_v14, %v786_v50  ;;  %v5276_v20 = vld [vmem:[#allocation6 + $0x3f8] sm:$0xff]  ;;  %vm5302_vm3 = vmor %vm789_vm2, %vm790_vm1  ;;  %v5319_v8 = vld [vmem:[#allocation6 + $0x390] sm:$0xff] }
 0x168   :  { %v782_v53 = vsel %vm779_vm15, %v781_v43, %v777_v1  ;;  %v5294_v60 = vld [vmem:[#allocation6 + $0x1f8] sm:$0xff]  ;;  %v5321_v43 = vld [vmem:[#allocation6 + $0x1b0] sm:$0xff]  ;;  %vm794_vm4 = vcmp.eq.f32.partialorder %v793_v36, 8.507059e+37 }
 0x169   :  { %v3581_v9 = vpop.eup %3580  ;;  %v800_v11 = vmul.f32 0.0, %v782_v53  ;;  %v788_v27 = vadd.f32 %v5246_v14, %v787_v13  ;;  %v5325_v6 = vld [vmem:[#allocation6 + $0x398] sm:$0xff]  ;;  %v5331_v1 = vld [vmem:[#allocation6 + $0x190] sm:$0xff] }
 0x16a   :  { %v5268_v42 = vmul.f32 %v3581_v9, %v734_v16  ;;  %v5341_v13 = vld [vmem:[#allocation6 + $0x170] sm:$0xff]  ;;  %v5347_v16 = vld [vmem:[#allocation6 + $0x178] sm:$0xff] }
 0x16b   :  { %v5270_v61 = vadd.f32 %v801_v17, %v800_v11  ;;  %v795_v11 = vand.u32 2147483648, %v5229_v46  ;;  %v5310_v46 = vld [vmem:[#allocation6 + $0x3b8] sm:$0xff]  ;;  %v792_v50 = vsel %vm5302_vm3, %v5246_v14, %v788_v27  ;;  %8330 = vst [vmem:[#allocation37_spill] sm:$0xff] %v5341_v13  ;;  %v5343_v9 = vld [vmem:[#allocation6 + $0x370] sm:$0xff] }
 0x16c   :  { %825 = vmatmul.f32.vlgmr.msrb.gmra.mxu0 %v5268_v42  ;;  %845 = vmatmul.f32.vlgmr.msra.gmra.mxu1 %v5268_v42  ;;  %v5327_v14 = vld [vmem:[#allocation6 + $0x1b8] sm:$0xff]  ;;  %8331 = vst [vmem:[#allocation38_spill] sm:$0xff] %v5343_v9  ;;  %v5355_v36 = vld [vmem:[#allocation6 + $0x350] sm:$0xff] }
 0x16d   :  { %3582 = vtanh.f32 %v5270_v61  ;;  %865 = vmatmul.f32.vlgmr.msra.gmra.mxu2 %v5268_v42  ;;  %885 = vmatmul.f32.vlgmr.msra.gmra.mxu3 %v5268_v42  ;;  %v796_v39 = vor.u32 1.1754944e-38, %v795_v11  ;;  %v5337_v17 = vld [vmem:[#allocation6 + $0x198] sm:$0xff]  ;;  %8332 = vst [vmem:[#allocation39_spill] sm:$0xff] %v5347_v16  ;;  %v5353_v11 = vld [vmem:[#allocation6 + $0x150] sm:$0xff] }
 0x16e   :  { %1101 = vmatpush.msrb.mxu0 %v5286_v63  ;;  %1121 = vmatpush.msra.mxu1 %v5272_v55  ;;  %v5349_v27 = vld [vmem:[#allocation6 + $0x378] sm:$0xff]  ;;  %8334 = vst [vmem:[#allocation41_spill] sm:$0xff] %v5353_v11 }
 0x16f   :  { %1141 = vmatpush.msra.mxu2 %v5294_v60  ;;  %1161 = vmatpush.msra.mxu3 %v5276_v20  ;;  %v797_v12 = vsel %vm794_vm4, %v796_v39, %v792_v50  ;;  %8333 = vst [vmem:[#allocation40_spill] sm:$0xff] %v5349_v27  ;;  %v5361_v50 = vld [vmem:[#allocation6 + $0x358] sm:$0xff]  ;;  %v5365_v39 = vld [vmem:[#allocation6 + $0x130] sm:$0xff] }
 0x170   :  { %1102 = vmatpush.msrb.mxu0 %v5306_v41  ;;  %1122 = vmatpush.msra.mxu1 %v5283_v57  ;;  %8335 = vst [vmem:[#allocation44_spill] sm:$0xff] %v5355_v36 }
 0x171   :  { %1142 = vmatpush.msra.mxu2 %v5315_v15  ;;  %1162 = vmatpush.msra.mxu3 %v5290_v54  ;;  %8337 = vst [vmem:[#allocation46_spill] sm:$0xff] %v5361_v50 }
 0x172   :  { %1103 = vmatpush.msrb.mxu0 %v5321_v43  ;;  %1123 = vmatpush.msra.mxu1 %v5298_v28  ;;  %8338 = vst [vmem:[#allocation47_spill] sm:$0xff] %v5365_v39 }
 0x173   :  { %v3583_v21 = vpop.eup %3582  ;;  %1143 = vmatpush.msra.mxu2 %v5327_v14  ;;  %1163 = vmatpush.msra.mxu3 %v5310_v46 }
 0x174   :  { %1104 = vmatpush.msrb.mxu0 %v5331_v1  ;;  %1124 = vmatpush.msra.mxu1 %v5319_v8  ;;  %v5335_v53 = vmul.f32 %v3583_v21, %v797_v12  ;;  %v5367_v21 = vld [vmem:[#allocation6 + $0x330] sm:$0xff]  ;;  %v5371_v12 = vld [vmem:[#allocation6 + $0x138] sm:$0xff] }
 0x175   :  { %1144 = vmatpush.msra.mxu2 %v5337_v17  ;;  %1164 = vmatpush.msra.mxu3 %v5325_v6  ;;  %8339 = vst [vmem:[#allocation49_spill] sm:$0xff] %v5367_v21 }
 0x176   :  { %1037 = vmatmul.f32.vlgmr.msra.gmra.mxu0 %v5268_v42  ;;  %1057 = vmatmul.f32.vlgmr.msrb.gmra.mxu1 %v5335_v53  ;;  %8340 = vst [vmem:[#allocation50_spill] sm:$0xff] %v5371_v12 }
 0x177   :  { %1077 = vmatmul.f32.vlgmr.msrb.gmra.mxu2 %v5268_v42  ;;  %1097 = vmatmul.f32.vlgmr.msrb.gmra.mxu3 %v5335_v53 }
 0x178   :  { %1105 = vmatpush.msrb.mxu0 %v5341_v13  ;;  %1125 = vmatpush.msra.mxu1 %v5343_v9  ;;  %v5373_v13 = vld [vmem:[#allocation6 + $0x338] sm:$0xff]  ;;  %v5377_v9 = vld [vmem:[#allocation6 + $0x110] sm:$0xff] }
 0x179   :  { %1145 = vmatpush.msra.mxu2 %v5347_v16  ;;  %1165 = vmatpush.msra.mxu3 %v5349_v27  ;;  %8341 = vst [vmem:[#allocation52_spill] sm:$0xff] %v5373_v13  ;;  %v5379_v16 = vld [vmem:[#allocation6 + $0x310] sm:$0xff]  ;;  %v5383_v27 = vld [vmem:[#allocation6 + $0x118] sm:$0xff] }
 0x17a   :  { %1106 = vmatpush.msrb.mxu0 %v5353_v11  ;;  %1126 = vmatpush.msra.mxu1 %v5355_v36  ;;  %8342 = vst [vmem:[#allocation53_spill] sm:$0xff] %v5377_v9  ;;  %v5385_v11 = vld [vmem:[#allocation6 + $0x318] sm:$0xff]  ;;  %v5389_v36 = vld [vmem:[#allocation6 + $0xf0] sm:$0xff] }
 0x17b   :  { %1146 = vmatpush.msra.mxu2 %v5359_v7  ;;  %1166 = vmatpush.msra.mxu3 %v5361_v50  ;;  %8343 = vst [vmem:[#allocation54_spill] sm:$0xff] %v5379_v16  ;;  %v5391_v7 = vld [vmem:[#allocation6 + $0x2f0] sm:$0xff]  ;;  %v5395_v50 = vld [vmem:[#allocation6 + $0xf8] sm:$0xff] }
 0x17c   :  { %1107 = vmatpush.msrb.mxu0 %v5365_v39  ;;  %1127 = vmatpush.msra.mxu1 %v5367_v21  ;;  %8344 = vst [vmem:[#allocation55_spill] sm:$0xff] %v5383_v27  ;;  %v5397_v39 = vld [vmem:[#allocation6 + $0x2f8] sm:$0xff]  ;;  %v5401_v21 = vld [vmem:[#allocation6 + $0xd0] sm:$0xff] }
 0x17d   :  { %8345 = vst [vmem:[#allocation56_spill] sm:$0xff] %v5385_v11  ;;  %1147 = vmatpush.msra.mxu2 %v5371_v12  ;;  %1167 = vmatpush.msra.mxu3 %v5373_v13  ;;  %v5403_v12 = vld [vmem:[#allocation6 + $0x2d0] sm:$0xff]  ;;  %v5407_v13 = vld [vmem:[#allocation6 + $0xd8] sm:$0xff] }
 0x17e   :  { %8346 = vst [vmem:[#allocation57_spill] sm:$0xff] %v5389_v36  ;;  %1108 = vmatpush.msrb.mxu0 %v5377_v9  ;;  %1128 = vmatpush.msra.mxu1 %v5379_v16  ;;  %v5409_v9 = vld [vmem:[#allocation6 + $0x2d8] sm:$0xff]  ;;  %v5413_v16 = vld [vmem:[#allocation6 + $0xb0] sm:$0xff] }
 0x17f   :  { %8347 = vst [vmem:[#allocation58_spill] sm:$0xff] %v5391_v7  ;;  %1148 = vmatpush.msra.mxu2 %v5383_v27  ;;  %1168 = vmatpush.msra.mxu3 %v5385_v11  ;;  %v5415_v27 = vld [vmem:[#allocation6 + $0x2b0] sm:$0xff]  ;;  %v5419_v11 = vld [vmem:[#allocation6 + $0xb8] sm:$0xff] }
 0x180   :  { %8348 = vst [vmem:[#allocation59_spill] sm:$0xff] %v5395_v50  ;;  %1109 = vmatpush.msrb.mxu0 %v5389_v36  ;;  %1129 = vmatpush.msra.mxu1 %v5391_v7  ;;  %v5421_v36 = vld [vmem:[#allocation6 + $0x2b8] sm:$0xff]  ;;  %v5425_v7 = vld [vmem:[#allocation6 + $0x90] sm:$0xff] }
 0x181   :  { %8349 = vst [vmem:[#allocation61_spill] sm:$0xff] %v5397_v39  ;;  %1149 = vmatpush.msra.mxu2 %v5395_v50  ;;  %1169 = vmatpush.msra.mxu3 %v5397_v39  ;;  %v5427_v50 = vld [vmem:[#allocation6 + $0x290] sm:$0xff]  ;;  %v5431_v39 = vld [vmem:[#allocation6 + $0x98] sm:$0xff] }
 0x182   :  { %8350 = vst [vmem:[#allocation62_spill] sm:$0xff] %v5401_v21  ;;  %1110 = vmatpush.msrb.mxu0 %v5401_v21  ;;  %1130 = vmatpush.msra.mxu1 %v5403_v12  ;;  %v5433_v21 = vld [vmem:[#allocation6 + $0x298] sm:$0xff] }
 0x183   :  { %8351 = vst [vmem:[#allocation63_spill] sm:$0xff] %v5403_v12  ;;  %1150 = vmatpush.msra.mxu2 %v5407_v13  ;;  %1170 = vmatpush.msra.mxu3 %v5409_v9  ;;  %v5437_v12 = vld [vmem:[#allocation6 + $0x70] sm:$0xff] }
 0x184   :  { %8352 = vst [vmem:[#allocation64_spill] sm:$0xff] %v5407_v13  ;;  %1111 = vmatpush.msrb.mxu0 %v5413_v16  ;;  %1131 = vmatpush.msra.mxu1 %v5415_v27  ;;  %v5439_v13 = vld [vmem:[#allocation6 + $0x270] sm:$0xff] }
 0x185   :  { %8353 = vst [vmem:[#allocation65_spill] sm:$0xff] %v5409_v9  ;;  %1151 = vmatpush.msra.mxu2 %v5419_v11  ;;  %1171 = vmatpush.msra.mxu3 %v5421_v36  ;;  %v5443_v9 = vld [vmem:[#allocation6 + $0x78] sm:$0xff] }
 0x186   :  { %8354 = vst [vmem:[#allocation66_spill] sm:$0xff] %v5413_v16  ;;  %1112 = vmatpush.msrb.mxu0 %v5425_v7  ;;  %1132 = vmatpush.msra.mxu1 %v5427_v50  ;;  %v5445_v16 = vld [vmem:[#allocation6 + $0x278] sm:$0xff] }
 0x187   :  { %8355 = vst [vmem:[#allocation67_spill] sm:$0xff] %v5415_v27  ;;  %1152 = vmatpush.msra.mxu2 %v5431_v39  ;;  %1172 = vmatpush.msra.mxu3 %v5433_v21  ;;  %v5449_v27 = vld [vmem:[#allocation6 + $0x50] sm:$0xff] }
 0x188   :  { %8356 = vst [vmem:[#allocation68_spill] sm:$0xff] %v5419_v11  ;;  %v5451_v11 = vld [vmem:[#allocation6 + $0x250] sm:$0xff]  ;;  %1113 = vmatpush.msrb.mxu0 %v5437_v12  ;;  %1133 = vmatpush.msra.mxu1 %v5439_v13 }
 0x189   :  { %8357 = vst [vmem:[#allocation69_spill] sm:$0xff] %v5421_v36  ;;  %v5455_v36 = vld [vmem:[#allocation6 + $0x58] sm:$0xff]  ;;  %1153 = vmatpush.msra.mxu2 %v5443_v9  ;;  %1173 = vmatpush.msra.mxu3 %v5445_v16 }
 0x18a   :  { %8358 = vst [vmem:[#allocation70_spill] sm:$0xff] %v5425_v7  ;;  %v5457_v7 = vld [vmem:[#allocation6 + $0x258] sm:$0xff]  ;;  %1114 = vmatpush.msrb.mxu0 %v5449_v27  ;;  %1134 = vmatpush.msra.mxu1 %v5451_v11 }
 0x18b   :  { %8359 = vst [vmem:[#allocation71_spill] sm:$0xff] %v5427_v50  ;;  %v5461_v50 = vld [vmem:[#allocation6 + $0x30] sm:$0xff]  ;;  %1154 = vmatpush.msra.mxu2 %v5455_v36  ;;  %1174 = vmatpush.msra.mxu3 %v5457_v7 }
 0x18c   :  { %8360 = vst [vmem:[#allocation72_spill] sm:$0xff] %v5431_v39  ;;  %v5463_v39 = vld [vmem:[#allocation6 + $0x230] sm:$0xff]  ;;  %1115 = vmatpush.msrb.mxu0 %v5461_v50 }
 0x18d   :  { %8361 = vst [vmem:[#allocation73_spill] sm:$0xff] %v5433_v21  ;;  %v5467_v21 = vld [vmem:[#allocation6 + $0x38] sm:$0xff]  ;;  %1135 = vmatpush.msra.mxu1 %v5463_v39 }
 0x18e   :  { %8362 = vst [vmem:[#allocation74_spill] sm:$0xff] %v5437_v12  ;;  %v5469_v12 = vld [vmem:[#allocation6 + $0x238] sm:$0xff]  ;;  %1155 = vmatpush.msra.mxu2 %v5467_v21 }
 0x18f   :  { %8363 = vst [vmem:[#allocation75_spill] sm:$0xff] %v5439_v13  ;;  %v5473_v13 = vld [vmem:[#allocation6 + $0x10] sm:$0xff]  ;;  %1175 = vmatpush.msra.mxu3 %v5469_v12 }
 0x190   :  { %8364 = vst [vmem:[#allocation76_spill] sm:$0xff] %v5443_v9  ;;  %v5475_v9 = vld [vmem:[#allocation6 + $0x210] sm:$0xff]  ;;  %1116 = vmatpush.msrb.mxu0 %v5473_v13 }
 0x191   :  { %8365 = vst [vmem:[#allocation77_spill] sm:$0xff] %v5445_v16  ;;  %v5479_v16 = vld [vmem:[#allocation6 + $0x18] sm:$0xff]  ;;  %1136 = vmatpush.msra.mxu1 %v5475_v9  ;;  %1117 = vmatmul.f32.vlgmr.msrb.gmra.mxu0 %v5268_v42 }
 0x192   :  { %8366 = vst [vmem:[#allocation78_spill] sm:$0xff] %v5449_v27  ;;  %v5481_v27 = vld [vmem:[#allocation6 + $0x218] sm:$0xff]  ;;  %1156 = vmatpush.msra.mxu2 %v5479_v16  ;;  %1137 = vmatmul.f32.vlgmr.msra.gmra.mxu1 %v5335_v53 }
 0x193   :  { %8367 = vst [vmem:[#allocation79_spill] sm:$0xff] %v5463_v39  ;;  %1176 = vmatpush.msra.mxu3 %v5481_v27  ;;  %1157 = vmatmul.f32.vlgmr.msra.gmra.mxu2 %v5268_v42  ;;  %v5493_v39 = vld [vmem:[#allocation4 + $0x1e0] sm:$0xff]  ;;  %v5508_v42 = vld [vmem:[#allocation4 + $0x1c8] sm:$0xff] }
 0x194   :  { %8368 = vst [vmem:[#allocation80_spill] sm:$0xff] %v5469_v12  ;;  %1177 = vmatmul.f32.vlgmr.msra.gmra.mxu3 %v5335_v53  ;;  %1311 = vmatpush.msra.mxu0 %v5493_v39  ;;  %v5496_v12 = vld [vmem:[#allocation4 + $0x1e8] sm:$0xff]  ;;  %v5511_v53 = vld [vmem:[#allocation4 + $0x1d0] sm:$0xff] }
 0x195   :  { %8369 = vst [vmem:[#allocation81_spill] sm:$0xff] %v5475_v9  ;;  %1331 = vmatpush.msrb.mxu1 %v5496_v12  ;;  %v5499_v9 = vld [vmem:[#allocation4 + $0x1f0] sm:$0xff] }
 0x196   :  { %8370 = vst [vmem:[#allocation82_spill] sm:$0xff] %v5479_v16  ;;  %1351 = vmatpush.msrb.mxu2 %v5499_v9  ;;  %v5505_v16 = vld [vmem:[#allocation4 + $0x1c0] sm:$0xff] }
 0x197   :  { %8371 = vst [vmem:[#allocation83_spill] sm:$0xff] %v5481_v27  ;;  %v5502_v27 = vld [vmem:[#allocation4 + $0x1f8] sm:$0xff]  ;;  %1312 = vmatpush.msra.mxu0 %v5505_v16  ;;  %1332 = vmatpush.msrb.mxu1 %v5508_v42 }
 0x198   :  { %8372 = vst [vmem:[#allocation84_spill] sm:$0xff] %v5496_v12  ;;  %1371 = vmatpush.msrb.mxu3 %v5502_v27  ;;  %1352 = vmatpush.msrb.mxu2 %v5511_v53  ;;  %v5514_v12 = vld [vmem:[#allocation4 + $0x1d8] sm:$0xff] }
 0x199   :  { %8373 = vst [vmem:[#allocation85_spill] sm:$0xff] %v5499_v9  ;;  %v5517_v9 = vld [vmem:[#allocation4 + $0x1a0] sm:$0xff] }
 0x19a   :  { %8374 = vst [vmem:[#allocation86_spill] sm:$0xff] %v5502_v27  ;;  %1372 = vmatpush.msrb.mxu3 %v5514_v12  ;;  %1313 = vmatpush.msra.mxu0 %v5517_v9  ;;  %v5520_v27 = vld [vmem:[#allocation4 + $0x1a8] sm:$0xff] }
 0x19b   :  { %8375 = vst [vmem:[#allocation87_spill] sm:$0xff] %v5505_v16  ;;  %1333 = vmatpush.msrb.mxu1 %v5520_v27  ;;  %v5523_v16 = vld [vmem:[#allocation4 + $0x1b0] sm:$0xff] }
 0x19c   :  { %8376 = vst [vmem:[#allocation88_spill] sm:$0xff] %v5508_v42  ;;  %1353 = vmatpush.msrb.mxu2 %v5523_v16  ;;  %v5526_v42 = vld [vmem:[#allocation4 + $0x1b8] sm:$0xff] }
 0x19d   :  { %8377 = vst [vmem:[#allocation89_spill] sm:$0xff] %v5511_v53  ;;  %1373 = vmatpush.msrb.mxu3 %v5526_v42  ;;  %v5529_v53 = vld [vmem:[#allocation4 + $0x180] sm:$0xff] }
 0x19e   :  { %8378 = vst [vmem:[#allocation90_spill] sm:$0xff] %v5514_v12  ;;  %1314 = vmatpush.msra.mxu0 %v5529_v53  ;;  %v5532_v12 = vld [vmem:[#allocation4 + $0x188] sm:$0xff] }
 0x19f   :  { %8379 = vst [vmem:[#allocation91_spill] sm:$0xff] %v5517_v9  ;;  %1334 = vmatpush.msrb.mxu1 %v5532_v12  ;;  %v5535_v9 = vld [vmem:[#allocation4 + $0x190] sm:$0xff] }
 0x1a0   :  { %8380 = vst [vmem:[#allocation92_spill] sm:$0xff] %v5520_v27  ;;  %1354 = vmatpush.msrb.mxu2 %v5535_v9  ;;  %v5538_v27 = vld [vmem:[#allocation4 + $0x198] sm:$0xff] }
 0x1a1   :  { %8381 = vst [vmem:[#allocation93_spill] sm:$0xff] %v5523_v16  ;;  %1374 = vmatpush.msrb.mxu3 %v5538_v27  ;;  %v5541_v16 = vld [vmem:[#allocation4 + $0x160] sm:$0xff] }
 0x1a2   :  { %8382 = vst [vmem:[#allocation94_spill] sm:$0xff] %v5526_v42  ;;  %1315 = vmatpush.msra.mxu0 %v5541_v16  ;;  %v5544_v42 = vld [vmem:[#allocation4 + $0x168] sm:$0xff] }
 0x1a3   :  { %8383 = vst [vmem:[#allocation95_spill] sm:$0xff] %v5529_v53  ;;  %1335 = vmatpush.msrb.mxu1 %v5544_v42  ;;  %v5547_v53 = vld [vmem:[#allocation4 + $0x170] sm:$0xff] }
 0x1a4   :  { %8384 = vst [vmem:[#allocation96_spill] sm:$0xff] %v5532_v12  ;;  %1355 = vmatpush.msrb.mxu2 %v5547_v53  ;;  %v5550_v12 = vld [vmem:[#allocation4 + $0x178] sm:$0xff] }
 0x1a5   :  { %8385 = vst [vmem:[#allocation97_spill] sm:$0xff] %v5535_v9  ;;  %1375 = vmatpush.msrb.mxu3 %v5550_v12  ;;  %v5553_v9 = vld [vmem:[#allocation4 + $0x140] sm:$0xff] }
 0x1a6   :  { %8386 = vst [vmem:[#allocation98_spill] sm:$0xff] %v5538_v27  ;;  %1316 = vmatpush.msra.mxu0 %v5553_v9  ;;  %v5556_v27 = vld [vmem:[#allocation4 + $0x148] sm:$0xff] }
 0x1a7   :  { %8387 = vst [vmem:[#allocation99_spill] sm:$0xff] %v5541_v16  ;;  %1336 = vmatpush.msrb.mxu1 %v5556_v27  ;;  %v5559_v16 = vld [vmem:[#allocation4 + $0x150] sm:$0xff] }
 0x1a8   :  { %8388 = vst [vmem:[#allocation100_spill] sm:$0xff] %v5544_v42  ;;  %1356 = vmatpush.msrb.mxu2 %v5559_v16  ;;  %v5562_v42 = vld [vmem:[#allocation4 + $0x158] sm:$0xff] }
 0x1a9   :  { %8389 = vst [vmem:[#allocation101_spill] sm:$0xff] %v5547_v53  ;;  %1376 = vmatpush.msrb.mxu3 %v5562_v42  ;;  %v5565_v53 = vld [vmem:[#allocation4 + $0x120] sm:$0xff] }
 0x1aa   :  { %8390 = vst [vmem:[#allocation102_spill] sm:$0xff] %v5550_v12  ;;  %1317 = vmatpush.msra.mxu0 %v5565_v53  ;;  %v5568_v12 = vld [vmem:[#allocation4 + $0x128] sm:$0xff] }
 0x1ab   :  { %8391 = vst [vmem:[#allocation103_spill] sm:$0xff] %v5553_v9  ;;  %1337 = vmatpush.msrb.mxu1 %v5568_v12  ;;  %v5571_v9 = vld [vmem:[#allocation4 + $0x130] sm:$0xff] }
 0x1ac   :  { %8392 = vst [vmem:[#allocation104_spill] sm:$0xff] %v5556_v27  ;;  %1357 = vmatpush.msrb.mxu2 %v5571_v9  ;;  %v5574_v27 = vld [vmem:[#allocation4 + $0x138] sm:$0xff] }
 0x1ad   :  { %8393 = vst [vmem:[#allocation105_spill] sm:$0xff] %v5559_v16  ;;  %1377 = vmatpush.msrb.mxu3 %v5574_v27  ;;  %v5577_v16 = vld [vmem:[#allocation4 + $0x100] sm:$0xff] }
 0x1ae   :  { %8394 = vst [vmem:[#allocation106_spill] sm:$0xff] %v5562_v42  ;;  %1318 = vmatpush.msra.mxu0 %v5577_v16  ;;  %v5580_v42 = vld [vmem:[#allocation4 + $0x108] sm:$0xff] }
 0x1af   :  { %8395 = vst [vmem:[#allocation107_spill] sm:$0xff] %v5565_v53  ;;  %1338 = vmatpush.msrb.mxu1 %v5580_v42  ;;  %v5583_v53 = vld [vmem:[#allocation4 + $0x110] sm:$0xff] }
 0x1b0   :  { %8396 = vst [vmem:[#allocation108_spill] sm:$0xff] %v5568_v12  ;;  %1358 = vmatpush.msrb.mxu2 %v5583_v53  ;;  %v5586_v12 = vld [vmem:[#allocation4 + $0x118] sm:$0xff] }
 0x1b1   :  { %8397 = vst [vmem:[#allocation109_spill] sm:$0xff] %v5571_v9  ;;  %1378 = vmatpush.msrb.mxu3 %v5586_v12  ;;  %v5589_v9 = vld [vmem:[#allocation4 + $0xe0] sm:$0xff] }
 0x1b2   :  { %8398 = vst [vmem:[#allocation110_spill] sm:$0xff] %v5574_v27  ;;  %1319 = vmatpush.msra.mxu0 %v5589_v9  ;;  %v5592_v27 = vld [vmem:[#allocation4 + $0xe8] sm:$0xff] }
 0x1b3   :  { %8399 = vst [vmem:[#allocation111_spill] sm:$0xff] %v5577_v16  ;;  %1339 = vmatpush.msrb.mxu1 %v5592_v27  ;;  %v5595_v16 = vld [vmem:[#allocation4 + $0xf0] sm:$0xff] }
 0x1b4   :  { %8400 = vst [vmem:[#allocation112_spill] sm:$0xff] %v5580_v42  ;;  %1359 = vmatpush.msrb.mxu2 %v5595_v16  ;;  %v5598_v42 = vld [vmem:[#allocation4 + $0xf8] sm:$0xff] }
 0x1b5   :  { %8401 = vst [vmem:[#allocation113_spill] sm:$0xff] %v5583_v53  ;;  %1379 = vmatpush.msrb.mxu3 %v5598_v42  ;;  %v5601_v53 = vld [vmem:[#allocation4 + $0xc0] sm:$0xff] }
 0x1b6   :  { %8402 = vst [vmem:[#allocation114_spill] sm:$0xff] %v5586_v12  ;;  %1320 = vmatpush.msra.mxu0 %v5601_v53  ;;  %v5604_v12 = vld [vmem:[#allocation4 + $0xc8] sm:$0xff] }
 0x1b7   :  { %8403 = vst [vmem:[#allocation115_spill] sm:$0xff] %v5589_v9  ;;  %1340 = vmatpush.msrb.mxu1 %v5604_v12  ;;  %v5607_v9 = vld [vmem:[#allocation4 + $0xd0] sm:$0xff] }
 0x1b8   :  { %8404 = vst [vmem:[#allocation116_spill] sm:$0xff] %v5592_v27  ;;  %1360 = vmatpush.msrb.mxu2 %v5607_v9  ;;  %v5610_v27 = vld [vmem:[#allocation4 + $0xd8] sm:$0xff] }
 0x1b9   :  { %8405 = vst [vmem:[#allocation117_spill] sm:$0xff] %v5595_v16  ;;  %1380 = vmatpush.msrb.mxu3 %v5610_v27  ;;  %v5613_v16 = vld [vmem:[#allocation4 + $0xa0] sm:$0xff] }
 0x1ba   :  { %8406 = vst [vmem:[#allocation118_spill] sm:$0xff] %v5598_v42  ;;  %1321 = vmatpush.msra.mxu0 %v5613_v16  ;;  %v5616_v42 = vld [vmem:[#allocation4 + $0xa8] sm:$0xff] }
 0x1bb   :  { %8407 = vst [vmem:[#allocation119_spill] sm:$0xff] %v5601_v53  ;;  %1341 = vmatpush.msrb.mxu1 %v5616_v42  ;;  %v5619_v53 = vld [vmem:[#allocation4 + $0xb0] sm:$0xff] }
 0x1bc   :  { %8408 = vst [vmem:[#allocation120_spill] sm:$0xff] %v5604_v12  ;;  %1361 = vmatpush.msrb.mxu2 %v5619_v53  ;;  %v5622_v12 = vld [vmem:[#allocation4 + $0xb8] sm:$0xff] }
 0x1bd   :  { %8409 = vst [vmem:[#allocation121_spill] sm:$0xff] %v5607_v9  ;;  %1381 = vmatpush.msrb.mxu3 %v5622_v12  ;;  %v5625_v9 = vld [vmem:[#allocation4 + $0x80] sm:$0xff] }
 0x1be   :  { %8410 = vst [vmem:[#allocation122_spill] sm:$0xff] %v5610_v27  ;;  %1322 = vmatpush.msra.mxu0 %v5625_v9  ;;  %v5628_v27 = vld [vmem:[#allocation4 + $0x88] sm:$0xff] }
 0x1bf   :  { %8411 = vst [vmem:[#allocation123_spill] sm:$0xff] %v5613_v16  ;;  %1342 = vmatpush.msrb.mxu1 %v5628_v27  ;;  %v5631_v16 = vld [vmem:[#allocation4 + $0x90] sm:$0xff] }
 0x1c0   :  { %8412 = vst [vmem:[#allocation124_spill] sm:$0xff] %v5616_v42  ;;  %1362 = vmatpush.msrb.mxu2 %v5631_v16  ;;  %v5634_v42 = vld [vmem:[#allocation4 + $0x98] sm:$0xff] }
 0x1c1   :  { %8413 = vst [vmem:[#allocation125_spill] sm:$0xff] %v5619_v53  ;;  %1382 = vmatpush.msrb.mxu3 %v5634_v42  ;;  %v5637_v53 = vld [vmem:[#allocation4 + $0x60] sm:$0xff] }
 0x1c2   :  { %8414 = vst [vmem:[#allocation126_spill] sm:$0xff] %v5622_v12  ;;  %1323 = vmatpush.msra.mxu0 %v5637_v53  ;;  %v5640_v12 = vld [vmem:[#allocation4 + $0x68] sm:$0xff] }
 0x1c3   :  { %8415 = vst [vmem:[#allocation127_spill] sm:$0xff] %v5625_v9  ;;  %1343 = vmatpush.msrb.mxu1 %v5640_v12  ;;  %v5643_v9 = vld [vmem:[#allocation4 + $0x70] sm:$0xff] }
 0x1c4   :  { %8416 = vst [vmem:[#allocation128_spill] sm:$0xff] %v5628_v27  ;;  %1363 = vmatpush.msrb.mxu2 %v5643_v9  ;;  %v5646_v27 = vld [vmem:[#allocation4 + $0x78] sm:$0xff] }
 0x1c5   :  { %8417 = vst [vmem:[#allocation129_spill] sm:$0xff] %v5631_v16  ;;  %1383 = vmatpush.msrb.mxu3 %v5646_v27  ;;  %v5649_v16 = vld [vmem:[#allocation4 + $0x40] sm:$0xff] }
 0x1c6   :  { %8418 = vst [vmem:[#allocation130_spill] sm:$0xff] %v5634_v42  ;;  %1324 = vmatpush.msra.mxu0 %v5649_v16  ;;  %v5652_v42 = vld [vmem:[#allocation4 + $0x48] sm:$0xff] }
 0x1c7   :  { %8419 = vst [vmem:[#allocation131_spill] sm:$0xff] %v5637_v53  ;;  %1344 = vmatpush.msrb.mxu1 %v5652_v42  ;;  %v5655_v53 = vld [vmem:[#allocation4 + $0x50] sm:$0xff] }
 0x1c8   :  { %8420 = vst [vmem:[#allocation132_spill] sm:$0xff] %v5640_v12  ;;  %1364 = vmatpush.msrb.mxu2 %v5655_v53  ;;  %v5658_v12 = vld [vmem:[#allocation4 + $0x58] sm:$0xff] }
 0x1c9   :  { %8421 = vst [vmem:[#allocation133_spill] sm:$0xff] %v5643_v9  ;;  %1384 = vmatpush.msrb.mxu3 %v5658_v12  ;;  %v5661_v9 = vld [vmem:[#allocation4 + $0x20] sm:$0xff] }
 0x1ca   :  { %8422 = vst [vmem:[#allocation134_spill] sm:$0xff] %v5646_v27  ;;  %1325 = vmatpush.msra.mxu0 %v5661_v9  ;;  %v5664_v27 = vld [vmem:[#allocation4 + $0x28] sm:$0xff] }
 0x1cb   :  { %8423 = vst [vmem:[#allocation135_spill] sm:$0xff] %v5649_v16  ;;  %1345 = vmatpush.msrb.mxu1 %v5664_v27  ;;  %v5667_v16 = vld [vmem:[#allocation4 + $0x30] sm:$0xff] }
 0x1cc   :  { %8424 = vst [vmem:[#allocation136_spill] sm:$0xff] %v5652_v42  ;;  %1365 = vmatpush.msrb.mxu2 %v5667_v16  ;;  %v5670_v42 = vld [vmem:[#allocation4 + $0x38] sm:$0xff] }
 0x1cd   :  { %8425 = vst [vmem:[#allocation137_spill] sm:$0xff] %v5655_v53  ;;  %1385 = vmatpush.msrb.mxu3 %v5670_v42  ;;  %v5673_v53 = vld [vmem:[#allocation4] sm:$0xff] }
 0x1ce   :  { %8426 = vst [vmem:[#allocation138_spill] sm:$0xff] %v5658_v12  ;;  %1326 = vmatpush.msra.mxu0 %v5673_v53  ;;  %v5676_v12 = vld [vmem:[#allocation4 + $0x8] sm:$0xff] }
 0x1cf   :  { %8427 = vst [vmem:[#allocation139_spill] sm:$0xff] %v5661_v9  ;;  %1346 = vmatpush.msrb.mxu1 %v5676_v12  ;;  %v5679_v9 = vld [vmem:[#allocation4 + $0x10] sm:$0xff] }
 0x1d0   :  { %8428 = vst [vmem:[#allocation140_spill] sm:$0xff] %v5664_v27  ;;  %1366 = vmatpush.msrb.mxu2 %v5679_v9  ;;  %v5682_v27 = vld [vmem:[#allocation4 + $0x18] sm:$0xff] }
 0x1d1   :  { %8429 = vst [vmem:[#allocation141_spill] sm:$0xff] %v5667_v16  ;;  %1386 = vmatpush.msrb.mxu3 %v5682_v27  ;;  %v5685_v16 = vld [vmem:[#allocation6 + $0x1e0] sm:$0xff]  ;;  %1415 = vmatpush.msra.mxu1 %v5067_v18  ;;  %v5705_v18 = vld [vmem:[#allocation6 + $0x1a8] sm:$0xff] }
 0x1d2   :  { %8430 = vst [vmem:[#allocation142_spill] sm:$0xff] %v5670_v42  ;;  %1395 = vmatpush.msrb.mxu0 %v5685_v16  ;;  %v5689_v42 = vld [vmem:[#allocation6 + $0x1e8] sm:$0xff] }
 0x1d3   :  { %8431 = vst [vmem:[#allocation143_spill] sm:$0xff] %v5676_v12  ;;  %1435 = vmatpush.msra.mxu2 %v5689_v42  ;;  %1455 = vmatpush.msra.mxu3 %v5069_v19  ;;  %v5693_v12 = vld [vmem:[#allocation6 + $0x1c0] sm:$0xff] }
 0x1d4   :  { %8432 = vst [vmem:[#allocation144_spill] sm:$0xff] %v5679_v9  ;;  %1396 = vmatpush.msrb.mxu0 %v5693_v12  ;;  %1416 = vmatpush.msra.mxu1 %v5077_v22  ;;  %v5697_v9 = vld [vmem:[#allocation6 + $0x1c8] sm:$0xff]  ;;  %v5709_v19 = vld [vmem:[#allocation6 + $0x180] sm:$0xff] }
 0x1d5   :  { %8433 = vst [vmem:[#allocation145_spill] sm:$0xff] %v5682_v27  ;;  %1436 = vmatpush.msra.mxu2 %v5697_v9  ;;  %1456 = vmatpush.msra.mxu3 %v5079_v24  ;;  %v5701_v27 = vld [vmem:[#allocation6 + $0x1a0] sm:$0xff]  ;;  %v5713_v22 = vld [vmem:[#allocation6 + $0x188] sm:$0xff] }
 0x1d6   :  { %1397 = vmatpush.msrb.mxu0 %v5701_v27  ;;  %1417 = vmatpush.msra.mxu1 %v5083_v25  ;;  %v5717_v24 = vld [vmem:[#allocation6 + $0x160] sm:$0xff]  ;;  %v5721_v25 = vld [vmem:[#allocation6 + $0x168] sm:$0xff] }
 0x1d7   :  { %1437 = vmatpush.msra.mxu2 %v5705_v18  ;;  %1457 = vmatpush.msra.mxu3 %v5085_v26  ;;  %v5725_v26 = vld [vmem:[#allocation6 + $0x140] sm:$0xff] }
 0x1d8   :  { %1398 = vmatpush.msrb.mxu0 %v5709_v19  ;;  %1418 = vmatpush.msra.mxu1 %v5093_v29  ;;  %v5729_v29 = vld [vmem:[#allocation6 + $0x148] sm:$0xff] }
 0x1d9   :  { %1438 = vmatpush.msra.mxu2 %v5713_v22  ;;  %1458 = vmatpush.msra.mxu3 %v5095_v30  ;;  %8434 = vst [vmem:[#allocation146_spill] sm:$0xff] %v5729_v29  ;;  %v5733_v30 = vld [vmem:[#allocation6 + $0x120] sm:$0xff] }
 0x1da   :  { %1399 = vmatpush.msrb.mxu0 %v5717_v24  ;;  %1419 = vmatpush.msra.mxu1 %v5099_v31  ;;  %8435 = vst [vmem:[#allocation147_spill] sm:$0xff] %v5733_v30  ;;  %v5737_v31 = vld [vmem:[#allocation6 + $0x128] sm:$0xff] }
 0x1db   :  { %1439 = vmatpush.msra.mxu2 %v5721_v25  ;;  %1459 = vmatpush.msra.mxu3 %v5101_v32  ;;  %8436 = vst [vmem:[#allocation148_spill] sm:$0xff] %v5737_v31  ;;  %v5741_v32 = vld [vmem:[#allocation6 + $0x100] sm:$0xff] }
 0x1dc   :  { %1400 = vmatpush.msrb.mxu0 %v5725_v26  ;;  %1420 = vmatpush.msra.mxu1 %v5107_v34  ;;  %8437 = vst [vmem:[#allocation149_spill] sm:$0xff] %v5741_v32  ;;  %v5745_v34 = vld [vmem:[#allocation6 + $0x108] sm:$0xff] }
 0x1dd   :  { %1440 = vmatpush.msra.mxu2 %v5729_v29  ;;  %1460 = vmatpush.msra.mxu3 %v5109_v35  ;;  %8438 = vst [vmem:[#allocation150_spill] sm:$0xff] %v5745_v34  ;;  %v5749_v35 = vld [vmem:[#allocation6 + $0xe0] sm:$0xff] }
 0x1de   :  { %1401 = vmatpush.msrb.mxu0 %v5733_v30  ;;  %1421 = vmatpush.msra.mxu1 %v5115_v37  ;;  %8439 = vst [vmem:[#allocation151_spill] sm:$0xff] %v5749_v35  ;;  %v5753_v37 = vld [vmem:[#allocation6 + $0xe8] sm:$0xff] }
 0x1df   :  { %1441 = vmatpush.msra.mxu2 %v5737_v31  ;;  %1461 = vmatpush.msra.mxu3 %v5117_v38  ;;  %8440 = vst [vmem:[#allocation152_spill] sm:$0xff] %v5753_v37  ;;  %v5757_v38 = vld [vmem:[#allocation6 + $0xc0] sm:$0xff]  ;;  %v8463_v31 = vld [vmem:[#allocation36_spill] sm:$0xff] }
 0x1e0   :  { %1402 = vmatpush.msrb.mxu0 %v5741_v32  ;;  %1422 = vmatpush.msra.mxu1 %v5124_v44  ;;  %8441 = vst [vmem:[#allocation153_spill] sm:$0xff] %v5757_v38  ;;  %v5761_v44 = vld [vmem:[#allocation6 + $0xc8] sm:$0xff] }
 0x1e1   :  { %1442 = vmatpush.msra.mxu2 %v5745_v34  ;;  %1462 = vmatpush.msra.mxu3 %v5126_v45  ;;  %8442 = vst [vmem:[#allocation154_spill] sm:$0xff] %v5761_v44  ;;  %v5765_v45 = vld [vmem:[#allocation6 + $0xa0] sm:$0xff] }
 0x1e2   :  { %1403 = vmatpush.msrb.mxu0 %v5749_v35  ;;  %1423 = vmatpush.msra.mxu1 %v5130_v2  ;;  %8443 = vst [vmem:[#allocation155_spill] sm:$0xff] %v5765_v45  ;;  %v5769_v2 = vld [vmem:[#allocation6 + $0xa8] sm:$0xff] }
 0x1e3   :  { %1443 = vmatpush.msra.mxu2 %v5753_v37  ;;  %1463 = vmatpush.msra.mxu3 %v5132_v56  ;;  %8444 = vst [vmem:[#allocation156_spill] sm:$0xff] %v5769_v2  ;;  %v5773_v56 = vld [vmem:[#allocation6 + $0x80] sm:$0xff] }
 0x1e4   :  { %1404 = vmatpush.msrb.mxu0 %v5757_v38  ;;  %1424 = vmatpush.msra.mxu1 %v5141_v10  ;;  %8445 = vst [vmem:[#allocation157_spill] sm:$0xff] %v5773_v56  ;;  %v5777_v10 = vld [vmem:[#allocation6 + $0x88] sm:$0xff] }
 0x1e5   :  { %1444 = vmatpush.msra.mxu2 %v5761_v44  ;;  %1464 = vmatpush.msra.mxu3 %v5143_v58  ;;  %8446 = vst [vmem:[#allocation158_spill] sm:$0xff] %v5777_v10  ;;  %v5781_v58 = vld [vmem:[#allocation6 + $0x60] sm:$0xff] }
 0x1e6   :  { %1405 = vmatpush.msrb.mxu0 %v5765_v45  ;;  %1425 = vmatpush.msra.mxu1 %v5155_v4  ;;  %8447 = vst [vmem:[#allocation159_spill] sm:$0xff] %v5781_v58  ;;  %v5785_v4 = vld [vmem:[#allocation6 + $0x68] sm:$0xff] }
 0x1e7   :  { %1445 = vmatpush.msra.mxu2 %v5769_v2  ;;  %1465 = vmatpush.msra.mxu3 %v5157_v52  ;;  %8448 = vst [vmem:[#allocation160_spill] sm:$0xff] %v5785_v4  ;;  %v5789_v52 = vld [vmem:[#allocation6 + $0x40] sm:$0xff] }
 0x1e8   :  { %1406 = vmatpush.msrb.mxu0 %v5773_v56  ;;  %1426 = vmatpush.msra.mxu1 %v5163_v62  ;;  %8449 = vst [vmem:[#allocation161_spill] sm:$0xff] %v5789_v52  ;;  %v5793_v62 = vld [vmem:[#allocation6 + $0x48] sm:$0xff] }
 0x1e9   :  { %1446 = vmatpush.msra.mxu2 %v5777_v10  ;;  %1466 = vmatpush.msra.mxu3 %v5165_v0  ;;  %8450 = vst [vmem:[#allocation162_spill] sm:$0xff] %v5793_v62  ;;  %v5797_v0 = vld [vmem:[#allocation6 + $0x20] sm:$0xff] }
 0x1ea   :  { %1407 = vmatpush.msrb.mxu0 %v5781_v58  ;;  %1427 = vmatpush.msra.mxu1 %v5171_v48  ;;  %8451 = vst [vmem:[#allocation163_spill] sm:$0xff] %v5797_v0  ;;  %v5801_v48 = vld [vmem:[#allocation6 + $0x28] sm:$0xff]  ;;  %v8458_v10 = vld [vmem:[#allocation10_spill] sm:$0xff] }
 0x1eb   :  { %1447 = vmatpush.msra.mxu2 %v5785_v4  ;;  %1467 = vmatpush.msra.mxu3 %v5173_v49  ;;  %8452 = vst [vmem:[#allocation164_spill] sm:$0xff] %v5801_v48  ;;  %v5805_v49 = vld [vmem:[#allocation6] sm:$0xff] }
 0x1ec   :  { %1408 = vmatpush.msrb.mxu0 %v5789_v52  ;;  %1428 = vmatpush.msra.mxu1 %v5177_v51  ;;  %8453 = vst [vmem:[#allocation165_spill] sm:$0xff] %v5805_v49  ;;  %v5809_v51 = vld [vmem:[#allocation6 + $0x8] sm:$0xff] }
 0x1ed   :  { %1448 = vmatpush.msra.mxu2 %v5793_v62  ;;  %1468 = vmatpush.msra.mxu3 %v5179_v3  ;;  %8454 = vst [vmem:[#allocation166_spill] sm:$0xff] %v5809_v51  ;;  %v175_v3 = vadd.f32 %v5035_v23, %v8316_v40  ;;  %v826_v62 = vpop.f32.mrf.mxu0  ;;  %v8459_v40 = vld [vmem:[#allocation31_spill] sm:$0xff] }
 0x1ee   :  { %1409 = vmatpush.msrb.mxu0 %v5797_v0  ;;  %1429 = vmatpush.msra.mxu1 %v5190_v47  ;;  %v8455_v47 = vld [vmem:[#allocation28_spill] sm:$0xff]  ;;  %v8456_v0 = vld [vmem:[#allocation17_spill] sm:$0xff] }
 0x1ef   :  { %1449 = vmatpush.msra.mxu2 %v5801_v48  ;;  %1469 = vmatpush.msra.mxu3 %v5192_v33  ;;  %v134_v48 = vadd.f32 %v8456_v0, %v8455_v47  ;;  %v846_v33 = vpop.f32.mrf.mxu1 }
 0x1f0   :  { %1410 = vmatpush.msrb.mxu0 %v5805_v49  ;;  %1430 = vmatpush.msra.mxu1 %v5197_v59  ;;  %v890_v4 = vadd.f32 %v846_v33, %v175_v3  ;;  %v8457_v59 = vld [vmem:[#allocation48_spill] sm:$0xff] }
 0x1f1   :  { %1450 = vmatpush.msra.mxu2 %v5809_v51  ;;  %1470 = vmatpush.msra.mxu3 %v5199_v5  ;;  %v889_v52 = vadd.f32 %v826_v62, %v134_v48  ;;  %v216_v56 = vadd.f32 %v8458_v10, %v8457_v59  ;;  %v866_v51 = vpop.f32.mrf.mxu2  ;;  %v886_v5 = vpop.f32.mrf.mxu3  ;;  %v8461_v10 = vld [vmem:[#allocation12_spill] sm:$0xff] }
 0x1f2   :  { %v3490_v49 = vmul.f32 -1.442695, %v890_v4  ;;  %v8460_v4 = vld [vmem:[#allocation60_spill] sm:$0xff] }
 0x1f3   :  { %v3489_v58 = vmul.f32 -1.442695, %v889_v52  ;;  %v891_v2 = vadd.f32 %v866_v51, %v216_v56 }
 0x1f5   :  { %3584 = vpow2.f32 %v3489_v58  ;;  %v3491_v45 = vmul.f32 -1.442695, %v891_v2  ;;  %v1038_v44 = vpop.f32.mrf.mxu0  ;;  %v8462_v2 = vld [vmem:[#allocation32_spill] sm:$0xff] }
 0x1f6   :  { %3586 = vpow2.f32 %v3490_v49  ;;  %v1039_v38 = vadd.f32 %v1038_v44, %v8459_v40  ;;  %v257_v49 = vadd.f32 %v8461_v10, %v8460_v4 }
 0x1f7   :  { %3588 = vpow2.f32 %v3491_v45  ;;  %v1058_v62 = vpop.f32.mrf.mxu1 }
 0x1f8   :  { %v1059_v52 = vadd.f32 %v1058_v62, %v1039_v38  ;;  %v892_v44 = vadd.f32 %v886_v5, %v257_v49 }
 0x1fa   :  { %v3492_v58 = vmul.f32 -1.442695, %v1059_v52  ;;  %v1078_v3 = vpop.f32.mrf.mxu2  ;;  %v1098_v40 = vpop.f32.mrf.mxu3 }
 0x1fb   :  { %v3585_v23 = vpop.eup %3584  ;;  %v1079_v51 = vadd.f32 %v1078_v3, %v8462_v2 }
 0x1fc   :  { %v3587_v0 = vpop.eup %3586  ;;  %v1190_v47 = vadd.f32 1.0, %v3585_v23 }
 0x1fd   :  { %v1191_v48 = vadd.f32 1.0, %v3587_v0  ;;  %v3589_v56 = vpop.eup %3588  ;;  %v1099_v45 = vadd.f32 %v1098_v40, %v1079_v51 }
 0x1fe   :  { %3590 = vrcp.f32 %v1190_v47  ;;  %v5823_v33 = vadd.f32 1.0, %v3589_v56  ;;  %v1204_v35 = vand.u32 2147483648, %v1190_v47  ;;  %vm1198_vm7 = vweird.f32 %v1190_v47 }
 0x1ff   :  { %3592 = vrcp.f32 %v1191_v48  ;;  %v3493_v52 = vmul.f32 -1.442695, %v1099_v45  ;;  %v1219_v37 = vand.u32 2147483648, %v1191_v48  ;;  %v1217_v40 = vand.u32 2147483647, %v1191_v48 }
 0x200   :  { %3594 = vpow2.f32 %v3492_v58  ;;  %v1202_v58 = vand.u32 2147483647, %v1190_v47  ;;  %vm1213_vm8 = vweird.f32 %v1191_v48  ;;  %v1205_v45 = vor.u32 1.1754944e-38, %v1204_v35 }
 0x201   :  { %3596 = vrcp.f32 %v5823_v33  ;;  %vm1218_vm12 = vcmp.eq.f32.partialorder %v1217_v40, 8.507059e+37  ;;  %vm1228_vm14 = vweird.f32 %v5823_v33 }
 0x202   :  { %3598 = vtanh.f32 %v892_v44  ;;  %vm1203_vm11 = vcmp.eq.f32.partialorder %v1202_v58, 8.507059e+37 }
 0x203   :  { %3600 = vpow2.f32 %v3493_v52 }
 0x204   :  { %v3591_v23 = vpop.eup %3590 }
 0x205   :  { %v3593_v59 = vpop.eup %3592  ;;  %v1194_v0 = vmul.f32 %v3591_v23, %v1190_v47  ;;  %vm1199_vm5 = vweird.f32 %v3591_v23 }
 0x206   :  { %v1209_v38 = vmul.f32 %v3593_v59, %v1191_v48  ;;  %v3595_v10 = vpop.eup %3594  ;;  %vm1214_vm6 = vweird.f32 %v3593_v59  ;;  %vm1200_vm9 = vmor %vm1198_vm7, %vm1199_vm5 }
 0x207   :  { %v1195_v62 = vsub.f32 1.0, %v1194_v0  ;;  %v5826_v56 = vadd.f32 1.0, %v3595_v10  ;;  %v3597_v49 = vpop.eup %3596  ;;  %vm1215_vm10 = vmor %vm1213_vm8, %vm1214_vm6 }
 0x208   :  { %v1210_v4 = vsub.f32 1.0, %v1209_v38  ;;  %v1224_v44 = vmul.f32 %v3597_v49, %v5823_v33  ;;  %v3599_v38 = vpop.eup %3598  ;;  %vm1229_vm13 = vweird.f32 %v3597_v49 }
 0x209   :  { %v1196_v3 = vmul.f32 %v3591_v23, %v1195_v62  ;;  %3602 = vrcp.f32 %v5826_v56  ;;  %v1220_v62 = vor.u32 1.1754944e-38, %v1219_v37  ;;  %v3601_v34 = vpop.eup %3600  ;;  %vm1230_vm15 = vmor %vm1228_vm14, %vm1229_vm13  ;;  %vm1261_vm5 = vweird.f32 %v5826_v56 }
 0x20a   :  { %v1211_v5 = vmul.f32 %v3593_v59, %v1210_v4  ;;  %v1225_v52 = vsub.f32 1.0, %v1224_v44  ;;  %v5831_v30 = vadd.f32 1.0, %v3601_v34  ;;  %v8464_v34 = vld [vmem:[#allocation34_spill] sm:$0xff] }
 0x20b   :  { %v1197_v51 = vadd.f32 %v3591_v23, %v1196_v3 }
 0x20c   :  { %v1212_v0 = vadd.f32 %v3593_v59, %v1211_v5  ;;  %v1226_v32 = vmul.f32 %v3597_v49, %v1225_v52  ;;  %3604 = vrcp.f32 %v5831_v30  ;;  %vm1276_vm3 = vweird.f32 %v5831_v30 }
 0x20d   :  { %v1201_v10 = vsel %vm1200_vm9, %v3591_v23, %v1197_v51  ;;  %v1234_v23 = vand.u32 2147483648, %v5823_v33 }
 0x20e   :  { %v1206_v4 = vsel %vm1203_vm11, %v1205_v45, %v1201_v10  ;;  %v1216_v2 = vsel %vm1215_vm10, %v3593_v59, %v1212_v0  ;;  %v1227_v37 = vadd.f32 %v3597_v49, %v1226_v32 }
 0x20f   :  { %v1221_v3 = vsel %vm1218_vm12, %v1220_v62, %v1216_v2  ;;  %v1240_v47 = vmul.f32 %v3599_v38, %v1206_v4  ;;  %v5833_v29 = vpop.eup %3602  ;;  %v1118_v2 = vpop.f32.mrf.mxu0  ;;  %v1235_v45 = vor.u32 1.1754944e-38, %v1234_v23  ;;  %v1282_v23 = vand.u32 2147483648, %v5831_v30 }
 0x210   :  { %v1239_v48 = vmul.f32 %v1221_v3, %v8463_v31  ;;  %v1257_v59 = vmul.f32 %v5833_v29, %v5826_v56  ;;  %v1232_v31 = vand.u32 2147483647, %v5823_v33  ;;  %v1119_v58 = vadd.f32 %v1118_v2, %v8464_v34  ;;  %v1138_v5 = vpop.f32.mrf.mxu1 }
 0x211   :  { %v1231_v40 = vsel %vm1230_vm15, %v3597_v49, %v1227_v37  ;;  %vm1262_vm2 = vweird.f32 %v5833_v29 }
 0x212   :  { %v5835_v35 = vadd.f32 %v1240_v47, %v1239_v48  ;;  %v1258_v51 = vsub.f32 1.0, %v1257_v59  ;;  %v1139_v32 = vadd.f32 %v1138_v5, %v1119_v58  ;;  %v3605_v44 = vpop.eup %3604  ;;  %vm1233_vm0 = vcmp.eq.f32.partialorder %v1232_v31, 8.507059e+37  ;;  %v8465_v47 = vld [vmem:[#allocation35_spill] sm:$0xff]  ;;  %vm5877_vm6 = vmor %vm1261_vm5, %vm1262_vm2 }
 0x213   :  { %v1272_v0 = vmul.f32 %v3605_v44, %v5831_v30  ;;  %v1236_v10 = vsel %vm1233_vm0, %v1235_v45, %v1231_v40  ;;  %vm1277_vm1 = vweird.f32 %v3605_v44  ;;  %v1267_v58 = vand.u32 2147483648, %v5826_v56  ;;  %v8476_v45 = vld [vmem:[#allocation45_spill] sm:$0xff] }
 0x214   :  { %3606 = vtanh.f32 %v5835_v35  ;;  %v3494_v38 = vmul.f32 -1.442695, %v1139_v32  ;;  %v1259_v3 = vmul.f32 %v5833_v29, %v1258_v51  ;;  %v1280_v5 = vand.u32 2147483647, %v5831_v30  ;;  %vm5865_vm4 = vmor %vm1276_vm3, %vm1277_vm1  ;;  %v8490_v51 = vld [vmem:[#allocation62_spill] sm:$0xff] }
 0x215   :  { %v1273_v4 = vsub.f32 1.0, %v1272_v0  ;;  %v1283_v30 = vor.u32 1.1754944e-38, %v1282_v23  ;;  %v8478_v0 = vld [vmem:[#allocation47_spill] sm:$0xff] }
 0x216   :  { %3608 = vpow2.f32 %v3494_v38  ;;  %v1158_v33 = vpop.f32.mrf.mxu2  ;;  %v1260_v2 = vadd.f32 %v5833_v29, %v1259_v3  ;;  %vm1281_vm7 = vcmp.eq.f32.partialorder %v1280_v5, 8.507059e+37  ;;  %v8479_v38 = vld [vmem:[#allocation49_spill] sm:$0xff]  ;;  %v8483_v3 = vld [vmem:[#allocation54_spill] sm:$0xff] }
 0x217   :  { %v1159_v48 = vadd.f32 %v1158_v33, %v8465_v47  ;;  %v1274_v49 = vmul.f32 %v3605_v44, %v1273_v4  ;;  %v1178_v37 = vpop.f32.mrf.mxu3  ;;  %v8481_v4 = vld [vmem:[#allocation52_spill] sm:$0xff]  ;;  %v8482_v33 = vld [vmem:[#allocation53_spill] sm:$0xff] }
 0x218   :  { %v8489_v5 = vld [vmem:[#allocation61_spill] sm:$0xff] }
 0x219   :  { %v1179_v59 = vadd.f32 %v1178_v37, %v1159_v48  ;;  %v1275_v31 = vadd.f32 %v3605_v44, %v1274_v49  ;;  %v8484_v49 = vld [vmem:[#allocation55_spill] sm:$0xff]  ;;  %v8485_v37 = vld [vmem:[#allocation56_spill] sm:$0xff] }
 0x21a   :  { %v3607_v62 = vpop.eup %3606 }
 0x21b   :  { %v5846_v52 = vmul.f32 %v3607_v62, %v1236_v10  ;;  %3610 = vtanh.f32 %v1179_v59  ;;  %v8480_v10 = vld [vmem:[#allocation50_spill] sm:$0xff] }
 0x21c   :  { %v3609_v40 = vpop.eup %3608 }
 0x21d   :  { %1327 = vmatmul.f32.vlgmr.msra.gmra.mxu0 %v5846_v52  ;;  %1347 = vmatmul.f32.vlgmr.msrb.gmra.mxu1 %v5846_v52 }
 0x21e   :  { %1367 = vmatmul.f32.vlgmr.msrb.gmra.mxu2 %v5846_v52  ;;  %1387 = vmatmul.f32.vlgmr.msrb.gmra.mxu3 %v5846_v52 }
 0x21f   :  { %1475 = vmatpush.msra.mxu0 %v5286_v63  ;;  %1495 = vmatpush.msrb.mxu1 %v5272_v55  ;;  %v1265_v55 = vand.u32 2147483647, %v5826_v56  ;;  %v5873_v63 = vadd.f32 1.0, %v3609_v40 }
 0x220   :  { %1515 = vmatpush.msrb.mxu2 %v5294_v60  ;;  %1535 = vmatpush.msrb.mxu3 %v5276_v20  ;;  %v1279_v60 = vsel %vm5865_vm4, %v3605_v44, %v1275_v31  ;;  %v8487_v31 = vld [vmem:[#allocation58_spill] sm:$0xff] }
 0x221   :  { %1476 = vmatpush.msra.mxu0 %v5306_v41  ;;  %1496 = vmatpush.msrb.mxu1 %v5283_v57  ;;  %v1264_v57 = vsel %vm5877_vm6, %v5833_v29, %v1260_v2  ;;  %3612 = vrcp.f32 %v5873_v63  ;;  %v1268_v41 = vor.u32 1.1754944e-38, %v1267_v58  ;;  %vm1266_vm8 = vcmp.eq.f32.partialorder %v1265_v55, 8.507059e+37  ;;  %v8486_v2 = vld [vmem:[#allocation57_spill] sm:$0xff]  ;;  %v8488_v58 = vld [vmem:[#allocation59_spill] sm:$0xff] }
 0x222   :  { %1516 = vmatpush.msrb.mxu2 %v5315_v15  ;;  %1536 = vmatpush.msrb.mxu3 %v5290_v54  ;;  %v1284_v15 = vsel %vm1281_vm7, %v1283_v30, %v1279_v60  ;;  %v3611_v54 = vpop.eup %3610  ;;  %v1297_v48 = vand.u32 2147483648, %v5873_v63  ;;  %v1295_v23 = vand.u32 2147483647, %v5873_v63  ;;  %vm1291_vm10 = vweird.f32 %v5873_v63  ;;  %v8491_v55 = vld [vmem:[#allocation63_spill] sm:$0xff]  ;;  %v8492_v60 = vld [vmem:[#allocation64_spill] sm:$0xff]  ;;  %v8493_v30 = vld [vmem:[#allocation65_spill] sm:$0xff] }
 0x223   :  { %1477 = vmatpush.msra.mxu0 %v5321_v43  ;;  %1497 = vmatpush.msrb.mxu1 %v5298_v28  ;;  %v1269_v29 = vsel %vm1266_vm8, %v1268_v41, %v1264_v57  ;;  %v1302_v43 = vmul.f32 %v1284_v15, %v5270_v61  ;;  %v8477_v61 = vld [vmem:[#allocation46_spill] sm:$0xff] }
 0x224   :  { %1517 = vmatpush.msrb.mxu2 %v5327_v14  ;;  %1537 = vmatpush.msrb.mxu3 %v5310_v46  ;;  %v1303_v28 = vmul.f32 %v3611_v54, %v1269_v29  ;;  %v8470_v46 = vld [vmem:[#allocation37_spill] sm:$0xff]  ;;  %v8471_v14 = vld [vmem:[#allocation38_spill] sm:$0xff]  ;;  %v1298_v20 = vor.u32 1.1754944e-38, %v1297_v48  ;;  %vm1296_vm12 = vcmp.eq.f32.partialorder %v1295_v23, 8.507059e+37  ;;  %v8495_v54 = vld [vmem:[#allocation67_spill] sm:$0xff] }
 0x225   :  { %1478 = vmatpush.msra.mxu0 %v5331_v1  ;;  %1498 = vmatpush.msrb.mxu1 %v5319_v8  ;;  %v8472_v1 = vld [vmem:[#allocation39_spill] sm:$0xff]  ;;  %v8473_v8 = vld [vmem:[#allocation40_spill] sm:$0xff]  ;;  %v8494_v15 = vld [vmem:[#allocation66_spill] sm:$0xff] }
 0x226   :  { %1518 = vmatpush.msrb.mxu2 %v5337_v17  ;;  %1538 = vmatpush.msrb.mxu3 %v5325_v6  ;;  %v5904_v32 = vadd.f32 %v1303_v28, %v1302_v43  ;;  %v8474_v17 = vld [vmem:[#allocation41_spill] sm:$0xff]  ;;  %v8475_v6 = vld [vmem:[#allocation44_spill] sm:$0xff]  ;;  %v8523_v48 = vld [vmem:[#allocation95_spill] sm:$0xff] }
 0x227   :  { %1411 = vmatmul.f32.vlgmr.msrb.gmra.mxu0 %v5846_v52  ;;  %1451 = vmatmul.f32.vlgmr.msra.gmra.mxu2 %v5846_v52  ;;  %v3613_v56 = vpop.eup %3612  ;;  %v8496_v28 = vld [vmem:[#allocation68_spill] sm:$0xff]  ;;  %v8527_v23 = vld [vmem:[#allocation99_spill] sm:$0xff] }
 0x228   :  { %1479 = vmatpush.msra.mxu0 %v8470_v46  ;;  %1499 = vmatpush.msrb.mxu1 %v8471_v14  ;;  %v1287_v44 = vmul.f32 %v3613_v56, %v5873_v63  ;;  %3614 = vtanh.f32 %v5904_v32  ;;  %vm1292_vm9 = vweird.f32 %v3613_v56  ;;  %v8497_v63 = vld [vmem:[#allocation69_spill] sm:$0xff]  ;;  %v8498_v46 = vld [vmem:[#allocation70_spill] sm:$0xff]  ;;  %v8499_v14 = vld [vmem:[#allocation71_spill] sm:$0xff] }
 0x229   :  { %1519 = vmatpush.msrb.mxu2 %v8472_v1  ;;  %1539 = vmatpush.msrb.mxu3 %v8473_v8  ;;  %vm1293_vm11 = vmor %vm1291_vm10, %vm1292_vm9  ;;  %v8500_v1 = vld [vmem:[#allocation72_spill] sm:$0xff]  ;;  %v8501_v8 = vld [vmem:[#allocation73_spill] sm:$0xff] }
 0x22a   :  { %1480 = vmatpush.msra.mxu0 %v8474_v17  ;;  %1500 = vmatpush.msrb.mxu1 %v8475_v6  ;;  %v1288_v62 = vsub.f32 1.0, %v1287_v44  ;;  %v8503_v17 = vld [vmem:[#allocation75_spill] sm:$0xff]  ;;  %v8504_v6 = vld [vmem:[#allocation76_spill] sm:$0xff]  ;;  %v8505_v44 = vld [vmem:[#allocation77_spill] sm:$0xff] }
 0x22b   :  { %1520 = vmatpush.msrb.mxu2 %v8476_v45  ;;  %1540 = vmatpush.msrb.mxu3 %v8477_v61  ;;  %v8506_v45 = vld [vmem:[#allocation78_spill] sm:$0xff]  ;;  %v8507_v61 = vld [vmem:[#allocation79_spill] sm:$0xff] }
 0x22c   :  { %1481 = vmatpush.msra.mxu0 %v8478_v0  ;;  %1501 = vmatpush.msrb.mxu1 %v8479_v38  ;;  %v1289_v59 = vmul.f32 %v3613_v56, %v1288_v62  ;;  %v8508_v0 = vld [vmem:[#allocation80_spill] sm:$0xff]  ;;  %v8509_v38 = vld [vmem:[#allocation81_spill] sm:$0xff]  ;;  %v8510_v62 = vld [vmem:[#allocation82_spill] sm:$0xff] }
 0x22d   :  { %1521 = vmatpush.msrb.mxu2 %v8480_v10  ;;  %1541 = vmatpush.msrb.mxu3 %v8481_v4  ;;  %v8511_v10 = vld [vmem:[#allocation83_spill] sm:$0xff]  ;;  %v8518_v4 = vld [vmem:[#allocation90_spill] sm:$0xff] }
 0x22e   :  { %1482 = vmatpush.msra.mxu0 %v8482_v33  ;;  %1502 = vmatpush.msrb.mxu1 %v8483_v3  ;;  %v1290_v40 = vadd.f32 %v3613_v56, %v1289_v59  ;;  %v3615_v41 = vpop.eup %3614  ;;  %v8519_v33 = vld [vmem:[#allocation91_spill] sm:$0xff]  ;;  %v8521_v3 = vld [vmem:[#allocation92_spill] sm:$0xff]  ;;  %v8526_v59 = vld [vmem:[#allocation98_spill] sm:$0xff] }
 0x22f   :  { %1522 = vmatpush.msrb.mxu2 %v8484_v49  ;;  %1542 = vmatpush.msrb.mxu3 %v8485_v37  ;;  %v8524_v49 = vld [vmem:[#allocation97_spill] sm:$0xff]  ;;  %v8525_v37 = vld [vmem:[#allocation96_spill] sm:$0xff] }
 0x230   :  { %1483 = vmatpush.msra.mxu0 %v8486_v2  ;;  %1503 = vmatpush.msrb.mxu1 %v8487_v31  ;;  %v1294_v57 = vsel %vm1293_vm11, %v3613_v56, %v1290_v40  ;;  %v8502_v56 = vld [vmem:[#allocation74_spill] sm:$0xff]  ;;  %v8528_v2 = vld [vmem:[#allocation101_spill] sm:$0xff]  ;;  %v8529_v31 = vld [vmem:[#allocation100_spill] sm:$0xff] }
 0x231   :  { %1523 = vmatpush.msrb.mxu2 %v8488_v58  ;;  %1543 = vmatpush.msrb.mxu3 %v8489_v5  ;;  %v1299_v29 = vsel %vm1296_vm12, %v1298_v20, %v1294_v57  ;;  %v8530_v58 = vld [vmem:[#allocation102_spill] sm:$0xff]  ;;  %v8531_v5 = vld [vmem:[#allocation103_spill] sm:$0xff]  ;;  %v8532_v40 = vld [vmem:[#allocation105_spill] sm:$0xff] }
 0x232   :  { %1484 = vmatpush.msra.mxu0 %v8490_v51  ;;  %1504 = vmatpush.msrb.mxu1 %v8491_v55  ;;  %v1306_v43 = vmul.f32 %v3615_v41, %v1299_v29  ;;  %v8533_v51 = vld [vmem:[#allocation104_spill] sm:$0xff]  ;;  %v8534_v55 = vld [vmem:[#allocation106_spill] sm:$0xff]  ;;  %v8535_v20 = vld [vmem:[#allocation107_spill] sm:$0xff] }
 0x233   :  { %1524 = vmatpush.msrb.mxu2 %v8492_v60  ;;  %1544 = vmatpush.msrb.mxu3 %v8493_v30  ;;  %v8536_v60 = vld [vmem:[#allocation109_spill] sm:$0xff]  ;;  %v8537_v30 = vld [vmem:[#allocation108_spill] sm:$0xff]  ;;  %v8538_v57 = vld [vmem:[#allocation110_spill] sm:$0xff] }
 0x234   :  { %1485 = vmatpush.msra.mxu0 %v8494_v15  ;;  %1505 = vmatpush.msrb.mxu1 %v8495_v54  ;;  %v8539_v41 = vld [vmem:[#allocation111_spill] sm:$0xff]  ;;  %v8540_v15 = vld [vmem:[#allocation113_spill] sm:$0xff]  ;;  %v8541_v54 = vld [vmem:[#allocation112_spill] sm:$0xff] }
 0x235   :  { %1525 = vmatpush.msrb.mxu2 %v8496_v28  ;;  %1545 = vmatpush.msrb.mxu3 %v8497_v63  ;;  %v8542_v29 = vld [vmem:[#allocation114_spill] sm:$0xff]  ;;  %v8543_v28 = vld [vmem:[#allocation115_spill] sm:$0xff]  ;;  %v8544_v63 = vld [vmem:[#allocation117_spill] sm:$0xff] }
 0x236   :  { %1486 = vmatpush.msra.mxu0 %v8498_v46  ;;  %1506 = vmatpush.msrb.mxu1 %v8499_v14  ;;  %v8546_v46 = vld [vmem:[#allocation118_spill] sm:$0xff]  ;;  %v8547_v14 = vld [vmem:[#allocation119_spill] sm:$0xff] }
 0x237   :  { %1431 = vmatmul.f32.vlgmr.msra.gmra.mxu1 %v1306_v43  ;;  %1471 = vmatmul.f32.vlgmr.msra.gmra.mxu3 %v1306_v43 }
 0x238   :  { %1526 = vmatpush.msrb.mxu2 %v8500_v1  ;;  %1546 = vmatpush.msrb.mxu3 %v8501_v8  ;;  %v8548_v1 = vld [vmem:[#allocation121_spill] sm:$0xff]  ;;  %v8549_v8 = vld [vmem:[#allocation120_spill] sm:$0xff] }
 0x239   :  { %1487 = vmatpush.msra.mxu0 %v8502_v56  ;;  %1507 = vmatpush.msrb.mxu1 %v8503_v17  ;;  %v8550_v56 = vld [vmem:[#allocation122_spill] sm:$0xff]  ;;  %v8551_v17 = vld [vmem:[#allocation123_spill] sm:$0xff] }
 0x23a   :  { %1527 = vmatpush.msrb.mxu2 %v8504_v6  ;;  %1547 = vmatpush.msrb.mxu3 %v8505_v44  ;;  %v8552_v6 = vld [vmem:[#allocation125_spill] sm:$0xff]  ;;  %v8553_v44 = vld [vmem:[#allocation124_spill] sm:$0xff] }
 0x23b   :  { %1488 = vmatpush.msra.mxu0 %v8506_v45  ;;  %1508 = vmatpush.msrb.mxu1 %v5451_v11  ;;  %v8512_v11 = vld [vmem:[#allocation85_spill] sm:$0xff]  ;;  %v8554_v45 = vld [vmem:[#allocation126_spill] sm:$0xff] }
 0x23c   :  { %1528 = vmatpush.msrb.mxu2 %v5455_v36  ;;  %1548 = vmatpush.msrb.mxu3 %v5457_v7  ;;  %v8513_v36 = vld [vmem:[#allocation84_spill] sm:$0xff]  ;;  %v8514_v7 = vld [vmem:[#allocation86_spill] sm:$0xff] }
 0x23d   :  { %1489 = vmatpush.msra.mxu0 %v5461_v50  ;;  %1509 = vmatpush.msrb.mxu1 %v8507_v61  ;;  %v8516_v50 = vld [vmem:[#allocation89_spill] sm:$0xff]  ;;  %v8555_v61 = vld [vmem:[#allocation127_spill] sm:$0xff] }
 0x23e   :  { %1529 = vmatpush.msrb.mxu2 %v5467_v21  ;;  %1549 = vmatpush.msrb.mxu3 %v8508_v0  ;;  %v8517_v21 = vld [vmem:[#allocation88_spill] sm:$0xff]  ;;  %v8556_v0 = vld [vmem:[#allocation129_spill] sm:$0xff] }
 0x23f   :  { %1490 = vmatpush.msra.mxu0 %v5473_v13  ;;  %1510 = vmatpush.msrb.mxu1 %v8509_v38  ;;  %v8515_v13 = vld [vmem:[#allocation87_spill] sm:$0xff]  ;;  %v8557_v38 = vld [vmem:[#allocation128_spill] sm:$0xff] }
 0x240   :  { %1530 = vmatpush.msrb.mxu2 %v8510_v62  ;;  %1550 = vmatpush.msrb.mxu3 %v8511_v10  ;;  %v8558_v62 = vld [vmem:[#allocation130_spill] sm:$0xff]  ;;  %v8559_v10 = vld [vmem:[#allocation131_spill] sm:$0xff] }
 0x241   :  { %1491 = vmatmul.f32.vlgmr.msra.gmra.mxu0 %v5846_v52  ;;  %1511 = vmatmul.f32.vlgmr.msrb.gmra.mxu1 %v1306_v43 }
 0x242   :  { %1531 = vmatmul.f32.vlgmr.msrb.gmra.mxu2 %v5846_v52  ;;  %1551 = vmatmul.f32.vlgmr.msrb.gmra.mxu3 %v1306_v43  ;;  %v8520_v52 = vld [vmem:[#allocation93_spill] sm:$0xff]  ;;  %v8545_v43 = vld [vmem:[#allocation116_spill] sm:$0xff] }
 0x243   :  { %1685 = vmatpush.msrb.mxu0 %v5493_v39  ;;  %1725 = vmatpush.msra.mxu2 %v8512_v11  ;;  %v8522_v39 = vld [vmem:[#allocation94_spill] sm:$0xff]  ;;  %v8560_v11 = vld [vmem:[#allocation133_spill] sm:$0xff] }
 0x244   :  { %1705 = vmatpush.msra.mxu1 %v8513_v36  ;;  %1745 = vmatpush.msra.mxu3 %v8514_v7  ;;  %v8561_v36 = vld [vmem:[#allocation132_spill] sm:$0xff]  ;;  %v8562_v7 = vld [vmem:[#allocation134_spill] sm:$0xff] }
 0x245   :  { %1686 = vmatpush.msrb.mxu0 %v8515_v13  ;;  %1726 = vmatpush.msra.mxu2 %v8516_v50  ;;  %v8563_v13 = vld [vmem:[#allocation135_spill] sm:$0xff]  ;;  %v8564_v50 = vld [vmem:[#allocation137_spill] sm:$0xff] }
 0x246   :  { %1706 = vmatpush.msra.mxu1 %v8517_v21  ;;  %1746 = vmatpush.msra.mxu3 %v8518_v4  ;;  %v8565_v21 = vld [vmem:[#allocation136_spill] sm:$0xff]  ;;  %v8566_v4 = vld [vmem:[#allocation138_spill] sm:$0xff] }
 0x247   :  { %1687 = vmatpush.msrb.mxu0 %v8519_v33  ;;  %1727 = vmatpush.msra.mxu2 %v8520_v52  ;;  %v8567_v33 = vld [vmem:[#allocation139_spill] sm:$0xff]  ;;  %v8568_v52 = vld [vmem:[#allocation141_spill] sm:$0xff] }
 0x248   :  { %1707 = vmatpush.msra.mxu1 %v8521_v3  ;;  %1747 = vmatpush.msra.mxu3 %v8522_v39  ;;  %v8569_v3 = vld [vmem:[#allocation140_spill] sm:$0xff]  ;;  %v8570_v39 = vld [vmem:[#allocation142_spill] sm:$0xff] }
 0x249   :  { %1688 = vmatpush.msrb.mxu0 %v8523_v48  ;;  %1728 = vmatpush.msra.mxu2 %v8524_v49  ;;  %v8571_v48 = vld [vmem:[#allocation144_spill] sm:$0xff]  ;;  %v8572_v49 = vld [vmem:[#allocation143_spill] sm:$0xff] }
 0x24a   :  { %1708 = vmatpush.msra.mxu1 %v8525_v37  ;;  %1748 = vmatpush.msra.mxu3 %v8526_v59  ;;  %v8573_v37 = vld [vmem:[#allocation145_spill] sm:$0xff]  ;;  %v6025_v59 = vld [vmem:[#allocation6 + $0x3e0] sm:$0xff] }
 0x24b   :  { %1689 = vmatpush.msrb.mxu0 %v8527_v23  ;;  %1729 = vmatpush.msra.mxu2 %v8528_v2  ;;  %v6028_v23 = vld [vmem:[#allocation6 + $0x3e8] sm:$0xff]  ;;  %v6065_v2 = vld [vmem:[#allocation6 + $0x340] sm:$0xff] }
 0x24c   :  { %1709 = vmatpush.msra.mxu1 %v8529_v31  ;;  %1749 = vmatpush.msra.mxu3 %v8530_v58  ;;  %v6068_v31 = vld [vmem:[#allocation6 + $0x348] sm:$0xff]  ;;  %v8578_v58 = vld [vmem:[#allocation150_spill] sm:$0xff] }
 0x24d   :  { %1690 = vmatpush.msrb.mxu0 %v8531_v5  ;;  %1730 = vmatpush.msra.mxu2 %v8532_v40  ;;  %v6073_v5 = vld [vmem:[#allocation6 + $0x320] sm:$0xff]  ;;  %v6076_v40 = vld [vmem:[#allocation6 + $0x328] sm:$0xff] }
 0x24e   :  { %1710 = vmatpush.msra.mxu1 %v8533_v51  ;;  %1750 = vmatpush.msra.mxu3 %v8534_v55  ;;  %v8579_v51 = vld [vmem:[#allocation151_spill] sm:$0xff]  ;;  %v8580_v55 = vld [vmem:[#allocation152_spill] sm:$0xff] }
 0x24f   :  { %1691 = vmatpush.msrb.mxu0 %v8535_v20  ;;  %1731 = vmatpush.msra.mxu2 %v8536_v60  ;;  %v6081_v20 = vld [vmem:[#allocation6 + $0x300] sm:$0xff]  ;;  %v6084_v60 = vld [vmem:[#allocation6 + $0x308] sm:$0xff] }
 0x250   :  { %1711 = vmatpush.msra.mxu1 %v8537_v30  ;;  %1751 = vmatpush.msra.mxu3 %v8538_v57  ;;  %v8581_v30 = vld [vmem:[#allocation153_spill] sm:$0xff]  ;;  %v8582_v57 = vld [vmem:[#allocation154_spill] sm:$0xff] }
 0x251   :  { %1692 = vmatpush.msrb.mxu0 %v8539_v41  ;;  %1732 = vmatpush.msra.mxu2 %v8540_v15  ;;  %v6089_v41 = vld [vmem:[#allocation6 + $0x2e0] sm:$0xff]  ;;  %v6092_v15 = vld [vmem:[#allocation6 + $0x2e8] sm:$0xff] }
 0x252   :  { %1712 = vmatpush.msra.mxu1 %v8541_v54  ;;  %1752 = vmatpush.msra.mxu3 %v8542_v29  ;;  %v8583_v54 = vld [vmem:[#allocation155_spill] sm:$0xff]  ;;  %v8584_v29 = vld [vmem:[#allocation156_spill] sm:$0xff] }
 0x253   :  { %1693 = vmatpush.msrb.mxu0 %v8543_v28  ;;  %1733 = vmatpush.msra.mxu2 %v8544_v63  ;;  %v6097_v28 = vld [vmem:[#allocation6 + $0x2c0] sm:$0xff]  ;;  %v6100_v63 = vld [vmem:[#allocation6 + $0x2c8] sm:$0xff] }
 0x254   :  { %1713 = vmatpush.msra.mxu1 %v8545_v43  ;;  %1753 = vmatpush.msra.mxu3 %v8546_v46  ;;  %v8585_v43 = vld [vmem:[#allocation157_spill] sm:$0xff]  ;;  %v8586_v46 = vld [vmem:[#allocation158_spill] sm:$0xff] }
 0x255   :  { %1694 = vmatpush.msrb.mxu0 %v8547_v14  ;;  %1734 = vmatpush.msra.mxu2 %v8548_v1  ;;  %v6105_v14 = vld [vmem:[#allocation6 + $0x2a0] sm:$0xff]  ;;  %v6108_v1 = vld [vmem:[#allocation6 + $0x2a8] sm:$0xff] }
 0x256   :  { %1714 = vmatpush.msra.mxu1 %v8549_v8  ;;  %1754 = vmatpush.msra.mxu3 %v8550_v56  ;;  %v8587_v8 = vld [vmem:[#allocation159_spill] sm:$0xff]  ;;  %v8588_v56 = vld [vmem:[#allocation160_spill] sm:$0xff] }
 0x257   :  { %1695 = vmatpush.msrb.mxu0 %v8551_v17  ;;  %1735 = vmatpush.msra.mxu2 %v8552_v6  ;;  %v6113_v17 = vld [vmem:[#allocation6 + $0x280] sm:$0xff]  ;;  %v6116_v6 = vld [vmem:[#allocation6 + $0x288] sm:$0xff] }
 0x258   :  { %1715 = vmatpush.msra.mxu1 %v8553_v44  ;;  %1755 = vmatpush.msra.mxu3 %v8554_v45  ;;  %v8589_v44 = vld [vmem:[#allocation161_spill] sm:$0xff]  ;;  %v8590_v45 = vld [vmem:[#allocation162_spill] sm:$0xff] }
 0x259   :  { %1696 = vmatpush.msrb.mxu0 %v8555_v61  ;;  %1736 = vmatpush.msra.mxu2 %v8556_v0  ;;  %v6121_v61 = vld [vmem:[#allocation6 + $0x260] sm:$0xff]  ;;  %v6124_v0 = vld [vmem:[#allocation6 + $0x268] sm:$0xff] }
 0x25a   :  { %1716 = vmatpush.msra.mxu1 %v8557_v38  ;;  %1756 = vmatpush.msra.mxu3 %v8558_v62  ;;  %v8591_v38 = vld [vmem:[#allocation163_spill] sm:$0xff]  ;;  %v8592_v62 = vld [vmem:[#allocation164_spill] sm:$0xff] }
 0x25b   :  { %1697 = vmatpush.msrb.mxu0 %v8559_v10  ;;  %1737 = vmatpush.msra.mxu2 %v8560_v11  ;;  %v6129_v10 = vld [vmem:[#allocation6 + $0x240] sm:$0xff]  ;;  %v6132_v11 = vld [vmem:[#allocation6 + $0x248] sm:$0xff] }
 0x25c   :  { %1717 = vmatpush.msra.mxu1 %v8561_v36  ;;  %1757 = vmatpush.msra.mxu3 %v8562_v7  ;;  %v8593_v36 = vld [vmem:[#allocation165_spill] sm:$0xff]  ;;  %v8594_v7 = vld [vmem:[#allocation166_spill] sm:$0xff] }
 0x25d   :  { %1698 = vmatpush.msrb.mxu0 %v8563_v13  ;;  %1738 = vmatpush.msra.mxu2 %v8564_v50  ;;  %v6137_v13 = vld [vmem:[#allocation6 + $0x220] sm:$0xff]  ;;  %v6140_v50 = vld [vmem:[#allocation6 + $0x228] sm:$0xff] }
 0x25e   :  { %1718 = vmatpush.msra.mxu1 %v8565_v21  ;;  %1758 = vmatpush.msra.mxu3 %v8566_v4  ;;  %v6143_v21 = vld [vmem:[#allocation6 + $0x200] sm:$0xff]  ;;  %v6146_v4 = vld [vmem:[#allocation6 + $0x208] sm:$0xff] }
 0x25f   :  { %1699 = vmatpush.msrb.mxu0 %v8567_v33  ;;  %1739 = vmatpush.msra.mxu2 %v8568_v52  ;;  %8595 = vst [vmem:[#allocation17_spill] sm:$0xff] %v6146_v4  ;;  %v8596_v33 = vld [vmem:[#allocation42_spill] sm:$0xff]  ;;  %v8597_v52 = vld [vmem:[#allocation11_spill] sm:$0xff] }
 0x260   :  { %1719 = vmatpush.msra.mxu1 %v8569_v3  ;;  %1759 = vmatpush.msra.mxu3 %v8570_v39  ;;  %v178_v3 = vadd.f32 %v8597_v52, %v8596_v33  ;;  %v8598_v39 = vld [vmem:[#allocation28_spill] sm:$0xff] }
 0x261   :  { %1700 = vmatpush.msrb.mxu0 %v5673_v53  ;;  %1740 = vmatpush.msra.mxu2 %v8571_v48  ;;  %v6052_v53 = vld [vmem:[#allocation6 + $0x388] sm:$0xff]  ;;  %v8599_v48 = vld [vmem:[#allocation21_spill] sm:$0xff] }
 0x262   :  { %1720 = vmatpush.msra.mxu1 %v8572_v49  ;;  %1760 = vmatpush.msra.mxu3 %v8573_v37  ;;  %v137_v49 = vadd.f32 %v8599_v48, %v8598_v39 }
 0x263   :  { %1769 = vmatpush.msra.mxu0 %v5685_v16  ;;  %1809 = vmatpush.msrb.mxu2 %v5689_v42  ;;  %v6033_v16 = vld [vmem:[#allocation6 + $0x3c0] sm:$0xff]  ;;  %v6036_v42 = vld [vmem:[#allocation6 + $0x3c8] sm:$0xff] }
 0x264   :  { %1789 = vmatpush.msrb.mxu1 %v6025_v59  ;;  %1829 = vmatpush.msrb.mxu3 %v6028_v23 }
 0x265   :  { %1770 = vmatpush.msra.mxu0 %v5693_v12  ;;  %1810 = vmatpush.msrb.mxu2 %v5697_v9  ;;  %v6041_v9 = vld [vmem:[#allocation6 + $0x3a0] sm:$0xff]  ;;  %v6044_v12 = vld [vmem:[#allocation6 + $0x3a8] sm:$0xff] }
 0x266   :  { %1790 = vmatpush.msrb.mxu1 %v6033_v16  ;;  %1830 = vmatpush.msrb.mxu3 %v6036_v42 }
 0x267   :  { %1771 = vmatpush.msra.mxu0 %v5701_v27  ;;  %1811 = vmatpush.msrb.mxu2 %v5705_v18  ;;  %v6049_v27 = vld [vmem:[#allocation6 + $0x380] sm:$0xff] }
 0x268   :  { %1791 = vmatpush.msrb.mxu1 %v6041_v9  ;;  %1831 = vmatpush.msrb.mxu3 %v6044_v12  ;;  %v8574_v18 = vld [vmem:[#allocation146_spill] sm:$0xff] }
 0x269   :  { %1772 = vmatpush.msra.mxu0 %v5709_v19  ;;  %1812 = vmatpush.msrb.mxu2 %v5713_v22  ;;  %v6057_v19 = vld [vmem:[#allocation6 + $0x360] sm:$0xff]  ;;  %v6060_v22 = vld [vmem:[#allocation6 + $0x368] sm:$0xff] }
 0x26a   :  { %1792 = vmatpush.msrb.mxu1 %v6049_v27  ;;  %1832 = vmatpush.msrb.mxu3 %v6052_v53 }
 0x26b   :  { %1773 = vmatpush.msra.mxu0 %v5717_v24  ;;  %1813 = vmatpush.msrb.mxu2 %v5721_v25  ;;  %v8575_v24 = vld [vmem:[#allocation147_spill] sm:$0xff]  ;;  %v8576_v25 = vld [vmem:[#allocation148_spill] sm:$0xff] }
 0x26c   :  { %1793 = vmatpush.msrb.mxu1 %v6057_v19  ;;  %1833 = vmatpush.msrb.mxu3 %v6060_v22 }
 0x26d   :  { %1774 = vmatpush.msra.mxu0 %v5725_v26  ;;  %1814 = vmatpush.msrb.mxu2 %v8574_v18  ;;  %v8577_v26 = vld [vmem:[#allocation149_spill] sm:$0xff] }
 0x26e   :  { %1794 = vmatpush.msrb.mxu1 %v6065_v2  ;;  %1834 = vmatpush.msrb.mxu3 %v6068_v31 }
 0x26f   :  { %1775 = vmatpush.msra.mxu0 %v8575_v24  ;;  %1815 = vmatpush.msrb.mxu2 %v8576_v25 }
 0x270   :  { %1795 = vmatpush.msrb.mxu1 %v6073_v5  ;;  %1835 = vmatpush.msrb.mxu3 %v6076_v40 }
 0x271   :  { %1776 = vmatpush.msra.mxu0 %v8577_v26  ;;  %1816 = vmatpush.msrb.mxu2 %v8578_v58 }
 0x272   :  { %1796 = vmatpush.msrb.mxu1 %v6081_v20  ;;  %1836 = vmatpush.msrb.mxu3 %v6084_v60 }
 0x273   :  { %1777 = vmatpush.msra.mxu0 %v8579_v51  ;;  %1817 = vmatpush.msrb.mxu2 %v8580_v55  ;;  %v8600_v51 = vld [vmem:[#allocation48_spill] sm:$0xff]  ;;  %v8601_v55 = vld [vmem:[#allocation13_spill] sm:$0xff] }
 0x274   :  { %1797 = vmatpush.msrb.mxu1 %v6089_v41  ;;  %1837 = vmatpush.msrb.mxu3 %v6092_v15 }
 0x275   :  { %1778 = vmatpush.msra.mxu0 %v8581_v30  ;;  %1818 = vmatpush.msrb.mxu2 %v8582_v57  ;;  %v219_v30 = vadd.f32 %v8601_v55, %v8600_v51 }
 0x276   :  { %1798 = vmatpush.msrb.mxu1 %v6097_v28  ;;  %1838 = vmatpush.msrb.mxu3 %v6100_v63 }
 0x277   :  { %1779 = vmatpush.msra.mxu0 %v8583_v54  ;;  %1819 = vmatpush.msrb.mxu2 %v8584_v29 }
 0x278   :  { %1799 = vmatpush.msrb.mxu1 %v6105_v14  ;;  %1839 = vmatpush.msrb.mxu3 %v6108_v1 }
 0x279   :  { %1780 = vmatpush.msra.mxu0 %v8585_v43  ;;  %1820 = vmatpush.msrb.mxu2 %v8586_v46 }
 0x27a   :  { %1800 = vmatpush.msrb.mxu1 %v6113_v17  ;;  %1840 = vmatpush.msrb.mxu3 %v6116_v6 }
 0x27b   :  { %1781 = vmatpush.msra.mxu0 %v8587_v8  ;;  %1821 = vmatpush.msrb.mxu2 %v8588_v56 }
 0x27c   :  { %1801 = vmatpush.msrb.mxu1 %v6121_v61  ;;  %1841 = vmatpush.msrb.mxu3 %v6124_v0 }
 0x27d   :  { %1782 = vmatpush.msra.mxu0 %v8589_v44  ;;  %1822 = vmatpush.msrb.mxu2 %v8590_v45 }
 0x27e   :  { %1802 = vmatpush.msrb.mxu1 %v6129_v10  ;;  %1842 = vmatpush.msrb.mxu3 %v6132_v11 }
 0x27f   :  { %1783 = vmatpush.msra.mxu0 %v8591_v38  ;;  %1823 = vmatpush.msrb.mxu2 %v8592_v62  ;;  %v8602_v38 = vld [vmem:[#allocation60_spill] sm:$0xff]  ;;  %v8603_v62 = vld [vmem:[#allocation15_spill] sm:$0xff] }
 0x280   :  { %1803 = vmatpush.msrb.mxu1 %v6137_v13  ;;  %1843 = vmatpush.msrb.mxu3 %v6140_v50 }
 0x281   :  { %1784 = vmatpush.msra.mxu0 %v8593_v36  ;;  %1824 = vmatpush.msrb.mxu2 %v8594_v7  ;;  %v260_v36 = vadd.f32 %v8603_v62, %v8602_v38 }
 0x282   :  { %1804 = vmatpush.msrb.mxu1 %v6143_v21  ;;  %1844 = vmatpush.msrb.mxu3 %v6146_v4 }
 0x29a   :  { %v1328_v37 = vpop.f32.mrf.mxu0  ;;  %v1348_v18 = vpop.f32.mrf.mxu1 }
 0x29b   :  { %v1391_v24 = vadd.f32 %v1328_v37, %v137_v49  ;;  %v1392_v25 = vadd.f32 %v1348_v18, %v178_v3 }
 0x29d   :  { %v3495_v26 = vmul.f32 -1.442695, %v1391_v24  ;;  %v3496_v58 = vmul.f32 -1.442695, %v1392_v25 }
 0x29f   :  { %3616 = vpow2.f32 %v3495_v26 }
 0x2a0   :  { %3618 = vpow2.f32 %v3496_v58  ;;  %v8604_v58 = vld [vmem:[#allocation31_spill] sm:$0xff] }
 0x2a1   :  { %v1368_v57 = vpop.f32.mrf.mxu2  ;;  %v1388_v44 = vpop.f32.mrf.mxu3 }
 0x2a2   :  { %v1393_v54 = vadd.f32 %v1368_v57, %v219_v30  ;;  %v1394_v3 = vadd.f32 %v1388_v44, %v260_v36 }
 0x2a4   :  { %v3497_v29 = vmul.f32 -1.442695, %v1393_v54  ;;  %v1412_v37 = vpop.f32.mrf.mxu0 }
 0x2a5   :  { %v3617_v43 = vpop.eup %3616  ;;  %v1413_v55 = vadd.f32 %v1412_v37, %v8604_v58 }
 0x2a6   :  { %v3619_v46 = vpop.eup %3618  ;;  %v1564_v8 = vadd.f32 1.0, %v3617_v43  ;;  %3620 = vpow2.f32 %v3497_v29 }
 0x2a7   :  { %v1565_v56 = vadd.f32 1.0, %v3619_v46 }
 0x2a8   :  { %3622 = vrcp.f32 %v1564_v8  ;;  %v1578_v26 = vand.u32 2147483648, %v1564_v8  ;;  %v1576_v54 = vand.u32 2147483647, %v1564_v8  ;;  %vm1572_vm15 = vweird.f32 %v1564_v8 }
 0x2a9   :  { %3624 = vrcp.f32 %v1565_v56  ;;  %v1593_v30 = vand.u32 2147483648, %v1565_v56  ;;  %v1591_v43 = vand.u32 2147483647, %v1565_v56  ;;  %vm1587_vm0 = vweird.f32 %v1565_v56 }
 0x2aa   :  { %vm1577_vm3 = vcmp.eq.f32.partialorder %v1576_v54, 8.507059e+37 }
 0x2ab   :  { %v1594_v37 = vor.u32 1.1754944e-38, %v1593_v30  ;;  %vm1592_vm4 = vcmp.eq.f32.partialorder %v1591_v43, 8.507059e+37 }
 0x2ac   :  { %v3621_v45 = vpop.eup %3620 }
 0x2ad   :  { %v6157_v7 = vadd.f32 1.0, %v3621_v45 }
 0x2ae   :  { %v3623_v52 = vpop.eup %3622 }
 0x2af   :  { %v3625_v48 = vpop.eup %3624  ;;  %v1568_v49 = vmul.f32 %v3623_v52, %v1564_v8  ;;  %3626 = vrcp.f32 %v6157_v7  ;;  %vm1573_vm13 = vweird.f32 %v3623_v52  ;;  %v1608_v54 = vand.u32 2147483648, %v6157_v7 }
 0x2b0   :  { %v1583_v18 = vmul.f32 %v3625_v48, %v1565_v56  ;;  %3628 = vtanh.f32 %v1394_v3  ;;  %vm1588_vm14 = vweird.f32 %v3625_v48  ;;  %vm1574_vm1 = vmor %vm1572_vm15, %vm1573_vm13  ;;  %vm1602_vm6 = vweird.f32 %v6157_v7 }
 0x2b1   :  { %v1569_v24 = vsub.f32 1.0, %v1568_v49  ;;  %v1579_v49 = vor.u32 1.1754944e-38, %v1578_v26  ;;  %vm1589_vm2 = vmor %vm1587_vm0, %vm1588_vm14 }
 0x2b2   :  { %v1584_v25 = vsub.f32 1.0, %v1583_v18  ;;  %v1452_v18 = vpop.f32.mrf.mxu2 }
 0x2b3   :  { %v1570_v57 = vmul.f32 %v3623_v52, %v1569_v24 }
 0x2b4   :  { %v1585_v29 = vmul.f32 %v3625_v48, %v1584_v25  ;;  %v1432_v46 = vpop.f32.mrf.mxu1 }
 0x2b5   :  { %v3627_v44 = vpop.eup %3626  ;;  %v1571_v45 = vadd.f32 %v3623_v52, %v1570_v57  ;;  %v1433_v62 = vadd.f32 %v1432_v46, %v1413_v55  ;;  %v8605_v55 = vld [vmem:[#allocation32_spill] sm:$0xff] }
 0x2b6   :  { %v1598_v36 = vmul.f32 %v3627_v44, %v6157_v7  ;;  %v1586_v3 = vadd.f32 %v3625_v48, %v1585_v29  ;;  %v3629_v25 = vpop.eup %3628  ;;  %v1453_v56 = vadd.f32 %v1452_v18, %v8605_v55  ;;  %vm1603_vm5 = vweird.f32 %v3627_v44 }
 0x2b7   :  { %v1575_v24 = vsel %vm1574_vm1, %v3623_v52, %v1571_v45  ;;  %v3498_v58 = vmul.f32 -1.442695, %v1433_v62  ;;  %vm1604_vm7 = vmor %vm1602_vm6, %vm1603_vm5 }
 0x2b8   :  { %v1599_v38 = vsub.f32 1.0, %v1598_v36  ;;  %v1580_v51 = vsel %vm1577_vm3, %v1579_v49, %v1575_v24  ;;  %v1590_v39 = vsel %vm1589_vm2, %v3625_v48, %v1586_v3 }
 0x2b9   :  { %v1595_v57 = vsel %vm1592_vm4, %v1594_v37, %v1590_v39  ;;  %v1614_v8 = vmul.f32 %v3629_v25, %v1580_v51  ;;  %3630 = vpow2.f32 %v3498_v58  ;;  %v1606_v51 = vand.u32 2147483647, %v6157_v7  ;;  %v6187_v25 = vld [vmem:[#allocation6 + $0x1f0] sm:$0xff] }
 0x2ba   :  { %v1600_v46 = vmul.f32 %v3627_v44, %v1599_v38  ;;  %v1613_v26 = vmul.f32 %v1595_v57, %v5835_v35  ;;  %v1472_v29 = vpop.f32.mrf.mxu3  ;;  %v6190_v57 = vld [vmem:[#allocation6 + $0x1f8] sm:$0xff] }
 0x2bb   :  { %v1473_v33 = vadd.f32 %v1472_v29, %v1453_v56  ;;  %vm1607_vm8 = vcmp.eq.f32.partialorder %v1606_v51, 8.507059e+37  ;;  %v6194_v56 = vld [vmem:[#allocation6 + $0x3f0] sm:$0xff] }
 0x2bc   :  { %v6164_v4 = vadd.f32 %v1614_v8, %v1613_v26  ;;  %v1601_v52 = vadd.f32 %v3627_v44, %v1600_v46  ;;  %v6197_v46 = vld [vmem:[#allocation6 + $0x3f8] sm:$0xff] }
 0x2bd   :  { %v3499_v30 = vmul.f32 -1.442695, %v1473_v33  ;;  %v1609_v33 = vor.u32 1.1754944e-38, %v1608_v54 }
 0x2be   :  { %3632 = vtanh.f32 %v6164_v4  ;;  %v1492_v48 = vpop.f32.mrf.mxu0  ;;  %v1512_v58 = vpop.f32.mrf.mxu1  ;;  %v1605_v43 = vsel %vm1604_vm7, %v3627_v44, %v1601_v52  ;;  %v6200_v52 = vld [vmem:[#allocation6 + $0x1d0] sm:$0xff] }
 0x2bf   :  { %v3631_v39 = vpop.eup %3630  ;;  %3634 = vpow2.f32 %v3499_v30  ;;  %v1493_v35 = vadd.f32 %v1492_v48, %v8464_v34  ;;  %v1610_v49 = vsel %vm1607_vm8, %v1609_v33, %v1605_v43  ;;  %v6203_v30 = vld [vmem:[#allocation6 + $0x1d8] sm:$0xff]  ;;  %v6208_v48 = vld [vmem:[#allocation6 + $0x3d0] sm:$0xff] }
 0x2c0   :  { %v6171_v38 = vadd.f32 1.0, %v3631_v39  ;;  %v6211_v39 = vld [vmem:[#allocation6 + $0x3d8] sm:$0xff] }
 0x2c1   :  { %v1513_v45 = vadd.f32 %v1512_v58, %v1493_v35  ;;  %v6215_v58 = vld [vmem:[#allocation6 + $0x1b0] sm:$0xff]  ;;  %v6218_v43 = vld [vmem:[#allocation6 + $0x1b8] sm:$0xff] }
 0x2c2   :  { %3636 = vrcp.f32 %v6171_v38  ;;  %vm1635_vm10 = vweird.f32 %v6171_v38 }
 0x2c3   :  { %v3500_v62 = vmul.f32 -1.442695, %v1513_v45 }
 0x2c4   :  { %v3633_v36 = vpop.eup %3632 }
 0x2c5   :  { %v3635_v3 = vpop.eup %3634  ;;  %v6174_v18 = vmul.f32 %v3633_v36, %v1610_v49  ;;  %3638 = vpow2.f32 %v3500_v62  ;;  %v1532_v37 = vpop.f32.mrf.mxu2  ;;  %v6224_v62 = vld [vmem:[#allocation6 + $0x3b0] sm:$0xff]  ;;  %v6227_v36 = vld [vmem:[#allocation6 + $0x3b8] sm:$0xff] }
 0x2c6   :  { %v6176_v7 = vadd.f32 1.0, %v3635_v3  ;;  %v1533_v8 = vadd.f32 %v1532_v37, %v8465_v47  ;;  %v1552_v51 = vpop.f32.mrf.mxu3  ;;  %8606 = vst [vmem:[#allocation10_spill] sm:$0xff] %v6224_v62  ;;  %v6234_v37 = vld [vmem:[#allocation6 + $0x190] sm:$0xff] }
 0x2c7   :  { %1701 = vmatmul.f32.vlgmr.msrb.gmra.mxu0 %v6174_v18  ;;  %1721 = vmatmul.f32.vlgmr.msra.gmra.mxu1 %v6174_v18  ;;  %8607 = vst [vmem:[#allocation12_spill] sm:$0xff] %v6227_v36 }
 0x2c8   :  { %v6180_v44 = vpop.eup %3636  ;;  %3640 = vrcp.f32 %v6176_v7  ;;  %1741 = vmatmul.f32.vlgmr.msra.gmra.mxu2 %v6174_v18  ;;  %1761 = vmatmul.f32.vlgmr.msra.gmra.mxu3 %v6174_v18  ;;  %v1553_v33 = vadd.f32 %v1552_v51, %v1533_v8  ;;  %8608 = vst [vmem:[#allocation36_spill] sm:$0xff] %v6234_v37  ;;  %v1641_v8 = vand.u32 2147483648, %v6171_v38  ;;  %v6245_v51 = vld [vmem:[#allocation6 + $0x170] sm:$0xff]  ;;  %v1656_v47 = vand.u32 2147483648, %v6176_v7 }
 0x2c9   :  { %v1631_v24 = vmul.f32 %v6180_v44, %v6171_v38  ;;  %1849 = vmatpush.msrb.mxu0 %v6187_v25  ;;  %1889 = vmatpush.msra.mxu2 %v6190_v57  ;;  %vm1636_vm9 = vweird.f32 %v6180_v44  ;;  %8610 = vst [vmem:[#allocation37_spill] sm:$0xff] %v6245_v51  ;;  %vm1650_vm13 = vweird.f32 %v6176_v7 }
 0x2ca   :  { %1869 = vmatpush.msra.mxu1 %v6194_v56  ;;  %1909 = vmatpush.msra.mxu3 %v6197_v46  ;;  %vm6254_vm11 = vmor %vm1635_vm10, %vm1636_vm9 }
 0x2cb   :  { %v3639_v26 = vpop.eup %3638  ;;  %v1632_v29 = vsub.f32 1.0, %v1631_v24  ;;  %1850 = vmatpush.msrb.mxu0 %v6200_v52  ;;  %1890 = vmatpush.msra.mxu2 %v6203_v30  ;;  %v6237_v24 = vld [vmem:[#allocation6 + $0x198] sm:$0xff] }
 0x2cc   :  { %v6206_v54 = vadd.f32 1.0, %v3639_v26  ;;  %1870 = vmatpush.msra.mxu1 %v6208_v48  ;;  %1910 = vmatpush.msra.mxu3 %v6211_v39  ;;  %8609 = vst [vmem:[#allocation34_spill] sm:$0xff] %v6237_v24 }
 0x2cd   :  { %v1633_v35 = vmul.f32 %v6180_v44, %v1632_v29  ;;  %1851 = vmatpush.msrb.mxu0 %v6215_v58  ;;  %1891 = vmatpush.msra.mxu2 %v6218_v43  ;;  %v1639_v29 = vand.u32 2147483647, %v6171_v38  ;;  %v6261_v38 = vld [vmem:[#allocation6 + $0x398] sm:$0xff] }
 0x2ce   :  { %v6221_v45 = vpop.eup %3640  ;;  %3642 = vrcp.f32 %v6206_v54  ;;  %1871 = vmatpush.msra.mxu1 %v6224_v62  ;;  %1911 = vmatpush.msra.mxu3 %v6227_v36  ;;  %8615 = vst [vmem:[#allocation40_spill] sm:$0xff] %v6261_v38  ;;  %v6270_v36 = vld [vmem:[#allocation6 + $0x150] sm:$0xff]  ;;  %v6281_v62 = vld [vmem:[#allocation6 + $0x378] sm:$0xff]  ;;  %vm1665_vm2 = vweird.f32 %v6206_v54 }
 0x2cf   :  { %v1646_v49 = vmul.f32 %v6221_v45, %v6176_v7  ;;  %v1634_v3 = vadd.f32 %v6180_v44, %v1633_v35  ;;  %1852 = vmatpush.msrb.mxu0 %v6234_v37  ;;  %1892 = vmatpush.msra.mxu2 %v6237_v24  ;;  %v6248_v35 = vld [vmem:[#allocation6 + $0x178] sm:$0xff]  ;;  %3644 = vtanh.f32 %v1553_v33  ;;  %vm1651_vm12 = vweird.f32 %v6221_v45  ;;  %8618 = vst [vmem:[#allocation45_spill] sm:$0xff] %v6281_v62  ;;  %v6288_v24 = vld [vmem:[#allocation6 + $0x130] sm:$0xff] }
 0x2d0   :  { %1785 = vmatmul.f32.vlgmr.msra.gmra.mxu0 %v6174_v18  ;;  %1825 = vmatmul.f32.vlgmr.msrb.gmra.mxu2 %v6174_v18  ;;  %8611 = vst [vmem:[#allocation38_spill] sm:$0xff] %v6248_v35  ;;  %v1654_v37 = vand.u32 2147483647, %v6176_v7  ;;  %v6273_v33 = vld [vmem:[#allocation6 + $0x158] sm:$0xff]  ;;  %vm1640_vm14 = vcmp.eq.f32.partialorder %v1639_v29, 8.507059e+37  ;;  %vm6296_vm15 = vmor %vm1650_vm13, %vm1651_vm12  ;;  %v1657_v7 = vor.u32 1.1754944e-38, %v1656_v47 }
 0x2d1   :  { %v1647_v26 = vsub.f32 1.0, %v1646_v49  ;;  %1853 = vmatpush.msrb.mxu0 %v6245_v51  ;;  %1893 = vmatpush.msra.mxu2 %v6248_v35  ;;  %v6258_v49 = vld [vmem:[#allocation6 + $0x390] sm:$0xff]  ;;  %v1638_v35 = vsel %vm6254_vm11, %v6180_v44, %v1634_v3  ;;  %8616 = vst [vmem:[#allocation41_spill] sm:$0xff] %v6273_v33  ;;  %v6303_v29 = vld [vmem:[#allocation6 + $0x358] sm:$0xff] }
 0x2d2   :  { %8614 = vst [vmem:[#allocation39_spill] sm:$0xff] %v6258_v49  ;;  %1872 = vmatpush.msra.mxu1 %v6258_v49  ;;  %1912 = vmatpush.msra.mxu3 %v6261_v38  ;;  %v1642_v38 = vor.u32 1.1754944e-38, %v1641_v8  ;;  %v6291_v8 = vld [vmem:[#allocation6 + $0x138] sm:$0xff]  ;;  %vm1655_vm0 = vcmp.eq.f32.partialorder %v1654_v37, 8.507059e+37  ;;  %v6322_v37 = vld [vmem:[#allocation6 + $0xf0] sm:$0xff] }
 0x2d3   :  { %v1648_v51 = vmul.f32 %v6221_v45, %v1647_v26  ;;  %1854 = vmatpush.msrb.mxu0 %v6270_v36  ;;  %1894 = vmatpush.msra.mxu2 %v6273_v33  ;;  %v6278_v26 = vld [vmem:[#allocation6 + $0x370] sm:$0xff]  ;;  %8619 = vst [vmem:[#allocation46_spill] sm:$0xff] %v6288_v24  ;;  %v6312_v47 = vld [vmem:[#allocation6 + $0x118] sm:$0xff] }
 0x2d4   :  { %v6276_v49 = vpop.eup %3642  ;;  %8617 = vst [vmem:[#allocation44_spill] sm:$0xff] %v6278_v26  ;;  %1873 = vmatpush.msra.mxu1 %v6278_v26  ;;  %1913 = vmatpush.msra.mxu3 %v6281_v62  ;;  %v1643_v26 = vsel %vm1640_vm14, %v1642_v38, %v1638_v35  ;;  %v6300_v33 = vld [vmem:[#allocation6 + $0x350] sm:$0xff] }
 0x2d5   :  { %v1661_v44 = vmul.f32 %v6276_v49, %v6206_v54  ;;  %v1649_v3 = vadd.f32 %v6221_v45, %v1648_v51  ;;  %1855 = vmatpush.msrb.mxu0 %v6288_v24  ;;  %8620 = vst [vmem:[#allocation47_spill] sm:$0xff] %v6291_v8  ;;  %1895 = vmatpush.msra.mxu2 %v6291_v8  ;;  %v6309_v24 = vld [vmem:[#allocation6 + $0x110] sm:$0xff]  ;;  %v3645_v35 = vpop.eup %3644  ;;  %vm1666_vm1 = vweird.f32 %v6276_v49 }
 0x2d6   :  { %8623 = vst [vmem:[#allocation49_spill] sm:$0xff] %v6300_v33  ;;  %1874 = vmatpush.msra.mxu1 %v6300_v33  ;;  %1914 = vmatpush.msra.mxu3 %v6303_v29  ;;  %v6315_v33 = vld [vmem:[#allocation6 + $0x330] sm:$0xff]  ;;  %v1677_v62 = vmul.f32 %v3645_v35, %v1643_v26  ;;  %v6340_v35 = vld [vmem:[#allocation6 + $0xd8] sm:$0xff]  ;;  %vm6375_vm3 = vmor %vm1665_vm2, %vm1666_vm1 }
 0x2d7   :  { %v1662_v51 = vsub.f32 1.0, %v1661_v44  ;;  %v1653_v8 = vsel %vm6296_vm15, %v6221_v45, %v1649_v3  ;;  %1856 = vmatpush.msrb.mxu0 %v6309_v24  ;;  %1896 = vmatpush.msra.mxu2 %v6312_v47  ;;  %8624 = vst [vmem:[#allocation50_spill] sm:$0xff] %v6315_v33  ;;  %v6318_v44 = vld [vmem:[#allocation6 + $0x338] sm:$0xff]  ;;  %v6337_v26 = vld [vmem:[#allocation6 + $0xd0] sm:$0xff] }
 0x2d8   :  { %v1658_v38 = vsel %vm1655_vm0, %v1657_v7, %v1653_v8  ;;  %1875 = vmatpush.msra.mxu1 %v6315_v33  ;;  %1915 = vmatpush.msra.mxu3 %v6318_v44  ;;  %v6325_v3 = vld [vmem:[#allocation6 + $0xf8] sm:$0xff]  ;;  %v6329_v7 = vld [vmem:[#allocation6 + $0x310] sm:$0xff]  ;;  %8628 = vst [vmem:[#allocation55_spill] sm:$0xff] %v6337_v26 }
 0x2d9   :  { %v1676_v45 = vmul.f32 %v1658_v38, %v5904_v32  ;;  %1857 = vmatpush.msrb.mxu0 %v6322_v37  ;;  %1897 = vmatpush.msra.mxu2 %v6325_v3  ;;  %v1663_v8 = vmul.f32 %v6276_v49, %v1662_v51  ;;  %8625 = vst [vmem:[#allocation52_spill] sm:$0xff] %v6329_v7  ;;  %v6332_v33 = vld [vmem:[#allocation6 + $0x318] sm:$0xff]  ;;  %v6343_v38 = vld [vmem:[#allocation6 + $0x2f0] sm:$0xff] }
 0x2da   :  { %1876 = vmatpush.msra.mxu1 %v6329_v7  ;;  %8626 = vst [vmem:[#allocation53_spill] sm:$0xff] %v6332_v33  ;;  %1916 = vmatpush.msra.mxu3 %v6332_v33  ;;  %v6346_v51 = vld [vmem:[#allocation6 + $0x2f8] sm:$0xff]  ;;  %v6394_v7 = vld [vmem:[#allocation6 + $0x290] sm:$0xff] }
 0x2db   :  { %v6335_v32 = vadd.f32 %v1677_v62, %v1676_v45  ;;  %1858 = vmatpush.msrb.mxu0 %v6337_v26  ;;  %8629 = vst [vmem:[#allocation56_spill] sm:$0xff] %v6340_v35  ;;  %1898 = vmatpush.msra.mxu2 %v6340_v35  ;;  %v1664_v33 = vadd.f32 %v6276_v49, %v1663_v8  ;;  %v6352_v45 = vld [vmem:[#allocation6 + $0xb0] sm:$0xff]  ;;  %v6355_v62 = vld [vmem:[#allocation6 + $0xb8] sm:$0xff]  ;;  %v1669_v8 = vand.u32 2147483647, %v6206_v54 }
 0x2dc   :  { %8630 = vst [vmem:[#allocation57_spill] sm:$0xff] %v6343_v38  ;;  %1877 = vmatpush.msra.mxu1 %v6343_v38  ;;  %1917 = vmatpush.msra.mxu3 %v6346_v51  ;;  %v1671_v38 = vand.u32 2147483648, %v6206_v54  ;;  %v6359_v35 = vld [vmem:[#allocation6 + $0x2d0] sm:$0xff] }
 0x2dd   :  { %8627 = vst [vmem:[#allocation54_spill] sm:$0xff] %v6335_v32  ;;  %3646 = vtanh.f32 %v6335_v32  ;;  %1859 = vmatpush.msrb.mxu0 %v6352_v45  ;;  %1899 = vmatpush.msra.mxu2 %v6355_v62  ;;  %v6367_v32 = vld [vmem:[#allocation6 + $0x90] sm:$0xff]  ;;  %v1668_v54 = vsel %vm6375_vm3, %v6276_v49, %v1664_v33  ;;  %vm1670_vm4 = vcmp.eq.f32.partialorder %v1669_v8, 8.507059e+37  ;;  %v6403_v33 = vld [vmem:[#allocation6 + $0x58] sm:$0xff] }
 0x2de   :  { %8631 = vst [vmem:[#allocation58_spill] sm:$0xff] %v6346_v51  ;;  %1878 = vmatpush.msra.mxu1 %v6359_v35  ;;  %v6362_v51 = vld [vmem:[#allocation6 + $0x2d8] sm:$0xff]  ;;  %v1672_v26 = vor.u32 1.1754944e-38, %v1671_v38  ;;  %v6400_v49 = vld [vmem:[#allocation6 + $0x50] sm:$0xff] }
 0x2df   :  { %8632 = vst [vmem:[#allocation59_spill] sm:$0xff] %v6352_v45  ;;  %1918 = vmatpush.msra.mxu3 %v6362_v51  ;;  %1860 = vmatpush.msrb.mxu0 %v6367_v32  ;;  %v6370_v45 = vld [vmem:[#allocation6 + $0x98] sm:$0xff]  ;;  %v6412_v8 = vld [vmem:[#allocation6 + $0x30] sm:$0xff] }
 0x2e0   :  { %8633 = vst [vmem:[#allocation61_spill] sm:$0xff] %v6355_v62  ;;  %1900 = vmatpush.msra.mxu2 %v6370_v45  ;;  %v6379_v62 = vld [vmem:[#allocation6 + $0x2b0] sm:$0xff] }
 0x2e1   :  { %8634 = vst [vmem:[#allocation62_spill] sm:$0xff] %v6359_v35  ;;  %1879 = vmatpush.msra.mxu1 %v6379_v62 }
 0x2e2   :  { %8635 = vst [vmem:[#allocation63_spill] sm:$0xff] %v6362_v51  ;;  %v6382_v51 = vld [vmem:[#allocation6 + $0x2b8] sm:$0xff] }
 0x2e3   :  { %8636 = vst [vmem:[#allocation64_spill] sm:$0xff] %v6367_v32  ;;  %1919 = vmatpush.msra.mxu3 %v6382_v51  ;;  %v6388_v32 = vld [vmem:[#allocation6 + $0x70] sm:$0xff]  ;;  %1880 = vmatpush.msra.mxu1 %v6394_v7  ;;  %v3647_v35 = vpop.eup %3646 }
 0x2e4   :  { %8637 = vst [vmem:[#allocation65_spill] sm:$0xff] %v6370_v45  ;;  %1861 = vmatpush.msrb.mxu0 %v6388_v32  ;;  %v6391_v45 = vld [vmem:[#allocation6 + $0x78] sm:$0xff] }
 0x2e5   :  { %8640 = vst [vmem:[#allocation66_spill] sm:$0xff] %v6379_v62  ;;  %1901 = vmatpush.msra.mxu2 %v6391_v45  ;;  %v6397_v62 = vld [vmem:[#allocation6 + $0x298] sm:$0xff] }
 0x2e6   :  { %8641 = vst [vmem:[#allocation67_spill] sm:$0xff] %v6388_v32  ;;  %1920 = vmatpush.msra.mxu3 %v6397_v62  ;;  %1862 = vmatpush.msrb.mxu0 %v6400_v49  ;;  %v6406_v32 = vld [vmem:[#allocation6 + $0x270] sm:$0xff] }
 0x2e7   :  { %8642 = vst [vmem:[#allocation68_spill] sm:$0xff] %v6391_v45  ;;  %1902 = vmatpush.msra.mxu2 %v6403_v33  ;;  %v1673_v45 = vsel %vm1670_vm4, %v1672_v26, %v1668_v54  ;;  %1881 = vmatpush.msra.mxu1 %v6406_v32  ;;  %v6418_v26 = vld [vmem:[#allocation6 + $0x10] sm:$0xff] }
 0x2e8   :  { %8643 = vst [vmem:[#allocation69_spill] sm:$0xff] %v6394_v7  ;;  %v1680_v38 = vmul.f32 %v3647_v35, %v1673_v45  ;;  %v6409_v7 = vld [vmem:[#allocation6 + $0x278] sm:$0xff]  ;;  %1863 = vmatpush.msrb.mxu0 %v6412_v8  ;;  %v6425_v54 = vld [vmem:[#allocation6 + $0x250] sm:$0xff] }
 0x2e9   :  { %8644 = vst [vmem:[#allocation70_spill] sm:$0xff] %v6397_v62  ;;  %1921 = vmatpush.msra.mxu3 %v6409_v7  ;;  %v6415_v62 = vld [vmem:[#allocation6 + $0x38] sm:$0xff]  ;;  %1882 = vmatpush.msra.mxu1 %v6425_v54 }
 0x2ea   :  { %8645 = vst [vmem:[#allocation71_spill] sm:$0xff] %v6412_v8  ;;  %1903 = vmatpush.msra.mxu2 %v6415_v62  ;;  %1805 = vmatmul.f32.vlgmr.msrb.gmra.mxu1 %v1680_v38  ;;  %v6421_v45 = vld [vmem:[#allocation6 + $0x18] sm:$0xff]  ;;  %v6441_v8 = vld [vmem:[#allocation4 + $0x1f0] sm:$0xff] }
 0x2eb   :  { %8646 = vst [vmem:[#allocation72_spill] sm:$0xff] %v6415_v62  ;;  %1845 = vmatmul.f32.vlgmr.msrb.gmra.mxu3 %v1680_v38  ;;  %1864 = vmatpush.msrb.mxu0 %v6418_v26  ;;  %v6429_v35 = vld [vmem:[#allocation6 + $0x258] sm:$0xff]  ;;  %v6432_v62 = vld [vmem:[#allocation6 + $0x230] sm:$0xff] }
 0x2ec   :  { %8647 = vst [vmem:[#allocation73_spill] sm:$0xff] %v6418_v26  ;;  %1904 = vmatpush.msra.mxu2 %v6421_v45  ;;  %1865 = vmatmul.f32.vlgmr.msrb.gmra.mxu0 %v6174_v18  ;;  %v6435_v26 = vld [vmem:[#allocation4 + $0x1e0] sm:$0xff] }
 0x2ed   :  { %8648 = vst [vmem:[#allocation74_spill] sm:$0xff] %v6421_v45  ;;  %1905 = vmatmul.f32.vlgmr.msra.gmra.mxu2 %v6174_v18  ;;  %1922 = vmatpush.msra.mxu3 %v6429_v35  ;;  %v6438_v45 = vld [vmem:[#allocation6 + $0x238] sm:$0xff]  ;;  %v6444_v18 = vld [vmem:[#allocation6 + $0x210] sm:$0xff] }
 0x2ee   :  { %8649 = vst [vmem:[#allocation75_spill] sm:$0xff] %v6429_v35  ;;  %1883 = vmatpush.msra.mxu1 %v6432_v62  ;;  %2059 = vmatpush.msra.mxu0 %v6435_v26  ;;  %v6447_v35 = vld [vmem:[#allocation4 + $0x1c0] sm:$0xff] }
 0x2ef   :  { %8650 = vst [vmem:[#allocation76_spill] sm:$0xff] %v6432_v62  ;;  %1923 = vmatpush.msra.mxu3 %v6438_v45  ;;  %2099 = vmatpush.msrb.mxu2 %v6441_v8  ;;  %v6450_v62 = vld [vmem:[#allocation6 + $0x218] sm:$0xff] }
 0x2f0   :  { %8651 = vst [vmem:[#allocation77_spill] sm:$0xff] %v6435_v26  ;;  %1884 = vmatpush.msra.mxu1 %v6444_v18  ;;  %2060 = vmatpush.msra.mxu0 %v6447_v35  ;;  %v6453_v26 = vld [vmem:[#allocation4 + $0x1d0] sm:$0xff] }
 0x2f1   :  { %8652 = vst [vmem:[#allocation78_spill] sm:$0xff] %v6438_v45  ;;  %1924 = vmatpush.msra.mxu3 %v6450_v62  ;;  %2100 = vmatpush.msrb.mxu2 %v6453_v26  ;;  %v6456_v45 = vld [vmem:[#allocation4 + $0x1a0] sm:$0xff] }
 0x2f2   :  { %8653 = vst [vmem:[#allocation79_spill] sm:$0xff] %v6441_v8  ;;  %1885 = vmatmul.f32.vlgmr.msra.gmra.mxu1 %v1680_v38  ;;  %2061 = vmatpush.msra.mxu0 %v6456_v45  ;;  %v6459_v8 = vld [vmem:[#allocation4 + $0x1b0] sm:$0xff] }
 0x2f3   :  { %8654 = vst [vmem:[#allocation80_spill] sm:$0xff] %v6444_v18  ;;  %1925 = vmatmul.f32.vlgmr.msra.gmra.mxu3 %v1680_v38  ;;  %2101 = vmatpush.msrb.mxu2 %v6459_v8  ;;  %v6462_v18 = vld [vmem:[#allocation4 + $0x1e8] sm:$0xff]  ;;  %v6471_v38 = vld [vmem:[#allocation4 + $0x190] sm:$0xff] }
 0x2f4   :  { %8655 = vst [vmem:[#allocation81_spill] sm:$0xff] %v6447_v35  ;;  %2079 = vmatpush.msrb.mxu1 %v6462_v18  ;;  %v6465_v35 = vld [vmem:[#allocation4 + $0x1f8] sm:$0xff] }
 0x2f5   :  { %8656 = vst [vmem:[#allocation82_spill] sm:$0xff] %v6450_v62  ;;  %2119 = vmatpush.msrb.mxu3 %v6465_v35  ;;  %v6468_v62 = vld [vmem:[#allocation4 + $0x180] sm:$0xff]  ;;  %2102 = vmatpush.msrb.mxu2 %v6471_v38 }
 0x2f6   :  { %8657 = vst [vmem:[#allocation83_spill] sm:$0xff] %v6456_v45  ;;  %2062 = vmatpush.msra.mxu0 %v6468_v62  ;;  %v6474_v45 = vld [vmem:[#allocation4 + $0x1c8] sm:$0xff] }
 0x2f7   :  { %8658 = vst [vmem:[#allocation85_spill] sm:$0xff] %v6459_v8  ;;  %2080 = vmatpush.msrb.mxu1 %v6474_v45  ;;  %v6477_v8 = vld [vmem:[#allocation4 + $0x1d8] sm:$0xff] }
 0x2f8   :  { %8659 = vst [vmem:[#allocation84_spill] sm:$0xff] %v6462_v18  ;;  %2120 = vmatpush.msrb.mxu3 %v6477_v8  ;;  %v6480_v18 = vld [vmem:[#allocation4 + $0x160] sm:$0xff] }
 0x2f9   :  { %8660 = vst [vmem:[#allocation86_spill] sm:$0xff] %v6465_v35  ;;  %2063 = vmatpush.msra.mxu0 %v6480_v18  ;;  %v6483_v35 = vld [vmem:[#allocation4 + $0x170] sm:$0xff] }
 0x2fa   :  { %8661 = vst [vmem:[#allocation87_spill] sm:$0xff] %v6468_v62  ;;  %2103 = vmatpush.msrb.mxu2 %v6483_v35  ;;  %v6486_v62 = vld [vmem:[#allocation4 + $0x1a8] sm:$0xff] }
 0x2fb   :  { %8662 = vst [vmem:[#allocation89_spill] sm:$0xff] %v6471_v38  ;;  %2081 = vmatpush.msrb.mxu1 %v6486_v62  ;;  %v6489_v38 = vld [vmem:[#allocation4 + $0x1b8] sm:$0xff] }
 0x2fc   :  { %8663 = vst [vmem:[#allocation88_spill] sm:$0xff] %v6474_v45  ;;  %2121 = vmatpush.msrb.mxu3 %v6489_v38  ;;  %v6492_v45 = vld [vmem:[#allocation4 + $0x140] sm:$0xff] }
 0x2fd   :  { %8664 = vst [vmem:[#allocation90_spill] sm:$0xff] %v6477_v8  ;;  %2064 = vmatpush.msra.mxu0 %v6492_v45  ;;  %v6495_v8 = vld [vmem:[#allocation4 + $0x150] sm:$0xff] }
 0x2fe   :  { %8665 = vst [vmem:[#allocation91_spill] sm:$0xff] %v6480_v18  ;;  %2104 = vmatpush.msrb.mxu2 %v6495_v8  ;;  %v6498_v18 = vld [vmem:[#allocation4 + $0x188] sm:$0xff] }
 0x2ff   :  { %8666 = vst [vmem:[#allocation93_spill] sm:$0xff] %v6483_v35  ;;  %2082 = vmatpush.msrb.mxu1 %v6498_v18  ;;  %v6501_v35 = vld [vmem:[#allocation4 + $0x198] sm:$0xff] }
 0x300   :  { %8667 = vst [vmem:[#allocation92_spill] sm:$0xff] %v6486_v62  ;;  %2122 = vmatpush.msrb.mxu3 %v6501_v35  ;;  %v6504_v62 = vld [vmem:[#allocation4 + $0x120] sm:$0xff] }
 0x301   :  { %8668 = vst [vmem:[#allocation94_spill] sm:$0xff] %v6489_v38  ;;  %2065 = vmatpush.msra.mxu0 %v6504_v62  ;;  %v6507_v38 = vld [vmem:[#allocation4 + $0x130] sm:$0xff] }
 0x302   :  { %8669 = vst [vmem:[#allocation95_spill] sm:$0xff] %v6492_v45  ;;  %2105 = vmatpush.msrb.mxu2 %v6507_v38  ;;  %v6510_v45 = vld [vmem:[#allocation4 + $0x168] sm:$0xff] }
 0x303   :  { %8670 = vst [vmem:[#allocation97_spill] sm:$0xff] %v6495_v8  ;;  %2083 = vmatpush.msrb.mxu1 %v6510_v45  ;;  %v6513_v8 = vld [vmem:[#allocation4 + $0x178] sm:$0xff] }
 0x304   :  { %8671 = vst [vmem:[#allocation96_spill] sm:$0xff] %v6498_v18  ;;  %2123 = vmatpush.msrb.mxu3 %v6513_v8  ;;  %v6516_v18 = vld [vmem:[#allocation4 + $0x100] sm:$0xff] }
 0x305   :  { %8672 = vst [vmem:[#allocation98_spill] sm:$0xff] %v6501_v35  ;;  %2066 = vmatpush.msra.mxu0 %v6516_v18  ;;  %v6519_v35 = vld [vmem:[#allocation4 + $0x110] sm:$0xff] }
 0x306   :  { %8673 = vst [vmem:[#allocation99_spill] sm:$0xff] %v6504_v62  ;;  %2106 = vmatpush.msrb.mxu2 %v6519_v35  ;;  %v6522_v62 = vld [vmem:[#allocation4 + $0x148] sm:$0xff] }
 0x307   :  { %8674 = vst [vmem:[#allocation101_spill] sm:$0xff] %v6507_v38  ;;  %2084 = vmatpush.msrb.mxu1 %v6522_v62  ;;  %v6525_v38 = vld [vmem:[#allocation4 + $0x158] sm:$0xff] }
 0x308   :  { %8675 = vst [vmem:[#allocation100_spill] sm:$0xff] %v6510_v45  ;;  %2124 = vmatpush.msrb.mxu3 %v6525_v38  ;;  %v6528_v45 = vld [vmem:[#allocation4 + $0xe0] sm:$0xff] }
 0x309   :  { %8676 = vst [vmem:[#allocation102_spill] sm:$0xff] %v6513_v8  ;;  %2067 = vmatpush.msra.mxu0 %v6528_v45  ;;  %v6531_v8 = vld [vmem:[#allocation4 + $0xf0] sm:$0xff] }
 0x30a   :  { %8677 = vst [vmem:[#allocation103_spill] sm:$0xff] %v6516_v18  ;;  %2107 = vmatpush.msrb.mxu2 %v6531_v8  ;;  %v6534_v18 = vld [vmem:[#allocation4 + $0x128] sm:$0xff] }
 0x30b   :  { %8678 = vst [vmem:[#allocation105_spill] sm:$0xff] %v6519_v35  ;;  %2085 = vmatpush.msrb.mxu1 %v6534_v18  ;;  %v6537_v35 = vld [vmem:[#allocation4 + $0x138] sm:$0xff] }
 0x30c   :  { %8679 = vst [vmem:[#allocation104_spill] sm:$0xff] %v6522_v62  ;;  %2125 = vmatpush.msrb.mxu3 %v6537_v35  ;;  %v6540_v62 = vld [vmem:[#allocation4 + $0xc0] sm:$0xff] }
 0x30d   :  { %8680 = vst [vmem:[#allocation106_spill] sm:$0xff] %v6525_v38  ;;  %2068 = vmatpush.msra.mxu0 %v6540_v62  ;;  %v6543_v38 = vld [vmem:[#allocation4 + $0xd0] sm:$0xff] }
 0x30e   :  { %8681 = vst [vmem:[#allocation107_spill] sm:$0xff] %v6528_v45  ;;  %2108 = vmatpush.msrb.mxu2 %v6543_v38  ;;  %v6546_v45 = vld [vmem:[#allocation4 + $0x108] sm:$0xff] }
 0x30f   :  { %8682 = vst [vmem:[#allocation109_spill] sm:$0xff] %v6531_v8  ;;  %2086 = vmatpush.msrb.mxu1 %v6546_v45  ;;  %v6549_v8 = vld [vmem:[#allocation4 + $0x118] sm:$0xff] }
 0x310   :  { %8683 = vst [vmem:[#allocation108_spill] sm:$0xff] %v6534_v18  ;;  %2126 = vmatpush.msrb.mxu3 %v6549_v8  ;;  %v6552_v18 = vld [vmem:[#allocation4 + $0xa0] sm:$0xff] }
 0x311   :  { %8684 = vst [vmem:[#allocation110_spill] sm:$0xff] %v6537_v35  ;;  %2069 = vmatpush.msra.mxu0 %v6552_v18  ;;  %v6555_v35 = vld [vmem:[#allocation4 + $0xb0] sm:$0xff] }
 0x312   :  { %8685 = vst [vmem:[#allocation111_spill] sm:$0xff] %v6540_v62  ;;  %2109 = vmatpush.msrb.mxu2 %v6555_v35  ;;  %v6558_v62 = vld [vmem:[#allocation4 + $0xe8] sm:$0xff] }
 0x313   :  { %8686 = vst [vmem:[#allocation113_spill] sm:$0xff] %v6543_v38  ;;  %2087 = vmatpush.msrb.mxu1 %v6558_v62  ;;  %v6561_v38 = vld [vmem:[#allocation4 + $0xf8] sm:$0xff] }
 0x314   :  { %8687 = vst [vmem:[#allocation112_spill] sm:$0xff] %v6546_v45  ;;  %2127 = vmatpush.msrb.mxu3 %v6561_v38  ;;  %v6564_v45 = vld [vmem:[#allocation4 + $0x80] sm:$0xff] }
 0x315   :  { %8688 = vst [vmem:[#allocation114_spill] sm:$0xff] %v6549_v8  ;;  %2070 = vmatpush.msra.mxu0 %v6564_v45  ;;  %v6567_v8 = vld [vmem:[#allocation4 + $0x90] sm:$0xff] }
 0x316   :  { %8689 = vst [vmem:[#allocation115_spill] sm:$0xff] %v6552_v18  ;;  %2110 = vmatpush.msrb.mxu2 %v6567_v8  ;;  %v6570_v18 = vld [vmem:[#allocation4 + $0xc8] sm:$0xff] }
 0x317   :  { %8690 = vst [vmem:[#allocation117_spill] sm:$0xff] %v6555_v35  ;;  %2088 = vmatpush.msrb.mxu1 %v6570_v18  ;;  %v6573_v35 = vld [vmem:[#allocation4 + $0xd8] sm:$0xff] }
 0x318   :  { %8691 = vst [vmem:[#allocation116_spill] sm:$0xff] %v6558_v62  ;;  %2128 = vmatpush.msrb.mxu3 %v6573_v35  ;;  %v6576_v62 = vld [vmem:[#allocation4 + $0x60] sm:$0xff] }
 0x319   :  { %8692 = vst [vmem:[#allocation118_spill] sm:$0xff] %v6561_v38  ;;  %2071 = vmatpush.msra.mxu0 %v6576_v62  ;;  %v6579_v38 = vld [vmem:[#allocation4 + $0x70] sm:$0xff] }
 0x31a   :  { %8693 = vst [vmem:[#allocation119_spill] sm:$0xff] %v6564_v45  ;;  %2111 = vmatpush.msrb.mxu2 %v6579_v38  ;;  %v6582_v45 = vld [vmem:[#allocation4 + $0xa8] sm:$0xff] }
 0x31b   :  { %8694 = vst [vmem:[#allocation121_spill] sm:$0xff] %v6567_v8  ;;  %2089 = vmatpush.msrb.mxu1 %v6582_v45  ;;  %v6585_v8 = vld [vmem:[#allocation4 + $0xb8] sm:$0xff] }
 0x31c   :  { %8695 = vst [vmem:[#allocation120_spill] sm:$0xff] %v6570_v18  ;;  %2129 = vmatpush.msrb.mxu3 %v6585_v8  ;;  %v6588_v18 = vld [vmem:[#allocation4 + $0x40] sm:$0xff] }
 0x31d   :  { %8696 = vst [vmem:[#allocation122_spill] sm:$0xff] %v6573_v35  ;;  %2072 = vmatpush.msra.mxu0 %v6588_v18  ;;  %v6591_v35 = vld [vmem:[#allocation4 + $0x50] sm:$0xff] }
 0x31e   :  { %8697 = vst [vmem:[#allocation123_spill] sm:$0xff] %v6576_v62  ;;  %2112 = vmatpush.msrb.mxu2 %v6591_v35  ;;  %v6594_v62 = vld [vmem:[#allocation4 + $0x88] sm:$0xff] }
 0x31f   :  { %8698 = vst [vmem:[#allocation125_spill] sm:$0xff] %v6579_v38  ;;  %2090 = vmatpush.msrb.mxu1 %v6594_v62  ;;  %v6597_v38 = vld [vmem:[#allocation4 + $0x98] sm:$0xff] }
 0x320   :  { %8699 = vst [vmem:[#allocation124_spill] sm:$0xff] %v6582_v45  ;;  %2130 = vmatpush.msrb.mxu3 %v6597_v38  ;;  %v6600_v45 = vld [vmem:[#allocation4 + $0x20] sm:$0xff] }
 0x321   :  { %8700 = vst [vmem:[#allocation126_spill] sm:$0xff] %v6585_v8  ;;  %2073 = vmatpush.msra.mxu0 %v6600_v45  ;;  %v6603_v8 = vld [vmem:[#allocation4 + $0x30] sm:$0xff] }
 0x322   :  { %8701 = vst [vmem:[#allocation127_spill] sm:$0xff] %v6588_v18  ;;  %2113 = vmatpush.msrb.mxu2 %v6603_v8  ;;  %v6606_v18 = vld [vmem:[#allocation4 + $0x68] sm:$0xff] }
 0x323   :  { %8702 = vst [vmem:[#allocation129_spill] sm:$0xff] %v6591_v35  ;;  %2091 = vmatpush.msrb.mxu1 %v6606_v18  ;;  %v6609_v35 = vld [vmem:[#allocation4 + $0x78] sm:$0xff] }
 0x324   :  { %8703 = vst [vmem:[#allocation128_spill] sm:$0xff] %v6594_v62  ;;  %2131 = vmatpush.msrb.mxu3 %v6609_v35  ;;  %v6612_v62 = vld [vmem:[#allocation4] sm:$0xff] }
 0x325   :  { %8704 = vst [vmem:[#allocation130_spill] sm:$0xff] %v6597_v38  ;;  %2074 = vmatpush.msra.mxu0 %v6612_v62  ;;  %v6615_v38 = vld [vmem:[#allocation4 + $0x10] sm:$0xff] }
 0x326   :  { %8705 = vst [vmem:[#allocation131_spill] sm:$0xff] %v6600_v45  ;;  %2114 = vmatpush.msrb.mxu2 %v6615_v38  ;;  %v6618_v45 = vld [vmem:[#allocation6 + $0x1e0] sm:$0xff] }
 0x327   :  { %8706 = vst [vmem:[#allocation133_spill] sm:$0xff] %v6603_v8  ;;  %2143 = vmatpush.msrb.mxu0 %v6618_v45  ;;  %v6621_v8 = vld [vmem:[#allocation6 + $0x1e8] sm:$0xff] }
 0x328   :  { %8707 = vst [vmem:[#allocation132_spill] sm:$0xff] %v6606_v18  ;;  %2183 = vmatpush.msra.mxu2 %v6621_v8  ;;  %v6624_v18 = vld [vmem:[#allocation4 + $0x48] sm:$0xff] }
 0x329   :  { %8708 = vst [vmem:[#allocation134_spill] sm:$0xff] %v6609_v35  ;;  %2092 = vmatpush.msrb.mxu1 %v6624_v18  ;;  %v6627_v35 = vld [vmem:[#allocation4 + $0x58] sm:$0xff] }
 0x32a   :  { %8709 = vst [vmem:[#allocation135_spill] sm:$0xff] %v6612_v62  ;;  %2132 = vmatpush.msrb.mxu3 %v6627_v35  ;;  %v6630_v62 = vld [vmem:[#allocation6 + $0x1c0] sm:$0xff] }
 0x32b   :  { %8710 = vst [vmem:[#allocation137_spill] sm:$0xff] %v6615_v38  ;;  %2144 = vmatpush.msrb.mxu0 %v6630_v62  ;;  %v6633_v38 = vld [vmem:[#allocation6 + $0x1c8] sm:$0xff] }
 0x32c   :  { %8711 = vst [vmem:[#allocation136_spill] sm:$0xff] %v6618_v45  ;;  %2184 = vmatpush.msra.mxu2 %v6633_v38  ;;  %v6636_v45 = vld [vmem:[#allocation4 + $0x28] sm:$0xff] }
 0x32d   :  { %8712 = vst [vmem:[#allocation138_spill] sm:$0xff] %v6621_v8  ;;  %2093 = vmatpush.msrb.mxu1 %v6636_v45  ;;  %v6639_v8 = vld [vmem:[#allocation4 + $0x38] sm:$0xff] }
 0x32e   :  { %8713 = vst [vmem:[#allocation139_spill] sm:$0xff] %v6624_v18  ;;  %2133 = vmatpush.msrb.mxu3 %v6639_v8  ;;  %v6642_v18 = vld [vmem:[#allocation6 + $0x1a0] sm:$0xff] }
 0x32f   :  { %8714 = vst [vmem:[#allocation141_spill] sm:$0xff] %v6627_v35  ;;  %2145 = vmatpush.msrb.mxu0 %v6642_v18  ;;  %v6645_v35 = vld [vmem:[#allocation6 + $0x1a8] sm:$0xff] }
 0x330   :  { %8715 = vst [vmem:[#allocation140_spill] sm:$0xff] %v6630_v62  ;;  %2185 = vmatpush.msra.mxu2 %v6645_v35  ;;  %v6648_v62 = vld [vmem:[#allocation4 + $0x8] sm:$0xff] }
 0x331   :  { %8716 = vst [vmem:[#allocation142_spill] sm:$0xff] %v6633_v38  ;;  %2094 = vmatpush.msrb.mxu1 %v6648_v62  ;;  %v6651_v38 = vld [vmem:[#allocation4 + $0x18] sm:$0xff] }
 0x332   :  { %8717 = vst [vmem:[#allocation144_spill] sm:$0xff] %v6636_v45  ;;  %2134 = vmatpush.msrb.mxu3 %v6651_v38  ;;  %v6654_v45 = vld [vmem:[#allocation6 + $0x180] sm:$0xff] }
 0x333   :  { %8718 = vst [vmem:[#allocation143_spill] sm:$0xff] %v6639_v8  ;;  %2146 = vmatpush.msrb.mxu0 %v6654_v45  ;;  %v6657_v8 = vld [vmem:[#allocation6 + $0x188] sm:$0xff]  ;;  %2163 = vmatpush.msra.mxu1 %v6025_v59  ;;  %v6678_v59 = vld [vmem:[#allocation6 + $0x120] sm:$0xff] }
 0x334   :  { %8719 = vst [vmem:[#allocation145_spill] sm:$0xff] %v6642_v18  ;;  %2186 = vmatpush.msra.mxu2 %v6657_v8  ;;  %2203 = vmatpush.msra.mxu3 %v6028_v23  ;;  %v6665_v18 = vld [vmem:[#allocation6 + $0x168] sm:$0xff] }
 0x335   :  { %8720 = vst [vmem:[#allocation146_spill] sm:$0xff] %v6645_v35  ;;  %v6662_v35 = vld [vmem:[#allocation6 + $0x160] sm:$0xff]  ;;  %2164 = vmatpush.msra.mxu1 %v6033_v16  ;;  %v6681_v23 = vld [vmem:[#allocation6 + $0x128] sm:$0xff] }
 0x336   :  { %8721 = vst [vmem:[#allocation147_spill] sm:$0xff] %v6654_v45  ;;  %2147 = vmatpush.msrb.mxu0 %v6662_v35  ;;  %2187 = vmatpush.msra.mxu2 %v6665_v18  ;;  %v6670_v45 = vld [vmem:[#allocation6 + $0x140] sm:$0xff] }
 0x337   :  { %8722 = vst [vmem:[#allocation148_spill] sm:$0xff] %v6657_v8  ;;  %2204 = vmatpush.msra.mxu3 %v6036_v42  ;;  %v6673_v8 = vld [vmem:[#allocation6 + $0x148] sm:$0xff]  ;;  %2165 = vmatpush.msra.mxu1 %v6041_v9  ;;  %v6686_v16 = vld [vmem:[#allocation6 + $0x100] sm:$0xff] }
 0x338   :  { %2148 = vmatpush.msrb.mxu0 %v6670_v45  ;;  %2188 = vmatpush.msra.mxu2 %v6673_v8  ;;  %v6689_v42 = vld [vmem:[#allocation6 + $0x108] sm:$0xff]  ;;  %v6694_v9 = vld [vmem:[#allocation6 + $0xe0] sm:$0xff] }
 0x339   :  { %2205 = vmatpush.msra.mxu3 %v6044_v12  ;;  %2166 = vmatpush.msra.mxu1 %v6049_v27  ;;  %8723 = vst [vmem:[#allocation149_spill] sm:$0xff] %v6689_v42  ;;  %v6697_v12 = vld [vmem:[#allocation6 + $0xe8] sm:$0xff]  ;;  %v6702_v27 = vld [vmem:[#allocation6 + $0xc0] sm:$0xff] }
 0x33a   :  { %2149 = vmatpush.msrb.mxu0 %v6678_v59  ;;  %2189 = vmatpush.msra.mxu2 %v6681_v23  ;;  %8724 = vst [vmem:[#allocation150_spill] sm:$0xff] %v6694_v9 }
 0x33b   :  { %2206 = vmatpush.msra.mxu3 %v6052_v53  ;;  %2167 = vmatpush.msra.mxu1 %v6057_v19  ;;  %8725 = vst [vmem:[#allocation151_spill] sm:$0xff] %v6697_v12  ;;  %v6705_v53 = vld [vmem:[#allocation6 + $0xc8] sm:$0xff]  ;;  %v6710_v19 = vld [vmem:[#allocation6 + $0xa0] sm:$0xff] }
 0x33c   :  { %2150 = vmatpush.msrb.mxu0 %v6686_v16  ;;  %2190 = vmatpush.msra.mxu2 %v6689_v42  ;;  %8726 = vst [vmem:[#allocation152_spill] sm:$0xff] %v6702_v27 }
 0x33d   :  { %2207 = vmatpush.msra.mxu3 %v6060_v22  ;;  %2168 = vmatpush.msra.mxu1 %v6065_v2  ;;  %8727 = vst [vmem:[#allocation153_spill] sm:$0xff] %v6705_v53  ;;  %v6713_v22 = vld [vmem:[#allocation6 + $0xa8] sm:$0xff]  ;;  %v6718_v2 = vld [vmem:[#allocation6 + $0x80] sm:$0xff] }
 0x33e   :  { %2151 = vmatpush.msrb.mxu0 %v6694_v9  ;;  %2191 = vmatpush.msra.mxu2 %v6697_v12  ;;  %8728 = vst [vmem:[#allocation154_spill] sm:$0xff] %v6710_v19 }
 0x33f   :  { %2208 = vmatpush.msra.mxu3 %v6068_v31  ;;  %2169 = vmatpush.msra.mxu1 %v6073_v5  ;;  %8729 = vst [vmem:[#allocation155_spill] sm:$0xff] %v6713_v22  ;;  %v6721_v31 = vld [vmem:[#allocation6 + $0x88] sm:$0xff]  ;;  %v6726_v5 = vld [vmem:[#allocation6 + $0x60] sm:$0xff] }
 0x340   :  { %2152 = vmatpush.msrb.mxu0 %v6702_v27  ;;  %2192 = vmatpush.msra.mxu2 %v6705_v53  ;;  %8730 = vst [vmem:[#allocation156_spill] sm:$0xff] %v6718_v2 }
 0x341   :  { %2209 = vmatpush.msra.mxu3 %v6076_v40  ;;  %2170 = vmatpush.msra.mxu1 %v6081_v20  ;;  %8731 = vst [vmem:[#allocation157_spill] sm:$0xff] %v6721_v31  ;;  %v6729_v40 = vld [vmem:[#allocation6 + $0x68] sm:$0xff]  ;;  %v6734_v20 = vld [vmem:[#allocation6 + $0x40] sm:$0xff] }
 0x342   :  { %2153 = vmatpush.msrb.mxu0 %v6710_v19  ;;  %2193 = vmatpush.msra.mxu2 %v6713_v22  ;;  %8732 = vst [vmem:[#allocation158_spill] sm:$0xff] %v6726_v5 }
 0x343   :  { %2210 = vmatpush.msra.mxu3 %v6084_v60  ;;  %2171 = vmatpush.msra.mxu1 %v6089_v41  ;;  %8733 = vst [vmem:[#allocation159_spill] sm:$0xff] %v6729_v40  ;;  %v6737_v60 = vld [vmem:[#allocation6 + $0x48] sm:$0xff]  ;;  %v6742_v41 = vld [vmem:[#allocation6 + $0x20] sm:$0xff] }
 0x344   :  { %2154 = vmatpush.msrb.mxu0 %v6718_v2  ;;  %2194 = vmatpush.msra.mxu2 %v6721_v31  ;;  %8734 = vst [vmem:[#allocation160_spill] sm:$0xff] %v6734_v20 }
 0x345   :  { %2211 = vmatpush.msra.mxu3 %v6092_v15  ;;  %2172 = vmatpush.msra.mxu1 %v6097_v28  ;;  %8735 = vst [vmem:[#allocation161_spill] sm:$0xff] %v6737_v60  ;;  %v6745_v15 = vld [vmem:[#allocation6 + $0x28] sm:$0xff]  ;;  %v6750_v28 = vld [vmem:[#allocation6] sm:$0xff] }
 0x346   :  { %2155 = vmatpush.msrb.mxu0 %v6726_v5  ;;  %2195 = vmatpush.msra.mxu2 %v6729_v40  ;;  %8736 = vst [vmem:[#allocation162_spill] sm:$0xff] %v6742_v41 }
 0x347   :  { %2212 = vmatpush.msra.mxu3 %v6100_v63  ;;  %2173 = vmatpush.msra.mxu1 %v6105_v14  ;;  %8737 = vst [vmem:[#allocation163_spill] sm:$0xff] %v6745_v15  ;;  %v6753_v63 = vld [vmem:[#allocation6 + $0x8] sm:$0xff]  ;;  %v8740_v14 = vld [vmem:[#allocation17_spill] sm:$0xff] }
 0x348   :  { %2156 = vmatpush.msrb.mxu0 %v6734_v20  ;;  %2196 = vmatpush.msra.mxu2 %v6737_v60  ;;  %8738 = vst [vmem:[#allocation164_spill] sm:$0xff] %v6750_v28  ;;  %v8746_v20 = vld [vmem:[#allocation16_spill] sm:$0xff] }
 0x349   :  { %2213 = vmatpush.msra.mxu3 %v6108_v1  ;;  %2174 = vmatpush.msra.mxu1 %v6113_v17  ;;  %8739 = vst [vmem:[#allocation165_spill] sm:$0xff] %v6753_v63  ;;  %v8741_v1 = vld [vmem:[#allocation42_spill] sm:$0xff] }
 0x34a   :  { %2157 = vmatpush.msrb.mxu0 %v6742_v41  ;;  %2197 = vmatpush.msra.mxu2 %v6745_v15  ;;  %v8742_v17 = vld [vmem:[#allocation14_spill] sm:$0xff]  ;;  %v1702_v15 = vpop.f32.mrf.mxu0 }
 0x34b   :  { %2214 = vmatpush.msra.mxu3 %v6116_v6  ;;  %2175 = vmatpush.msra.mxu1 %v6121_v61  ;;  %v181_v6 = vadd.f32 %v8742_v17, %v8741_v1 }
 0x34c   :  { %2158 = vmatpush.msrb.mxu0 %v6750_v28  ;;  %2198 = vmatpush.msra.mxu2 %v6753_v63  ;;  %v8743_v63 = vld [vmem:[#allocation28_spill] sm:$0xff]  ;;  %v8744_v28 = vld [vmem:[#allocation25_spill] sm:$0xff] }
 0x34d   :  { %2215 = vmatpush.msra.mxu3 %v6124_v0  ;;  %2176 = vmatpush.msra.mxu1 %v6129_v10  ;;  %v140_v61 = vadd.f32 %v8744_v28, %v8743_v63  ;;  %v1722_v0 = vpop.f32.mrf.mxu1  ;;  %v1762_v28 = vpop.f32.mrf.mxu3 }
 0x34e   :  { %v1766_v10 = vadd.f32 %v1722_v0, %v181_v6  ;;  %v8747_v6 = vld [vmem:[#allocation60_spill] sm:$0xff] }
 0x34f   :  { %2216 = vmatpush.msra.mxu3 %v6132_v11  ;;  %2177 = vmatpush.msra.mxu1 %v6137_v13  ;;  %v1765_v41 = vadd.f32 %v1702_v15, %v140_v61  ;;  %v8745_v13 = vld [vmem:[#allocation48_spill] sm:$0xff] }
 0x350   :  { %v3502_v11 = vmul.f32 -1.442695, %v1766_v10 }
 0x351   :  { %2217 = vmatpush.msra.mxu3 %v6140_v50  ;;  %2178 = vmatpush.msra.mxu1 %v6143_v21  ;;  %v3501_v60 = vmul.f32 -1.442695, %v1765_v41  ;;  %v222_v50 = vadd.f32 %v8746_v20, %v8745_v13  ;;  %v1742_v21 = vpop.f32.mrf.mxu2  ;;  %v8748_v41 = vld [vmem:[#allocation19_spill] sm:$0xff] }
 0x352   :  { %v263_v61 = vadd.f32 %v8748_v41, %v8747_v6 }
 0x353   :  { %2218 = vmatpush.msra.mxu3 %v8740_v14  ;;  %3648 = vpow2.f32 %v3501_v60  ;;  %v1767_v40 = vadd.f32 %v1742_v21, %v222_v50 }
 0x354   :  { %3650 = vpow2.f32 %v3502_v11  ;;  %v1768_v20 = vadd.f32 %v1762_v28, %v263_v61 }
 0x355   :  { %v3503_v14 = vmul.f32 -1.442695, %v1767_v40 }
 0x357   :  { %3652 = vpow2.f32 %v3503_v14 }
 0x359   :  { %v3649_v5 = vpop.eup %3648 }
 0x35a   :  { %v3651_v31 = vpop.eup %3650  ;;  %v1938_v17 = vadd.f32 1.0, %v3649_v5 }
 0x35b   :  { %v1939_v1 = vadd.f32 1.0, %v3651_v31 }
 0x35c   :  { %3654 = vrcp.f32 %v1938_v17  ;;  %v1952_v21 = vand.u32 2147483648, %v1938_v17  ;;  %v1950_v13 = vand.u32 2147483647, %v1938_v17  ;;  %vm1946_vm7 = vweird.f32 %v1938_v17 }
 0x35d   :  { %3656 = vrcp.f32 %v1939_v1  ;;  %v3653_v15 = vpop.eup %3652  ;;  %v1967_v31 = vand.u32 2147483648, %v1939_v1  ;;  %v1965_v41 = vand.u32 2147483647, %v1939_v1  ;;  %vm1961_vm8 = vweird.f32 %v1939_v1 }
 0x35e   :  { %v6772_v60 = vadd.f32 1.0, %v3653_v15  ;;  %v1786_v15 = vpop.f32.mrf.mxu0  ;;  %v1953_v61 = vor.u32 1.1754944e-38, %v1952_v21  ;;  %vm1951_vm11 = vcmp.eq.f32.partialorder %v1950_v13, 8.507059e+37  ;;  %v1826_v21 = vpop.f32.mrf.mxu2 }
 0x35f   :  { %vm1966_vm12 = vcmp.eq.f32.partialorder %v1965_v41, 8.507059e+37 }
 0x360   :  { %3658 = vrcp.f32 %v6772_v60  ;;  %vm1976_vm14 = vweird.f32 %v6772_v60 }
 0x361   :  { %3660 = vtanh.f32 %v1768_v20 }
 0x362   :  { %v3655_v0 = vpop.eup %3654 }
 0x363   :  { %v3657_v10 = vpop.eup %3656  ;;  %v1942_v11 = vmul.f32 %v3655_v0, %v1938_v17  ;;  %vm1947_vm5 = vweird.f32 %v3655_v0 }
 0x364   :  { %v1957_v40 = vmul.f32 %v3657_v10, %v1939_v1  ;;  %vm1962_vm6 = vweird.f32 %v3657_v10  ;;  %vm1948_vm9 = vmor %vm1946_vm7, %vm1947_vm5 }
 0x365   :  { %v1943_v50 = vsub.f32 1.0, %v1942_v11  ;;  %vm1963_vm10 = vmor %vm1961_vm8, %vm1962_vm6 }
 0x366   :  { %v1958_v5 = vsub.f32 1.0, %v1957_v40  ;;  %v3659_v6 = vpop.eup %3658  ;;  %v1968_v40 = vor.u32 1.1754944e-38, %v1967_v31 }
 0x367   :  { %v1944_v14 = vmul.f32 %v3655_v0, %v1943_v50  ;;  %v1972_v28 = vmul.f32 %v3659_v6, %v6772_v60  ;;  %v8749_v50 = vld [vmem:[#allocation31_spill] sm:$0xff]  ;;  %v3661_v19 = vpop.eup %3660  ;;  %v1806_v17 = vpop.f32.mrf.mxu1  ;;  %vm1977_vm13 = vweird.f32 %v3659_v6 }
 0x368   :  { %v1959_v63 = vmul.f32 %v3657_v10, %v1958_v5  ;;  %v1787_v22 = vadd.f32 %v1786_v15, %v8749_v50  ;;  %vm1978_vm15 = vmor %vm1976_vm14, %vm1977_vm13 }
 0x369   :  { %v1945_v2 = vadd.f32 %v3655_v0, %v1944_v14  ;;  %v1973_v5 = vsub.f32 1.0, %v1972_v28  ;;  %v1866_v13 = vpop.f32.mrf.mxu0 }
 0x36a   :  { %v1960_v11 = vadd.f32 %v3657_v10, %v1959_v63  ;;  %v1807_v42 = vadd.f32 %v1806_v17, %v1787_v22 }
 0x36b   :  { %v1949_v20 = vsel %vm1948_vm9, %v3655_v0, %v1945_v2  ;;  %v1974_v1 = vmul.f32 %v3659_v6, %v1973_v5  ;;  %v1982_v0 = vand.u32 2147483648, %v6772_v60 }
 0x36c   :  { %v1954_v53 = vsel %vm1951_vm11, %v1953_v61, %v1949_v20  ;;  %v1964_v27 = vsel %vm1963_vm10, %v3657_v10, %v1960_v11  ;;  %v3504_v31 = vmul.f32 -1.442695, %v1807_v42  ;;  %v1827_v10 = vadd.f32 %v1826_v21, %v8605_v55  ;;  %v8756_v21 = vld [vmem:[#allocation38_spill] sm:$0xff] }
 0x36d   :  { %v1969_v12 = vsel %vm1966_vm12, %v1968_v40, %v1964_v27  ;;  %v1988_v14 = vmul.f32 %v3661_v19, %v1954_v53  ;;  %v1975_v2 = vadd.f32 %v3659_v6, %v1974_v1  ;;  %v1980_v27 = vand.u32 2147483647, %v6772_v60  ;;  %v8755_v1 = vld [vmem:[#allocation37_spill] sm:$0xff] }
 0x36e   :  { %v1987_v9 = vmul.f32 %v1969_v12, %v6164_v4  ;;  %v1846_v4 = vpop.f32.mrf.mxu3  ;;  %v1983_v19 = vor.u32 1.1754944e-38, %v1982_v0 }
 0x36f   :  { %v1847_v12 = vadd.f32 %v1846_v4, %v1827_v10  ;;  %v1979_v42 = vsel %vm1978_vm15, %v3659_v6, %v1975_v2  ;;  %v1886_v53 = vpop.f32.mrf.mxu1  ;;  %vm1981_vm0 = vcmp.eq.f32.partialorder %v1980_v27, 8.507059e+37  ;;  %v8758_v2 = vld [vmem:[#allocation40_spill] sm:$0xff]  ;;  %v8759_v27 = vld [vmem:[#allocation41_spill] sm:$0xff] }
 0x370   :  { %v6778_v63 = vadd.f32 %v1988_v14, %v1987_v9  ;;  %v1867_v9 = vadd.f32 %v1866_v13, %v8464_v34  ;;  %v1984_v28 = vsel %vm1981_vm0, %v1983_v19, %v1979_v42 }
 0x371   :  { %v3505_v22 = vmul.f32 -1.442695, %v1847_v12  ;;  %v8761_v12 = vld [vmem:[#allocation45_spill] sm:$0xff] }
 0x372   :  { %3662 = vtanh.f32 %v6778_v63  ;;  %v1887_v41 = vadd.f32 %v1886_v53, %v1867_v9  ;;  %v8760_v9 = vld [vmem:[#allocation44_spill] sm:$0xff] }
 0x373   :  { %3664 = vpow2.f32 %v3504_v31  ;;  %v8757_v31 = vld [vmem:[#allocation39_spill] sm:$0xff] }
 0x374   :  { %3666 = vpow2.f32 %v3505_v22  ;;  %v3506_v61 = vmul.f32 -1.442695, %v1887_v41  ;;  %v8762_v22 = vld [vmem:[#allocation46_spill] sm:$0xff]  ;;  %v8763_v41 = vld [vmem:[#allocation47_spill] sm:$0xff] }
 0x376   :  { %3668 = vpow2.f32 %v3506_v61  ;;  %v1926_v14 = vpop.f32.mrf.mxu3  ;;  %v8764_v61 = vld [vmem:[#allocation49_spill] sm:$0xff] }
 0x378   :  { %v3663_v15 = vpop.eup %3662 }
 0x379   :  { %v3665_v11 = vpop.eup %3664  ;;  %v6786_v40 = vmul.f32 %v3663_v15, %v1984_v28 }
 0x37a   :  { %v6788_v60 = vadd.f32 1.0, %v3665_v11  ;;  %v3667_v6 = vpop.eup %3666 }
 0x37b   :  { %2075 = vmatmul.f32.vlgmr.msra.gmra.mxu0 %v6786_v40  ;;  %2095 = vmatmul.f32.vlgmr.msrb.gmra.mxu1 %v6786_v40  ;;  %v6799_v20 = vadd.f32 1.0, %v3667_v6  ;;  %v8791_v6 = vld [vmem:[#allocation73_spill] sm:$0xff] }
 0x37c   :  { %3670 = vrcp.f32 %v6788_v60  ;;  %2115 = vmatmul.f32.vlgmr.msrb.gmra.mxu2 %v6786_v40  ;;  %2135 = vmatmul.f32.vlgmr.msrb.gmra.mxu3 %v6786_v40  ;;  %v3669_v5 = vpop.eup %3668  ;;  %v2015_v19 = vand.u32 2147483648, %v6788_v60  ;;  %vm2009_vm2 = vweird.f32 %v6788_v60  ;;  %v2013_v28 = vand.u32 2147483647, %v6788_v60 }
 0x37d   :  { %2223 = vmatpush.msra.mxu0 %v6187_v25  ;;  %2263 = vmatpush.msrb.mxu2 %v6190_v57  ;;  %3672 = vrcp.f32 %v6799_v20  ;;  %v6806_v25 = vadd.f32 1.0, %v3669_v5  ;;  %v2030_v11 = vand.u32 2147483648, %v6799_v20  ;;  %vm2024_vm5 = vweird.f32 %v6799_v20 }
 0x37e   :  { %2243 = vmatpush.msrb.mxu1 %v6194_v56  ;;  %2283 = vmatpush.msrb.mxu3 %v6197_v46  ;;  %v1906_v56 = vpop.f32.mrf.mxu2  ;;  %v8750_v46 = vld [vmem:[#allocation10_spill] sm:$0xff]  ;;  %vm2014_vm6 = vcmp.eq.f32.partialorder %v2013_v28, 8.507059e+37  ;;  %v8831_v28 = vld [vmem:[#allocation113_spill] sm:$0xff] }
 0x37f   :  { %2224 = vmatpush.msra.mxu0 %v6200_v52  ;;  %2264 = vmatpush.msrb.mxu2 %v6203_v30  ;;  %v8751_v52 = vld [vmem:[#allocation12_spill] sm:$0xff]  ;;  %3674 = vrcp.f32 %v6806_v25  ;;  %vm2039_vm10 = vweird.f32 %v6806_v25 }
 0x380   :  { %2244 = vmatpush.msrb.mxu1 %v6208_v48  ;;  %2284 = vmatpush.msrb.mxu3 %v6211_v39  ;;  %v8752_v48 = vld [vmem:[#allocation36_spill] sm:$0xff]  ;;  %v8753_v39 = vld [vmem:[#allocation34_spill] sm:$0xff] }
 0x381   :  { %2225 = vmatpush.msra.mxu0 %v6215_v58  ;;  %2265 = vmatpush.msrb.mxu2 %v6218_v43  ;;  %v8754_v43 = vld [vmem:[#allocation35_spill] sm:$0xff] }
 0x382   :  { %v3671_v57 = vpop.eup %3670  ;;  %2245 = vmatpush.msrb.mxu1 %v8750_v46  ;;  %2285 = vmatpush.msrb.mxu3 %v8751_v52  ;;  %v1907_v17 = vadd.f32 %v1906_v56, %v8754_v43  ;;  %v2028_v56 = vand.u32 2147483647, %v6799_v20  ;;  %v2016_v52 = vor.u32 1.1754944e-38, %v2015_v19  ;;  %v8783_v19 = vld [vmem:[#allocation68_spill] sm:$0xff] }
 0x383   :  { %v2005_v30 = vmul.f32 %v3671_v57, %v6788_v60  ;;  %2226 = vmatpush.msra.mxu0 %v8752_v48  ;;  %2266 = vmatpush.msrb.mxu2 %v8753_v39  ;;  %v3673_v13 = vpop.eup %3672  ;;  %vm2010_vm1 = vweird.f32 %v3671_v57  ;;  %v8770_v39 = vld [vmem:[#allocation55_spill] sm:$0xff] }
 0x384   :  { %2159 = vmatmul.f32.vlgmr.msrb.gmra.mxu0 %v6786_v40  ;;  %2199 = vmatmul.f32.vlgmr.msra.gmra.mxu2 %v6786_v40  ;;  %v1927_v0 = vadd.f32 %v1926_v14, %v1907_v17  ;;  %v2020_v4 = vmul.f32 %v3673_v13, %v6799_v20  ;;  %vm6841_vm3 = vmor %vm2009_vm2, %vm2010_vm1  ;;  %vm2025_vm4 = vweird.f32 %v3673_v13  ;;  %vm2029_vm8 = vcmp.eq.f32.partialorder %v2028_v56, 8.507059e+37  ;;  %v8774_v17 = vld [vmem:[#allocation59_spill] sm:$0xff]  ;;  %v8793_v56 = vld [vmem:[#allocation76_spill] sm:$0xff] }
 0x385   :  { %v2006_v58 = vsub.f32 1.0, %v2005_v30  ;;  %2227 = vmatpush.msra.mxu0 %v8755_v1  ;;  %2267 = vmatpush.msrb.mxu2 %v8756_v21  ;;  %v6828_v42 = vpop.eup %3674  ;;  %v8769_v30 = vld [vmem:[#allocation53_spill] sm:$0xff]  ;;  %vm2026_vm7 = vmor %vm2024_vm5, %vm2025_vm4 }
 0x386   :  { %2246 = vmatpush.msrb.mxu1 %v8757_v31  ;;  %2286 = vmatpush.msrb.mxu3 %v8758_v2  ;;  %v2021_v15 = vsub.f32 1.0, %v2020_v4  ;;  %3676 = vtanh.f32 %v1927_v0  ;;  %v8775_v1 = vld [vmem:[#allocation61_spill] sm:$0xff]  ;;  %v8776_v31 = vld [vmem:[#allocation54_spill] sm:$0xff]  ;;  %vm2040_vm9 = vweird.f32 %v6828_v42 }
 0x387   :  { %v2007_v10 = vmul.f32 %v3671_v57, %v2006_v58  ;;  %2228 = vmatpush.msra.mxu0 %v6270_v36  ;;  %2268 = vmatpush.msrb.mxu2 %v8759_v27  ;;  %v2035_v36 = vmul.f32 %v6828_v42, %v6806_v25  ;;  %v8778_v27 = vld [vmem:[#allocation63_spill] sm:$0xff]  ;;  %v8780_v4 = vld [vmem:[#allocation65_spill] sm:$0xff]  ;;  %vm6885_vm11 = vmor %vm2039_vm10, %vm2040_vm9 }
 0x388   :  { %2247 = vmatpush.msrb.mxu1 %v8760_v9  ;;  %2287 = vmatpush.msrb.mxu3 %v8761_v12  ;;  %v2022_v5 = vmul.f32 %v3673_v13, %v2021_v15  ;;  %v8781_v12 = vld [vmem:[#allocation66_spill] sm:$0xff] }
 0x389   :  { %v2008_v53 = vadd.f32 %v3671_v57, %v2007_v10  ;;  %2229 = vmatpush.msra.mxu0 %v8762_v22  ;;  %2269 = vmatpush.msrb.mxu2 %v8763_v41  ;;  %v2036_v46 = vsub.f32 1.0, %v2035_v36  ;;  %v8777_v10 = vld [vmem:[#allocation62_spill] sm:$0xff]  ;;  %v8784_v41 = vld [vmem:[#allocation69_spill] sm:$0xff]  ;;  %v2045_v36 = vand.u32 2147483648, %v6806_v25 }
 0x38a   :  { %2248 = vmatpush.msrb.mxu1 %v8764_v61  ;;  %2288 = vmatpush.msrb.mxu3 %v6303_v29  ;;  %v8767_v29 = vld [vmem:[#allocation50_spill] sm:$0xff]  ;;  %v8788_v61 = vld [vmem:[#allocation71_spill] sm:$0xff] }
 0x38b   :  { %2230 = vmatpush.msra.mxu0 %v6309_v24  ;;  %2270 = vmatpush.msrb.mxu2 %v6312_v47  ;;  %v2012_v60 = vsel %vm6841_vm3, %v3671_v57, %v2008_v53  ;;  %v2023_v24 = vadd.f32 %v3673_v13, %v2022_v5  ;;  %v8768_v47 = vld [vmem:[#allocation52_spill] sm:$0xff]  ;;  %v2031_v57 = vor.u32 1.1754944e-38, %v2030_v11  ;;  %v2037_v21 = vmul.f32 %v6828_v42, %v2036_v46  ;;  %v8782_v53 = vld [vmem:[#allocation67_spill] sm:$0xff]  ;;  %v8785_v15 = vld [vmem:[#allocation70_spill] sm:$0xff] }
 0x38c   :  { %2249 = vmatpush.msrb.mxu1 %v8767_v29  ;;  %2289 = vmatpush.msrb.mxu3 %v6318_v44  ;;  %v2017_v48 = vsel %vm2014_vm6, %v2016_v52, %v2012_v60  ;;  %v8771_v44 = vld [vmem:[#allocation56_spill] sm:$0xff]  ;;  %v3677_v20 = vpop.eup %3676  ;;  %v8792_v5 = vld [vmem:[#allocation74_spill] sm:$0xff]  ;;  %v8795_v29 = vld [vmem:[#allocation77_spill] sm:$0xff] }
 0x38d   :  { %2231 = vmatpush.msra.mxu0 %v6322_v37  ;;  %2271 = vmatpush.msrb.mxu2 %v6325_v3  ;;  %v2027_v14 = vsel %vm2026_vm7, %v3673_v13, %v2023_v24  ;;  %v8772_v37 = vld [vmem:[#allocation57_spill] sm:$0xff]  ;;  %v8773_v3 = vld [vmem:[#allocation58_spill] sm:$0xff]  ;;  %v2051_v0 = vmul.f32 %v3677_v20, %v2017_v48  ;;  %v8779_v13 = vld [vmem:[#allocation64_spill] sm:$0xff]  ;;  %v2038_v22 = vadd.f32 %v6828_v42, %v2037_v21 }
 0x38e   :  { %2250 = vmatpush.msrb.mxu1 %v8768_v47  ;;  %2290 = vmatpush.msrb.mxu3 %v8769_v30  ;;  %v2032_v58 = vsel %vm2029_vm8, %v2031_v57, %v2027_v14  ;;  %v8789_v11 = vld [vmem:[#allocation72_spill] sm:$0xff]  ;;  %v8798_v52 = vld [vmem:[#allocation82_spill] sm:$0xff]  ;;  %v8799_v24 = vld [vmem:[#allocation81_spill] sm:$0xff] }
 0x38f   :  { %2232 = vmatpush.msra.mxu0 %v8770_v39  ;;  %2272 = vmatpush.msrb.mxu2 %v8771_v44  ;;  %v2050_v2 = vmul.f32 %v2032_v58, %v8776_v31  ;;  %v8797_v46 = vld [vmem:[#allocation80_spill] sm:$0xff]  ;;  %v8801_v47 = vld [vmem:[#allocation86_spill] sm:$0xff]  ;;  %v8802_v30 = vld [vmem:[#allocation83_spill] sm:$0xff] }
 0x390   :  { %2251 = vmatpush.msrb.mxu1 %v8772_v37  ;;  %2291 = vmatpush.msrb.mxu3 %v8773_v3  ;;  %v8803_v57 = vld [vmem:[#allocation85_spill] sm:$0xff]  ;;  %v8804_v48 = vld [vmem:[#allocation88_spill] sm:$0xff]  ;;  %v8805_v39 = vld [vmem:[#allocation90_spill] sm:$0xff] }
 0x391   :  { %2233 = vmatpush.msra.mxu0 %v8774_v17  ;;  %2273 = vmatpush.msrb.mxu2 %v8775_v1  ;;  %v6869_v9 = vadd.f32 %v2051_v0, %v2050_v2  ;;  %v8806_v44 = vld [vmem:[#allocation87_spill] sm:$0xff]  ;;  %v8807_v14 = vld [vmem:[#allocation89_spill] sm:$0xff]  ;;  %v8808_v37 = vld [vmem:[#allocation92_spill] sm:$0xff] }
 0x392   :  { %2252 = vmatpush.msrb.mxu1 %v8777_v10  ;;  %2292 = vmatpush.msrb.mxu3 %v8778_v27  ;;  %v8809_v3 = vld [vmem:[#allocation94_spill] sm:$0xff]  ;;  %v8811_v20 = vld [vmem:[#allocation93_spill] sm:$0xff]  ;;  %v8812_v58 = vld [vmem:[#allocation96_spill] sm:$0xff] }
 0x393   :  { %2234 = vmatpush.msra.mxu0 %v8779_v13  ;;  %2274 = vmatpush.msrb.mxu2 %v8780_v4  ;;  %3678 = vtanh.f32 %v6869_v9  ;;  %v8813_v17 = vld [vmem:[#allocation98_spill] sm:$0xff]  ;;  %v8814_v1 = vld [vmem:[#allocation95_spill] sm:$0xff]  ;;  %v8815_v21 = vld [vmem:[#allocation97_spill] sm:$0xff] }
 0x394   :  { %2253 = vmatpush.msrb.mxu1 %v8781_v12  ;;  %2293 = vmatpush.msrb.mxu3 %v6382_v51  ;;  %v2043_v51 = vand.u32 2147483647, %v6806_v25  ;;  %v8790_v25 = vld [vmem:[#allocation75_spill] sm:$0xff]  ;;  %v8816_v31 = vld [vmem:[#allocation100_spill] sm:$0xff]  ;;  %v8817_v2 = vld [vmem:[#allocation102_spill] sm:$0xff] }
 0x395   :  { %2235 = vmatpush.msra.mxu0 %v8782_v53  ;;  %2275 = vmatpush.msrb.mxu2 %v8783_v19  ;;  %v8818_v0 = vld [vmem:[#allocation99_spill] sm:$0xff]  ;;  %v8819_v10 = vld [vmem:[#allocation101_spill] sm:$0xff]  ;;  %v8820_v27 = vld [vmem:[#allocation104_spill] sm:$0xff] }
 0x396   :  { %2254 = vmatpush.msrb.mxu1 %v8784_v41  ;;  %2294 = vmatpush.msrb.mxu3 %v8785_v15  ;;  %vm2044_vm12 = vcmp.eq.f32.partialorder %v2043_v51, 8.507059e+37  ;;  %v8821_v13 = vld [vmem:[#allocation106_spill] sm:$0xff]  ;;  %v8822_v4 = vld [vmem:[#allocation103_spill] sm:$0xff]  ;;  %v8823_v12 = vld [vmem:[#allocation105_spill] sm:$0xff] }
 0x397   :  { %2236 = vmatpush.msra.mxu0 %v6400_v49  ;;  %2276 = vmatpush.msrb.mxu2 %v6403_v33  ;;  %v2042_v49 = vsel %vm6885_vm11, %v6828_v42, %v2038_v22  ;;  %v2046_v33 = vor.u32 1.1754944e-38, %v2045_v36  ;;  %v8794_v42 = vld [vmem:[#allocation78_spill] sm:$0xff]  ;;  %v8824_v53 = vld [vmem:[#allocation108_spill] sm:$0xff]  ;;  %v8826_v22 = vld [vmem:[#allocation107_spill] sm:$0xff] }
 0x398   :  { %2255 = vmatpush.msrb.mxu1 %v6406_v32  ;;  %2295 = vmatpush.msrb.mxu3 %v6409_v7  ;;  %v8825_v19 = vld [vmem:[#allocation110_spill] sm:$0xff]  ;;  %v8827_v41 = vld [vmem:[#allocation109_spill] sm:$0xff]  ;;  %v8828_v15 = vld [vmem:[#allocation112_spill] sm:$0xff] }
 0x399   :  { %2237 = vmatpush.msra.mxu0 %v8788_v61  ;;  %2277 = vmatpush.msrb.mxu2 %v8789_v11  ;;  %v3679_v32 = vpop.eup %3678  ;;  %v2047_v7 = vsel %vm2044_vm12, %v2046_v33, %v2042_v49  ;;  %v8829_v36 = vld [vmem:[#allocation114_spill] sm:$0xff]  ;;  %v8830_v51 = vld [vmem:[#allocation111_spill] sm:$0xff]  ;;  %v8832_v61 = vld [vmem:[#allocation116_spill] sm:$0xff] }
 0x39a   :  { %2256 = vmatpush.msrb.mxu1 %v6425_v54  ;;  %2296 = vmatpush.msrb.mxu3 %v8790_v25  ;;  %v2054_v60 = vmul.f32 %v3679_v32, %v2047_v7  ;;  %v8796_v54 = vld [vmem:[#allocation79_spill] sm:$0xff]  ;;  %v8833_v11 = vld [vmem:[#allocation118_spill] sm:$0xff]  ;;  %v8835_v33 = vld [vmem:[#allocation117_spill] sm:$0xff] }
 0x39b   :  { %2238 = vmatpush.msra.mxu0 %v8791_v6  ;;  %2278 = vmatpush.msrb.mxu2 %v8792_v5  ;;  %v8834_v49 = vld [vmem:[#allocation115_spill] sm:$0xff]  ;;  %v8836_v25 = vld [vmem:[#allocation120_spill] sm:$0xff]  ;;  %v8837_v6 = vld [vmem:[#allocation122_spill] sm:$0xff] }
 0x39c   :  { %2239 = vmatmul.f32.vlgmr.msra.gmra.mxu0 %v6786_v40  ;;  %2279 = vmatmul.f32.vlgmr.msrb.gmra.mxu2 %v6786_v40  ;;  %v8800_v40 = vld [vmem:[#allocation84_spill] sm:$0xff]  ;;  %v8838_v5 = vld [vmem:[#allocation119_spill] sm:$0xff]  ;;  %v8839_v32 = vld [vmem:[#allocation121_spill] sm:$0xff] }
 0x39d   :  { %2257 = vmatpush.msrb.mxu1 %v8793_v56  ;;  %2297 = vmatpush.msrb.mxu3 %v8794_v42  ;;  %v8840_v7 = vld [vmem:[#allocation124_spill] sm:$0xff]  ;;  %v8842_v56 = vld [vmem:[#allocation123_spill] sm:$0xff]  ;;  %v8843_v42 = vld [vmem:[#allocation125_spill] sm:$0xff] }
 0x39e   :  { %2433 = vmatpush.msrb.mxu0 %v8795_v29  ;;  %2473 = vmatpush.msra.mxu2 %v8796_v54  ;;  %v8844_v29 = vld [vmem:[#allocation128_spill] sm:$0xff]  ;;  %v8845_v54 = vld [vmem:[#allocation130_spill] sm:$0xff] }
 0x39f   :  { %2179 = vmatmul.f32.vlgmr.msra.gmra.mxu1 %v2054_v60  ;;  %2219 = vmatmul.f32.vlgmr.msra.gmra.mxu3 %v2054_v60 }
 0x3a0   :  { %2258 = vmatpush.msrb.mxu1 %v8797_v46  ;;  %2298 = vmatpush.msrb.mxu3 %v8798_v52  ;;  %v8846_v46 = vld [vmem:[#allocation127_spill] sm:$0xff]  ;;  %v8847_v52 = vld [vmem:[#allocation129_spill] sm:$0xff] }
 0x3a1   :  { %2434 = vmatpush.msrb.mxu0 %v8799_v24  ;;  %2474 = vmatpush.msra.mxu2 %v6453_v26  ;;  %v8810_v26 = vld [vmem:[#allocation91_spill] sm:$0xff]  ;;  %v8848_v24 = vld [vmem:[#allocation132_spill] sm:$0xff] }
 0x3a2   :  { %2453 = vmatpush.msra.mxu1 %v8800_v40  ;;  %2493 = vmatpush.msra.mxu3 %v8801_v47  ;;  %v8849_v40 = vld [vmem:[#allocation134_spill] sm:$0xff]  ;;  %v8850_v47 = vld [vmem:[#allocation131_spill] sm:$0xff] }
 0x3a3   :  { %2435 = vmatpush.msrb.mxu0 %v8802_v30  ;;  %2475 = vmatpush.msra.mxu2 %v8803_v57  ;;  %v8851_v30 = vld [vmem:[#allocation133_spill] sm:$0xff]  ;;  %v8852_v57 = vld [vmem:[#allocation139_spill] sm:$0xff] }
 0x3a4   :  { %2454 = vmatpush.msra.mxu1 %v8804_v48  ;;  %2494 = vmatpush.msra.mxu3 %v8805_v39  ;;  %v8853_v48 = vld [vmem:[#allocation141_spill] sm:$0xff]  ;;  %v8854_v39 = vld [vmem:[#allocation135_spill] sm:$0xff] }
 0x3a5   :  { %2436 = vmatpush.msrb.mxu0 %v8806_v44  ;;  %2476 = vmatpush.msra.mxu2 %v8807_v14  ;;  %v8855_v44 = vld [vmem:[#allocation137_spill] sm:$0xff]  ;;  %v8856_v14 = vld [vmem:[#allocation136_spill] sm:$0xff] }
 0x3a6   :  { %2455 = vmatpush.msra.mxu1 %v8808_v37  ;;  %2495 = vmatpush.msra.mxu3 %v8809_v3  ;;  %v8857_v37 = vld [vmem:[#allocation138_spill] sm:$0xff]  ;;  %v8858_v3 = vld [vmem:[#allocation144_spill] sm:$0xff] }
 0x3a7   :  { %2259 = vmatmul.f32.vlgmr.msrb.gmra.mxu1 %v2054_v60  ;;  %2299 = vmatmul.f32.vlgmr.msrb.gmra.mxu3 %v2054_v60  ;;  %v8841_v60 = vld [vmem:[#allocation126_spill] sm:$0xff] }
 0x3a8   :  { %2437 = vmatpush.msrb.mxu0 %v8810_v26  ;;  %2477 = vmatpush.msra.mxu2 %v8811_v20  ;;  %v8859_v26 = vld [vmem:[#allocation143_spill] sm:$0xff]  ;;  %v8860_v20 = vld [vmem:[#allocation140_spill] sm:$0xff] }
 0x3a9   :  { %2456 = vmatpush.msra.mxu1 %v8812_v58  ;;  %2496 = vmatpush.msra.mxu3 %v8813_v17  ;;  %v8861_v58 = vld [vmem:[#allocation142_spill] sm:$0xff]  ;;  %v8862_v17 = vld [vmem:[#allocation145_spill] sm:$0xff] }
 0x3aa   :  { %2438 = vmatpush.msrb.mxu0 %v8814_v1  ;;  %2478 = vmatpush.msra.mxu2 %v8815_v21  ;;  %v8863_v1 = vld [vmem:[#allocation146_spill] sm:$0xff] }
 0x3ab   :  { %2457 = vmatpush.msra.mxu1 %v8816_v31  ;;  %2497 = vmatpush.msra.mxu3 %v8817_v2  ;;  %v6976_v21 = vld [vmem:[#allocation6 + $0x3e0] sm:$0xff]  ;;  %v6979_v31 = vld [vmem:[#allocation6 + $0x3e8] sm:$0xff] }
 0x3ac   :  { %2439 = vmatpush.msrb.mxu0 %v8818_v0  ;;  %2479 = vmatpush.msra.mxu2 %v8819_v10  ;;  %v8864_v2 = vld [vmem:[#allocation147_spill] sm:$0xff]  ;;  %v8865_v0 = vld [vmem:[#allocation148_spill] sm:$0xff]  ;;  %v6984_v10 = vld [vmem:[#allocation6 + $0x3c0] sm:$0xff] }
 0x3ad   :  { %2458 = vmatpush.msra.mxu1 %v8820_v27  ;;  %2498 = vmatpush.msra.mxu3 %v8821_v13  ;;  %v6995_v27 = vld [vmem:[#allocation6 + $0x3a8] sm:$0xff]  ;;  %v7000_v13 = vld [vmem:[#allocation6 + $0x380] sm:$0xff] }
 0x3ae   :  { %2440 = vmatpush.msrb.mxu0 %v8822_v4  ;;  %2480 = vmatpush.msra.mxu2 %v8823_v12  ;;  %v7003_v4 = vld [vmem:[#allocation6 + $0x388] sm:$0xff] }
 0x3af   :  { %2459 = vmatpush.msra.mxu1 %v8824_v53  ;;  %2499 = vmatpush.msra.mxu3 %v8825_v19  ;;  %v7019_v12 = vld [vmem:[#allocation6 + $0x348] sm:$0xff]  ;;  %v7024_v53 = vld [vmem:[#allocation6 + $0x320] sm:$0xff] }
 0x3b0   :  { %2441 = vmatpush.msrb.mxu0 %v8826_v22  ;;  %2481 = vmatpush.msra.mxu2 %v8827_v41  ;;  %v7027_v19 = vld [vmem:[#allocation6 + $0x328] sm:$0xff]  ;;  %v8870_v22 = vld [vmem:[#allocation153_spill] sm:$0xff]  ;;  %v7032_v41 = vld [vmem:[#allocation6 + $0x300] sm:$0xff] }
 0x3b1   :  { %2460 = vmatpush.msra.mxu1 %v8828_v15  ;;  %2500 = vmatpush.msra.mxu3 %v8829_v36  ;;  %v7035_v15 = vld [vmem:[#allocation6 + $0x308] sm:$0xff]  ;;  %v8871_v36 = vld [vmem:[#allocation154_spill] sm:$0xff] }
 0x3b2   :  { %2442 = vmatpush.msrb.mxu0 %v8830_v51  ;;  %2482 = vmatpush.msra.mxu2 %v8831_v28  ;;  %v8872_v51 = vld [vmem:[#allocation155_spill] sm:$0xff]  ;;  %v7040_v28 = vld [vmem:[#allocation6 + $0x2e0] sm:$0xff] }
 0x3b3   :  { %2461 = vmatpush.msra.mxu1 %v8832_v61  ;;  %2501 = vmatpush.msra.mxu3 %v8833_v11  ;;  %v7043_v61 = vld [vmem:[#allocation6 + $0x2e8] sm:$0xff]  ;;  %v8873_v11 = vld [vmem:[#allocation156_spill] sm:$0xff] }
 0x3b4   :  { %2443 = vmatpush.msrb.mxu0 %v8834_v49  ;;  %2483 = vmatpush.msra.mxu2 %v8835_v33  ;;  %v8874_v49 = vld [vmem:[#allocation157_spill] sm:$0xff]  ;;  %v7048_v33 = vld [vmem:[#allocation6 + $0x2c0] sm:$0xff] }
 0x3b5   :  { %2462 = vmatpush.msra.mxu1 %v8836_v25  ;;  %2502 = vmatpush.msra.mxu3 %v8837_v6  ;;  %v7051_v25 = vld [vmem:[#allocation6 + $0x2c8] sm:$0xff]  ;;  %v8875_v6 = vld [vmem:[#allocation158_spill] sm:$0xff] }
 0x3b6   :  { %2444 = vmatpush.msrb.mxu0 %v8838_v5  ;;  %2484 = vmatpush.msra.mxu2 %v8839_v32  ;;  %v8876_v5 = vld [vmem:[#allocation159_spill] sm:$0xff]  ;;  %v7056_v32 = vld [vmem:[#allocation6 + $0x2a0] sm:$0xff] }
 0x3b7   :  { %2463 = vmatpush.msra.mxu1 %v8840_v7  ;;  %2503 = vmatpush.msra.mxu3 %v8841_v60  ;;  %v7059_v7 = vld [vmem:[#allocation6 + $0x2a8] sm:$0xff]  ;;  %v8877_v60 = vld [vmem:[#allocation160_spill] sm:$0xff] }
 0x3b8   :  { %2445 = vmatpush.msrb.mxu0 %v8842_v56  ;;  %2485 = vmatpush.msra.mxu2 %v8843_v42  ;;  %v8878_v56 = vld [vmem:[#allocation161_spill] sm:$0xff]  ;;  %v7064_v42 = vld [vmem:[#allocation6 + $0x280] sm:$0xff] }
 0x3b9   :  { %2464 = vmatpush.msra.mxu1 %v8844_v29  ;;  %2504 = vmatpush.msra.mxu3 %v8845_v54  ;;  %v7067_v29 = vld [vmem:[#allocation6 + $0x288] sm:$0xff]  ;;  %v8879_v54 = vld [vmem:[#allocation162_spill] sm:$0xff] }
 0x3ba   :  { %2446 = vmatpush.msrb.mxu0 %v8846_v46  ;;  %2486 = vmatpush.msra.mxu2 %v8847_v52  ;;  %v8880_v46 = vld [vmem:[#allocation163_spill] sm:$0xff]  ;;  %v7072_v52 = vld [vmem:[#allocation6 + $0x260] sm:$0xff] }
 0x3bb   :  { %2465 = vmatpush.msra.mxu1 %v8848_v24  ;;  %2505 = vmatpush.msra.mxu3 %v8849_v40  ;;  %v7075_v24 = vld [vmem:[#allocation6 + $0x268] sm:$0xff]  ;;  %v8881_v40 = vld [vmem:[#allocation164_spill] sm:$0xff] }
 0x3bc   :  { %2447 = vmatpush.msrb.mxu0 %v8850_v47  ;;  %2487 = vmatpush.msra.mxu2 %v8851_v30  ;;  %v8882_v47 = vld [vmem:[#allocation165_spill] sm:$0xff]  ;;  %v7080_v30 = vld [vmem:[#allocation6 + $0x240] sm:$0xff] }
 0x3bd   :  { %2466 = vmatpush.msra.mxu1 %v8852_v57  ;;  %2506 = vmatpush.msra.mxu3 %v8853_v48  ;;  %v7083_v57 = vld [vmem:[#allocation6 + $0x248] sm:$0xff]  ;;  %v7086_v48 = vld [vmem:[#allocation6 + $0x220] sm:$0xff] }
 0x3be   :  { %2448 = vmatpush.msrb.mxu0 %v8854_v39  ;;  %2488 = vmatpush.msra.mxu2 %v8855_v44  ;;  %v7089_v39 = vld [vmem:[#allocation6 + $0x228] sm:$0xff]  ;;  %v7092_v44 = vld [vmem:[#allocation6 + $0x200] sm:$0xff] }
 0x3bf   :  { %2467 = vmatpush.msra.mxu1 %v8858_v3  ;;  %2507 = vmatpush.msra.mxu3 %v8859_v26  ;;  %v8884_v3 = vld [vmem:[#allocation33_spill] sm:$0xff] }
 0x3c0   :  { %2517 = vmatpush.msra.mxu0 %v8856_v14  ;;  %2557 = vmatpush.msrb.mxu2 %v8857_v37  ;;  %v7095_v14 = vld [vmem:[#allocation6 + $0x208] sm:$0xff]  ;;  %v8883_v37 = vld [vmem:[#allocation28_spill] sm:$0xff] }
 0x3c1   :  { %2468 = vmatpush.msra.mxu1 %v6648_v62  ;;  %2508 = vmatpush.msra.mxu3 %v6651_v38  ;;  %v6987_v62 = vld [vmem:[#allocation6 + $0x3c8] sm:$0xff]  ;;  %v6992_v38 = vld [vmem:[#allocation6 + $0x3a0] sm:$0xff]  ;;  %v143_v26 = vadd.f32 %v8884_v3, %v8883_v37 }
 0x3c2   :  { %2518 = vmatpush.msra.mxu0 %v8860_v20  ;;  %2558 = vmatpush.msrb.mxu2 %v8861_v58  ;;  %v8885_v20 = vld [vmem:[#allocation42_spill] sm:$0xff] }
 0x3c3   :  { %2537 = vmatpush.msrb.mxu1 %v6976_v21  ;;  %2577 = vmatpush.msrb.mxu3 %v6979_v31  ;;  %v8886_v58 = vld [vmem:[#allocation18_spill] sm:$0xff] }
 0x3c4   :  { %2519 = vmatpush.msra.mxu0 %v8862_v17  ;;  %2559 = vmatpush.msrb.mxu2 %v8863_v1  ;;  %v184_v17 = vadd.f32 %v8886_v58, %v8885_v20 }
 0x3c5   :  { %2538 = vmatpush.msrb.mxu1 %v6984_v10  ;;  %2578 = vmatpush.msrb.mxu3 %v6987_v62 }
 0x3c6   :  { %2520 = vmatpush.msra.mxu0 %v8864_v2  ;;  %2560 = vmatpush.msrb.mxu2 %v8865_v0 }
 0x3c7   :  { %2539 = vmatpush.msrb.mxu1 %v6992_v38  ;;  %2579 = vmatpush.msrb.mxu3 %v6995_v27 }
 0x3c8   :  { %2521 = vmatpush.msra.mxu0 %v6662_v35  ;;  %2561 = vmatpush.msrb.mxu2 %v6665_v18  ;;  %v7008_v35 = vld [vmem:[#allocation6 + $0x360] sm:$0xff]  ;;  %v7011_v18 = vld [vmem:[#allocation6 + $0x368] sm:$0xff] }
 0x3c9   :  { %2540 = vmatpush.msrb.mxu1 %v7000_v13  ;;  %2580 = vmatpush.msrb.mxu3 %v7003_v4 }
 0x3ca   :  { %2522 = vmatpush.msra.mxu0 %v6670_v45  ;;  %2562 = vmatpush.msrb.mxu2 %v6673_v8  ;;  %v8866_v8 = vld [vmem:[#allocation149_spill] sm:$0xff]  ;;  %v7016_v45 = vld [vmem:[#allocation6 + $0x340] sm:$0xff] }
 0x3cb   :  { %2541 = vmatpush.msrb.mxu1 %v7008_v35  ;;  %2581 = vmatpush.msrb.mxu3 %v7011_v18 }
 0x3cc   :  { %2523 = vmatpush.msra.mxu0 %v6678_v59  ;;  %2563 = vmatpush.msrb.mxu2 %v6681_v23  ;;  %v8867_v59 = vld [vmem:[#allocation150_spill] sm:$0xff]  ;;  %v8868_v23 = vld [vmem:[#allocation151_spill] sm:$0xff] }
 0x3cd   :  { %2542 = vmatpush.msrb.mxu1 %v7016_v45  ;;  %2582 = vmatpush.msrb.mxu3 %v7019_v12 }
 0x3ce   :  { %2524 = vmatpush.msra.mxu0 %v6686_v16  ;;  %2564 = vmatpush.msrb.mxu2 %v8866_v8  ;;  %v8869_v16 = vld [vmem:[#allocation152_spill] sm:$0xff] }
 0x3cf   :  { %2543 = vmatpush.msrb.mxu1 %v7024_v53  ;;  %2583 = vmatpush.msrb.mxu3 %v7027_v19 }
 0x3d0   :  { %2525 = vmatpush.msra.mxu0 %v8867_v59  ;;  %2565 = vmatpush.msrb.mxu2 %v8868_v23 }
 0x3d1   :  { %2544 = vmatpush.msrb.mxu1 %v7032_v41  ;;  %2584 = vmatpush.msrb.mxu3 %v7035_v15 }
 0x3d2   :  { %2526 = vmatpush.msra.mxu0 %v8869_v16  ;;  %2566 = vmatpush.msrb.mxu2 %v8870_v22  ;;  %v8887_v16 = vld [vmem:[#allocation48_spill] sm:$0xff] }
 0x3d3   :  { %2545 = vmatpush.msrb.mxu1 %v7040_v28  ;;  %2585 = vmatpush.msrb.mxu3 %v7043_v61  ;;  %v8888_v22 = vld [vmem:[#allocation20_spill] sm:$0xff] }
 0x3d4   :  { %2527 = vmatpush.msra.mxu0 %v8871_v36  ;;  %2567 = vmatpush.msrb.mxu2 %v8872_v51  ;;  %v225_v36 = vadd.f32 %v8888_v22, %v8887_v16 }
 0x3d5   :  { %2546 = vmatpush.msrb.mxu1 %v7048_v33  ;;  %2586 = vmatpush.msrb.mxu3 %v7051_v25 }
 0x3d6   :  { %2528 = vmatpush.msra.mxu0 %v8873_v11  ;;  %2568 = vmatpush.msrb.mxu2 %v8874_v49 }
 0x3d7   :  { %2547 = vmatpush.msrb.mxu1 %v7056_v32  ;;  %2587 = vmatpush.msrb.mxu3 %v7059_v7 }
 0x3d8   :  { %2529 = vmatpush.msra.mxu0 %v8875_v6  ;;  %2569 = vmatpush.msrb.mxu2 %v8876_v5 }
 0x3d9   :  { %2548 = vmatpush.msrb.mxu1 %v7064_v42  ;;  %2588 = vmatpush.msrb.mxu3 %v7067_v29 }
 0x3da   :  { %2530 = vmatpush.msra.mxu0 %v8877_v60  ;;  %2570 = vmatpush.msrb.mxu2 %v8878_v56 }
 0x3db   :  { %2549 = vmatpush.msrb.mxu1 %v7072_v52  ;;  %2589 = vmatpush.msrb.mxu3 %v7075_v24 }
 0x3dc   :  { %2531 = vmatpush.msra.mxu0 %v8879_v54  ;;  %2571 = vmatpush.msrb.mxu2 %v8880_v46 }
 0x3dd   :  { %2550 = vmatpush.msrb.mxu1 %v7080_v30  ;;  %2590 = vmatpush.msrb.mxu3 %v7083_v57 }
 0x3de   :  { %2532 = vmatpush.msra.mxu0 %v8881_v40  ;;  %2572 = vmatpush.msrb.mxu2 %v8882_v47  ;;  %v8889_v40 = vld [vmem:[#allocation60_spill] sm:$0xff]  ;;  %v8890_v47 = vld [vmem:[#allocation23_spill] sm:$0xff] }
 0x3df   :  { %2551 = vmatpush.msrb.mxu1 %v7086_v48  ;;  %2591 = vmatpush.msrb.mxu3 %v7089_v39  ;;  %v266_v3 = vadd.f32 %v8890_v47, %v8889_v40 }
 0x3e1   :  { %2552 = vmatpush.msrb.mxu1 %v7092_v44  ;;  %2592 = vmatpush.msrb.mxu3 %v7095_v14 }
 0x3f8   :  { %v2076_v1 = vpop.f32.mrf.mxu0  ;;  %v2096_v2 = vpop.f32.mrf.mxu1 }
 0x3f9   :  { %v2139_v0 = vadd.f32 %v2076_v1, %v143_v26  ;;  %v2140_v8 = vadd.f32 %v2096_v2, %v184_v17 }
 0x3fb   :  { %v3507_v59 = vmul.f32 -1.442695, %v2139_v0  ;;  %v3508_v23 = vmul.f32 -1.442695, %v2140_v8 }
 0x3fd   :  { %3680 = vpow2.f32 %v3507_v59 }
 0x3fe   :  { %3682 = vpow2.f32 %v3508_v23 }
 0x3ff   :  { %v2116_v51 = vpop.f32.mrf.mxu2  ;;  %v2136_v54 = vpop.f32.mrf.mxu3 }
 0x400   :  { %v2141_v11 = vadd.f32 %v2116_v51, %v225_v36  ;;  %v2142_v17 = vadd.f32 %v2136_v54, %v266_v3 }
 0x402   :  { %v3509_v49 = vmul.f32 -1.442695, %v2141_v11 }
 0x403   :  { %v3681_v6 = vpop.eup %3680 }
 0x404   :  { %v3683_v5 = vpop.eup %3682  ;;  %v2312_v60 = vadd.f32 1.0, %v3681_v6  ;;  %3684 = vpow2.f32 %v3509_v49 }
 0x405   :  { %v2313_v56 = vadd.f32 1.0, %v3683_v5 }
 0x406   :  { %3686 = vrcp.f32 %v2312_v60  ;;  %v2326_v23 = vand.u32 2147483648, %v2312_v60  ;;  %v2324_v51 = vand.u32 2147483647, %v2312_v60  ;;  %vm2320_vm15 = vweird.f32 %v2312_v60 }
 0x407   :  { %3688 = vrcp.f32 %v2313_v56  ;;  %v2341_v22 = vand.u32 2147483648, %v2313_v56  ;;  %v2339_v49 = vand.u32 2147483647, %v2313_v56  ;;  %vm2335_vm0 = vweird.f32 %v2313_v56 }
 0x408   :  { %vm2325_vm3 = vcmp.eq.f32.partialorder %v2324_v51, 8.507059e+37 }
 0x409   :  { %v2342_v3 = vor.u32 1.1754944e-38, %v2341_v22  ;;  %vm2340_vm4 = vcmp.eq.f32.partialorder %v2339_v49, 8.507059e+37 }
 0x40a   :  { %v3685_v46 = vpop.eup %3684 }
 0x40b   :  { %v2314_v26 = vadd.f32 1.0, %v3685_v46  ;;  %v2327_v46 = vor.u32 1.1754944e-38, %v2326_v23 }
 0x40c   :  { %v3687_v58 = vpop.eup %3686 }
 0x40d   :  { %v3689_v1 = vpop.eup %3688  ;;  %v2316_v2 = vmul.f32 %v3687_v58, %v2312_v60  ;;  %3690 = vrcp.f32 %v2314_v26  ;;  %vm2321_vm13 = vweird.f32 %v3687_v58  ;;  %v2160_v60 = vpop.f32.mrf.mxu0  ;;  %v2356_v22 = vand.u32 2147483648, %v2314_v26 }
 0x40e   :  { %v2331_v0 = vmul.f32 %v3689_v1, %v2313_v56  ;;  %3692 = vtanh.f32 %v2142_v17  ;;  %vm2336_vm14 = vweird.f32 %v3689_v1  ;;  %vm2322_vm1 = vmor %vm2320_vm15, %vm2321_vm13  ;;  %v2161_v23 = vadd.f32 %v2160_v60, %v8749_v50  ;;  %v7127_v60 = vld [vmem:[#allocation6 + $0x3f0] sm:$0xff] }
 0x40f   :  { %v2317_v8 = vsub.f32 1.0, %v2316_v2  ;;  %vm2337_vm2 = vmor %vm2335_vm0, %vm2336_vm14  ;;  %vm2350_vm6 = vweird.f32 %v2314_v26  ;;  %v2354_v51 = vand.u32 2147483647, %v2314_v26 }
 0x410   :  { %v2332_v59 = vsub.f32 1.0, %v2331_v0 }
 0x411   :  { %v2318_v36 = vmul.f32 %v3687_v58, %v2317_v8  ;;  %vm2355_vm8 = vcmp.eq.f32.partialorder %v2354_v51, 8.507059e+37  ;;  %v7140_v51 = vld [vmem:[#allocation6 + $0x3d0] sm:$0xff] }
 0x412   :  { %v2333_v11 = vmul.f32 %v3689_v1, %v2332_v59  ;;  %8891 = vst [vmem:[#allocation166_spill] sm:$0xff] %v7140_v51 }
 0x413   :  { %v3691_v6 = vpop.eup %3690  ;;  %v2319_v5 = vadd.f32 %v3687_v58, %v2318_v36 }
 0x414   :  { %v2346_v54 = vmul.f32 %v3691_v6, %v2314_v26  ;;  %v2334_v47 = vadd.f32 %v3689_v1, %v2333_v11  ;;  %v3693_v17 = vpop.eup %3692  ;;  %vm2351_vm5 = vweird.f32 %v3691_v6 }
 0x415   :  { %v2323_v2 = vsel %vm2322_vm1, %v3687_v58, %v2319_v5  ;;  %vm2352_vm7 = vmor %vm2350_vm6, %vm2351_vm5  ;;  %v2357_v5 = vor.u32 1.1754944e-38, %v2356_v22  ;;  %v7133_v22 = vld [vmem:[#allocation6 + $0x1d0] sm:$0xff] }
 0x416   :  { %v2347_v0 = vsub.f32 1.0, %v2346_v54  ;;  %v2328_v8 = vsel %vm2325_vm3, %v2327_v46, %v2323_v2  ;;  %v2338_v40 = vsel %vm2337_vm2, %v3689_v1, %v2334_v47 }
 0x417   :  { %v2343_v59 = vsel %vm2340_vm4, %v2342_v3, %v2338_v40  ;;  %v2362_v16 = vmul.f32 %v3693_v17, %v2328_v8  ;;  %v2200_v40 = vpop.f32.mrf.mxu2  ;;  %v7119_v8 = vld [vmem:[#allocation6 + $0x1f0] sm:$0xff] }
 0x418   :  { %v2348_v20 = vmul.f32 %v3691_v6, %v2347_v0  ;;  %v2361_v36 = vmul.f32 %v2343_v59, %v6778_v63  ;;  %v7122_v59 = vld [vmem:[#allocation6 + $0x1f8] sm:$0xff] }
 0x419   :  { %v2240_v63 = vpop.f32.mrf.mxu0 }
 0x41a   :  { %v7107_v56 = vadd.f32 %v2362_v16, %v2361_v36  ;;  %v2349_v37 = vadd.f32 %v3691_v6, %v2348_v20  ;;  %v2201_v16 = vadd.f32 %v2200_v40, %v8605_v55  ;;  %v2241_v3 = vadd.f32 %v2240_v63, %v8464_v34  ;;  %v7146_v40 = vld [vmem:[#allocation6 + $0x1b0] sm:$0xff] }
 0x41b   :  { %8893 = vst [vmem:[#allocation21_spill] sm:$0xff] %v7146_v40 }
 0x41c   :  { %3694 = vtanh.f32 %v7107_v56  ;;  %v2180_v58 = vpop.f32.mrf.mxu1  ;;  %v2353_v11 = vsel %vm2352_vm7, %v3691_v6, %v2349_v37 }
 0x41d   :  { %v2181_v1 = vadd.f32 %v2180_v58, %v2161_v23  ;;  %v2358_v54 = vsel %vm2355_vm8, %v2357_v5, %v2353_v11  ;;  %v7130_v23 = vld [vmem:[#allocation6 + $0x3f8] sm:$0xff] }
 0x41e   :  { %v7136_v58 = vld [vmem:[#allocation6 + $0x1d8] sm:$0xff] }
 0x41f   :  { %v3510_v49 = vmul.f32 -1.442695, %v2181_v1  ;;  %v7143_v1 = vld [vmem:[#allocation6 + $0x3d8] sm:$0xff] }
 0x420   :  { %8892 = vst [vmem:[#allocation11_spill] sm:$0xff] %v7143_v1  ;;  %v7149_v11 = vld [vmem:[#allocation6 + $0x1b8] sm:$0xff] }
 0x421   :  { %3696 = vpow2.f32 %v3510_v49  ;;  %8894 = vst [vmem:[#allocation13_spill] sm:$0xff] %v7149_v11  ;;  %v7152_v49 = vld [vmem:[#allocation6 + $0x3b0] sm:$0xff]  ;;  %v7155_v5 = vld [vmem:[#allocation6 + $0x3b8] sm:$0xff] }
 0x422   :  { %v3695_v20 = vpop.eup %3694  ;;  %v2220_v46 = vpop.f32.mrf.mxu3  ;;  %8895 = vst [vmem:[#allocation15_spill] sm:$0xff] %v7152_v49 }
 0x423   :  { %v7112_v47 = vmul.f32 %v3695_v20, %v2358_v54  ;;  %v2221_v2 = vadd.f32 %v2220_v46, %v2201_v16  ;;  %8896 = vst [vmem:[#allocation32_spill] sm:$0xff] %v7155_v5  ;;  %v7158_v16 = vld [vmem:[#allocation6 + $0x190] sm:$0xff]  ;;  %v7161_v20 = vld [vmem:[#allocation6 + $0x198] sm:$0xff] }
 0x424   :  { %v2260_v26 = vpop.f32.mrf.mxu1  ;;  %8897 = vst [vmem:[#allocation17_spill] sm:$0xff] %v7158_v16 }
 0x425   :  { %v3511_v17 = vmul.f32 -1.442695, %v2221_v2  ;;  %v2261_v0 = vadd.f32 %v2260_v26, %v2241_v3  ;;  %2449 = vmatmul.f32.vlgmr.msrb.gmra.mxu0 %v7112_v47  ;;  %2469 = vmatmul.f32.vlgmr.msra.gmra.mxu1 %v7112_v47  ;;  %8898 = vst [vmem:[#allocation14_spill] sm:$0xff] %v7161_v20  ;;  %v7168_v3 = vld [vmem:[#allocation6 + $0x170] sm:$0xff]  ;;  %v7171_v2 = vld [vmem:[#allocation6 + $0x178] sm:$0xff] }
 0x426   :  { %2489 = vmatmul.f32.vlgmr.msra.gmra.mxu2 %v7112_v47  ;;  %2509 = vmatmul.f32.vlgmr.msra.gmra.mxu3 %v7112_v47  ;;  %8899 = vst [vmem:[#allocation25_spill] sm:$0xff] %v7168_v3 }
 0x427   :  { %v3697_v37 = vpop.eup %3696  ;;  %3698 = vpow2.f32 %v3511_v17  ;;  %v3512_v6 = vmul.f32 -1.442695, %v2261_v0  ;;  %2597 = vmatpush.msrb.mxu0 %v7119_v8  ;;  %2637 = vmatpush.msra.mxu2 %v7122_v59  ;;  %8900 = vst [vmem:[#allocation16_spill] sm:$0xff] %v7171_v2  ;;  %v7179_v0 = vld [vmem:[#allocation6 + $0x390] sm:$0xff] }
 0x428   :  { %v7125_v36 = vadd.f32 1.0, %v3697_v37  ;;  %2617 = vmatpush.msra.mxu1 %v7127_v60  ;;  %2657 = vmatpush.msra.mxu3 %v7130_v23  ;;  %8901 = vst [vmem:[#allocation19_spill] sm:$0xff] %v7179_v0  ;;  %v7182_v37 = vld [vmem:[#allocation6 + $0x398] sm:$0xff] }
 0x429   :  { %3700 = vpow2.f32 %v3512_v6  ;;  %2598 = vmatpush.msrb.mxu0 %v7133_v22  ;;  %2638 = vmatpush.msra.mxu2 %v7136_v58  ;;  %8902 = vst [vmem:[#allocation31_spill] sm:$0xff] %v7182_v37 }
 0x42a   :  { %3702 = vrcp.f32 %v7125_v36  ;;  %2618 = vmatpush.msra.mxu1 %v7140_v51  ;;  %2658 = vmatpush.msra.mxu3 %v7143_v1  ;;  %vm2383_vm10 = vweird.f32 %v7125_v36  ;;  %v7276_v1 = vld [vmem:[#allocation6 + $0xb0] sm:$0xff] }
 0x42b   :  { %2599 = vmatpush.msrb.mxu0 %v7146_v40  ;;  %2639 = vmatpush.msra.mxu2 %v7149_v11  ;;  %v7254_v11 = vld [vmem:[#allocation6 + $0xd8] sm:$0xff]  ;;  %v7282_v51 = vld [vmem:[#allocation6 + $0x2d0] sm:$0xff] }
 0x42c   :  { %2619 = vmatpush.msra.mxu1 %v7152_v49  ;;  %2659 = vmatpush.msra.mxu3 %v7155_v5  ;;  %v7207_v5 = vld [vmem:[#allocation6 + $0x350] sm:$0xff]  ;;  %8920 = vst [vmem:[#allocation55_spill] sm:$0xff] %v7254_v11 }
 0x42d   :  { %v3699_v63 = vpop.eup %3698  ;;  %2600 = vmatpush.msrb.mxu0 %v7158_v16  ;;  %2640 = vmatpush.msra.mxu2 %v7161_v20  ;;  %v2300_v20 = vpop.f32.mrf.mxu3  ;;  %v7200_v16 = vld [vmem:[#allocation6 + $0x130] sm:$0xff]  ;;  %8909 = vst [vmem:[#allocation39_spill] sm:$0xff] %v7207_v5 }
 0x42e   :  { %v7164_v54 = vadd.f32 1.0, %v3699_v63  ;;  %2533 = vmatmul.f32.vlgmr.msra.gmra.mxu0 %v7112_v47  ;;  %2573 = vmatmul.f32.vlgmr.msrb.gmra.mxu2 %v7112_v47  ;;  %v2280_v63 = vpop.f32.mrf.mxu2  ;;  %8907 = vst [vmem:[#allocation37_spill] sm:$0xff] %v7200_v16  ;;  %v7251_v49 = vld [vmem:[#allocation6 + $0xd0] sm:$0xff] }
 0x42f   :  { %v3701_v46 = vpop.eup %3700  ;;  %2601 = vmatpush.msrb.mxu0 %v7168_v3  ;;  %2641 = vmatpush.msra.mxu2 %v7171_v2  ;;  %v7187_v3 = vld [vmem:[#allocation6 + $0x150] sm:$0xff]  ;;  %v7190_v2 = vld [vmem:[#allocation6 + $0x158] sm:$0xff]  ;;  %8919 = vst [vmem:[#allocation53_spill] sm:$0xff] %v7251_v49 }
 0x430   :  { %v7174_v26 = vpop.eup %3702  ;;  %3704 = vrcp.f32 %v7164_v54  ;;  %v7177_v17 = vadd.f32 1.0, %v3701_v46  ;;  %2620 = vmatpush.msra.mxu1 %v7179_v0  ;;  %2660 = vmatpush.msra.mxu3 %v7182_v37  ;;  %8903 = vst [vmem:[#allocation10_spill] sm:$0xff] %v7187_v3  ;;  %v7194_v46 = vld [vmem:[#allocation6 + $0x370] sm:$0xff]  ;;  %v7197_v0 = vld [vmem:[#allocation6 + $0x378] sm:$0xff]  ;;  %v2402_v40 = vand.u32 2147483647, %v7164_v54  ;;  %vm2398_vm13 = vweird.f32 %v7164_v54 }
 0x431   :  { %v2379_v6 = vmul.f32 %v7174_v26, %v7125_v36  ;;  %2602 = vmatpush.msrb.mxu0 %v7187_v3  ;;  %8904 = vst [vmem:[#allocation12_spill] sm:$0xff] %v7190_v2  ;;  %2642 = vmatpush.msra.mxu2 %v7190_v2  ;;  %v7203_v3 = vld [vmem:[#allocation6 + $0x138] sm:$0xff]  ;;  %v2281_v2 = vadd.f32 %v2280_v63, %v8754_v43  ;;  %v7222_v43 = vld [vmem:[#allocation6 + $0x330] sm:$0xff]  ;;  %vm2384_vm9 = vweird.f32 %v7174_v26 }
 0x432   :  { %3706 = vrcp.f32 %v7177_v17  ;;  %8905 = vst [vmem:[#allocation36_spill] sm:$0xff] %v7194_v46  ;;  %2621 = vmatpush.msra.mxu1 %v7194_v46  ;;  %2661 = vmatpush.msra.mxu3 %v7197_v0  ;;  %v7210_v46 = vld [vmem:[#allocation6 + $0x358] sm:$0xff]  ;;  %vm7260_vm11 = vmor %vm2383_vm10, %vm2384_vm9  ;;  %vm2403_vm0 = vcmp.eq.f32.partialorder %v2402_v40, 8.507059e+37  ;;  %vm2413_vm2 = vweird.f32 %v7177_v17 }
 0x433   :  { %8906 = vst [vmem:[#allocation34_spill] sm:$0xff] %v7197_v0  ;;  %v2380_v37 = vsub.f32 1.0, %v2379_v6  ;;  %2603 = vmatpush.msrb.mxu0 %v7200_v16  ;;  %2643 = vmatpush.msra.mxu2 %v7203_v3  ;;  %v7214_v0 = vld [vmem:[#allocation6 + $0x110] sm:$0xff]  ;;  %v7217_v16 = vld [vmem:[#allocation6 + $0x118] sm:$0xff]  ;;  %v2301_v63 = vadd.f32 %v2300_v20, %v2281_v2 }
 0x434   :  { %8908 = vst [vmem:[#allocation38_spill] sm:$0xff] %v7203_v3  ;;  %2622 = vmatpush.msra.mxu1 %v7207_v5  ;;  %2662 = vmatpush.msra.mxu3 %v7210_v46  ;;  %v7225_v5 = vld [vmem:[#allocation6 + $0x338] sm:$0xff] }
 0x435   :  { %8910 = vst [vmem:[#allocation40_spill] sm:$0xff] %v7210_v46  ;;  %v2381_v6 = vmul.f32 %v7174_v26, %v2380_v37  ;;  %2604 = vmatpush.msrb.mxu0 %v7214_v0  ;;  %2644 = vmatpush.msra.mxu2 %v7217_v16  ;;  %v7232_v46 = vld [vmem:[#allocation6 + $0xf0] sm:$0xff]  ;;  %v7235_v20 = vld [vmem:[#allocation6 + $0xf8] sm:$0xff]  ;;  %3708 = vtanh.f32 %v2301_v63 }
 0x436   :  { %8911 = vst [vmem:[#allocation41_spill] sm:$0xff] %v7214_v0  ;;  %v7220_v3 = vpop.eup %3704  ;;  %2623 = vmatpush.msra.mxu1 %v7222_v43  ;;  %2663 = vmatpush.msra.mxu3 %v7225_v5  ;;  %v7279_v63 = vld [vmem:[#allocation6 + $0xb8] sm:$0xff] }
 0x437   :  { %8912 = vst [vmem:[#allocation44_spill] sm:$0xff] %v7217_v16  ;;  %v2394_v37 = vmul.f32 %v7220_v3, %v7164_v54  ;;  %v2382_v0 = vadd.f32 %v7174_v26, %v2381_v6  ;;  %2605 = vmatpush.msrb.mxu0 %v7232_v46  ;;  %2645 = vmatpush.msra.mxu2 %v7235_v20  ;;  %v7244_v16 = vld [vmem:[#allocation6 + $0x318] sm:$0xff]  ;;  %vm2399_vm12 = vweird.f32 %v7220_v3 }
 0x438   :  { %8913 = vst [vmem:[#allocation45_spill] sm:$0xff] %v7222_v43  ;;  %v7238_v2 = vpop.eup %3706  ;;  %v2389_v43 = vand.u32 2147483648, %v7125_v36  ;;  %2664 = vmatpush.msra.mxu3 %v7244_v16  ;;  %vm7298_vm15 = vmor %vm2398_vm13, %vm2399_vm12 }
 0x439   :  { %8914 = vst [vmem:[#allocation46_spill] sm:$0xff] %v7225_v5  ;;  %v7241_v5 = vld [vmem:[#allocation6 + $0x310] sm:$0xff]  ;;  %v2395_v6 = vsub.f32 1.0, %v2394_v37  ;;  %2606 = vmatpush.msrb.mxu0 %v7251_v49  ;;  %2646 = vmatpush.msra.mxu2 %v7254_v11  ;;  %v2386_v11 = vsel %vm7260_vm11, %v7174_v26, %v2382_v0  ;;  %v7293_v37 = vld [vmem:[#allocation6 + $0x98] sm:$0xff]  ;;  %vm2414_vm1 = vweird.f32 %v7238_v2 }
 0x43a   :  { %8915 = vst [vmem:[#allocation47_spill] sm:$0xff] %v7232_v46  ;;  %2624 = vmatpush.msra.mxu1 %v7241_v5  ;;  %v2409_v46 = vmul.f32 %v7238_v2, %v7177_v17  ;;  %v7290_v0 = vld [vmem:[#allocation6 + $0x90] sm:$0xff]  ;;  %vm7367_vm3 = vmor %vm2413_vm2, %vm2414_vm1 }
 0x43b   :  { %8916 = vst [vmem:[#allocation49_spill] sm:$0xff] %v7235_v20  ;;  %v2387_v20 = vand.u32 2147483647, %v7125_v36  ;;  %v7267_v36 = vld [vmem:[#allocation6 + $0x2f8] sm:$0xff]  ;;  %v2396_v49 = vmul.f32 %v7220_v3, %v2395_v6  ;;  %2607 = vmatpush.msrb.mxu0 %v7276_v1  ;;  %2647 = vmatpush.msra.mxu2 %v7279_v63 }
 0x43c   :  { %8917 = vst [vmem:[#allocation50_spill] sm:$0xff] %v7241_v5  ;;  %v2404_v5 = vand.u32 2147483648, %v7164_v54  ;;  %2665 = vmatpush.msra.mxu3 %v7267_v36  ;;  %v7285_v6 = vld [vmem:[#allocation6 + $0x2d8] sm:$0xff]  ;;  %v7302_v54 = vld [vmem:[#allocation6 + $0x2b0] sm:$0xff] }
 0x43d   :  { %8918 = vst [vmem:[#allocation52_spill] sm:$0xff] %v7244_v16  ;;  %v7264_v16 = vld [vmem:[#allocation6 + $0x2f0] sm:$0xff]  ;;  %vm2388_vm14 = vcmp.eq.f32.partialorder %v2387_v20, 8.507059e+37  ;;  %v2397_v26 = vadd.f32 %v7220_v3, %v2396_v49  ;;  %2608 = vmatpush.msrb.mxu0 %v7290_v0  ;;  %2648 = vmatpush.msra.mxu2 %v7293_v37  ;;  %v7305_v49 = vld [vmem:[#allocation6 + $0x2b8] sm:$0xff] }
 0x43e   :  { %8923 = vst [vmem:[#allocation56_spill] sm:$0xff] %v7264_v16  ;;  %2625 = vmatpush.msra.mxu1 %v7264_v16  ;;  %v2410_v16 = vsub.f32 1.0, %v2409_v46  ;;  %2666 = vmatpush.msra.mxu3 %v7285_v6  ;;  %v2405_v46 = vor.u32 1.1754944e-38, %v2404_v5 }
 0x43f   :  { %8924 = vst [vmem:[#allocation57_spill] sm:$0xff] %v7267_v36  ;;  %v2390_v36 = vor.u32 1.1754944e-38, %v2389_v43  ;;  %v2401_v20 = vsel %vm7298_vm15, %v7220_v3, %v2397_v26  ;;  %v7325_v26 = vld [vmem:[#allocation6 + $0x50] sm:$0xff]  ;;  %v7328_v43 = vld [vmem:[#allocation6 + $0x58] sm:$0xff] }
 0x440   :  { %2626 = vmatpush.msra.mxu1 %v7282_v51  ;;  %8925 = vst [vmem:[#allocation58_spill] sm:$0xff] %v7285_v6  ;;  %2667 = vmatpush.msra.mxu3 %v7305_v49  ;;  %v2411_v5 = vmul.f32 %v7238_v2, %v2410_v16  ;;  %v7331_v16 = vld [vmem:[#allocation6 + $0x270] sm:$0xff] }
 0x441   :  { %8926 = vst [vmem:[#allocation59_spill] sm:$0xff] %v7290_v0  ;;  %v2391_v6 = vsel %vm2388_vm14, %v2390_v36, %v2386_v11  ;;  %v7314_v0 = vld [vmem:[#allocation6 + $0x78] sm:$0xff]  ;;  %v3709_v11 = vpop.eup %3708  ;;  %v2406_v36 = vsel %vm2403_vm0, %v2405_v46, %v2401_v20 }
 0x442   :  { %8927 = vst [vmem:[#allocation61_spill] sm:$0xff] %v7293_v37  ;;  %2627 = vmatpush.msra.mxu1 %v7302_v54  ;;  %v7311_v37 = vld [vmem:[#allocation6 + $0x70] sm:$0xff]  ;;  %2649 = vmatpush.msra.mxu2 %v7314_v0  ;;  %v2424_v40 = vmul.f32 %v2406_v36, %v6869_v9  ;;  %v2425_v3 = vmul.f32 %v3709_v11, %v2391_v6  ;;  %v7334_v46 = vld [vmem:[#allocation6 + $0x278] sm:$0xff] }
 0x443   :  { %8930 = vst [vmem:[#allocation54_spill] sm:$0xff] %v7302_v54  ;;  %2609 = vmatpush.msrb.mxu0 %v7311_v37  ;;  %v7318_v54 = vld [vmem:[#allocation6 + $0x290] sm:$0xff]  ;;  %v7342_v6 = vld [vmem:[#allocation6 + $0x38] sm:$0xff]  ;;  %v2412_v11 = vadd.f32 %v7238_v2, %v2411_v5  ;;  %v2417_v5 = vand.u32 2147483647, %v7177_v17 }
 0x444   :  { %8931 = vst [vmem:[#allocation62_spill] sm:$0xff] %v7305_v49  ;;  %2628 = vmatpush.msra.mxu1 %v7318_v54  ;;  %v7321_v49 = vld [vmem:[#allocation6 + $0x298] sm:$0xff]  ;;  %2650 = vmatpush.msra.mxu2 %v7328_v43  ;;  %v7337_v20 = vadd.f32 %v2425_v3, %v2424_v40  ;;  %v7339_v9 = vld [vmem:[#allocation6 + $0x30] sm:$0xff]  ;;  %v2419_v40 = vand.u32 2147483648, %v7177_v17 }
 0x445   :  { %2668 = vmatpush.msra.mxu3 %v7321_v49  ;;  %2610 = vmatpush.msrb.mxu0 %v7325_v26  ;;  %8932 = vst [vmem:[#allocation63_spill] sm:$0xff] %v7328_v43  ;;  %v7347_v36 = vld [vmem:[#allocation6 + $0x250] sm:$0xff]  ;;  %vm2418_vm4 = vcmp.eq.f32.partialorder %v2417_v5, 8.507059e+37  ;;  %v4192_v43 = vld [vmem:[#allocation4 + $0x1e8] sm:$0xff]  ;;  %v4193_v5 = vld [vmem:[#allocation4 + $0x1f8] sm:$0xff] }
 0x446   :  { %8933 = vst [vmem:[#allocation64_spill] sm:$0xff] %v7331_v16  ;;  %2629 = vmatpush.msra.mxu1 %v7331_v16  ;;  %2651 = vmatpush.msra.mxu2 %v7342_v6  ;;  %v7350_v16 = vld [vmem:[#allocation6 + $0x258] sm:$0xff]  ;;  %3710 = vtanh.f32 %v7337_v20  ;;  %v7355_v3 = vld [vmem:[#allocation6 + $0x10] sm:$0xff] }
 0x447   :  { %8934 = vst [vmem:[#allocation65_spill] sm:$0xff] %v7334_v46  ;;  %2669 = vmatpush.msra.mxu3 %v7334_v46  ;;  %2611 = vmatpush.msrb.mxu0 %v7339_v9  ;;  %v4183_v17 = vld [vmem:[#allocation4 + $0x1f0] sm:$0xff]  ;;  %v7383_v46 = vld [vmem:[#allocation6 + $0x218] sm:$0xff] }
 0x448   :  { %8935 = vst [vmem:[#allocation66_spill] sm:$0xff] %v7337_v20  ;;  %2630 = vmatpush.msra.mxu1 %v7347_v36 }
 0x449   :  { %8936 = vst [vmem:[#allocation67_spill] sm:$0xff] %v7339_v9  ;;  %2670 = vmatpush.msra.mxu3 %v7350_v16  ;;  %2612 = vmatpush.msrb.mxu0 %v7355_v3  ;;  %v7380_v9 = vld [vmem:[#allocation6 + $0x210] sm:$0xff] }
 0x44a   :  { %8937 = vst [vmem:[#allocation68_spill] sm:$0xff] %v7342_v6  ;;  %v7358_v6 = vld [vmem:[#allocation6 + $0x18] sm:$0xff]  ;;  %2613 = vmatmul.f32.vlgmr.msrb.gmra.mxu0 %v7112_v47 }
 0x44b   :  { %8938 = vst [vmem:[#allocation69_spill] sm:$0xff] %v7347_v36  ;;  %2652 = vmatpush.msra.mxu2 %v7358_v6  ;;  %v2420_v36 = vor.u32 1.1754944e-38, %v2419_v40  ;;  %v4190_v40 = vld [vmem:[#allocation4 + $0x180] sm:$0xff] }
 0x44c   :  { %8939 = vst [vmem:[#allocation70_spill] sm:$0xff] %v7350_v16  ;;  %2653 = vmatmul.f32.vlgmr.msra.gmra.mxu2 %v7112_v47  ;;  %v7371_v16 = vld [vmem:[#allocation6 + $0x230] sm:$0xff]  ;;  %v2416_v47 = vsel %vm7367_vm3, %v7238_v2, %v2412_v11  ;;  %v3711_v20 = vpop.eup %3710 }
 0x44d   :  { %8940 = vst [vmem:[#allocation71_spill] sm:$0xff] %v7355_v3  ;;  %2631 = vmatpush.msra.mxu1 %v7371_v16  ;;  %v7374_v3 = vld [vmem:[#allocation6 + $0x238] sm:$0xff]  ;;  %2847 = vmatpush.msrb.mxu2 %v4183_v17  ;;  %v2421_v2 = vsel %vm2418_vm4, %v2420_v36, %v2416_v47  ;;  %v4189_v17 = vld [vmem:[#allocation4 + $0x1b0] sm:$0xff]  ;;  %v4196_v36 = vld [vmem:[#allocation4 + $0x1c8] sm:$0xff] }
 0x44e   :  { %8941 = vst [vmem:[#allocation72_spill] sm:$0xff] %v7358_v6  ;;  %2671 = vmatpush.msra.mxu3 %v7374_v3  ;;  %v4182_v6 = vld [vmem:[#allocation4 + $0x1e0] sm:$0xff]  ;;  %v2428_v11 = vmul.f32 %v3711_v20, %v2421_v2  ;;  %v4197_v47 = vld [vmem:[#allocation4 + $0x1d8] sm:$0xff]  ;;  %v4199_v2 = vld [vmem:[#allocation4 + $0x150] sm:$0xff] }
 0x44f   :  { %8944 = vst [vmem:[#allocation75_spill] sm:$0xff] %v7371_v16  ;;  %2807 = vmatpush.msra.mxu0 %v4182_v6  ;;  %2632 = vmatpush.msra.mxu1 %v7380_v9  ;;  %v4186_v16 = vld [vmem:[#allocation4 + $0x1c0] sm:$0xff] }
 0x450   :  { %8945 = vst [vmem:[#allocation73_spill] sm:$0xff] %v7374_v3  ;;  %2672 = vmatpush.msra.mxu3 %v7383_v46  ;;  %v4187_v3 = vld [vmem:[#allocation4 + $0x1d0] sm:$0xff]  ;;  %v4188_v6 = vld [vmem:[#allocation4 + $0x1a0] sm:$0xff]  ;;  %2553 = vmatmul.f32.vlgmr.msrb.gmra.mxu1 %v2428_v11 }
 0x451   :  { %8946 = vst [vmem:[#allocation74_spill] sm:$0xff] %v7380_v9  ;;  %2808 = vmatpush.msra.mxu0 %v4186_v16  ;;  %2848 = vmatpush.msrb.mxu2 %v4187_v3  ;;  %v4191_v9 = vld [vmem:[#allocation4 + $0x190] sm:$0xff]  ;;  %v4194_v16 = vld [vmem:[#allocation4 + $0x160] sm:$0xff] }
 0x452   :  { %2593 = vmatmul.f32.vlgmr.msrb.gmra.mxu3 %v2428_v11  ;;  %2827 = vmatpush.msrb.mxu1 %v4192_v43  ;;  %v4195_v3 = vld [vmem:[#allocation4 + $0x170] sm:$0xff]  ;;  %v4198_v20 = vld [vmem:[#allocation4 + $0x140] sm:$0xff] }
 0x453   :  { %2809 = vmatpush.msra.mxu0 %v4188_v6  ;;  %2849 = vmatpush.msrb.mxu2 %v4189_v17  ;;  %v4200_v6 = vld [vmem:[#allocation4 + $0x1a8] sm:$0xff]  ;;  %v4201_v17 = vld [vmem:[#allocation4 + $0x1b8] sm:$0xff]  ;;  %v4203_v43 = vld [vmem:[#allocation4 + $0x130] sm:$0xff] }
 0x454   :  { %2867 = vmatpush.msrb.mxu3 %v4193_v5  ;;  %2828 = vmatpush.msrb.mxu1 %v4196_v36  ;;  %v4205_v5 = vld [vmem:[#allocation4 + $0x110] sm:$0xff]  ;;  %v4208_v36 = vld [vmem:[#allocation4 + $0xe0] sm:$0xff] }
 0x455   :  { %2810 = vmatpush.msra.mxu0 %v4190_v40  ;;  %2850 = vmatpush.msrb.mxu2 %v4191_v9  ;;  %v4202_v9 = vld [vmem:[#allocation4 + $0x120] sm:$0xff] }
 0x456   :  { %2868 = vmatpush.msrb.mxu3 %v4197_v47  ;;  %2829 = vmatpush.msrb.mxu1 %v4200_v6  ;;  %v4204_v40 = vld [vmem:[#allocation4 + $0x100] sm:$0xff]  ;;  %v4209_v47 = vld [vmem:[#allocation4 + $0xf0] sm:$0xff] }
 0x457   :  { %2811 = vmatpush.msra.mxu0 %v4194_v16  ;;  %2851 = vmatpush.msrb.mxu2 %v4195_v3  ;;  %v4206_v16 = vld [vmem:[#allocation4 + $0x188] sm:$0xff]  ;;  %v4207_v3 = vld [vmem:[#allocation4 + $0x198] sm:$0xff]  ;;  %v4212_v6 = vld [vmem:[#allocation4 + $0xc0] sm:$0xff] }
 0x458   :  { %2869 = vmatpush.msrb.mxu3 %v4201_v17  ;;  %2633 = vmatmul.f32.vlgmr.msra.gmra.mxu1 %v2428_v11  ;;  %v4213_v17 = vld [vmem:[#allocation4 + $0xd0] sm:$0xff] }
 0x459   :  { %2812 = vmatpush.msra.mxu0 %v4198_v20  ;;  %2852 = vmatpush.msrb.mxu2 %v4199_v2  ;;  %v4210_v20 = vld [vmem:[#allocation4 + $0x168] sm:$0xff]  ;;  %v4211_v2 = vld [vmem:[#allocation4 + $0x178] sm:$0xff] }
 0x45a   :  { %2673 = vmatmul.f32.vlgmr.msra.gmra.mxu3 %v2428_v11  ;;  %2830 = vmatpush.msrb.mxu1 %v4206_v16  ;;  %v4214_v11 = vld [vmem:[#allocation4 + $0x148] sm:$0xff]  ;;  %v4219_v16 = vld [vmem:[#allocation4 + $0x138] sm:$0xff] }
 0x45b   :  { %2813 = vmatpush.msra.mxu0 %v4202_v9  ;;  %2853 = vmatpush.msrb.mxu2 %v4203_v43  ;;  %v4215_v9 = vld [vmem:[#allocation4 + $0x158] sm:$0xff]  ;;  %v4216_v43 = vld [vmem:[#allocation4 + $0xa0] sm:$0xff] }
 0x45c   :  { %2870 = vmatpush.msrb.mxu3 %v4207_v3  ;;  %2831 = vmatpush.msrb.mxu1 %v4210_v20  ;;  %v4220_v3 = vld [vmem:[#allocation4 + $0x80] sm:$0xff]  ;;  %v4223_v20 = vld [vmem:[#allocation4 + $0x118] sm:$0xff] }
 0x45d   :  { %2814 = vmatpush.msra.mxu0 %v4204_v40  ;;  %2854 = vmatpush.msrb.mxu2 %v4205_v5  ;;  %v4217_v40 = vld [vmem:[#allocation4 + $0xb0] sm:$0xff]  ;;  %v4218_v5 = vld [vmem:[#allocation4 + $0x128] sm:$0xff] }
 0x45e   :  { %2871 = vmatpush.msrb.mxu3 %v4211_v2  ;;  %2832 = vmatpush.msrb.mxu1 %v4214_v11  ;;  %v4224_v2 = vld [vmem:[#allocation4 + $0x60] sm:$0xff]  ;;  %v4227_v11 = vld [vmem:[#allocation4 + $0xf8] sm:$0xff] }
 0x45f   :  { %2815 = vmatpush.msra.mxu0 %v4208_v36  ;;  %2855 = vmatpush.msrb.mxu2 %v4209_v47  ;;  %v4221_v36 = vld [vmem:[#allocation4 + $0x90] sm:$0xff]  ;;  %v4222_v47 = vld [vmem:[#allocation4 + $0x108] sm:$0xff] }
 0x460   :  { %2872 = vmatpush.msrb.mxu3 %v4215_v9  ;;  %2833 = vmatpush.msrb.mxu1 %v4218_v5  ;;  %v4228_v9 = vld [vmem:[#allocation4 + $0x40] sm:$0xff]  ;;  %v4231_v5 = vld [vmem:[#allocation4 + $0xd8] sm:$0xff] }
 0x461   :  { %2816 = vmatpush.msra.mxu0 %v4212_v6  ;;  %2856 = vmatpush.msrb.mxu2 %v4213_v17  ;;  %v4225_v6 = vld [vmem:[#allocation4 + $0x70] sm:$0xff]  ;;  %v4226_v17 = vld [vmem:[#allocation4 + $0xe8] sm:$0xff] }
 0x462   :  { %2873 = vmatpush.msrb.mxu3 %v4219_v16  ;;  %2834 = vmatpush.msrb.mxu1 %v4222_v47  ;;  %v4232_v16 = vld [vmem:[#allocation4 + $0x20] sm:$0xff]  ;;  %v4235_v47 = vld [vmem:[#allocation4 + $0xb8] sm:$0xff] }
 0x463   :  { %2817 = vmatpush.msra.mxu0 %v4216_v43  ;;  %2857 = vmatpush.msrb.mxu2 %v4217_v40  ;;  %v4229_v43 = vld [vmem:[#allocation4 + $0x50] sm:$0xff]  ;;  %v4230_v40 = vld [vmem:[#allocation4 + $0xc8] sm:$0xff] }
 0x464   :  { %2874 = vmatpush.msrb.mxu3 %v4223_v20  ;;  %2835 = vmatpush.msrb.mxu1 %v4226_v17  ;;  %v4236_v20 = vld [vmem:[#allocation4] sm:$0xff]  ;;  %v7389_v17 = vld [vmem:[#allocation6 + $0x1e8] sm:$0xff] }
 0x465   :  { %2818 = vmatpush.msra.mxu0 %v4220_v3  ;;  %2858 = vmatpush.msrb.mxu2 %v4221_v36  ;;  %v4233_v3 = vld [vmem:[#allocation4 + $0x30] sm:$0xff]  ;;  %v4234_v36 = vld [vmem:[#allocation4 + $0xa8] sm:$0xff] }
 0x466   :  { %2875 = vmatpush.msrb.mxu3 %v4227_v11  ;;  %2836 = vmatpush.msrb.mxu1 %v4230_v40  ;;  %v4240_v11 = vld [vmem:[#allocation4 + $0x88] sm:$0xff] }
 0x467   :  { %2819 = vmatpush.msra.mxu0 %v4224_v2  ;;  %2859 = vmatpush.msrb.mxu2 %v4225_v6  ;;  %v4237_v2 = vld [vmem:[#allocation4 + $0x10] sm:$0xff]  ;;  %v7386_v6 = vld [vmem:[#allocation6 + $0x1e0] sm:$0xff]  ;;  %v7395_v40 = vld [vmem:[#allocation6 + $0x1c8] sm:$0xff] }
 0x468   :  { %2876 = vmatpush.msrb.mxu3 %v4231_v5  ;;  %2837 = vmatpush.msrb.mxu1 %v4234_v36  ;;  %v4244_v5 = vld [vmem:[#allocation4 + $0x68] sm:$0xff] }
 0x469   :  { %2820 = vmatpush.msra.mxu0 %v4228_v9  ;;  %2860 = vmatpush.msrb.mxu2 %v4229_v43  ;;  %v4241_v9 = vld [vmem:[#allocation4 + $0x98] sm:$0xff]  ;;  %v7392_v43 = vld [vmem:[#allocation6 + $0x1c0] sm:$0xff]  ;;  %v7401_v36 = vld [vmem:[#allocation6 + $0x1a8] sm:$0xff] }
 0x46a   :  { %2877 = vmatpush.msrb.mxu3 %v4235_v47  ;;  %2838 = vmatpush.msrb.mxu1 %v4240_v11  ;;  %8947 = vst [vmem:[#allocation76_spill] sm:$0xff] %v7401_v36  ;;  %v4248_v47 = vld [vmem:[#allocation4 + $0x48] sm:$0xff] }
 0x46b   :  { %2821 = vmatpush.msra.mxu0 %v4232_v16  ;;  %2861 = vmatpush.msrb.mxu2 %v4233_v3  ;;  %v4245_v16 = vld [vmem:[#allocation4 + $0x78] sm:$0xff]  ;;  %v7398_v3 = vld [vmem:[#allocation6 + $0x1a0] sm:$0xff]  ;;  %v7407_v11 = vld [vmem:[#allocation6 + $0x188] sm:$0xff] }
 0x46c   :  { %2878 = vmatpush.msrb.mxu3 %v4241_v9  ;;  %2839 = vmatpush.msrb.mxu1 %v4244_v5  ;;  %8949 = vst [vmem:[#allocation77_spill] sm:$0xff] %v7407_v11  ;;  %v4252_v9 = vld [vmem:[#allocation4 + $0x28] sm:$0xff]  ;;  %v4253_v5 = vld [vmem:[#allocation4 + $0x38] sm:$0xff] }
 0x46d   :  { %2822 = vmatpush.msra.mxu0 %v4236_v20  ;;  %2862 = vmatpush.msrb.mxu2 %v4237_v2  ;;  %v4249_v20 = vld [vmem:[#allocation4 + $0x58] sm:$0xff]  ;;  %v7404_v2 = vld [vmem:[#allocation6 + $0x180] sm:$0xff] }
 0x46e   :  { %2879 = vmatpush.msrb.mxu3 %v4245_v16  ;;  %2840 = vmatpush.msrb.mxu1 %v4248_v47  ;;  %8948 = vst [vmem:[#allocation78_spill] sm:$0xff] %v7404_v2  ;;  %v7410_v16 = vld [vmem:[#allocation6 + $0x160] sm:$0xff]  ;;  %v4256_v47 = vld [vmem:[#allocation4 + $0x8] sm:$0xff] }
 0x46f   :  { %2891 = vmatpush.msrb.mxu0 %v7386_v6  ;;  %2931 = vmatpush.msra.mxu2 %v7389_v17 }
 0x470   :  { %2880 = vmatpush.msrb.mxu3 %v4249_v20  ;;  %2841 = vmatpush.msrb.mxu1 %v4252_v9  ;;  %v4257_v20 = vld [vmem:[#allocation4 + $0x18] sm:$0xff]  ;;  %v7424_v9 = vld [vmem:[#allocation6 + $0x120] sm:$0xff] }
 0x471   :  { %2892 = vmatpush.msrb.mxu0 %v7392_v43  ;;  %2932 = vmatpush.msra.mxu2 %v7395_v40 }
 0x472   :  { %2881 = vmatpush.msrb.mxu3 %v4253_v5  ;;  %2842 = vmatpush.msrb.mxu1 %v4256_v47  ;;  %v7427_v5 = vld [vmem:[#allocation6 + $0x128] sm:$0xff]  ;;  %v7432_v47 = vld [vmem:[#allocation6 + $0x100] sm:$0xff] }
 0x473   :  { %2893 = vmatpush.msrb.mxu0 %v7398_v3  ;;  %2933 = vmatpush.msra.mxu2 %v7401_v36  ;;  %v7413_v36 = vld [vmem:[#allocation6 + $0x168] sm:$0xff] }
 0x474   :  { %2882 = vmatpush.msrb.mxu3 %v4257_v20  ;;  %2911 = vmatpush.msra.mxu1 %v6976_v21  ;;  %v7435_v20 = vld [vmem:[#allocation6 + $0x108] sm:$0xff]  ;;  %v7440_v21 = vld [vmem:[#allocation6 + $0xe0] sm:$0xff] }
 0x475   :  { %2894 = vmatpush.msrb.mxu0 %v7404_v2  ;;  %2934 = vmatpush.msra.mxu2 %v7407_v11  ;;  %v7416_v2 = vld [vmem:[#allocation6 + $0x140] sm:$0xff]  ;;  %v7419_v11 = vld [vmem:[#allocation6 + $0x148] sm:$0xff] }
 0x476   :  { %2951 = vmatpush.msra.mxu3 %v6979_v31  ;;  %2912 = vmatpush.msra.mxu1 %v6984_v10  ;;  %v7443_v31 = vld [vmem:[#allocation6 + $0xe8] sm:$0xff]  ;;  %v7448_v10 = vld [vmem:[#allocation6 + $0xc0] sm:$0xff] }
 0x477   :  { %2895 = vmatpush.msrb.mxu0 %v7410_v16  ;;  %2935 = vmatpush.msra.mxu2 %v7413_v36 }
 0x478   :  { %2952 = vmatpush.msra.mxu3 %v6987_v62  ;;  %2913 = vmatpush.msra.mxu1 %v6992_v38  ;;  %v7451_v62 = vld [vmem:[#allocation6 + $0xc8] sm:$0xff]  ;;  %v7456_v38 = vld [vmem:[#allocation6 + $0xa0] sm:$0xff] }
 0x479   :  { %2896 = vmatpush.msrb.mxu0 %v7416_v2  ;;  %2936 = vmatpush.msra.mxu2 %v7419_v11 }
 0x47a   :  { %2953 = vmatpush.msra.mxu3 %v6995_v27  ;;  %2914 = vmatpush.msra.mxu1 %v7000_v13  ;;  %v7459_v27 = vld [vmem:[#allocation6 + $0xa8] sm:$0xff]  ;;  %v7464_v13 = vld [vmem:[#allocation6 + $0x80] sm:$0xff] }
 0x47b   :  { %2897 = vmatpush.msrb.mxu0 %v7424_v9  ;;  %2937 = vmatpush.msra.mxu2 %v7427_v5 }
 0x47c   :  { %2954 = vmatpush.msra.mxu3 %v7003_v4  ;;  %2915 = vmatpush.msra.mxu1 %v7008_v35  ;;  %v7467_v4 = vld [vmem:[#allocation6 + $0x88] sm:$0xff]  ;;  %v7472_v35 = vld [vmem:[#allocation6 + $0x60] sm:$0xff] }
 0x47d   :  { %2898 = vmatpush.msrb.mxu0 %v7432_v47  ;;  %2938 = vmatpush.msra.mxu2 %v7435_v20  ;;  %8950 = vst [vmem:[#allocation79_spill] sm:$0xff] %v7467_v4 }
 0x47e   :  { %2955 = vmatpush.msra.mxu3 %v7011_v18  ;;  %2916 = vmatpush.msra.mxu1 %v7016_v45  ;;  %8951 = vst [vmem:[#allocation80_spill] sm:$0xff] %v7472_v35  ;;  %v7475_v18 = vld [vmem:[#allocation6 + $0x68] sm:$0xff]  ;;  %v7480_v45 = vld [vmem:[#allocation6 + $0x40] sm:$0xff] }
 0x47f   :  { %2899 = vmatpush.msrb.mxu0 %v7440_v21  ;;  %2939 = vmatpush.msra.mxu2 %v7443_v31  ;;  %8952 = vst [vmem:[#allocation82_spill] sm:$0xff] %v7475_v18 }
 0x480   :  { %2956 = vmatpush.msra.mxu3 %v7019_v12  ;;  %2917 = vmatpush.msra.mxu1 %v7024_v53  ;;  %8953 = vst [vmem:[#allocation81_spill] sm:$0xff] %v7480_v45  ;;  %v7483_v12 = vld [vmem:[#allocation6 + $0x48] sm:$0xff]  ;;  %v7488_v53 = vld [vmem:[#allocation6 + $0x20] sm:$0xff] }
 0x481   :  { %2900 = vmatpush.msrb.mxu0 %v7448_v10  ;;  %2940 = vmatpush.msra.mxu2 %v7451_v62  ;;  %8954 = vst [vmem:[#allocation84_spill] sm:$0xff] %v7483_v12 }
 0x482   :  { %2957 = vmatpush.msra.mxu3 %v7027_v19  ;;  %2918 = vmatpush.msra.mxu1 %v7032_v41  ;;  %8955 = vst [vmem:[#allocation86_spill] sm:$0xff] %v7488_v53  ;;  %v7491_v19 = vld [vmem:[#allocation6 + $0x28] sm:$0xff]  ;;  %v7496_v41 = vld [vmem:[#allocation6] sm:$0xff] }
 0x483   :  { %2901 = vmatpush.msrb.mxu0 %v7456_v38  ;;  %2941 = vmatpush.msra.mxu2 %v7459_v27  ;;  %8956 = vst [vmem:[#allocation83_spill] sm:$0xff] %v7491_v19 }
 0x484   :  { %2958 = vmatpush.msra.mxu3 %v7035_v15  ;;  %2919 = vmatpush.msra.mxu1 %v7040_v28  ;;  %8957 = vst [vmem:[#allocation85_spill] sm:$0xff] %v7496_v41  ;;  %v7499_v15 = vld [vmem:[#allocation6 + $0x8] sm:$0xff]  ;;  %v8959_v28 = vld [vmem:[#allocation28_spill] sm:$0xff] }
 0x485   :  { %2902 = vmatpush.msrb.mxu0 %v7464_v13  ;;  %2942 = vmatpush.msra.mxu2 %v7467_v4  ;;  %8958 = vst [vmem:[#allocation88_spill] sm:$0xff] %v7499_v15 }
 0x486   :  { %2959 = vmatpush.msra.mxu3 %v7043_v61  ;;  %2920 = vmatpush.msra.mxu1 %v7048_v33  ;;  %v8960_v61 = vld [vmem:[#allocation43_spill] sm:$0xff] }
 0x487   :  { %2903 = vmatpush.msrb.mxu0 %v7472_v35  ;;  %2943 = vmatpush.msra.mxu2 %v7475_v18  ;;  %v146_v33 = vadd.f32 %v8960_v61, %v8959_v28 }
 0x488   :  { %2960 = vmatpush.msra.mxu3 %v7051_v25  ;;  %2921 = vmatpush.msra.mxu1 %v7056_v32  ;;  %v8961_v25 = vld [vmem:[#allocation42_spill] sm:$0xff] }
 0x489   :  { %2904 = vmatpush.msrb.mxu0 %v7480_v45  ;;  %2944 = vmatpush.msra.mxu2 %v7483_v12  ;;  %v8962_v32 = vld [vmem:[#allocation22_spill] sm:$0xff] }
 0x48a   :  { %2961 = vmatpush.msra.mxu3 %v7059_v7  ;;  %2922 = vmatpush.msra.mxu1 %v7064_v42  ;;  %v187_v7 = vadd.f32 %v8962_v32, %v8961_v25 }
 0x48b   :  { %2905 = vmatpush.msrb.mxu0 %v7488_v53  ;;  %2945 = vmatpush.msra.mxu2 %v7491_v19 }
 0x48c   :  { %2962 = vmatpush.msra.mxu3 %v7067_v29  ;;  %2923 = vmatpush.msra.mxu1 %v7072_v52 }
 0x48d   :  { %2906 = vmatpush.msrb.mxu0 %v7496_v41  ;;  %2946 = vmatpush.msra.mxu2 %v7499_v15  ;;  %v8964_v15 = vld [vmem:[#allocation24_spill] sm:$0xff] }
 0x48e   :  { %2963 = vmatpush.msra.mxu3 %v7075_v24  ;;  %2924 = vmatpush.msra.mxu1 %v7080_v30 }
 0x490   :  { %2964 = vmatpush.msra.mxu3 %v7083_v57  ;;  %2925 = vmatpush.msra.mxu1 %v7086_v48  ;;  %v8963_v48 = vld [vmem:[#allocation48_spill] sm:$0xff] }
 0x492   :  { %2965 = vmatpush.msra.mxu3 %v7089_v39  ;;  %2926 = vmatpush.msra.mxu1 %v7092_v44  ;;  %v228_v39 = vadd.f32 %v8964_v15, %v8963_v48 }
 0x494   :  { %2966 = vmatpush.msra.mxu3 %v7095_v14 }
 0x4a2   :  { %v2450_v42 = vpop.f32.mrf.mxu0  ;;  %v2470_v29 = vpop.f32.mrf.mxu1 }
 0x4a3   :  { %v2513_v52 = vadd.f32 %v2450_v42, %v146_v33  ;;  %v2514_v24 = vadd.f32 %v2470_v29, %v187_v7  ;;  %v8965_v7 = vld [vmem:[#allocation60_spill] sm:$0xff]  ;;  %v8966_v42 = vld [vmem:[#allocation27_spill] sm:$0xff] }
 0x4a4   :  { %v269_v29 = vadd.f32 %v8966_v42, %v8965_v7 }
 0x4a5   :  { %v3513_v30 = vmul.f32 -1.442695, %v2513_v52  ;;  %v3514_v57 = vmul.f32 -1.442695, %v2514_v24 }
 0x4a7   :  { %3712 = vpow2.f32 %v3513_v30 }
 0x4a8   :  { %3714 = vpow2.f32 %v3514_v57 }
 0x4a9   :  { %v2490_v44 = vpop.f32.mrf.mxu2  ;;  %v2510_v32 = vpop.f32.mrf.mxu3 }
 0x4aa   :  { %v2515_v41 = vadd.f32 %v2490_v44, %v228_v39  ;;  %v2516_v30 = vadd.f32 %v2510_v32, %v269_v29 }
 0x4ac   :  { %v3515_v14 = vmul.f32 -1.442695, %v2515_v41 }
 0x4ad   :  { %v3713_v19 = vpop.eup %3712 }
 0x4ae   :  { %v3715_v53 = vpop.eup %3714  ;;  %v2686_v61 = vadd.f32 1.0, %v3713_v19  ;;  %3716 = vpow2.f32 %v3515_v14 }
 0x4af   :  { %v2687_v28 = vadd.f32 1.0, %v3715_v53 }
 0x4b0   :  { %3718 = vrcp.f32 %v2686_v61  ;;  %v2700_v48 = vand.u32 2147483648, %v2686_v61  ;;  %v2698_v14 = vand.u32 2147483647, %v2686_v61  ;;  %vm2694_vm7 = vweird.f32 %v2686_v61 }
 0x4b1   :  { %3720 = vrcp.f32 %v2687_v28  ;;  %v2715_v19 = vand.u32 2147483648, %v2687_v28  ;;  %v2713_v12 = vand.u32 2147483647, %v2687_v28  ;;  %vm2709_vm8 = vweird.f32 %v2687_v28 }
 0x4b2   :  { %vm2699_vm11 = vcmp.eq.f32.partialorder %v2698_v14, 8.507059e+37 }
 0x4b3   :  { %vm2714_vm12 = vcmp.eq.f32.partialorder %v2713_v12, 8.507059e+37 }
 0x4b4   :  { %v3717_v33 = vpop.eup %3716 }
 0x4b5   :  { %v2688_v52 = vadd.f32 1.0, %v3717_v33  ;;  %v2701_v33 = vor.u32 1.1754944e-38, %v2700_v48 }
 0x4b6   :  { %v3719_v24 = vpop.eup %3718 }
 0x4b7   :  { %v3721_v15 = vpop.eup %3720  ;;  %v2690_v57 = vmul.f32 %v3719_v24, %v2686_v61  ;;  %3722 = vrcp.f32 %v2688_v52  ;;  %vm2695_vm5 = vweird.f32 %v3719_v24  ;;  %v2730_v48 = vand.u32 2147483648, %v2688_v52 }
 0x4b8   :  { %v2705_v39 = vmul.f32 %v3721_v15, %v2687_v28  ;;  %3724 = vtanh.f32 %v2516_v30  ;;  %vm2710_vm6 = vweird.f32 %v3721_v15  ;;  %vm2696_vm9 = vmor %vm2694_vm7, %vm2695_vm5  ;;  %vm2724_vm14 = vweird.f32 %v2688_v52 }
 0x4b9   :  { %v2691_v41 = vsub.f32 1.0, %v2690_v57  ;;  %vm2711_vm10 = vmor %vm2709_vm8, %vm2710_vm6  ;;  %v2716_v57 = vor.u32 1.1754944e-38, %v2715_v19  ;;  %v2731_v14 = vor.u32 1.1754944e-38, %v2730_v48  ;;  %v8974_v48 = vld [vmem:[#allocation14_spill] sm:$0xff] }
 0x4ba   :  { %v2706_v44 = vsub.f32 1.0, %v2705_v39 }
 0x4bb   :  { %v2692_v53 = vmul.f32 %v3719_v24, %v2691_v41 }
 0x4bc   :  { %v2707_v25 = vmul.f32 %v3721_v15, %v2706_v44 }
 0x4bd   :  { %v3723_v45 = vpop.eup %3722  ;;  %v2693_v42 = vadd.f32 %v3719_v24, %v2692_v53 }
 0x4be   :  { %v2720_v32 = vmul.f32 %v3723_v45, %v2688_v52  ;;  %v2708_v29 = vadd.f32 %v3721_v15, %v2707_v25  ;;  %v3725_v30 = vpop.eup %3724  ;;  %vm2725_vm13 = vweird.f32 %v3723_v45  ;;  %v2728_v25 = vand.u32 2147483647, %v2688_v52 }
 0x4bf   :  { %v2697_v39 = vsel %vm2696_vm9, %v3719_v24, %v2693_v42  ;;  %v2534_v24 = vpop.f32.mrf.mxu0  ;;  %vm2726_vm15 = vmor %vm2724_vm14, %vm2725_vm13 }
 0x4c0   :  { %v2721_v7 = vsub.f32 1.0, %v2720_v32  ;;  %v2702_v41 = vsel %vm2699_vm11, %v2701_v33, %v2697_v39  ;;  %v2712_v18 = vsel %vm2711_vm10, %v3721_v15, %v2708_v29  ;;  %v2535_v12 = vadd.f32 %v2534_v24, %v8749_v50  ;;  %v8976_v24 = vld [vmem:[#allocation16_spill] sm:$0xff] }
 0x4c1   :  { %v2717_v44 = vsel %vm2714_vm12, %v2716_v57, %v2712_v18  ;;  %v2736_v35 = vmul.f32 %v3725_v30, %v2702_v41  ;;  %vm2729_vm0 = vcmp.eq.f32.partialorder %v2728_v25, 8.507059e+37  ;;  %v8967_v41 = vld [vmem:[#allocation166_spill] sm:$0xff]  ;;  %v8975_v25 = vld [vmem:[#allocation25_spill] sm:$0xff] }
 0x4c2   :  { %v2722_v4 = vmul.f32 %v3723_v45, %v2721_v7  ;;  %v2735_v53 = vmul.f32 %v2717_v44, %v7107_v56  ;;  %v8970_v44 = vld [vmem:[#allocation13_spill] sm:$0xff] }
 0x4c4   :  { %v7523_v61 = vadd.f32 %v2736_v35, %v2735_v53  ;;  %v2723_v28 = vadd.f32 %v3723_v45, %v2722_v4  ;;  %v2574_v4 = vpop.f32.mrf.mxu2 }
 0x4c5   :  { %v2575_v52 = vadd.f32 %v2574_v4, %v8605_v55 }
 0x4c6   :  { %3726 = vtanh.f32 %v7523_v61  ;;  %v2727_v19 = vsel %vm2726_vm15, %v3723_v45, %v2723_v28  ;;  %v8971_v28 = vld [vmem:[#allocation15_spill] sm:$0xff] }
 0x4c7   :  { %v2732_v15 = vsel %vm2729_vm0, %v2731_v14, %v2727_v19  ;;  %v2614_v32 = vpop.f32.mrf.mxu0  ;;  %v8977_v19 = vld [vmem:[#allocation19_spill] sm:$0xff] }
 0x4c8   :  { %v2615_v33 = vadd.f32 %v2614_v32, %v8464_v34  ;;  %v8978_v14 = vld [vmem:[#allocation31_spill] sm:$0xff]  ;;  %v8984_v32 = vld [vmem:[#allocation38_spill] sm:$0xff] }
 0x4cc   :  { %v3727_v7 = vpop.eup %3726 }
 0x4cd   :  { %v2554_v18 = vpop.f32.mrf.mxu1  ;;  %v7527_v35 = vmul.f32 %v3727_v7, %v2732_v15  ;;  %v8981_v15 = vld [vmem:[#allocation36_spill] sm:$0xff] }
 0x4ce   :  { %v2555_v56 = vadd.f32 %v2554_v18, %v2535_v12  ;;  %v8979_v12 = vld [vmem:[#allocation10_spill] sm:$0xff]  ;;  %v8980_v18 = vld [vmem:[#allocation12_spill] sm:$0xff] }
 0x4cf   :  { %2823 = vmatmul.f32.vlgmr.msra.gmra.mxu0 %v7527_v35  ;;  %2843 = vmatmul.f32.vlgmr.msrb.gmra.mxu1 %v7527_v35 }
 0x4d0   :  { %v3516_v42 = vmul.f32 -1.442695, %v2555_v56  ;;  %2863 = vmatmul.f32.vlgmr.msrb.gmra.mxu2 %v7527_v35  ;;  %2883 = vmatmul.f32.vlgmr.msrb.gmra.mxu3 %v7527_v35  ;;  %v8982_v56 = vld [vmem:[#allocation34_spill] sm:$0xff] }
 0x4d1   :  { %2971 = vmatpush.msra.mxu0 %v7119_v8  ;;  %3011 = vmatpush.msrb.mxu2 %v7122_v59  ;;  %v8968_v8 = vld [vmem:[#allocation11_spill] sm:$0xff]  ;;  %v8969_v59 = vld [vmem:[#allocation21_spill] sm:$0xff] }
 0x4d2   :  { %3728 = vpow2.f32 %v3516_v42  ;;  %2991 = vmatpush.msrb.mxu1 %v7127_v60  ;;  %3031 = vmatpush.msrb.mxu3 %v7130_v23  ;;  %v8972_v23 = vld [vmem:[#allocation32_spill] sm:$0xff]  ;;  %v8983_v42 = vld [vmem:[#allocation37_spill] sm:$0xff] }
 0x4d3   :  { %2972 = vmatpush.msra.mxu0 %v7133_v22  ;;  %3012 = vmatpush.msrb.mxu2 %v7136_v58  ;;  %v8973_v58 = vld [vmem:[#allocation17_spill] sm:$0xff] }
 0x4d4   :  { %2992 = vmatpush.msrb.mxu1 %v8967_v41  ;;  %3032 = vmatpush.msrb.mxu3 %v8968_v8  ;;  %v2654_v41 = vpop.f32.mrf.mxu2 }
 0x4d5   :  { %v2594_v45 = vpop.f32.mrf.mxu3  ;;  %v2634_v57 = vpop.f32.mrf.mxu1  ;;  %2973 = vmatpush.msra.mxu0 %v8969_v59  ;;  %3013 = vmatpush.msrb.mxu2 %v8970_v44  ;;  %v8989_v59 = vld [vmem:[#allocation45_spill] sm:$0xff]  ;;  %v8990_v44 = vld [vmem:[#allocation46_spill] sm:$0xff] }
 0x4d6   :  { %v2595_v29 = vadd.f32 %v2594_v45, %v2575_v52  ;;  %v2635_v30 = vadd.f32 %v2634_v57, %v2615_v33  ;;  %2993 = vmatpush.msrb.mxu1 %v8971_v28  ;;  %3033 = vmatpush.msrb.mxu3 %v8972_v23  ;;  %v8985_v45 = vld [vmem:[#allocation39_spill] sm:$0xff]  ;;  %v8986_v33 = vld [vmem:[#allocation40_spill] sm:$0xff] }
 0x4d7   :  { %2974 = vmatpush.msra.mxu0 %v8973_v58  ;;  %3014 = vmatpush.msrb.mxu2 %v8974_v48  ;;  %v8993_v58 = vld [vmem:[#allocation50_spill] sm:$0xff]  ;;  %v8994_v48 = vld [vmem:[#allocation52_spill] sm:$0xff] }
 0x4d8   :  { %v3517_v39 = vmul.f32 -1.442695, %v2595_v29  ;;  %v3729_v53 = vpop.eup %3728  ;;  %v3518_v60 = vmul.f32 -1.442695, %v2635_v30  ;;  %2907 = vmatmul.f32.vlgmr.msrb.gmra.mxu0 %v7527_v35  ;;  %2947 = vmatmul.f32.vlgmr.msra.gmra.mxu2 %v7527_v35  ;;  %v8988_v30 = vld [vmem:[#allocation44_spill] sm:$0xff] }
 0x4d9   :  { %v7547_v22 = vadd.f32 1.0, %v3729_v53  ;;  %2975 = vmatpush.msra.mxu0 %v8975_v25  ;;  %3015 = vmatpush.msrb.mxu2 %v8976_v24  ;;  %v8991_v53 = vld [vmem:[#allocation47_spill] sm:$0xff] }
 0x4da   :  { %3730 = vpow2.f32 %v3517_v39  ;;  %2994 = vmatpush.msrb.mxu1 %v8977_v19  ;;  %3034 = vmatpush.msrb.mxu3 %v8978_v14  ;;  %v8987_v39 = vld [vmem:[#allocation41_spill] sm:$0xff]  ;;  %v8995_v25 = vld [vmem:[#allocation35_spill] sm:$0xff] }
 0x4db   :  { %3732 = vpow2.f32 %v3518_v60  ;;  %2976 = vmatpush.msra.mxu0 %v8979_v12  ;;  %3016 = vmatpush.msrb.mxu2 %v8980_v18  ;;  %v8992_v60 = vld [vmem:[#allocation49_spill] sm:$0xff]  ;;  %v2655_v24 = vadd.f32 %v2654_v41, %v8995_v25  ;;  %v8997_v14 = vld [vmem:[#allocation55_spill] sm:$0xff]  ;;  %v8998_v18 = vld [vmem:[#allocation56_spill] sm:$0xff]  ;;  %vm2757_vm2 = vweird.f32 %v7547_v22 }
 0x4dc   :  { %3734 = vrcp.f32 %v7547_v22  ;;  %2995 = vmatpush.msrb.mxu1 %v8981_v15  ;;  %3035 = vmatpush.msrb.mxu3 %v8982_v56  ;;  %v8996_v19 = vld [vmem:[#allocation53_spill] sm:$0xff] }
 0x4dd   :  { %2977 = vmatpush.msra.mxu0 %v8983_v42  ;;  %3017 = vmatpush.msrb.mxu2 %v8984_v32  ;;  %v2674_v23 = vpop.f32.mrf.mxu3 }
 0x4de   :  { %2996 = vmatpush.msrb.mxu1 %v8985_v45  ;;  %3036 = vmatpush.msrb.mxu3 %v8986_v33  ;;  %v2675_v56 = vadd.f32 %v2674_v23, %v2655_v24  ;;  %v2763_v33 = vand.u32 2147483648, %v7547_v22  ;;  %v9007_v24 = vld [vmem:[#allocation63_spill] sm:$0xff] }
 0x4df   :  { %2978 = vmatpush.msra.mxu0 %v8987_v39  ;;  %3018 = vmatpush.msrb.mxu2 %v8988_v30  ;;  %v9001_v39 = vld [vmem:[#allocation59_spill] sm:$0xff]  ;;  %v9002_v30 = vld [vmem:[#allocation61_spill] sm:$0xff] }
 0x4e0   :  { %v3731_v7 = vpop.eup %3730  ;;  %2997 = vmatpush.msrb.mxu1 %v8989_v59  ;;  %3037 = vmatpush.msrb.mxu3 %v8990_v44  ;;  %v2761_v59 = vand.u32 2147483647, %v7547_v22  ;;  %v9003_v44 = vld [vmem:[#allocation54_spill] sm:$0xff] }
 0x4e1   :  { %v7562_v4 = vadd.f32 1.0, %v3731_v7  ;;  %v3733_v52 = vpop.eup %3732  ;;  %2979 = vmatpush.msra.mxu0 %v8991_v53  ;;  %3019 = vmatpush.msrb.mxu2 %v8992_v60  ;;  %v8999_v7 = vld [vmem:[#allocation57_spill] sm:$0xff] }
 0x4e2   :  { %v7568_v29 = vpop.eup %3734  ;;  %v7571_v57 = vadd.f32 1.0, %v3733_v52  ;;  %2998 = vmatpush.msrb.mxu1 %v8993_v58  ;;  %3038 = vmatpush.msrb.mxu3 %v8994_v48  ;;  %v9000_v52 = vld [vmem:[#allocation58_spill] sm:$0xff]  ;;  %v2764_v48 = vor.u32 1.1754944e-38, %v2763_v33  ;;  %vm2762_vm6 = vcmp.eq.f32.partialorder %v2761_v59, 8.507059e+37  ;;  %v9014_v33 = vld [vmem:[#allocation71_spill] sm:$0xff] }
 0x4e3   :  { %3736 = vrcp.f32 %v7562_v4  ;;  %v2753_v8 = vmul.f32 %v7568_v29, %v7547_v22  ;;  %2980 = vmatpush.msra.mxu0 %v8996_v19  ;;  %3020 = vmatpush.msrb.mxu2 %v8997_v14  ;;  %vm2758_vm1 = vweird.f32 %v7568_v29  ;;  %v2778_v53 = vand.u32 2147483648, %v7562_v4  ;;  %v9008_v14 = vld [vmem:[#allocation64_spill] sm:$0xff] }
 0x4e4   :  { %3738 = vrcp.f32 %v7571_v57  ;;  %2999 = vmatpush.msrb.mxu1 %v8998_v18  ;;  %3039 = vmatpush.msrb.mxu3 %v8999_v7  ;;  %vm7609_vm3 = vmor %vm2757_vm2, %vm2758_vm1  ;;  %v2776_v23 = vand.u32 2147483647, %v7562_v4  ;;  %vm2772_vm5 = vweird.f32 %v7562_v4  ;;  %vm2787_vm10 = vweird.f32 %v7571_v57 }
 0x4e5   :  { %v2754_v28 = vsub.f32 1.0, %v2753_v8  ;;  %2981 = vmatpush.msra.mxu0 %v7276_v1  ;;  %3021 = vmatpush.msrb.mxu2 %v7279_v63  ;;  %3740 = vtanh.f32 %v2675_v56  ;;  %v9012_v56 = vld [vmem:[#allocation69_spill] sm:$0xff] }
 0x4e6   :  { %3000 = vmatpush.msrb.mxu1 %v7282_v51  ;;  %3040 = vmatpush.msrb.mxu3 %v9000_v52  ;;  %v9004_v51 = vld [vmem:[#allocation62_spill] sm:$0xff]  ;;  %vm2777_vm8 = vcmp.eq.f32.partialorder %v2776_v23, 8.507059e+37 }
 0x4e7   :  { %v2755_v12 = vmul.f32 %v7568_v29, %v2754_v28  ;;  %2982 = vmatpush.msra.mxu0 %v9001_v39  ;;  %3022 = vmatpush.msrb.mxu2 %v9002_v30 }
 0x4e8   :  { %3001 = vmatpush.msrb.mxu1 %v9003_v44  ;;  %3041 = vmatpush.msrb.mxu3 %v9004_v51  ;;  %v9018_v51 = vld [vmem:[#allocation73_spill] sm:$0xff] }
 0x4e9   :  { %v3737_v15 = vpop.eup %3736  ;;  %v2756_v32 = vadd.f32 %v7568_v29, %v2755_v12  ;;  %2983 = vmatpush.msra.mxu0 %v7311_v37  ;;  %3023 = vmatpush.msrb.mxu2 %v7314_v0  ;;  %v9009_v12 = vld [vmem:[#allocation65_spill] sm:$0xff] }
 0x4ea   :  { %v2768_v42 = vmul.f32 %v3737_v15, %v7562_v4  ;;  %v7597_v45 = vpop.eup %3738  ;;  %vm2773_vm4 = vweird.f32 %v3737_v15  ;;  %3002 = vmatpush.msrb.mxu1 %v7318_v54  ;;  %3042 = vmatpush.msrb.mxu3 %v7321_v49  ;;  %v9010_v54 = vld [vmem:[#allocation67_spill] sm:$0xff]  ;;  %v9011_v49 = vld [vmem:[#allocation68_spill] sm:$0xff] }
 0x4eb   :  { %v2783_v8 = vmul.f32 %v7597_v45, %v7571_v57  ;;  %v2760_v22 = vsel %vm7609_vm3, %v7568_v29, %v2756_v32  ;;  %2984 = vmatpush.msra.mxu0 %v7325_v26  ;;  %3024 = vmatpush.msrb.mxu2 %v9007_v24  ;;  %vm2774_vm7 = vmor %vm2772_vm5, %vm2773_vm4  ;;  %v2779_v29 = vor.u32 1.1754944e-38, %v2778_v53  ;;  %v3741_v4 = vpop.eup %3740  ;;  %vm2788_vm9 = vweird.f32 %v7597_v45 }
 0x4ec   :  { %v2769_v41 = vsub.f32 1.0, %v2768_v42  ;;  %3003 = vmatpush.msrb.mxu1 %v9008_v14  ;;  %3043 = vmatpush.msrb.mxu3 %v9009_v12  ;;  %v2765_v18 = vsel %vm2762_vm6, %v2764_v48, %v2760_v22  ;;  %v9013_v42 = vld [vmem:[#allocation70_spill] sm:$0xff]  ;;  %vm2789_vm11 = vmor %vm2787_vm10, %vm2788_vm9  ;;  %v9022_v48 = vld [vmem:[#allocation77_spill] sm:$0xff] }
 0x4ed   :  { %v2784_v58 = vsub.f32 1.0, %v2783_v8  ;;  %2985 = vmatpush.msra.mxu0 %v9010_v54  ;;  %3025 = vmatpush.msrb.mxu2 %v9011_v49  ;;  %v9016_v8 = vld [vmem:[#allocation66_spill] sm:$0xff]  ;;  %v2799_v44 = vmul.f32 %v3741_v4, %v2765_v18  ;;  %v9030_v4 = vld [vmem:[#allocation85_spill] sm:$0xff] }
 0x4ee   :  { %v2770_v28 = vmul.f32 %v3737_v15, %v2769_v41  ;;  %3004 = vmatpush.msrb.mxu1 %v9012_v56  ;;  %3044 = vmatpush.msrb.mxu3 %v9013_v42  ;;  %v9015_v41 = vld [vmem:[#allocation72_spill] sm:$0xff]  ;;  %v4292_v14 = vld [vmem:[#allocation6 + $0x320] sm:$0xff] }
 0x4ef   :  { %v2785_v32 = vmul.f32 %v7597_v45, %v2784_v58  ;;  %2986 = vmatpush.msra.mxu0 %v9014_v33  ;;  %3026 = vmatpush.msrb.mxu2 %v9015_v41  ;;  %v9021_v58 = vld [vmem:[#allocation78_spill] sm:$0xff] }
 0x4f0   :  { %v2771_v19 = vadd.f32 %v3737_v15, %v2770_v28  ;;  %2987 = vmatmul.f32.vlgmr.msra.gmra.mxu0 %v7527_v35  ;;  %3027 = vmatmul.f32.vlgmr.msrb.gmra.mxu2 %v7527_v35  ;;  %v9019_v28 = vld [vmem:[#allocation74_spill] sm:$0xff]  ;;  %v2793_v35 = vand.u32 2147483648, %v7571_v57 }
 0x4f1   :  { %3045 = vmatpush.msrb.mxu3 %v9018_v51  ;;  %3177 = vmatpush.msrb.mxu0 %v7386_v6  ;;  %v2786_v60 = vadd.f32 %v7597_v45, %v2785_v32  ;;  %v2791_v6 = vand.u32 2147483647, %v7571_v57  ;;  %v4281_v57 = vld [vmem:[#allocation6 + $0x3e8] sm:$0xff]  ;;  %v9028_v12 = vld [vmem:[#allocation86_spill] sm:$0xff]  ;;  %v9031_v32 = vld [vmem:[#allocation88_spill] sm:$0xff] }
 0x4f2   :  { %v2775_v7 = vsel %vm2774_vm7, %v3737_v15, %v2771_v19  ;;  %v9017_v15 = vld [vmem:[#allocation75_spill] sm:$0xff]  ;;  %3217 = vmatpush.msra.mxu2 %v7389_v17  ;;  %v9020_v17 = vld [vmem:[#allocation76_spill] sm:$0xff]  ;;  %v2794_v23 = vor.u32 1.1754944e-38, %v2793_v35  ;;  %v4294_v18 = vld [vmem:[#allocation6 + $0x300] sm:$0xff] }
 0x4f3   :  { %v2780_v52 = vsel %vm2777_vm8, %v2779_v29, %v2775_v7  ;;  %3005 = vmatpush.msrb.mxu1 %v9017_v15  ;;  %3046 = vmatpush.msrb.mxu3 %v7383_v46  ;;  %v2790_v22 = vsel %vm2789_vm11, %v7597_v45, %v2786_v60  ;;  %vm2792_vm12 = vcmp.eq.f32.partialorder %v2791_v6, 8.507059e+37  ;;  %v9027_v45 = vld [vmem:[#allocation84_spill] sm:$0xff]  ;;  %v9029_v29 = vld [vmem:[#allocation83_spill] sm:$0xff]  ;;  %v4301_v35 = vld [vmem:[#allocation6 + $0x1d8] sm:$0xff] }
 0x4f4   :  { %v2798_v59 = vmul.f32 %v2780_v52, %v9016_v8  ;;  %3178 = vmatpush.msrb.mxu0 %v7392_v43  ;;  %3218 = vmatpush.msra.mxu2 %v7395_v40  ;;  %v2795_v19 = vsel %vm2792_vm12, %v2794_v23, %v2790_v22  ;;  %v4295_v7 = vld [vmem:[#allocation6 + $0x308] sm:$0xff]  ;;  %v4296_v52 = vld [vmem:[#allocation6 + $0x1f0] sm:$0xff]  ;;  %v4297_v8 = vld [vmem:[#allocation6 + $0x1f8] sm:$0xff] }
 0x4f5   :  { %3006 = vmatpush.msrb.mxu1 %v9019_v28  ;;  %v4300_v60 = vld [vmem:[#allocation6 + $0x1d0] sm:$0xff]  ;;  %v4302_v6 = vld [vmem:[#allocation6 + $0x2c0] sm:$0xff]  ;;  %v4305_v23 = vld [vmem:[#allocation6 + $0x1b8] sm:$0xff] }
 0x4f6   :  { %v7638_v53 = vadd.f32 %v2799_v44, %v2798_v59  ;;  %3179 = vmatpush.msrb.mxu0 %v7398_v3  ;;  %3219 = vmatpush.msra.mxu2 %v9020_v17  ;;  %v4280_v3 = vld [vmem:[#allocation6 + $0x3e0] sm:$0xff]  ;;  %v4299_v44 = vld [vmem:[#allocation6 + $0x2e8] sm:$0xff]  ;;  %v4304_v22 = vld [vmem:[#allocation6 + $0x1b0] sm:$0xff] }
 0x4f7   :  { %v4298_v59 = vld [vmem:[#allocation6 + $0x2e0] sm:$0xff]  ;;  %v4303_v17 = vld [vmem:[#allocation6 + $0x2c8] sm:$0xff] }
 0x4f8   :  { %3742 = vtanh.f32 %v7638_v53  ;;  %3180 = vmatpush.msrb.mxu0 %v9021_v58  ;;  %3220 = vmatpush.msra.mxu2 %v9022_v48  ;;  %v4306_v58 = vld [vmem:[#allocation6 + $0x2a0] sm:$0xff]  ;;  %v4307_v48 = vld [vmem:[#allocation6 + $0x2a8] sm:$0xff] }
 0x4fa   :  { %3181 = vmatpush.msrb.mxu0 %v7410_v16  ;;  %3221 = vmatpush.msra.mxu2 %v7413_v36  ;;  %v4282_v36 = vld [vmem:[#allocation6 + $0x3c0] sm:$0xff]  ;;  %v4283_v16 = vld [vmem:[#allocation6 + $0x3c8] sm:$0xff] }
 0x4fc   :  { %3182 = vmatpush.msrb.mxu0 %v7416_v2  ;;  %3222 = vmatpush.msra.mxu2 %v7419_v11  ;;  %v4284_v2 = vld [vmem:[#allocation6 + $0x3a0] sm:$0xff]  ;;  %v4285_v11 = vld [vmem:[#allocation6 + $0x3a8] sm:$0xff] }
 0x4fe   :  { %v3743_v43 = vpop.eup %3742  ;;  %3183 = vmatpush.msrb.mxu0 %v7424_v9  ;;  %3223 = vmatpush.msra.mxu2 %v7427_v5  ;;  %v4286_v9 = vld [vmem:[#allocation6 + $0x380] sm:$0xff]  ;;  %v4287_v5 = vld [vmem:[#allocation6 + $0x388] sm:$0xff] }
 0x4ff   :  { %v2802_v40 = vmul.f32 %v3743_v43, %v2795_v19  ;;  %v4308_v43 = vld [vmem:[#allocation6 + $0x190] sm:$0xff]  ;;  %v4309_v19 = vld [vmem:[#allocation6 + $0x198] sm:$0xff] }
 0x500   :  { %3184 = vmatpush.msrb.mxu0 %v7432_v47  ;;  %3224 = vmatpush.msra.mxu2 %v7435_v20  ;;  %v9023_v47 = vld [vmem:[#allocation79_spill] sm:$0xff]  ;;  %v4288_v20 = vld [vmem:[#allocation6 + $0x360] sm:$0xff] }
 0x501   :  { %2927 = vmatmul.f32.vlgmr.msra.gmra.mxu1 %v2802_v40  ;;  %2967 = vmatmul.f32.vlgmr.msra.gmra.mxu3 %v2802_v40 }
 0x502   :  { %3197 = vmatpush.msra.mxu1 %v4280_v3  ;;  %3237 = vmatpush.msra.mxu3 %v4281_v57  ;;  %v4311_v3 = vld [vmem:[#allocation6 + $0x288] sm:$0xff]  ;;  %v4312_v57 = vld [vmem:[#allocation6 + $0x170] sm:$0xff] }
 0x503   :  { %3185 = vmatpush.msrb.mxu0 %v7440_v21  ;;  %3225 = vmatpush.msra.mxu2 %v7443_v31  ;;  %v4289_v21 = vld [vmem:[#allocation6 + $0x368] sm:$0xff]  ;;  %v9024_v31 = vld [vmem:[#allocation80_spill] sm:$0xff] }
 0x504   :  { %3198 = vmatpush.msra.mxu1 %v4282_v36  ;;  %3238 = vmatpush.msra.mxu3 %v4283_v16  ;;  %v4313_v36 = vld [vmem:[#allocation6 + $0x178] sm:$0xff]  ;;  %v4314_v16 = vld [vmem:[#allocation6 + $0x260] sm:$0xff] }
 0x505   :  { %3186 = vmatpush.msrb.mxu0 %v7448_v10  ;;  %3226 = vmatpush.msra.mxu2 %v7451_v62  ;;  %v9025_v10 = vld [vmem:[#allocation82_spill] sm:$0xff] }
 0x506   :  { %3199 = vmatpush.msra.mxu1 %v4284_v2  ;;  %3239 = vmatpush.msra.mxu3 %v4285_v11  ;;  %v4290_v62 = vld [vmem:[#allocation6 + $0x340] sm:$0xff]  ;;  %v4315_v2 = vld [vmem:[#allocation6 + $0x268] sm:$0xff]  ;;  %v4316_v11 = vld [vmem:[#allocation6 + $0x150] sm:$0xff] }
 0x507   :  { %3187 = vmatpush.msrb.mxu0 %v7456_v38  ;;  %3227 = vmatpush.msra.mxu2 %v7459_v27  ;;  %v4291_v38 = vld [vmem:[#allocation6 + $0x348] sm:$0xff]  ;;  %v9026_v27 = vld [vmem:[#allocation81_spill] sm:$0xff] }
 0x508   :  { %3200 = vmatpush.msra.mxu1 %v4286_v9  ;;  %3240 = vmatpush.msra.mxu3 %v4287_v5  ;;  %v4317_v9 = vld [vmem:[#allocation6 + $0x158] sm:$0xff]  ;;  %v4318_v5 = vld [vmem:[#allocation6 + $0x240] sm:$0xff] }
 0x509   :  { %3007 = vmatmul.f32.vlgmr.msrb.gmra.mxu1 %v2802_v40  ;;  %3047 = vmatmul.f32.vlgmr.msrb.gmra.mxu3 %v2802_v40  ;;  %v4310_v40 = vld [vmem:[#allocation6 + $0x280] sm:$0xff] }
 0x50a   :  { %3188 = vmatpush.msrb.mxu0 %v7464_v13  ;;  %3228 = vmatpush.msra.mxu2 %v9023_v47  ;;  %v4293_v13 = vld [vmem:[#allocation6 + $0x328] sm:$0xff] }
 0x50b   :  { %3201 = vmatpush.msra.mxu1 %v4288_v20  ;;  %3241 = vmatpush.msra.mxu3 %v4289_v21  ;;  %v4319_v47 = vld [vmem:[#allocation6 + $0x248] sm:$0xff]  ;;  %v4320_v20 = vld [vmem:[#allocation6 + $0x130] sm:$0xff]  ;;  %v4321_v21 = vld [vmem:[#allocation6 + $0x138] sm:$0xff] }
 0x50c   :  { %3189 = vmatpush.msrb.mxu0 %v9024_v31  ;;  %3229 = vmatpush.msra.mxu2 %v9025_v10  ;;  %v4322_v31 = vld [vmem:[#allocation6 + $0x220] sm:$0xff]  ;;  %v4323_v10 = vld [vmem:[#allocation6 + $0x228] sm:$0xff] }
 0x50d   :  { %3202 = vmatpush.msra.mxu1 %v4290_v62  ;;  %3242 = vmatpush.msra.mxu3 %v4291_v38  ;;  %v4324_v62 = vld [vmem:[#allocation6 + $0x110] sm:$0xff]  ;;  %v4325_v38 = vld [vmem:[#allocation6 + $0x118] sm:$0xff] }
 0x50e   :  { %3190 = vmatpush.msrb.mxu0 %v9026_v27  ;;  %3230 = vmatpush.msra.mxu2 %v9027_v45  ;;  %v4326_v27 = vld [vmem:[#allocation6 + $0x200] sm:$0xff]  ;;  %v4327_v45 = vld [vmem:[#allocation6 + $0x208] sm:$0xff] }
 0x50f   :  { %3203 = vmatpush.msra.mxu1 %v4292_v14  ;;  %3243 = vmatpush.msra.mxu3 %v4293_v13  ;;  %v4328_v14 = vld [vmem:[#allocation6 + $0xf0] sm:$0xff]  ;;  %v4329_v13 = vld [vmem:[#allocation6 + $0xf8] sm:$0xff] }
 0x510   :  { %3191 = vmatpush.msrb.mxu0 %v9028_v12  ;;  %3231 = vmatpush.msra.mxu2 %v9029_v29  ;;  %v4330_v12 = vld [vmem:[#allocation6 + $0x3f0] sm:$0xff]  ;;  %v4331_v29 = vld [vmem:[#allocation6 + $0x3f8] sm:$0xff] }
 0x511   :  { %3204 = vmatpush.msra.mxu1 %v4294_v18  ;;  %3244 = vmatpush.msra.mxu3 %v4295_v7  ;;  %v4332_v18 = vld [vmem:[#allocation6 + $0xd0] sm:$0xff]  ;;  %v4333_v7 = vld [vmem:[#allocation6 + $0xd8] sm:$0xff] }
 0x512   :  { %3192 = vmatpush.msrb.mxu0 %v9030_v4  ;;  %3232 = vmatpush.msra.mxu2 %v9031_v32  ;;  %v4334_v4 = vld [vmem:[#allocation6 + $0x3d0] sm:$0xff]  ;;  %v4335_v32 = vld [vmem:[#allocation6 + $0x3d8] sm:$0xff] }
 0x513   :  { %3205 = vmatpush.msra.mxu1 %v4298_v59  ;;  %3245 = vmatpush.msra.mxu3 %v4299_v44  ;;  %v4338_v59 = vld [vmem:[#allocation6 + $0x390] sm:$0xff]  ;;  %v4339_v44 = vld [vmem:[#allocation6 + $0x398] sm:$0xff] }
 0x514   :  { %3257 = vmatpush.msra.mxu0 %v4296_v52  ;;  %3297 = vmatpush.msrb.mxu2 %v4297_v8  ;;  %v4336_v52 = vld [vmem:[#allocation6 + $0x3b0] sm:$0xff]  ;;  %v4337_v8 = vld [vmem:[#allocation6 + $0x3b8] sm:$0xff] }
 0x515   :  { %3206 = vmatpush.msra.mxu1 %v4302_v6  ;;  %3246 = vmatpush.msra.mxu3 %v4303_v17  ;;  %v4350_v6 = vld [vmem:[#allocation6 + $0x2d0] sm:$0xff]  ;;  %v4353_v17 = vld [vmem:[#allocation6 + $0x2b8] sm:$0xff] }
 0x516   :  { %3258 = vmatpush.msra.mxu0 %v4300_v60  ;;  %3298 = vmatpush.msrb.mxu2 %v4301_v35  ;;  %v4340_v60 = vld [vmem:[#allocation6 + $0x370] sm:$0xff]  ;;  %v4349_v35 = vld [vmem:[#allocation6 + $0x2f8] sm:$0xff] }
 0x517   :  { %3207 = vmatpush.msra.mxu1 %v4306_v58  ;;  %3247 = vmatpush.msra.mxu3 %v4307_v48  ;;  %v9032_v58 = vld [vmem:[#allocation28_spill] sm:$0xff]  ;;  %v9033_v48 = vld [vmem:[#allocation51_spill] sm:$0xff] }
 0x518   :  { %3259 = vmatpush.msra.mxu0 %v4304_v22  ;;  %3299 = vmatpush.msrb.mxu2 %v4305_v23  ;;  %v4354_v22 = vld [vmem:[#allocation6 + $0x290] sm:$0xff]  ;;  %v4357_v23 = vld [vmem:[#allocation6 + $0x278] sm:$0xff] }
 0x519   :  { %3208 = vmatpush.msra.mxu1 %v4310_v40  ;;  %3248 = vmatpush.msra.mxu3 %v4311_v3  ;;  %v9035_v40 = vld [vmem:[#allocation26_spill] sm:$0xff] }
 0x51a   :  { %3260 = vmatpush.msra.mxu0 %v4308_v43  ;;  %3300 = vmatpush.msrb.mxu2 %v4309_v19  ;;  %v149_v43 = vadd.f32 %v9033_v48, %v9032_v58  ;;  %v9034_v19 = vld [vmem:[#allocation42_spill] sm:$0xff] }
 0x51b   :  { %3209 = vmatpush.msra.mxu1 %v4314_v16  ;;  %3249 = vmatpush.msra.mxu3 %v4315_v2  ;;  %v190_v3 = vadd.f32 %v9035_v40, %v9034_v19 }
 0x51c   :  { %3261 = vmatpush.msra.mxu0 %v4312_v57  ;;  %3301 = vmatpush.msrb.mxu2 %v4313_v36 }
 0x51d   :  { %3210 = vmatpush.msra.mxu1 %v4318_v5  ;;  %3250 = vmatpush.msra.mxu3 %v4319_v47 }
 0x51e   :  { %3262 = vmatpush.msra.mxu0 %v4316_v11  ;;  %3302 = vmatpush.msrb.mxu2 %v4317_v9  ;;  %v9037_v11 = vld [vmem:[#allocation29_spill] sm:$0xff] }
 0x51f   :  { %3211 = vmatpush.msra.mxu1 %v4322_v31  ;;  %3251 = vmatpush.msra.mxu3 %v4323_v10 }
 0x520   :  { %3263 = vmatpush.msra.mxu0 %v4320_v20  ;;  %3303 = vmatpush.msrb.mxu2 %v4321_v21 }
 0x521   :  { %3212 = vmatpush.msra.mxu1 %v4326_v27  ;;  %3252 = vmatpush.msra.mxu3 %v4327_v45 }
 0x522   :  { %3264 = vmatpush.msra.mxu0 %v4324_v62  ;;  %3304 = vmatpush.msrb.mxu2 %v4325_v38  ;;  %v9038_v62 = vld [vmem:[#allocation60_spill] sm:$0xff]  ;;  %v9039_v38 = vld [vmem:[#allocation30_spill] sm:$0xff] }
 0x523   :  { %3277 = vmatpush.msrb.mxu1 %v4330_v12  ;;  %3317 = vmatpush.msrb.mxu3 %v4331_v29  ;;  %v272_v27 = vadd.f32 %v9039_v38, %v9038_v62 }
 0x524   :  { %3265 = vmatpush.msra.mxu0 %v4328_v14  ;;  %3305 = vmatpush.msrb.mxu2 %v4329_v13 }
 0x525   :  { %3278 = vmatpush.msrb.mxu1 %v4334_v4  ;;  %3318 = vmatpush.msrb.mxu3 %v4335_v32 }
 0x526   :  { %3266 = vmatpush.msra.mxu0 %v4332_v18  ;;  %3306 = vmatpush.msrb.mxu2 %v4333_v7 }
 0x527   :  { %3279 = vmatpush.msrb.mxu1 %v4336_v52  ;;  %3319 = vmatpush.msrb.mxu3 %v4337_v8 }
 0x528   :  { %3267 = vmatpush.msra.mxu0 %v7276_v1  ;;  %3307 = vmatpush.msrb.mxu2 %v7279_v63  ;;  %v4341_v1 = vld [vmem:[#allocation6 + $0x378] sm:$0xff]  ;;  %v4342_v63 = vld [vmem:[#allocation6 + $0x350] sm:$0xff] }
 0x529   :  { %3280 = vmatpush.msrb.mxu1 %v4338_v59  ;;  %3320 = vmatpush.msrb.mxu3 %v4339_v44 }
 0x52a   :  { %3268 = vmatpush.msra.mxu0 %v9001_v39  ;;  %3308 = vmatpush.msrb.mxu2 %v9002_v30  ;;  %v4343_v39 = vld [vmem:[#allocation6 + $0x358] sm:$0xff]  ;;  %v4344_v30 = vld [vmem:[#allocation6 + $0x330] sm:$0xff] }
 0x52b   :  { %3281 = vmatpush.msrb.mxu1 %v4340_v60  ;;  %3321 = vmatpush.msrb.mxu3 %v4341_v1 }
 0x52c   :  { %3269 = vmatpush.msra.mxu0 %v7311_v37  ;;  %3309 = vmatpush.msrb.mxu2 %v7314_v0  ;;  %v4345_v37 = vld [vmem:[#allocation6 + $0x338] sm:$0xff]  ;;  %v4346_v0 = vld [vmem:[#allocation6 + $0x310] sm:$0xff] }
 0x52d   :  { %3282 = vmatpush.msrb.mxu1 %v4342_v63  ;;  %3322 = vmatpush.msrb.mxu3 %v4343_v39 }
 0x52e   :  { %3270 = vmatpush.msra.mxu0 %v7325_v26  ;;  %3310 = vmatpush.msrb.mxu2 %v9007_v24  ;;  %v4347_v26 = vld [vmem:[#allocation6 + $0x318] sm:$0xff]  ;;  %v4348_v24 = vld [vmem:[#allocation6 + $0x2f0] sm:$0xff] }
 0x52f   :  { %3283 = vmatpush.msrb.mxu1 %v4344_v30  ;;  %3323 = vmatpush.msrb.mxu3 %v4345_v37 }
 0x530   :  { %3271 = vmatpush.msra.mxu0 %v9010_v54  ;;  %3311 = vmatpush.msrb.mxu2 %v9011_v49  ;;  %v4351_v54 = vld [vmem:[#allocation6 + $0x2d8] sm:$0xff]  ;;  %v4352_v49 = vld [vmem:[#allocation6 + $0x2b0] sm:$0xff] }
 0x531   :  { %3284 = vmatpush.msrb.mxu1 %v4346_v0  ;;  %3324 = vmatpush.msrb.mxu3 %v4347_v26 }
 0x532   :  { %3272 = vmatpush.msra.mxu0 %v9014_v33  ;;  %3312 = vmatpush.msrb.mxu2 %v9015_v41  ;;  %v4355_v33 = vld [vmem:[#allocation6 + $0x298] sm:$0xff]  ;;  %v4356_v41 = vld [vmem:[#allocation6 + $0x270] sm:$0xff] }
 0x533   :  { %3285 = vmatpush.msrb.mxu1 %v4348_v24  ;;  %3325 = vmatpush.msrb.mxu3 %v4349_v35 }
 0x535   :  { %3286 = vmatpush.msrb.mxu1 %v4350_v6  ;;  %3326 = vmatpush.msrb.mxu3 %v4351_v54 }
 0x537   :  { %3287 = vmatpush.msrb.mxu1 %v4352_v49  ;;  %3327 = vmatpush.msrb.mxu3 %v4353_v17 }
 0x539   :  { %3288 = vmatpush.msrb.mxu1 %v4354_v22  ;;  %3328 = vmatpush.msrb.mxu3 %v4355_v33 }
 0x53b   :  { %3289 = vmatpush.msrb.mxu1 %v4356_v41  ;;  %3329 = vmatpush.msrb.mxu3 %v4357_v23 }
 0x53d   :  { %3290 = vmatpush.msrb.mxu1 %v9012_v56  ;;  %3330 = vmatpush.msrb.mxu3 %v9013_v42 }
 0x53f   :  { %3291 = vmatpush.msrb.mxu1 %v9017_v15  ;;  %3331 = vmatpush.msrb.mxu3 %v9018_v51  ;;  %v9036_v15 = vld [vmem:[#allocation48_spill] sm:$0xff] }
 0x540   :  { %v231_v51 = vadd.f32 %v9037_v11, %v9036_v15 }
 0x541   :  { %3292 = vmatpush.msrb.mxu1 %v9019_v28  ;;  %3332 = vmatpush.msrb.mxu3 %v7383_v46 }
 0x54c   :  { %v2824_v57 = vpop.f32.mrf.mxu0  ;;  %v2844_v36 = vpop.f32.mrf.mxu1 }
 0x54d   :  { %v2887_v16 = vadd.f32 %v2824_v57, %v149_v43  ;;  %v2888_v56 = vadd.f32 %v2844_v36, %v190_v3 }
 0x54f   :  { %v3519_v2 = vmul.f32 -1.442695, %v2887_v16  ;;  %v3520_v42 = vmul.f32 -1.442695, %v2888_v56 }
 0x551   :  { %3744 = vpow2.f32 %v3519_v2 }
 0x552   :  { %3746 = vpow2.f32 %v3520_v42 }
 0x553   :  { %v2864_v28 = vpop.f32.mrf.mxu2  ;;  %v2884_v31 = vpop.f32.mrf.mxu3 }
 0x554   :  { %v2889_v9 = vadd.f32 %v2864_v28, %v231_v51  ;;  %v2890_v13 = vadd.f32 %v2884_v31, %v272_v27 }
 0x555   :  { %v2908_v3 = vpop.f32.mrf.mxu0 }
 0x556   :  { %v3521_v46 = vmul.f32 -1.442695, %v2889_v9  ;;  %v2909_v16 = vadd.f32 %v2908_v3, %v8749_v50 }
 0x557   :  { %v3745_v5 = vpop.eup %3744 }
 0x558   :  { %v3747_v47 = vpop.eup %3746  ;;  %v3060_v20 = vadd.f32 1.0, %v3745_v5  ;;  %3748 = vpow2.f32 %v3521_v46 }
 0x559   :  { %v3061_v21 = vadd.f32 1.0, %v3747_v47 }
 0x55a   :  { %3750 = vrcp.f32 %v3060_v20  ;;  %v3074_v32 = vand.u32 2147483648, %v3060_v20  ;;  %v3072_v59 = vand.u32 2147483647, %v3060_v20  ;;  %vm3068_vm15 = vweird.f32 %v3060_v20 }
 0x55b   :  { %3752 = vrcp.f32 %v3061_v21  ;;  %v3089_v52 = vand.u32 2147483648, %v3061_v21  ;;  %v3087_v60 = vand.u32 2147483647, %v3061_v21  ;;  %vm3083_vm0 = vweird.f32 %v3061_v21  ;;  %v2948_v2 = vpop.f32.mrf.mxu2 }
 0x55c   :  { %v3075_v30 = vor.u32 1.1754944e-38, %v3074_v32  ;;  %vm3073_vm3 = vcmp.eq.f32.partialorder %v3072_v59, 8.507059e+37  ;;  %v2949_v11 = vadd.f32 %v2948_v2, %v8605_v55 }
 0x55d   :  { %v3090_v0 = vor.u32 1.1754944e-38, %v3089_v52  ;;  %vm3088_vm4 = vcmp.eq.f32.partialorder %v3087_v60, 8.507059e+37 }
 0x55e   :  { %v3749_v10 = vpop.eup %3748 }
 0x55f   :  { %v3062_v45 = vadd.f32 1.0, %v3749_v10 }
 0x560   :  { %v3751_v14 = vpop.eup %3750 }
 0x561   :  { %v3753_v12 = vpop.eup %3752  ;;  %v3064_v29 = vmul.f32 %v3751_v14, %v3060_v20  ;;  %3754 = vrcp.f32 %v3062_v45  ;;  %vm3069_vm13 = vweird.f32 %v3751_v14  ;;  %v3104_v58 = vand.u32 2147483648, %v3062_v45 }
 0x562   :  { %v3079_v18 = vmul.f32 %v3753_v12, %v3061_v21  ;;  %3756 = vtanh.f32 %v2890_v13  ;;  %vm3084_vm14 = vweird.f32 %v3753_v12  ;;  %vm3070_vm1 = vmor %vm3068_vm15, %vm3069_vm13  ;;  %vm3098_vm6 = vweird.f32 %v3062_v45 }
 0x563   :  { %v3065_v7 = vsub.f32 1.0, %v3064_v29  ;;  %vm3085_vm2 = vmor %vm3083_vm0, %vm3084_vm14  ;;  %v3102_v48 = vand.u32 2147483647, %v3062_v45  ;;  %v3105_v19 = vor.u32 1.1754944e-38, %v3104_v58 }
 0x564   :  { %v3080_v4 = vsub.f32 1.0, %v3079_v18 }
 0x565   :  { %v3066_v8 = vmul.f32 %v3751_v14, %v3065_v7  ;;  %vm3103_vm8 = vcmp.eq.f32.partialorder %v3102_v48, 8.507059e+37 }
 0x566   :  { %v3081_v44 = vmul.f32 %v3753_v12, %v3080_v4 }
 0x567   :  { %v3755_v1 = vpop.eup %3754  ;;  %v3067_v63 = vadd.f32 %v3751_v14, %v3066_v8 }
 0x568   :  { %v3094_v39 = vmul.f32 %v3755_v1, %v3062_v45  ;;  %v3082_v37 = vadd.f32 %v3753_v12, %v3081_v44  ;;  %v3757_v24 = vpop.eup %3756  ;;  %vm3099_vm5 = vweird.f32 %v3755_v1 }
 0x569   :  { %v3071_v26 = vsel %vm3070_vm1, %v3751_v14, %v3067_v63  ;;  %vm3100_vm7 = vmor %vm3098_vm6, %vm3099_vm5 }
 0x56a   :  { %v3095_v35 = vsub.f32 1.0, %v3094_v39  ;;  %v3076_v6 = vsel %vm3073_vm3, %v3075_v30, %v3071_v26  ;;  %v3086_v54 = vsel %vm3085_vm2, %v3753_v12, %v3082_v37 }
 0x56b   :  { %v3091_v49 = vsel %vm3088_vm4, %v3090_v0, %v3086_v54  ;;  %v3110_v17 = vmul.f32 %v3757_v24, %v3076_v6 }
 0x56c   :  { %v3096_v22 = vmul.f32 %v3755_v1, %v3095_v35  ;;  %v3109_v33 = vmul.f32 %v3091_v49, %v7523_v61 }
 0x56d   :  { %v2988_v15 = vpop.f32.mrf.mxu0 }
 0x56e   :  { %v3111_v41 = vadd.f32 %v3110_v17, %v3109_v33  ;;  %v3097_v23 = vadd.f32 %v3755_v1, %v3096_v22  ;;  %v2989_v28 = vadd.f32 %v2988_v15, %v8464_v34  ;;  %v3411_v15 = vld [vmem:[%s7778_s6 + $0x58] sm:$0xff] }
 0x570   :  { %3758 = vtanh.f32 %v3111_v41  ;;  %v3101_v43 = vsel %vm3100_vm7, %v3755_v1, %v3097_v23 }
 0x571   :  { %v3106_v57 = vsel %vm3103_vm8, %v3105_v19, %v3101_v43 }
 0x573   :  { %v3028_v14 = vpop.f32.mrf.mxu2 }
 0x574   :  { %v3029_v18 = vadd.f32 %v3028_v14, %v8995_v25  ;;  %v3405_v14 = vld [vmem:[%s7778_s6 + $0x28] sm:$0xff] }
 0x576   :  { %v3759_v40 = vpop.eup %3758 }
 0x577   :  { %v3113_v36 = vmul.f32 %v3759_v40, %v3106_v57 }
 0x579   :  { %3193 = vmatmul.f32.vlgmr.msrb.gmra.mxu0 %v3113_v36  ;;  %3233 = vmatmul.f32.vlgmr.msra.gmra.mxu2 %v3113_v36 }
 0x57e   :  { %v2928_v61 = vpop.f32.mrf.mxu1 }
 0x57f   :  { %v2929_v56 = vadd.f32 %v2928_v61, %v2909_v16  ;;  %v3414_v61 = vld [vmem:[%s7778_s6 + $0x70] sm:$0xff] }
 0x581   :  { %v3522_v42 = vmul.f32 -1.442695, %v2929_v56  ;;  %3273 = vmatmul.f32.vlgmr.msra.gmra.mxu0 %v3113_v36  ;;  %3313 = vmatmul.f32.vlgmr.msrb.gmra.mxu2 %v3113_v36  ;;  %v3413_v56 = vld [vmem:[%s7778_s6 + $0x68] sm:$0xff] }
 0x583   :  { %3760 = vpow2.f32 %v3522_v42  ;;  %v3412_v42 = vld [vmem:[%s7778_s6 + $0x60] sm:$0xff] }
 0x584   :  { %v2968_v51 = vpop.f32.mrf.mxu3 }
 0x585   :  { %v2969_v9 = vadd.f32 %v2968_v51, %v2949_v11  ;;  %v3410_v11 = vld [vmem:[%s7778_s6 + $0x50] sm:$0xff] }
 0x586   :  { %v3008_v46 = vpop.f32.mrf.mxu1 }
 0x587   :  { %v3523_v5 = vmul.f32 -1.442695, %v2969_v9  ;;  %v3009_v47 = vadd.f32 %v3008_v46, %v2989_v28  ;;  %v3409_v9 = vld [vmem:[%s7778_s6 + $0x48] sm:$0xff] }
 0x589   :  { %v3761_v20 = vpop.eup %3760  ;;  %3762 = vpow2.f32 %v3523_v5  ;;  %v3524_v21 = vmul.f32 -1.442695, %v3009_v47  ;;  %v3408_v47 = vld [vmem:[%s7778_s6 + $0x40] sm:$0xff] }
 0x58a   :  { %v3123_v31 = vadd.f32 1.0, %v3761_v20 }
 0x58b   :  { %3764 = vpow2.f32 %v3524_v21 }
 0x58c   :  { %3766 = vrcp.f32 %v3123_v31  ;;  %v3048_v29 = vpop.f32.mrf.mxu3  ;;  %v3137_v44 = vand.u32 2147483648, %v3123_v31  ;;  %vm3131_vm10 = vweird.f32 %v3123_v31  ;;  %v3135_v63 = vand.u32 2147483647, %v3123_v31 }
 0x58d   :  { %v3049_v32 = vadd.f32 %v3048_v29, %v3029_v18  ;;  %v3403_v29 = vld [vmem:[%s7778_s6 + $0x18] sm:$0xff] }
 0x58e   :  { %v3138_v24 = vor.u32 1.1754944e-38, %v3137_v44  ;;  %vm3136_vm14 = vcmp.eq.f32.partialorder %v3135_v63, 8.507059e+37 }
 0x58f   :  { %v3763_v10 = vpop.eup %3762 }
 0x590   :  { %v3124_v62 = vadd.f32 1.0, %v3763_v10 }
 0x591   :  { %v3765_v38 = vpop.eup %3764 }
 0x592   :  { %v3767_v27 = vpop.eup %3766  ;;  %3768 = vrcp.f32 %v3124_v62  ;;  %v3125_v45 = vadd.f32 1.0, %v3765_v38  ;;  %v3152_v39 = vand.u32 2147483648, %v3124_v62  ;;  %v3150_v0 = vand.u32 2147483647, %v3124_v62 }
 0x593   :  { %v3127_v13 = vmul.f32 %v3767_v27, %v3123_v31  ;;  %vm3132_vm9 = vweird.f32 %v3767_v27  ;;  %vm3146_vm13 = vweird.f32 %v3124_v62 }
 0x594   :  { %3770 = vrcp.f32 %v3125_v45  ;;  %vm3133_vm11 = vmor %vm3131_vm10, %vm3132_vm9  ;;  %v3153_v6 = vor.u32 1.1754944e-38, %v3152_v39  ;;  %vm3151_vm0 = vcmp.eq.f32.partialorder %v3150_v0, 8.507059e+37  ;;  %v3167_v43 = vand.u32 2147483648, %v3125_v45 }
 0x595   :  { %v3128_v12 = vsub.f32 1.0, %v3127_v13  ;;  %3772 = vtanh.f32 %v3049_v32  ;;  %vm3161_vm2 = vweird.f32 %v3125_v45  ;;  %v3165_v19 = vand.u32 2147483647, %v3125_v45  ;;  %v3401_v32 = vld [vmem:[%s7778_s6 + $0x8] sm:$0xff] }
 0x596   :  { %v3168_v3 = vor.u32 1.1754944e-38, %v3167_v43 }
 0x597   :  { %v3129_v7 = vmul.f32 %v3767_v27, %v3128_v12  ;;  %vm3166_vm4 = vcmp.eq.f32.partialorder %v3165_v19, 8.507059e+37 }
 0x598   :  { %v3769_v4 = vpop.eup %3768 }
 0x599   :  { %v3142_v52 = vmul.f32 %v3769_v4, %v3124_v62  ;;  %v3130_v8 = vadd.f32 %v3767_v27, %v3129_v7  ;;  %vm3147_vm12 = vweird.f32 %v3769_v4  ;;  %v3406_v62 = vld [vmem:[%s7778_s6 + $0x30] sm:$0xff] }
 0x59a   :  { %v3771_v59 = vpop.eup %3770  ;;  %vm3148_vm15 = vmor %vm3146_vm13, %vm3147_vm12 }
 0x59b   :  { %v3143_v60 = vsub.f32 1.0, %v3142_v52  ;;  %v3157_v1 = vmul.f32 %v3771_v59, %v3125_v45  ;;  %v3134_v37 = vsel %vm3133_vm11, %v3767_v27, %v3130_v8  ;;  %v3773_v17 = vpop.eup %3772  ;;  %vm3162_vm1 = vweird.f32 %v3771_v59  ;;  %v3400_v52 = vld [vmem:[%s7778_s6] sm:$0xff] }
 0x59c   :  { %v3139_v54 = vsel %vm3136_vm14, %v3138_v24, %v3134_v37  ;;  %vm3163_vm3 = vmor %vm3161_vm2, %vm3162_vm1  ;;  %vm3440_vm1 = vcmask 1024  }
 0x59d   :  { %v3144_v30 = vmul.f32 %v3769_v4, %v3143_v60  ;;  %v3158_v26 = vsub.f32 1.0, %v3157_v1  ;;  %v3173_v23 = vmul.f32 %v3773_v17, %v3139_v54 }
 0x59f   :  { %v3145_v35 = vadd.f32 %v3769_v4, %v3144_v30  ;;  %v3159_v22 = vmul.f32 %v3771_v59, %v3158_v26 }
 0x5a1   :  { %v3149_v49 = vsel %vm3148_vm15, %v3769_v4, %v3145_v35  ;;  %v3160_v48 = vadd.f32 %v3771_v59, %v3159_v22  ;;  %v3402_v4 = vld [vmem:[%s7778_s6 + $0x10] sm:$0xff] }
 0x5a2   :  { %v3154_v33 = vsel %vm3151_vm0, %v3153_v6, %v3149_v49 }
 0x5a3   :  { %v3172_v41 = vmul.f32 %v3154_v33, %v7638_v53  ;;  %v3164_v40 = vsel %vm3163_vm3, %v3771_v59, %v3160_v48  ;;  %v3415_v53 = vld [vmem:[%s7778_s6 + $0x78] sm:$0xff] }
 0x5a4   :  { %v3169_v36 = vsel %vm3166_vm4, %v3168_v3, %v3164_v40  ;;  %3420 = vmatpush.msrb.mxu0 %v3415_v53 }
 0x5a5   :  { %v7713_v58 = vadd.f32 %v3173_v23, %v3172_v41 }
 0x5a6   :  { %3421 = vmatpush.msrb.mxu0 %v3414_v61 }
 0x5a7   :  { %3774 = vtanh.f32 %v7713_v58 }
 0x5a8   :  { %3422 = vmatpush.msrb.mxu0 %v3413_v56 }
 0x5aa   :  { %3423 = vmatpush.msrb.mxu0 %v3412_v42 }
 0x5ac   :  { %3424 = vmatpush.msrb.mxu0 %v3411_v15 }
 0x5ad   :  { %v3775_v57 = vpop.eup %3774 }
 0x5ae   :  { %v3176_v16 = vmul.f32 %v3775_v57, %v3169_v36  ;;  %3425 = vmatpush.msrb.mxu0 %v3410_v11 }
 0x5b0   :  { %3213 = vmatmul.f32.vlgmr.msra.gmra.mxu1 %v3176_v16  ;;  %3253 = vmatmul.f32.vlgmr.msra.gmra.mxu3 %v3176_v16 }
 0x5b1   :  { %3426 = vmatpush.msrb.mxu0 %v3409_v9 }
 0x5b3   :  { %3427 = vmatpush.msrb.mxu0 %v3408_v47 }
 0x5b8   :  { %3293 = vmatmul.f32.vlgmr.msrb.gmra.mxu1 %v3176_v16  ;;  %3333 = vmatmul.f32.vlgmr.msrb.gmra.mxu3 %v3176_v16 }
 0x5f6   :  { %v3194_v2 = vpop.f32.mrf.mxu0 }
 0x5f7   :  { %v3195_v51 = vadd.f32 %v3194_v2, %v8749_v50  ;;  %v3407_v50 = vld [vmem:[%s7778_s6 + $0x38] sm:$0xff] }
 0x5f8   :  { %3428 = vmatpush.msrb.mxu0 %v3407_v50 }
 0x5fa   :  { %3429 = vmatpush.msrb.mxu0 %v3406_v62 }
 0x5fc   :  { %v3234_v5 = vpop.f32.mrf.mxu2  ;;  %3430 = vmatpush.msrb.mxu0 %v3405_v14 }
 0x5fd   :  { %v3235_v31 = vadd.f32 %v3234_v5, %v8605_v55  ;;  %v3404_v55 = vld [vmem:[%s7778_s6 + $0x20] sm:$0xff] }
 0x5fe   :  { %v3274_v21 = vpop.f32.mrf.mxu0  ;;  %3431 = vmatpush.msrb.mxu0 %v3404_v55 }
 0x5ff   :  { %v3275_v38 = vadd.f32 %v3274_v21, %v8464_v34  ;;  %v3535_v21 = vld [vmem:[#allocation3] ss:$0 sm:$0xff] }
 0x600   :  { %3432 = vmatpush.msrb.mxu0 %v3403_v29 }
 0x602   :  { %3433 = vmatpush.msrb.mxu0 %v3402_v4 }
 0x604   :  { %3434 = vmatpush.msrb.mxu0 %v3401_v32  ;;  %v3314_v63 = vpop.f32.mrf.mxu2 }
 0x605   :  { %v3315_v0 = vadd.f32 %v3314_v63, %v8995_v25 }
 0x606   :  { %3435 = vmatpush.msrb.mxu0 %v3400_v52 }
 0x62d   :  { %v3214_v28 = vpop.f32.mrf.mxu1 }
 0x62e   :  { %v3215_v46 = vadd.f32 %v3214_v28, %v3195_v51 }
 0x630   :  { %v3525_v20 = vmul.f32 -1.442695, %v3215_v46 }
 0x632   :  { %3776 = vpow2.f32 %v3525_v20 }
 0x633   :  { %v3254_v10 = vpop.f32.mrf.mxu3 }
 0x634   :  { %v3255_v27 = vadd.f32 %v3254_v10, %v3235_v31 }
 0x635   :  { %v3294_v45 = vpop.f32.mrf.mxu1 }
 0x636   :  { %v3526_v13 = vmul.f32 -1.442695, %v3255_v27  ;;  %v3295_v12 = vadd.f32 %v3294_v45, %v3275_v38 }
 0x638   :  { %v3777_v18 = vpop.eup %3776  ;;  %3778 = vpow2.f32 %v3526_v13  ;;  %v3527_v34 = vmul.f32 -1.442695, %v3295_v12 }
 0x639   :  { %v3346_v7 = vadd.f32 1.0, %v3777_v18 }
 0x63a   :  { %3780 = vpow2.f32 %v3527_v34 }
 0x63b   :  { %3782 = vrcp.f32 %v3346_v7  ;;  %v3334_v37 = vpop.f32.mrf.mxu3  ;;  %v3360_v17 = vand.u32 2147483648, %v3346_v7  ;;  %vm3354_vm6 = vweird.f32 %v3346_v7  ;;  %v3358_v41 = vand.u32 2147483647, %v3346_v7 }
 0x63c   :  { %v3335_v35 = vadd.f32 %v3334_v37, %v3315_v0 }
 0x63d   :  { %v3361_v40 = vor.u32 1.1754944e-38, %v3360_v17  ;;  %vm3359_vm10 = vcmp.eq.f32.partialorder %v3358_v41, 8.507059e+37 }
 0x63e   :  { %v3779_v8 = vpop.eup %3778 }
 0x63f   :  { %v3347_v59 = vadd.f32 1.0, %v3779_v8 }
 0x640   :  { %v3781_v44 = vpop.eup %3780 }
 0x641   :  { %v3783_v60 = vpop.eup %3782  ;;  %3784 = vrcp.f32 %v3347_v59  ;;  %v3348_v1 = vadd.f32 1.0, %v3781_v44  ;;  %v3375_v23 = vand.u32 2147483648, %v3347_v59  ;;  %v3373_v19 = vand.u32 2147483647, %v3347_v59 }
 0x642   :  { %v3350_v39 = vmul.f32 %v3783_v60, %v3346_v7  ;;  %vm3355_vm5 = vweird.f32 %v3783_v60  ;;  %vm3369_vm9 = vweird.f32 %v3347_v59 }
 0x643   :  { %3786 = vrcp.f32 %v3348_v1  ;;  %vm3356_vm7 = vmor %vm3354_vm6, %vm3355_vm5  ;;  %v3376_v57 = vor.u32 1.1754944e-38, %v3375_v23  ;;  %vm3374_vm12 = vcmp.eq.f32.partialorder %v3373_v19, 8.507059e+37  ;;  %v3390_v51 = vand.u32 2147483648, %v3348_v1 }
 0x644   :  { %v3351_v30 = vsub.f32 1.0, %v3350_v39  ;;  %3788 = vtanh.f32 %v3335_v35  ;;  %vm3384_vm14 = vweird.f32 %v3348_v1  ;;  %v3388_v28 = vand.u32 2147483647, %v3348_v1 }
 0x645   :  { %v3391_v46 = vor.u32 1.1754944e-38, %v3390_v51 }
 0x646   :  { %v3352_v26 = vmul.f32 %v3783_v60, %v3351_v30  ;;  %vm3389_vm0 = vcmp.eq.f32.partialorder %v3388_v28, 8.507059e+37 }
 0x647   :  { %v3785_v24 = vpop.eup %3784 }
 0x648   :  { %v3365_v6 = vmul.f32 %v3785_v24, %v3347_v59  ;;  %v3353_v54 = vadd.f32 %v3783_v60, %v3352_v26  ;;  %vm3370_vm8 = vweird.f32 %v3785_v24 }
 0x649   :  { %v3787_v49 = vpop.eup %3786  ;;  %vm3371_vm11 = vmor %vm3369_vm9, %vm3370_vm8 }
 0x64a   :  { %v3366_v22 = vsub.f32 1.0, %v3365_v6  ;;  %v3380_v33 = vmul.f32 %v3787_v49, %v3348_v1  ;;  %v3357_v43 = vsel %vm3356_vm7, %v3783_v60, %v3353_v54  ;;  %v3789_v53 = vpop.eup %3788  ;;  %vm3385_vm13 = vweird.f32 %v3787_v49 }
 0x64b   :  { %v3362_v36 = vsel %vm3359_vm10, %v3361_v40, %v3357_v43  ;;  %vm3386_vm15 = vmor %vm3384_vm14, %vm3385_vm13 }
 0x64c   :  { %v3367_v48 = vmul.f32 %v3785_v24, %v3366_v22  ;;  %v3381_v25 = vsub.f32 1.0, %v3380_v33  ;;  %v3396_v42 = vmul.f32 %v3789_v53, %v3362_v36 }
 0x64e   :  { %v3368_v3 = vadd.f32 %v3785_v24, %v3367_v48  ;;  %v3382_v61 = vmul.f32 %v3787_v49, %v3381_v25 }
 0x650   :  { %v3372_v16 = vsel %vm3371_vm11, %v3785_v24, %v3368_v3  ;;  %v3383_v11 = vadd.f32 %v3787_v49, %v3382_v61 }
 0x651   :  { %v3377_v56 = vsel %vm3374_vm12, %v3376_v57, %v3372_v16 }
 0x652   :  { %v3395_v2 = vmul.f32 %v3377_v56, %v7713_v58  ;;  %v3387_v9 = vsel %vm3386_vm15, %v3787_v49, %v3383_v11 }
 0x653   :  { %v3392_v47 = vsel %vm3389_vm0, %v3391_v46, %v3387_v9 }
 0x654   :  { %v3397_v15 = vadd.f32 %v3396_v42, %v3395_v2 }
 0x656   :  { %3790 = vtanh.f32 %v3397_v15 }
 0x65c   :  { %v3791_v5 = vpop.eup %3790 }
 0x65d   :  { %v3399_v20 = vmul.f32 %v3791_v5, %v3392_v47 }
 0x65f   :  { %3436 = vmatmul.f32.vlgmr.msrb.gmra.mxu0 %v3399_v20 }
 0x6dc   :  { %v3437_v50 = vpop.f32.mrf.mxu0 }
 0x6dd   :  { %v3438_v58 = vadd.f32 %v3535_v21, %v3437_v50 }
 0x6df   :  { %3441 = vst.msk [vmem:[%s7780_s8] sm:$0x3] %vm3440_vm1, %v3438_v58 }
 0x6e0   :  { %3446 = vsyncpa [#allocation5], 1 }
 0x6e1   :  { %3447 = vsyncpa [#allocation7], 1 }

</bundles_post_ra>
